<compile_context>
chip_gen: v7x
topology: tpu7x:2x2x1
jax: 0.10.0
libtpu: 0.0.40
codegen_flags: <defaults>
</compile_context>

<pallas_src>
import functools

import jax
import jax.numpy as jnp
from jax.experimental import pallas as pl
from jax.experimental.pallas import tpu as pltpu

NUM_HIDDENS = 128           # in/out channels of every residual block
NUM_RESIDUAL_HIDDENS = 32   # hidden channels of the 3x3 conv
NUM_RESIDUAL_LAYERS = 3

_WPAD_LEFT = 8              # left pad (multiple of 8) so the scratch center store is aligned


def _residual_stack_kernel(x_ref, w3_ref, w1_ref, o_ref, pad_ref, *, num_layers):
    # x_ref  : (1, H, W, C)      one image, NHWC
    # w3_ref : (L, 9, C, CM)     3x3 conv weights, tap-major (tap = ky*3 + kx), (in, out)
    # w1_ref : (L, CM, C)        1x1 conv weights, (in, out)
    # o_ref  : (1, H, W, C)
    # pad_ref: (H+2, W+16, C)    zero-padded VMEM scratch for shifted (halo) reads
    _, h, w, c = x_ref.shape
    cm = w1_ref.shape[1]

    x = x_ref[0]                                              # (H, W, C) f32

    # Zero the scratch each grid step (cheap; keeps halo rows/cols at 0 and is safe when
    # the batch axis is sharded across TensorCores, each owning its own scratch copy).
    pad_ref[...] = jnp.zeros_like(pad_ref)

    for l in range(num_layers):
        a = jnp.maximum(x, 0.0)                               # ReLU(x)
        # Store activation into the padded scratch (aligned: row offset on the untiled
        # major dim, column offset 8 on the sublane dim).
        pad_ref[1:1 + h, _WPAD_LEFT:_WPAD_LEFT + w, :] = a

        # 3x3 SAME conv (bias-free): sum over 9 taps of shifted-activation @ W3[tap].
        acc = jnp.zeros((h * w, cm), jnp.float32)
        for t in range(9):
            dy = t // 3 - 1
            dx = t % 3 - 1
            shifted = pad_ref[1 + dy:1 + dy + h,
                              _WPAD_LEFT + dx:_WPAD_LEFT + dx + w, :]   # (H, W, C)
            acc = acc + jnp.dot(shifted.reshape(h * w, c), w3_ref[l, t],
                                preferred_element_type=jnp.float32)

        mid = jnp.maximum(acc, 0.0)                           # ReLU, (H*W, CM)
        out = jnp.dot(mid, w1_ref[l],
                      preferred_element_type=jnp.float32)     # 1x1 conv -> (H*W, C)
        x = x + out.reshape(h, w, c)                          # residual add

    o_ref[0] = jnp.maximum(x, 0.0)                            # final ReLU of the stack


def residual_stack(x_nchw, w3, w1):
    """ResidualStack forward.

    x_nchw: (B, C, H, W) float32 (PyTorch layout)
    w3    : (L, 3, 3, C, CM) float32   3x3 conv weights per layer, (ky, kx, in, out)
    w1    : (L, CM, C) float32         1x1 conv weights per layer, (in, out)
    """
    b, c, h, w = x_nchw.shape
    l, kh, kw, c_in, cm = w3.shape
    assert (kh, kw) == (3, 3) and c_in == c and w1.shape == (l, cm, c)
    # Tested envelope: lane-dense channels, sublane-aligned width.
    assert c % 128 == 0 and w % 8 == 0 and h % 8 == 0

    x_nhwc = jnp.transpose(x_nchw, (0, 2, 3, 1))              # NCHW -> NHWC
    w3_taps = w3.reshape(l, 9, c, cm)

    out_nhwc = pl.pallas_call(
        functools.partial(_residual_stack_kernel, num_layers=l),
        out_shape=jax.ShapeDtypeStruct((b, h, w, c), jnp.float32),
        grid=(b,),
        in_specs=[
            pl.BlockSpec((1, h, w, c), lambda i: (i, 0, 0, 0)),      # one image per step
            pl.BlockSpec((l, 9, c, cm), lambda i: (0, 0, 0, 0)),     # weights: resident
            pl.BlockSpec((l, cm, c), lambda i: (0, 0, 0)),           # weights: resident
        ],
        out_specs=pl.BlockSpec((1, h, w, c), lambda i: (i, 0, 0, 0)),
        scratch_shapes=[pltpu.VMEM((h + 2, w + 16, c), jnp.float32)],
        compiler_params=pltpu.CompilerParams(
            dimension_semantics=("parallel",)),                      # shard batch over TCs
    )(x_nhwc, w3_taps, w1)

    return jnp.transpose(out_nhwc, (0, 3, 1, 2))              # back to NCHW


def init_params(key, *, in_channels=NUM_HIDDENS, num_hiddens=NUM_HIDDENS,
                num_residual_layers=NUM_RESIDUAL_LAYERS,
                num_residual_hiddens=NUM_RESIDUAL_HIDDENS):
    # PyTorch Conv2d default init: U(-k, k), k = 1/sqrt(fan_in); both convs are bias-free.
    k3, k1 = jax.random.split(key)
    b3 = 1.0 / (in_channels * 9) ** 0.5
    b1 = 1.0 / float(num_residual_hiddens) ** 0.5
    w3 = jax.random.uniform(
        k3, (num_residual_layers, 3, 3, in_channels, num_residual_hiddens),
        jnp.float32, -b3, b3)
    w1 = jax.random.uniform(
        k1, (num_residual_layers, num_residual_hiddens, num_hiddens),
        jnp.float32, -b1, b1)
    return w3, w1


def residual_stack_reference(x_nchw, w3, w1):
    """Pure-JAX (XLA conv) reference with identical semantics, for validation."""
    x = jnp.transpose(x_nchw, (0, 2, 3, 1))                   # NHWC
    for i in range(w3.shape[0]):
        a = jax.nn.relu(x)
        z = jax.lax.conv_general_dilated(
            a, w3[i], window_strides=(1, 1), padding="SAME",
            dimension_numbers=("NHWC", "HWIO", "NHWC"))
        z = jax.nn.relu(z)
        z = jax.lax.conv_general_dilated(
            z, w1[i][None, None], window_strides=(1, 1), padding="SAME",
            dimension_numbers=("NHWC", "HWIO", "NHWC"))
        x = x + z
    return jnp.transpose(jax.nn.relu(x), (0, 3, 1, 2))


if __name__ == "__main__":
    key = jax.random.PRNGKey(0)
    kx, kp = jax.random.split(key)

    B, C, H, W = 2, NUM_HIDDENS, 16, 16                       # small, faithful shapes
    x = jax.random.normal(kx, (B, C, H, W), jnp.float32)
    w3, w1 = init_params(kp)

    fwd = jax.jit(residual_stack)
    out = fwd(x, w3, w1)
    jax.block_until_ready(out)

    assert out.shape == (B, C, H, W)
    ref = residual_stack_reference(x, w3, w1)
    err = float(jnp.max(jnp.abs(out - ref)))
    assert err < 5e-2, f"max abs error vs reference: {err}"
    print("KERNEL_OK")
</pallas_src>

<mosaic_0001>
module attributes {stable_mosaic.version = 11 : i64} {
  func.func @_residual_stack_kernel(%arg0: i32, %arg1: memref<1x16x16x128xf32, #tpu.memory_space<vmem>>, %arg2: memref<3x9x128x32xf32, #tpu.memory_space<vmem>>, %arg3: memref<3x32x128xf32, #tpu.memory_space<vmem>>, %arg4: memref<1x16x16x128xf32, #tpu.memory_space<vmem>>, %arg5: memref<18x32x128xf32, #tpu.memory_space<vmem>>) attributes {dimension_semantics = [#tpu.dimension_semantics<parallel>], iteration_bounds = array<i64: 2>, scalar_prefetch = 0 : i64, scratch_operands = 1 : i64, tpu.core_type = #tpu.core_type<tc>, window_params = [{transform_indices = @transform_0, window_bounds = array<i64: 1, 16, 16, 128>}, {pipeline_mode = #tpu.pipeline_mode<synchronous>, transform_indices = @transform_1, window_bounds = array<i64: 3, 9, 128, 32>}, {pipeline_mode = #tpu.pipeline_mode<synchronous>, transform_indices = @transform_2, window_bounds = array<i64: 3, 32, 128>}, {transform_indices = @transform_3, window_bounds = array<i64: 1, 16, 16, 128>}]} {
    %c0 = arith.constant 0 : index
    %c0_0 = arith.constant 0 : index
    %c0_1 = arith.constant 0 : index
    %c0_2 = arith.constant 0 : index
    %0 = vector.load %arg1[%c0, %c0_0, %c0_1, %c0_2] : memref<1x16x16x128xf32, #tpu.memory_space<vmem>>, vector<1x16x16x128xf32>
    %1 = vector.shape_cast %0 : vector<1x16x16x128xf32> to vector<16x16x128xf32>
    %cst = arith.constant 0.000000e+00 : f32
    %2 = vector.broadcast %cst : f32 to vector<18x32x128xf32>
    %c0_3 = arith.constant 0 : index
    %c0_4 = arith.constant 0 : index
    %c0_5 = arith.constant 0 : index
    %3 = vector.load %arg5[%c0_3, %c0_4, %c0_5] : memref<18x32x128xf32, #tpu.memory_space<vmem>>, vector<18x32x128xf32>
    tpu.vector_store %arg5[%c0_3, %c0_4, %c0_5], %2 {strides = array<i32>} : memref<18x32x128xf32, #tpu.memory_space<vmem>>, vector<18x32x128xf32>,
    %cst_6 = arith.constant 0.000000e+00 : f32
    %4 = vector.broadcast %cst_6 : f32 to vector<16x16x128xf32>
    %5 = arith.maximumf %1, %4 : vector<16x16x128xf32>
    %c1 = arith.constant 1 : index
    %c8 = arith.constant 8 : index
    %c0_7 = arith.constant 0 : index
    %6 = vector.load %arg5[%c1, %c8, %c0_7] : memref<18x32x128xf32, #tpu.memory_space<vmem>>, vector<16x16x128xf32>
    tpu.vector_store %arg5[%c1, %c8, %c0_7], %5 {strides = array<i32>} : memref<18x32x128xf32, #tpu.memory_space<vmem>>, vector<16x16x128xf32>,
    %cst_8 = arith.constant 0.000000e+00 : f32
    %7 = vector.broadcast %cst_8 : f32 to vector<256x32xf32>
    %c0_9 = arith.constant 0 : index
    %c7 = arith.constant 7 : index
    %c0_10 = arith.constant 0 : index
    %8 = vector.load %arg5[%c0_9, %c7, %c0_10] : memref<18x32x128xf32, #tpu.memory_space<vmem>>, vector<16x16x128xf32>
    %9 = vector.shape_cast %8 : vector<16x16x128xf32> to vector<256x128xf32>
    %c0_11 = arith.constant 0 : index
    %c0_12 = arith.constant 0 : index
    %c0_13 = arith.constant 0 : index
    %c0_14 = arith.constant 0 : index
    %10 = vector.load %arg2[%c0_11, %c0_12, %c0_13, %c0_14] : memref<3x9x128x32xf32, #tpu.memory_space<vmem>>, vector<1x1x128x32xf32>
    %11 = vector.shape_cast %10 : vector<1x1x128x32xf32> to vector<128x32xf32>
    %cst_15 = arith.constant dense<0.000000e+00> : vector<256x32xf32>
    %12 = tpu.matmul %9, %11, %cst_15 {dimension_numbers = #tpu.dot_dimension_numbers<[1], [0], [0], [1], [0, 0, 1, 1], [], []>} : vector<256x128xf32>, vector<128x32xf32>, vector<256x32xf32> -> vector<256x32xf32>
    %13 = arith.addf %7, %12 : vector<256x32xf32>
    %c0_16 = arith.constant 0 : index
    %c8_17 = arith.constant 8 : index
    %c0_18 = arith.constant 0 : index
    %14 = vector.load %arg5[%c0_16, %c8_17, %c0_18] : memref<18x32x128xf32, #tpu.memory_space<vmem>>, vector<16x16x128xf32>
    %15 = vector.shape_cast %14 : vector<16x16x128xf32> to vector<256x128xf32>
    %c0_19 = arith.constant 0 : index
    %c1_20 = arith.constant 1 : index
    %c0_21 = arith.constant 0 : index
    %c0_22 = arith.constant 0 : index
    %16 = vector.load %arg2[%c0_19, %c1_20, %c0_21, %c0_22] : memref<3x9x128x32xf32, #tpu.memory_space<vmem>>, vector<1x1x128x32xf32>
    %17 = vector.shape_cast %16 : vector<1x1x128x32xf32> to vector<128x32xf32>
    %cst_23 = arith.constant dense<0.000000e+00> : vector<256x32xf32>
    %18 = tpu.matmul %15, %17, %cst_23 {dimension_numbers = #tpu.dot_dimension_numbers<[1], [0], [0], [1], [0, 0, 1, 1], [], []>} : vector<256x128xf32>, vector<128x32xf32>, vector<256x32xf32> -> vector<256x32xf32>
    %19 = arith.addf %13, %18 : vector<256x32xf32>
    %c0_24 = arith.constant 0 : index
    %c9 = arith.constant 9 : index
    %c0_25 = arith.constant 0 : index
    %20 = vector.load %arg5[%c0_24, %c9, %c0_25] : memref<18x32x128xf32, #tpu.memory_space<vmem>>, vector<16x16x128xf32>
    %21 = vector.shape_cast %20 : vector<16x16x128xf32> to vector<256x128xf32>
    %c0_26 = arith.constant 0 : index
    %c2 = arith.constant 2 : index
    %c0_27 = arith.constant 0 : index
    %c0_28 = arith.constant 0 : index
    %22 = vector.load %arg2[%c0_26, %c2, %c0_27, %c0_28] : memref<3x9x128x32xf32, #tpu.memory_space<vmem>>, vector<1x1x128x32xf32>
    %23 = vector.shape_cast %22 : vector<1x1x128x32xf32> to vector<128x32xf32>
    %cst_29 = arith.constant dense<0.000000e+00> : vector<256x32xf32>
    %24 = tpu.matmul %21, %23, %cst_29 {dimension_numbers = #tpu.dot_dimension_numbers<[1], [0], [0], [1], [0, 0, 1, 1], [], []>} : vector<256x128xf32>, vector<128x32xf32>, vector<256x32xf32> -> vector<256x32xf32>
    %25 = arith.addf %19, %24 : vector<256x32xf32>
    %c1_30 = arith.constant 1 : index
    %c7_31 = arith.constant 7 : index
    %c0_32 = arith.constant 0 : index
    %26 = vector.load %arg5[%c1_30, %c7_31, %c0_32] : memref<18x32x128xf32, #tpu.memory_space<vmem>>, vector<16x16x128xf32>
    %27 = vector.shape_cast %26 : vector<16x16x128xf32> to vector<256x128xf32>
    %c0_33 = arith.constant 0 : index
    %c3 = arith.constant 3 : index
    %c0_34 = arith.constant 0 : index
    %c0_35 = arith.constant 0 : index
    %28 = vector.load %arg2[%c0_33, %c3, %c0_34, %c0_35] : memref<3x9x128x32xf32, #tpu.memory_space<vmem>>, vector<1x1x128x32xf32>
    %29 = vector.shape_cast %28 : vector<1x1x128x32xf32> to vector<128x32xf32>
    %cst_36 = arith.constant dense<0.000000e+00> : vector<256x32xf32>
    %30 = tpu.matmul %27, %29, %cst_36 {dimension_numbers = #tpu.dot_dimension_numbers<[1], [0], [0], [1], [0, 0, 1, 1], [], []>} : vector<256x128xf32>, vector<128x32xf32>, vector<256x32xf32> -> vector<256x32xf32>
    %31 = arith.addf %25, %30 : vector<256x32xf32>
    %c1_37 = arith.constant 1 : index
    %c8_38 = arith.constant 8 : index
    %c0_39 = arith.constant 0 : index
    %32 = vector.load %arg5[%c1_37, %c8_38, %c0_39] : memref<18x32x128xf32, #tpu.memory_space<vmem>>, vector<16x16x128xf32>
    %33 = vector.shape_cast %32 : vector<16x16x128xf32> to vector<256x128xf32>
    %c0_40 = arith.constant 0 : index
    %c4 = arith.constant 4 : index
    %c0_41 = arith.constant 0 : index
    %c0_42 = arith.constant 0 : index
    %34 = vector.load %arg2[%c0_40, %c4, %c0_41, %c0_42] : memref<3x9x128x32xf32, #tpu.memory_space<vmem>>, vector<1x1x128x32xf32>
    %35 = vector.shape_cast %34 : vector<1x1x128x32xf32> to vector<128x32xf32>
    %cst_43 = arith.constant dense<0.000000e+00> : vector<256x32xf32>
    %36 = tpu.matmul %33, %35, %cst_43 {dimension_numbers = #tpu.dot_dimension_numbers<[1], [0], [0], [1], [0, 0, 1, 1], [], []>} : vector<256x128xf32>, vector<128x32xf32>, vector<256x32xf32> -> vector<256x32xf32>
    %37 = arith.addf %31, %36 : vector<256x32xf32>
    %c1_44 = arith.constant 1 : index
    %c9_45 = arith.constant 9 : index
    %c0_46 = arith.constant 0 : index
    %38 = vector.load %arg5[%c1_44, %c9_45, %c0_46] : memref<18x32x128xf32, #tpu.memory_space<vmem>>, vector<16x16x128xf32>
    %39 = vector.shape_cast %38 : vector<16x16x128xf32> to vector<256x128xf32>
    %c0_47 = arith.constant 0 : index
    %c5 = arith.constant 5 : index
    %c0_48 = arith.constant 0 : index
    %c0_49 = arith.constant 0 : index
    %40 = vector.load %arg2[%c0_47, %c5, %c0_48, %c0_49] : memref<3x9x128x32xf32, #tpu.memory_space<vmem>>, vector<1x1x128x32xf32>
    %41 = vector.shape_cast %40 : vector<1x1x128x32xf32> to vector<128x32xf32>
    %cst_50 = arith.constant dense<0.000000e+00> : vector<256x32xf32>
    %42 = tpu.matmul %39, %41, %cst_50 {dimension_numbers = #tpu.dot_dimension_numbers<[1], [0], [0], [1], [0, 0, 1, 1], [], []>} : vector<256x128xf32>, vector<128x32xf32>, vector<256x32xf32> -> vector<256x32xf32>
    %43 = arith.addf %37, %42 : vector<256x32xf32>
    %c2_51 = arith.constant 2 : index
    %c7_52 = arith.constant 7 : index
    %c0_53 = arith.constant 0 : index
    %44 = vector.load %arg5[%c2_51, %c7_52, %c0_53] : memref<18x32x128xf32, #tpu.memory_space<vmem>>, vector<16x16x128xf32>
    %45 = vector.shape_cast %44 : vector<16x16x128xf32> to vector<256x128xf32>
    %c0_54 = arith.constant 0 : index
    %c6 = arith.constant 6 : index
    %c0_55 = arith.constant 0 : index
    %c0_56 = arith.constant 0 : index
    %46 = vector.load %arg2[%c0_54, %c6, %c0_55, %c0_56] : memref<3x9x128x32xf32, #tpu.memory_space<vmem>>, vector<1x1x128x32xf32>
    %47 = vector.shape_cast %46 : vector<1x1x128x32xf32> to vector<128x32xf32>
    %cst_57 = arith.constant dense<0.000000e+00> : vector<256x32xf32>
    %48 = tpu.matmul %45, %47, %cst_57 {dimension_numbers = #tpu.dot_dimension_numbers<[1], [0], [0], [1], [0, 0, 1, 1], [], []>} : vector<256x128xf32>, vector<128x32xf32>, vector<256x32xf32> -> vector<256x32xf32>
    %49 = arith.addf %43, %48 : vector<256x32xf32>
    %c2_58 = arith.constant 2 : index
    %c8_59 = arith.constant 8 : index
    %c0_60 = arith.constant 0 : index
    %50 = vector.load %arg5[%c2_58, %c8_59, %c0_60] : memref<18x32x128xf32, #tpu.memory_space<vmem>>, vector<16x16x128xf32>
    %51 = vector.shape_cast %50 : vector<16x16x128xf32> to vector<256x128xf32>
    %c0_61 = arith.constant 0 : index
    %c7_62 = arith.constant 7 : index
    %c0_63 = arith.constant 0 : index
    %c0_64 = arith.constant 0 : index
    %52 = vector.load %arg2[%c0_61, %c7_62, %c0_63, %c0_64] : memref<3x9x128x32xf32, #tpu.memory_space<vmem>>, vector<1x1x128x32xf32>
    %53 = vector.shape_cast %52 : vector<1x1x128x32xf32> to vector<128x32xf32>
    %cst_65 = arith.constant dense<0.000000e+00> : vector<256x32xf32>
    %54 = tpu.matmul %51, %53, %cst_65 {dimension_numbers = #tpu.dot_dimension_numbers<[1], [0], [0], [1], [0, 0, 1, 1], [], []>} : vector<256x128xf32>, vector<128x32xf32>, vector<256x32xf32> -> vector<256x32xf32>
    %55 = arith.addf %49, %54 : vector<256x32xf32>
    %c2_66 = arith.constant 2 : index
    %c9_67 = arith.constant 9 : index
    %c0_68 = arith.constant 0 : index
    %56 = vector.load %arg5[%c2_66, %c9_67, %c0_68] : memref<18x32x128xf32, #tpu.memory_space<vmem>>, vector<16x16x128xf32>
    %57 = vector.shape_cast %56 : vector<16x16x128xf32> to vector<256x128xf32>
    %c0_69 = arith.constant 0 : index
    %c8_70 = arith.constant 8 : index
    %c0_71 = arith.constant 0 : index
    %c0_72 = arith.constant 0 : index
    %58 = vector.load %arg2[%c0_69, %c8_70, %c0_71, %c0_72] : memref<3x9x128x32xf32, #tpu.memory_space<vmem>>, vector<1x1x128x32xf32>
    %59 = vector.shape_cast %58 : vector<1x1x128x32xf32> to vector<128x32xf32>
    %cst_73 = arith.constant dense<0.000000e+00> : vector<256x32xf32>
    %60 = tpu.matmul %57, %59, %cst_73 {dimension_numbers = #tpu.dot_dimension_numbers<[1], [0], [0], [1], [0, 0, 1, 1], [], []>} : vector<256x128xf32>, vector<128x32xf32>, vector<256x32xf32> -> vector<256x32xf32>
    %61 = arith.addf %55, %60 : vector<256x32xf32>
    %cst_74 = arith.constant 0.000000e+00 : f32
    %62 = vector.broadcast %cst_74 : f32 to vector<256x32xf32>
    %63 = arith.maximumf %61, %62 : vector<256x32xf32>
    %c0_75 = arith.constant 0 : index
    %c0_76 = arith.constant 0 : index
    %c0_77 = arith.constant 0 : index
    %64 = vector.load %arg3[%c0_75, %c0_76, %c0_77] : memref<3x32x128xf32, #tpu.memory_space<vmem>>, vector<1x32x128xf32>
    %65 = vector.shape_cast %64 : vector<1x32x128xf32> to vector<32x128xf32>
    %cst_78 = arith.constant dense<0.000000e+00> : vector<256x128xf32>
    %66 = tpu.matmul %63, %65, %cst_78 {dimension_numbers = #tpu.dot_dimension_numbers<[1], [0], [0], [1], [0, 0, 1, 1], [], []>} : vector<256x32xf32>, vector<32x128xf32>, vector<256x128xf32> -> vector<256x128xf32>
    %67 = vector.shape_cast %66 : vector<256x128xf32> to vector<16x16x128xf32>
    %68 = arith.addf %1, %67 : vector<16x16x128xf32>
    %cst_79 = arith.constant 0.000000e+00 : f32
    %69 = vector.broadcast %cst_79 : f32 to vector<16x16x128xf32>
    %70 = arith.maximumf %68, %69 : vector<16x16x128xf32>
    %c1_80 = arith.constant 1 : index
    %c8_81 = arith.constant 8 : index
    %c0_82 = arith.constant 0 : index
    %71 = vector.load %arg5[%c1_80, %c8_81, %c0_82] : memref<18x32x128xf32, #tpu.memory_space<vmem>>, vector<16x16x128xf32>
    tpu.vector_store %arg5[%c1_80, %c8_81, %c0_82], %70 {strides = array<i32>} : memref<18x32x128xf32, #tpu.memory_space<vmem>>, vector<16x16x128xf32>,
    %cst_83 = arith.constant 0.000000e+00 : f32
    %72 = vector.broadcast %cst_83 : f32 to vector<256x32xf32>
    %c0_84 = arith.constant 0 : index
    %c7_85 = arith.constant 7 : index
    %c0_86 = arith.constant 0 : index
    %73 = vector.load %arg5[%c0_84, %c7_85, %c0_86] : memref<18x32x128xf32, #tpu.memory_space<vmem>>, vector<16x16x128xf32>
    %74 = vector.shape_cast %73 : vector<16x16x128xf32> to vector<256x128xf32>
    %c1_87 = arith.constant 1 : index
    %c0_88 = arith.constant 0 : index
    %c0_89 = arith.constant 0 : index
    %c0_90 = arith.constant 0 : index
    %75 = vector.load %arg2[%c1_87, %c0_88, %c0_89, %c0_90] : memref<3x9x128x32xf32, #tpu.memory_space<vmem>>, vector<1x1x128x32xf32>
    %76 = vector.shape_cast %75 : vector<1x1x128x32xf32> to vector<128x32xf32>
    %cst_91 = arith.constant dense<0.000000e+00> : vector<256x32xf32>
    %77 = tpu.matmul %74, %76, %cst_91 {dimension_numbers = #tpu.dot_dimension_numbers<[1], [0], [0], [1], [0, 0, 1, 1], [], []>} : vector<256x128xf32>, vector<128x32xf32>, vector<256x32xf32> -> vector<256x32xf32>
    %78 = arith.addf %72, %77 : vector<256x32xf32>
    %c0_92 = arith.constant 0 : index
    %c8_93 = arith.constant 8 : index
    %c0_94 = arith.constant 0 : index
    %79 = vector.load %arg5[%c0_92, %c8_93, %c0_94] : memref<18x32x128xf32, #tpu.memory_space<vmem>>, vector<16x16x128xf32>
    %80 = vector.shape_cast %79 : vector<16x16x128xf32> to vector<256x128xf32>
    %c1_95 = arith.constant 1 : index
    %c1_96 = arith.constant 1 : index
    %c0_97 = arith.constant 0 : index
    %c0_98 = arith.constant 0 : index
    %81 = vector.load %arg2[%c1_95, %c1_96, %c0_97, %c0_98] : memref<3x9x128x32xf32, #tpu.memory_space<vmem>>, vector<1x1x128x32xf32>
    %82 = vector.shape_cast %81 : vector<1x1x128x32xf32> to vector<128x32xf32>
    %cst_99 = arith.constant dense<0.000000e+00> : vector<256x32xf32>
    %83 = tpu.matmul %80, %82, %cst_99 {dimension_numbers = #tpu.dot_dimension_numbers<[1], [0], [0], [1], [0, 0, 1, 1], [], []>} : vector<256x128xf32>, vector<128x32xf32>, vector<256x32xf32> -> vector<256x32xf32>
    %84 = arith.addf %78, %83 : vector<256x32xf32>
    %c0_100 = arith.constant 0 : index
    %c9_101 = arith.constant 9 : index
    %c0_102 = arith.constant 0 : index
    %85 = vector.load %arg5[%c0_100, %c9_101, %c0_102] : memref<18x32x128xf32, #tpu.memory_space<vmem>>, vector<16x16x128xf32>
    %86 = vector.shape_cast %85 : vector<16x16x128xf32> to vector<256x128xf32>
    %c1_103 = arith.constant 1 : index
    %c2_104 = arith.constant 2 : index
    %c0_105 = arith.constant 0 : index
    %c0_106 = arith.constant 0 : index
    %87 = vector.load %arg2[%c1_103, %c2_104, %c0_105, %c0_106] : memref<3x9x128x32xf32, #tpu.memory_space<vmem>>, vector<1x1x128x32xf32>
    %88 = vector.shape_cast %87 : vector<1x1x128x32xf32> to vector<128x32xf32>
    %cst_107 = arith.constant dense<0.000000e+00> : vector<256x32xf32>
    %89 = tpu.matmul %86, %88, %cst_107 {dimension_numbers = #tpu.dot_dimension_numbers<[1], [0], [0], [1], [0, 0, 1, 1], [], []>} : vector<256x128xf32>, vector<128x32xf32>, vector<256x32xf32> -> vector<256x32xf32>
    %90 = arith.addf %84, %89 : vector<256x32xf32>
    %c1_108 = arith.constant 1 : index
    %c7_109 = arith.constant 7 : index
    %c0_110 = arith.constant 0 : index
    %91 = vector.load %arg5[%c1_108, %c7_109, %c0_110] : memref<18x32x128xf32, #tpu.memory_space<vmem>>, vector<16x16x128xf32>
    %92 = vector.shape_cast %91 : vector<16x16x128xf32> to vector<256x128xf32>
    %c1_111 = arith.constant 1 : index
    %c3_112 = arith.constant 3 : index
    %c0_113 = arith.constant 0 : index
    %c0_114 = arith.constant 0 : index
    %93 = vector.load %arg2[%c1_111, %c3_112, %c0_113, %c0_114] : memref<3x9x128x32xf32, #tpu.memory_space<vmem>>, vector<1x1x128x32xf32>
    %94 = vector.shape_cast %93 : vector<1x1x128x32xf32> to vector<128x32xf32>
    %cst_115 = arith.constant dense<0.000000e+00> : vector<256x32xf32>
    %95 = tpu.matmul %92, %94, %cst_115 {dimension_numbers = #tpu.dot_dimension_numbers<[1], [0], [0], [1], [0, 0, 1, 1], [], []>} : vector<256x128xf32>, vector<128x32xf32>, vector<256x32xf32> -> vector<256x32xf32>
    %96 = arith.addf %90, %95 : vector<256x32xf32>
    %c1_116 = arith.constant 1 : index
    %c8_117 = arith.constant 8 : index
    %c0_118 = arith.constant 0 : index
    %97 = vector.load %arg5[%c1_116, %c8_117, %c0_118] : memref<18x32x128xf32, #tpu.memory_space<vmem>>, vector<16x16x128xf32>
    %98 = vector.shape_cast %97 : vector<16x16x128xf32> to vector<256x128xf32>
    %c1_119 = arith.constant 1 : index
    %c4_120 = arith.constant 4 : index
    %c0_121 = arith.constant 0 : index
    %c0_122 = arith.constant 0 : index
    %99 = vector.load %arg2[%c1_119, %c4_120, %c0_121, %c0_122] : memref<3x9x128x32xf32, #tpu.memory_space<vmem>>, vector<1x1x128x32xf32>
    %100 = vector.shape_cast %99 : vector<1x1x128x32xf32> to vector<128x32xf32>
    %cst_123 = arith.constant dense<0.000000e+00> : vector<256x32xf32>
    %101 = tpu.matmul %98, %100, %cst_123 {dimension_numbers = #tpu.dot_dimension_numbers<[1], [0], [0], [1], [0, 0, 1, 1], [], []>} : vector<256x128xf32>, vector<128x32xf32>, vector<256x32xf32> -> vector<256x32xf32>
    %102 = arith.addf %96, %101 : vector<256x32xf32>
    %c1_124 = arith.constant 1 : index
    %c9_125 = arith.constant 9 : index
    %c0_126 = arith.constant 0 : index
    %103 = vector.load %arg5[%c1_124, %c9_125, %c0_126] : memref<18x32x128xf32, #tpu.memory_space<vmem>>, vector<16x16x128xf32>
    %104 = vector.shape_cast %103 : vector<16x16x128xf32> to vector<256x128xf32>
    %c1_127 = arith.constant 1 : index
    %c5_128 = arith.constant 5 : index
    %c0_129 = arith.constant 0 : index
    %c0_130 = arith.constant 0 : index
    %105 = vector.load %arg2[%c1_127, %c5_128, %c0_129, %c0_130] : memref<3x9x128x32xf32, #tpu.memory_space<vmem>>, vector<1x1x128x32xf32>
    %106 = vector.shape_cast %105 : vector<1x1x128x32xf32> to vector<128x32xf32>
    %cst_131 = arith.constant dense<0.000000e+00> : vector<256x32xf32>
    %107 = tpu.matmul %104, %106, %cst_131 {dimension_numbers = #tpu.dot_dimension_numbers<[1], [0], [0], [1], [0, 0, 1, 1], [], []>} : vector<256x128xf32>, vector<128x32xf32>, vector<256x32xf32> -> vector<256x32xf32>
    %108 = arith.addf %102, %107 : vector<256x32xf32>
    %c2_132 = arith.constant 2 : index
    %c7_133 = arith.constant 7 : index
    %c0_134 = arith.constant 0 : index
    %109 = vector.load %arg5[%c2_132, %c7_133, %c0_134] : memref<18x32x128xf32, #tpu.memory_space<vmem>>, vector<16x16x128xf32>
    %110 = vector.shape_cast %109 : vector<16x16x128xf32> to vector<256x128xf32>
    %c1_135 = arith.constant 1 : index
    %c6_136 = arith.constant 6 : index
    %c0_137 = arith.constant 0 : index
    %c0_138 = arith.constant 0 : index
    %111 = vector.load %arg2[%c1_135, %c6_136, %c0_137, %c0_138] : memref<3x9x128x32xf32, #tpu.memory_space<vmem>>, vector<1x1x128x32xf32>
    %112 = vector.shape_cast %111 : vector<1x1x128x32xf32> to vector<128x32xf32>
    %cst_139 = arith.constant dense<0.000000e+00> : vector<256x32xf32>
    %113 = tpu.matmul %110, %112, %cst_139 {dimension_numbers = #tpu.dot_dimension_numbers<[1], [0], [0], [1], [0, 0, 1, 1], [], []>} : vector<256x128xf32>, vector<128x32xf32>, vector<256x32xf32> -> vector<256x32xf32>
    %114 = arith.addf %108, %113 : vector<256x32xf32>
    %c2_140 = arith.constant 2 : index
    %c8_141 = arith.constant 8 : index
    %c0_142 = arith.constant 0 : index
    %115 = vector.load %arg5[%c2_140, %c8_141, %c0_142] : memref<18x32x128xf32, #tpu.memory_space<vmem>>, vector<16x16x128xf32>
    %116 = vector.shape_cast %115 : vector<16x16x128xf32> to vector<256x128xf32>
    %c1_143 = arith.constant 1 : index
    %c7_144 = arith.constant 7 : index
    %c0_145 = arith.constant 0 : index
    %c0_146 = arith.constant 0 : index
    %117 = vector.load %arg2[%c1_143, %c7_144, %c0_145, %c0_146] : memref<3x9x128x32xf32, #tpu.memory_space<vmem>>, vector<1x1x128x32xf32>
    %118 = vector.shape_cast %117 : vector<1x1x128x32xf32> to vector<128x32xf32>
    %cst_147 = arith.constant dense<0.000000e+00> : vector<256x32xf32>
    %119 = tpu.matmul %116, %118, %cst_147 {dimension_numbers = #tpu.dot_dimension_numbers<[1], [0], [0], [1], [0, 0, 1, 1], [], []>} : vector<256x128xf32>, vector<128x32xf32>, vector<256x32xf32> -> vector<256x32xf32>
    %120 = arith.addf %114, %119 : vector<256x32xf32>
    %c2_148 = arith.constant 2 : index
    %c9_149 = arith.constant 9 : index
    %c0_150 = arith.constant 0 : index
    %121 = vector.load %arg5[%c2_148, %c9_149, %c0_150] : memref<18x32x128xf32, #tpu.memory_space<vmem>>, vector<16x16x128xf32>
    %122 = vector.shape_cast %121 : vector<16x16x128xf32> to vector<256x128xf32>
    %c1_151 = arith.constant 1 : index
    %c8_152 = arith.constant 8 : index
    %c0_153 = arith.constant 0 : index
    %c0_154 = arith.constant 0 : index
    %123 = vector.load %arg2[%c1_151, %c8_152, %c0_153, %c0_154] : memref<3x9x128x32xf32, #tpu.memory_space<vmem>>, vector<1x1x128x32xf32>
    %124 = vector.shape_cast %123 : vector<1x1x128x32xf32> to vector<128x32xf32>
    %cst_155 = arith.constant dense<0.000000e+00> : vector<256x32xf32>
    %125 = tpu.matmul %122, %124, %cst_155 {dimension_numbers = #tpu.dot_dimension_numbers<[1], [0], [0], [1], [0, 0, 1, 1], [], []>} : vector<256x128xf32>, vector<128x32xf32>, vector<256x32xf32> -> vector<256x32xf32>
    %126 = arith.addf %120, %125 : vector<256x32xf32>
    %cst_156 = arith.constant 0.000000e+00 : f32
    %127 = vector.broadcast %cst_156 : f32 to vector<256x32xf32>
    %128 = arith.maximumf %126, %127 : vector<256x32xf32>
    %c1_157 = arith.constant 1 : index
    %c0_158 = arith.constant 0 : index
    %c0_159 = arith.constant 0 : index
    %129 = vector.load %arg3[%c1_157, %c0_158, %c0_159] : memref<3x32x128xf32, #tpu.memory_space<vmem>>, vector<1x32x128xf32>
    %130 = vector.shape_cast %129 : vector<1x32x128xf32> to vector<32x128xf32>
    %cst_160 = arith.constant dense<0.000000e+00> : vector<256x128xf32>
    %131 = tpu.matmul %128, %130, %cst_160 {dimension_numbers = #tpu.dot_dimension_numbers<[1], [0], [0], [1], [0, 0, 1, 1], [], []>} : vector<256x32xf32>, vector<32x128xf32>, vector<256x128xf32> -> vector<256x128xf32>
    %132 = vector.shape_cast %131 : vector<256x128xf32> to vector<16x16x128xf32>
    %133 = arith.addf %68, %132 : vector<16x16x128xf32>
    %cst_161 = arith.constant 0.000000e+00 : f32
    %134 = vector.broadcast %cst_161 : f32 to vector<16x16x128xf32>
    %135 = arith.maximumf %133, %134 : vector<16x16x128xf32>
    %c1_162 = arith.constant 1 : index
    %c8_163 = arith.constant 8 : index
    %c0_164 = arith.constant 0 : index
    %136 = vector.load %arg5[%c1_162, %c8_163, %c0_164] : memref<18x32x128xf32, #tpu.memory_space<vmem>>, vector<16x16x128xf32>
    tpu.vector_store %arg5[%c1_162, %c8_163, %c0_164], %135 {strides = array<i32>} : memref<18x32x128xf32, #tpu.memory_space<vmem>>, vector<16x16x128xf32>,
    %cst_165 = arith.constant 0.000000e+00 : f32
    %137 = vector.broadcast %cst_165 : f32 to vector<256x32xf32>
    %c0_166 = arith.constant 0 : index
    %c7_167 = arith.constant 7 : index
    %c0_168 = arith.constant 0 : index
    %138 = vector.load %arg5[%c0_166, %c7_167, %c0_168] : memref<18x32x128xf32, #tpu.memory_space<vmem>>, vector<16x16x128xf32>
    %139 = vector.shape_cast %138 : vector<16x16x128xf32> to vector<256x128xf32>
    %c2_169 = arith.constant 2 : index
    %c0_170 = arith.constant 0 : index
    %c0_171 = arith.constant 0 : index
    %c0_172 = arith.constant 0 : index
    %140 = vector.load %arg2[%c2_169, %c0_170, %c0_171, %c0_172] : memref<3x9x128x32xf32, #tpu.memory_space<vmem>>, vector<1x1x128x32xf32>
    %141 = vector.shape_cast %140 : vector<1x1x128x32xf32> to vector<128x32xf32>
    %cst_173 = arith.constant dense<0.000000e+00> : vector<256x32xf32>
    %142 = tpu.matmul %139, %141, %cst_173 {dimension_numbers = #tpu.dot_dimension_numbers<[1], [0], [0], [1], [0, 0, 1, 1], [], []>} : vector<256x128xf32>, vector<128x32xf32>, vector<256x32xf32> -> vector<256x32xf32>
    %143 = arith.addf %137, %142 : vector<256x32xf32>
    %c0_174 = arith.constant 0 : index
    %c8_175 = arith.constant 8 : index
    %c0_176 = arith.constant 0 : index
    %144 = vector.load %arg5[%c0_174, %c8_175, %c0_176] : memref<18x32x128xf32, #tpu.memory_space<vmem>>, vector<16x16x128xf32>
    %145 = vector.shape_cast %144 : vector<16x16x128xf32> to vector<256x128xf32>
    %c2_177 = arith.constant 2 : index
    %c1_178 = arith.constant 1 : index
    %c0_179 = arith.constant 0 : index
    %c0_180 = arith.constant 0 : index
    %146 = vector.load %arg2[%c2_177, %c1_178, %c0_179, %c0_180] : memref<3x9x128x32xf32, #tpu.memory_space<vmem>>, vector<1x1x128x32xf32>
    %147 = vector.shape_cast %146 : vector<1x1x128x32xf32> to vector<128x32xf32>
    %cst_181 = arith.constant dense<0.000000e+00> : vector<256x32xf32>
    %148 = tpu.matmul %145, %147, %cst_181 {dimension_numbers = #tpu.dot_dimension_numbers<[1], [0], [0], [1], [0, 0, 1, 1], [], []>} : vector<256x128xf32>, vector<128x32xf32>, vector<256x32xf32> -> vector<256x32xf32>
    %149 = arith.addf %143, %148 : vector<256x32xf32>
    %c0_182 = arith.constant 0 : index
    %c9_183 = arith.constant 9 : index
    %c0_184 = arith.constant 0 : index
    %150 = vector.load %arg5[%c0_182, %c9_183, %c0_184] : memref<18x32x128xf32, #tpu.memory_space<vmem>>, vector<16x16x128xf32>
    %151 = vector.shape_cast %150 : vector<16x16x128xf32> to vector<256x128xf32>
    %c2_185 = arith.constant 2 : index
    %c2_186 = arith.constant 2 : index
    %c0_187 = arith.constant 0 : index
    %c0_188 = arith.constant 0 : index
    %152 = vector.load %arg2[%c2_185, %c2_186, %c0_187, %c0_188] : memref<3x9x128x32xf32, #tpu.memory_space<vmem>>, vector<1x1x128x32xf32>
    %153 = vector.shape_cast %152 : vector<1x1x128x32xf32> to vector<128x32xf32>
    %cst_189 = arith.constant dense<0.000000e+00> : vector<256x32xf32>
    %154 = tpu.matmul %151, %153, %cst_189 {dimension_numbers = #tpu.dot_dimension_numbers<[1], [0], [0], [1], [0, 0, 1, 1], [], []>} : vector<256x128xf32>, vector<128x32xf32>, vector<256x32xf32> -> vector<256x32xf32>
    %155 = arith.addf %149, %154 : vector<256x32xf32>
    %c1_190 = arith.constant 1 : index
    %c7_191 = arith.constant 7 : index
    %c0_192 = arith.constant 0 : index
    %156 = vector.load %arg5[%c1_190, %c7_191, %c0_192] : memref<18x32x128xf32, #tpu.memory_space<vmem>>, vector<16x16x128xf32>
    %157 = vector.shape_cast %156 : vector<16x16x128xf32> to vector<256x128xf32>
    %c2_193 = arith.constant 2 : index
    %c3_194 = arith.constant 3 : index
    %c0_195 = arith.constant 0 : index
    %c0_196 = arith.constant 0 : index
    %158 = vector.load %arg2[%c2_193, %c3_194, %c0_195, %c0_196] : memref<3x9x128x32xf32, #tpu.memory_space<vmem>>, vector<1x1x128x32xf32>
    %159 = vector.shape_cast %158 : vector<1x1x128x32xf32> to vector<128x32xf32>
    %cst_197 = arith.constant dense<0.000000e+00> : vector<256x32xf32>
    %160 = tpu.matmul %157, %159, %cst_197 {dimension_numbers = #tpu.dot_dimension_numbers<[1], [0], [0], [1], [0, 0, 1, 1], [], []>} : vector<256x128xf32>, vector<128x32xf32>, vector<256x32xf32> -> vector<256x32xf32>
    %161 = arith.addf %155, %160 : vector<256x32xf32>
    %c1_198 = arith.constant 1 : index
    %c8_199 = arith.constant 8 : index
    %c0_200 = arith.constant 0 : index
    %162 = vector.load %arg5[%c1_198, %c8_199, %c0_200] : memref<18x32x128xf32, #tpu.memory_space<vmem>>, vector<16x16x128xf32>
    %163 = vector.shape_cast %162 : vector<16x16x128xf32> to vector<256x128xf32>
    %c2_201 = arith.constant 2 : index
    %c4_202 = arith.constant 4 : index
    %c0_203 = arith.constant 0 : index
    %c0_204 = arith.constant 0 : index
    %164 = vector.load %arg2[%c2_201, %c4_202, %c0_203, %c0_204] : memref<3x9x128x32xf32, #tpu.memory_space<vmem>>, vector<1x1x128x32xf32>
    %165 = vector.shape_cast %164 : vector<1x1x128x32xf32> to vector<128x32xf32>
    %cst_205 = arith.constant dense<0.000000e+00> : vector<256x32xf32>
    %166 = tpu.matmul %163, %165, %cst_205 {dimension_numbers = #tpu.dot_dimension_numbers<[1], [0], [0], [1], [0, 0, 1, 1], [], []>} : vector<256x128xf32>, vector<128x32xf32>, vector<256x32xf32> -> vector<256x32xf32>
    %167 = arith.addf %161, %166 : vector<256x32xf32>
    %c1_206 = arith.constant 1 : index
    %c9_207 = arith.constant 9 : index
    %c0_208 = arith.constant 0 : index
    %168 = vector.load %arg5[%c1_206, %c9_207, %c0_208] : memref<18x32x128xf32, #tpu.memory_space<vmem>>, vector<16x16x128xf32>
    %169 = vector.shape_cast %168 : vector<16x16x128xf32> to vector<256x128xf32>
    %c2_209 = arith.constant 2 : index
    %c5_210 = arith.constant 5 : index
    %c0_211 = arith.constant 0 : index
    %c0_212 = arith.constant 0 : index
    %170 = vector.load %arg2[%c2_209, %c5_210, %c0_211, %c0_212] : memref<3x9x128x32xf32, #tpu.memory_space<vmem>>, vector<1x1x128x32xf32>
    %171 = vector.shape_cast %170 : vector<1x1x128x32xf32> to vector<128x32xf32>
    %cst_213 = arith.constant dense<0.000000e+00> : vector<256x32xf32>
    %172 = tpu.matmul %169, %171, %cst_213 {dimension_numbers = #tpu.dot_dimension_numbers<[1], [0], [0], [1], [0, 0, 1, 1], [], []>} : vector<256x128xf32>, vector<128x32xf32>, vector<256x32xf32> -> vector<256x32xf32>
    %173 = arith.addf %167, %172 : vector<256x32xf32>
    %c2_214 = arith.constant 2 : index
    %c7_215 = arith.constant 7 : index
    %c0_216 = arith.constant 0 : index
    %174 = vector.load %arg5[%c2_214, %c7_215, %c0_216] : memref<18x32x128xf32, #tpu.memory_space<vmem>>, vector<16x16x128xf32>
    %175 = vector.shape_cast %174 : vector<16x16x128xf32> to vector<256x128xf32>
    %c2_217 = arith.constant 2 : index
    %c6_218 = arith.constant 6 : index
    %c0_219 = arith.constant 0 : index
    %c0_220 = arith.constant 0 : index
    %176 = vector.load %arg2[%c2_217, %c6_218, %c0_219, %c0_220] : memref<3x9x128x32xf32, #tpu.memory_space<vmem>>, vector<1x1x128x32xf32>
    %177 = vector.shape_cast %176 : vector<1x1x128x32xf32> to vector<128x32xf32>
    %cst_221 = arith.constant dense<0.000000e+00> : vector<256x32xf32>
    %178 = tpu.matmul %175, %177, %cst_221 {dimension_numbers = #tpu.dot_dimension_numbers<[1], [0], [0], [1], [0, 0, 1, 1], [], []>} : vector<256x128xf32>, vector<128x32xf32>, vector<256x32xf32> -> vector<256x32xf32>
    %179 = arith.addf %173, %178 : vector<256x32xf32>
    %c2_222 = arith.constant 2 : index
    %c8_223 = arith.constant 8 : index
    %c0_224 = arith.constant 0 : index
    %180 = vector.load %arg5[%c2_222, %c8_223, %c0_224] : memref<18x32x128xf32, #tpu.memory_space<vmem>>, vector<16x16x128xf32>
    %181 = vector.shape_cast %180 : vector<16x16x128xf32> to vector<256x128xf32>
    %c2_225 = arith.constant 2 : index
    %c7_226 = arith.constant 7 : index
    %c0_227 = arith.constant 0 : index
    %c0_228 = arith.constant 0 : index
    %182 = vector.load %arg2[%c2_225, %c7_226, %c0_227, %c0_228] : memref<3x9x128x32xf32, #tpu.memory_space<vmem>>, vector<1x1x128x32xf32>
    %183 = vector.shape_cast %182 : vector<1x1x128x32xf32> to vector<128x32xf32>
    %cst_229 = arith.constant dense<0.000000e+00> : vector<256x32xf32>
    %184 = tpu.matmul %181, %183, %cst_229 {dimension_numbers = #tpu.dot_dimension_numbers<[1], [0], [0], [1], [0, 0, 1, 1], [], []>} : vector<256x128xf32>, vector<128x32xf32>, vector<256x32xf32> -> vector<256x32xf32>
    %185 = arith.addf %179, %184 : vector<256x32xf32>
    %c2_230 = arith.constant 2 : index
    %c9_231 = arith.constant 9 : index
    %c0_232 = arith.constant 0 : index
    %186 = vector.load %arg5[%c2_230, %c9_231, %c0_232] : memref<18x32x128xf32, #tpu.memory_space<vmem>>, vector<16x16x128xf32>
    %187 = vector.shape_cast %186 : vector<16x16x128xf32> to vector<256x128xf32>
    %c2_233 = arith.constant 2 : index
    %c8_234 = arith.constant 8 : index
    %c0_235 = arith.constant 0 : index
    %c0_236 = arith.constant 0 : index
    %188 = vector.load %arg2[%c2_233, %c8_234, %c0_235, %c0_236] : memref<3x9x128x32xf32, #tpu.memory_space<vmem>>, vector<1x1x128x32xf32>
    %189 = vector.shape_cast %188 : vector<1x1x128x32xf32> to vector<128x32xf32>
    %cst_237 = arith.constant dense<0.000000e+00> : vector<256x32xf32>
    %190 = tpu.matmul %187, %189, %cst_237 {dimension_numbers = #tpu.dot_dimension_numbers<[1], [0], [0], [1], [0, 0, 1, 1], [], []>} : vector<256x128xf32>, vector<128x32xf32>, vector<256x32xf32> -> vector<256x32xf32>
    %191 = arith.addf %185, %190 : vector<256x32xf32>
    %cst_238 = arith.constant 0.000000e+00 : f32
    %192 = vector.broadcast %cst_238 : f32 to vector<256x32xf32>
    %193 = arith.maximumf %191, %192 : vector<256x32xf32>
    %c2_239 = arith.constant 2 : index
    %c0_240 = arith.constant 0 : index
    %c0_241 = arith.constant 0 : index
    %194 = vector.load %arg3[%c2_239, %c0_240, %c0_241] : memref<3x32x128xf32, #tpu.memory_space<vmem>>, vector<1x32x128xf32>
    %195 = vector.shape_cast %194 : vector<1x32x128xf32> to vector<32x128xf32>
    %cst_242 = arith.constant dense<0.000000e+00> : vector<256x128xf32>
    %196 = tpu.matmul %193, %195, %cst_242 {dimension_numbers = #tpu.dot_dimension_numbers<[1], [0], [0], [1], [0, 0, 1, 1], [], []>} : vector<256x32xf32>, vector<32x128xf32>, vector<256x128xf32> -> vector<256x128xf32>
    %197 = vector.shape_cast %196 : vector<256x128xf32> to vector<16x16x128xf32>
    %198 = arith.addf %133, %197 : vector<16x16x128xf32>
    %cst_243 = arith.constant 0.000000e+00 : f32
    %199 = vector.broadcast %cst_243 : f32 to vector<16x16x128xf32>
    %200 = arith.maximumf %198, %199 : vector<16x16x128xf32>
    %c0_244 = arith.constant 0 : index
    %c0_245 = arith.constant 0 : index
    %c0_246 = arith.constant 0 : index
    %c0_247 = arith.constant 0 : index
    %201 = vector.load %arg4[%c0_244, %c0_245, %c0_246, %c0_247] : memref<1x16x16x128xf32, #tpu.memory_space<vmem>>, vector<1x16x16x128xf32>
    %202 = vector.shape_cast %201 : vector<1x16x16x128xf32> to vector<16x16x128xf32>
    %203 = vector.shape_cast %200 : vector<16x16x128xf32> to vector<1x16x16x128xf32>
    tpu.vector_store %arg4[%c0_244, %c0_245, %c0_246, %c0_247], %203 {strides = array<i32>} : memref<1x16x16x128xf32, #tpu.memory_space<vmem>>, vector<1x16x16x128xf32>,
    return
  }
  func.func @transform_0(%arg0: i32) -> (i32, i32, i32, i32) {
    %c0_i32 = arith.constant 0 : i32
    %c0_i32_0 = arith.constant 0 : i32
    %c0_i32_1 = arith.constant 0 : i32
    %c0_i32_2 = arith.constant 0 : i32
    return %arg0, %c0_i32, %c0_i32_0, %c0_i32_1 : i32, i32, i32, i32
  }
  func.func @transform_1(%arg0: i32) -> (i32, i32, i32, i32) {
    %c0_i32 = arith.constant 0 : i32
    %c0_i32_0 = arith.constant 0 : i32
    %c0_i32_1 = arith.constant 0 : i32
    %c0_i32_2 = arith.constant 0 : i32
    %c0_i32_3 = arith.constant 0 : i32
    return %c0_i32, %c0_i32_0, %c0_i32_1, %c0_i32_2 : i32, i32, i32, i32
  }
  func.func @transform_2(%arg0: i32) -> (i32, i32, i32) {
    %c0_i32 = arith.constant 0 : i32
    %c0_i32_0 = arith.constant 0 : i32
    %c0_i32_1 = arith.constant 0 : i32
    %c0_i32_2 = arith.constant 0 : i32
    return %c0_i32, %c0_i32_0, %c0_i32_1 : i32, i32, i32
  }
  func.func @transform_3(%arg0: i32) -> (i32, i32, i32, i32) {
    %c0_i32 = arith.constant 0 : i32
    %c0_i32_0 = arith.constant 0 : i32
    %c0_i32_1 = arith.constant 0 : i32
    %c0_i32_2 = arith.constant 0 : i32
    return %arg0, %c0_i32, %c0_i32_0, %c0_i32_1 : i32, i32, i32, i32
  }
}

</mosaic_0001>

<bundles_post_ra>
// kernel: residual_stack.1
= control target key start
LH: loop header
LB: loop body
LE: loop exit
PB: predicated region body
PF: predicated region fallthrough
CT: control target
= control target key end

     0   :  { %8 = vsyncpa [#allocation4], 0  ;;  %s19381_s0 = inlined_call_operand.vmem [shape: f32[2,16,16,128], index: 0, kind: input, shape index: {}]   ;;  %s19382_s1 = inlined_call_operand.vmem [shape: f32[3,9,128,32], index: 1, kind: input, shape index: {}]   ;;  %s19383_s2 = inlined_call_operand.vmem [shape: f32[3,32,128], index: 2, kind: input, shape index: {}]   ;;  %s19384_s3 = inlined_call_operand.hbm [shape: f32[2,16,16,128], index: 3, kind: output, shape index: {}]  }
   0x1   :  { %10 = vsyncpa [#allocation4 + $0x1], 0  ;;  %s15951_s12 = smov 0   ;;  %s15953_s13 = smov 0  }
   0x2   :  { %s15955_s14 = smov 0   ;;  %s15957_s15 = smov 0  }
   0x3 LB: > { %s15972_s16 = sadd.s32 4294967295, %s15925_s15   ;;  %s9846_s17 = sadd.s32 4294967294, %s15925_s15   ;;  %s15925_s15 = sphi %s15957_s15, %s19784_s15   ;;  %s15921_s14 = sphi %s15955_s14, %s19783_s14   ;;  %s15917_s13 = sphi %s15953_s13, %s19782_s13   ;;  %s15913_s12 = sphi %s15951_s12, %s19781_s12  }
   0x4   : > { %s15976_s18 = sadd.s32 1, %s15925_s15   ;;  %s91_s19 = sadd.s32 1, %s15921_s14 }
   0x5   : > { %s88_s20 = ssub.s32 %s15925_s15, %s15976_s18  ;;  %p101_p0 = scmp.ne.s32.totalorder %s15921_s14, %s15917_s13 }
   0x6   : > { %p89_p1 = scmp.eq.s32.totalorder %s88_s20, 0  ;;  %p102_p2 = scmp.eq.s32.totalorder %s15972_s16, 1 }
   0x7   : > { %p107_p3 = scmp.ne.s32.totalorder %s15917_s13, %s15913_s12  ;;  %p108_p4 = scmp.eq.s32.totalorder %s9846_s17, 1 }
   0x8   : > { %s15987_s21 = scalar_select %p89_p1, %s15921_s14, %s91_s19  }
   0x9   : > { %p15989_p5 = por %p102_p2, %p101_p0  ;;  %p15993_p6 = por %p108_p4, %p107_p3 }
   0xa   : > { %p9849_p7 = scmp.ge.s32.totalorder %s15925_s15, 1  ;;  %p140_p8 = scmp.lt.s32.totalorder %s15925_s15, 3 }
   0xc   : > { %p141_p9 = pnand %p9849_p7, %p140_p8 }
   0xe   : > { %144 = sbr.rel (%p141_p9) target bundleno = 2730 (0xaaa), region = 32 }
  0x15   : > { %v9853_v0 = vld [vmem:[%s19382_s1 + $0x80] sm:$0xff]  ;;  %v9854_v1 = vld [vmem:[%s19382_s1 + $0x88] sm:$0xff]  ;;  %v9855_v2 = vld [vmem:[%s19382_s1 + $0x90] sm:$0xff]  ;;  %p164_p10 = scmp.lt.s32.totalorder %s15972_s16, 1  ;;  %v15927_v5 = vmov 0.0   ;;  %vm3064_vm0 = vcmask 261120  }
  0x16   : > { %v14112_v3 = vpack.c.bf16 %v9854_v1, %v9853_v0  ;;  %v9856_v4 = vld [vmem:[%s19382_s1 + $0x98] sm:$0xff]  ;;  %202 = vst [vmem:[#allocation2 + $0x8] sm:$0xff] %v15927_v5  ;;  %11816 = vmatprep.mubr.f32.mxu0 %v15927_v5  ;;  %201 = vst [vmem:[#allocation2] sm:$0xff] %v15927_v5  ;;  %v9857_v7 = vld [vmem:[%s19382_s1 + $0xa0] sm:$0xff]  ;;  %s161_s19 = sand.u32 1, %s15917_s13   ;;  %s10379_s25 = sshll.u32 %s15972_s16, 12 }
  0x17   : > { %203 = vst [vmem:[#allocation2 + $0x10] sm:$0xff] %v15927_v5  ;;  %204 = vst [vmem:[#allocation2 + $0x18] sm:$0xff] %v15927_v5  ;;  %v14116_v6 = vpack.c.bf16 %v9856_v4, %v9855_v2  ;;  %v9858_v8 = vld [vmem:[%s19382_s1 + $0xa8] sm:$0xff]  ;;  %s165_s9 = scalar_select %p164_p10, %s15972_s16, 1  ;;  %v9859_v10 = vld [vmem:[%s19382_s1 + $0xb0] sm:$0xff] }
  0x18   : > { %205 = vst [vmem:[#allocation2 + $0x20] sm:$0xff] %v15927_v5  ;;  %208 = vst [vmem:[#allocation2 + $0x38] sm:$0xff] %v15927_v5  ;;  %14113 = vmatprep.subr.bf16.mxu0 %v14112_v3  ;;  %v14120_v9 = vpack.c.bf16 %v9858_v8, %v9857_v7  ;;  %v9860_v11 = vld [vmem:[%s19382_s1 + $0xb8] sm:$0xff]  ;;  %v9861_v24 = vld [vmem:[%s19382_s1 + $0xc0] sm:$0xff]  ;;  %s9850_s20 = sshll.u32 %s161_s19, 8  ;;  %s19332_s30 = scalar_lea.hbm %s19384_s3, %s10379_s25 }
  0x19   : > { %209 = vst [vmem:[#allocation2 + $0x40] sm:$0xff] %v15927_v5  ;;  %212 = vst [vmem:[#allocation2 + $0x58] sm:$0xff] %v15927_v5  ;;  %14115 = vmatpush3.bf16.msra.mxu0 %v14112_v3  ;;  %s10378_s10 = sshll.u32 %s165_s9, 8  ;;  %v14124_v23 = vpack.c.bf16 %v9860_v11, %v9859_v10  ;;  %v9862_v25 = vld [vmem:[%s19382_s1 + $0xc8] sm:$0xff]  ;;  %v9863_v43 = vld [vmem:[%s19382_s1 + $0xd0] sm:$0xff]  ;;  %s19265_s24 = scalar_lea.vmem [#allocation3], %s9850_s20 }
  0x1a   : > { %213 = vst [vmem:[#allocation2 + $0x60] sm:$0xff] %v15927_v5  ;;  %216 = vst [vmem:[#allocation2 + $0x78] sm:$0xff] %v15927_v5  ;;  %14117 = vmatprep.subr.bf16.mxu0 %v14116_v6  ;;  %s16071_s26 = scalar_lea.vmem %s19381_s0, %s10378_s10  ;;  %v14128_v42 = vpack.c.bf16 %v9862_v25, %v9861_v24  ;;  %v9864_v44 = vld [vmem:[%s19382_s1 + $0xd8] sm:$0xff]  ;;  %v9865_v62 = vld [vmem:[%s19382_s1 + $0xe0] sm:$0xff]  ;;  %s9784_s27 = sshll.u32 %s19265_s24, 4  ;;  %s19334_s27 = int_to_ptr.vmem [resolvable:$true] %s9784_s27 }
  0x1b   : > { %217 = vst [vmem:[#allocation2 + $0x80] sm:$0xff] %v15927_v5  ;;  %220 = vst [vmem:[#allocation2 + $0x98] sm:$0xff] %v15927_v5  ;;  %v169_v12 = vld [vmem:[%s16071_s26] sm:$0xff]  ;;  %v170_v13 = vld [vmem:[%s16071_s26 + $0x8] sm:$0xff]  ;;  %v14132_v61 = vpack.c.bf16 %v9864_v44, %v9863_v43  ;;  %s19340_s16 = scalar_lea.sflag [#allocation4], %s161_s19  ;;  %s15863_s4 = scalar_lea.vmem %s19334_s27, 4096 }
  0x1c   : > { %221 = vst [vmem:[#allocation2 + $0xa0] sm:$0xff] %v15927_v5  ;;  %224 = vst [vmem:[#allocation2 + $0xb8] sm:$0xff] %v15927_v5  ;;  %v171_v14 = vld [vmem:[%s16071_s26 + $0x10] sm:$0xff]  ;;  %v16076_v15 = vmax.f32 %v169_v12, 0.0  ;;  %v16078_v16 = vmax.f32 %v170_v13, 0.0  ;;  %v172_v18 = vld [vmem:[%s16071_s26 + $0x18] sm:$0xff]  ;;  %p15864_p11 = scmp.ne.s32.totalorder %s19334_s27, %s15863_s4 }
  0x1d   : > { %225 = vst [vmem:[#allocation2 + $0xc0] sm:$0xff] %v15927_v5  ;;  %228 = vst [vmem:[#allocation2 + $0xd8] sm:$0xff] %v15927_v5  ;;  %v16080_v17 = vmax.f32 %v171_v14, 0.0  ;;  %14119 = vmatpush3.bf16.msra.mxu0 %v14116_v6  ;;  %v16083_v19 = vmax.f32 %v172_v18, 0.0  ;;  %v173_v20 = vld [vmem:[%s16071_s26 + $0x20] sm:$0xff]  ;;  %v174_v21 = vld [vmem:[%s16071_s26 + $0x28] sm:$0xff] }
  0x1e   : > { %229 = vst [vmem:[#allocation2 + $0xe0] sm:$0xff] %v15927_v5  ;;  %232 = vst [vmem:[#allocation2 + $0xf8] sm:$0xff] %v15927_v5  ;;  %v175_v22 = vld [vmem:[%s16071_s26 + $0x30] sm:$0xff]  ;;  %14121 = vmatprep.subr.bf16.mxu0 %v14120_v9  ;;  %v16097_v26 = vmax.f32 %v173_v20, 0.0  ;;  %v16099_v27 = vmax.f32 %v174_v21, 0.0  ;;  %v176_v29 = vld [vmem:[%s16071_s26 + $0x38] sm:$0xff]  ;;  %p15865_p12 = pnand %p15864_p11, %p15989_p5 }
  0x1f   : > { %233 = vst [vmem:[#allocation2 + $0x100] sm:$0xff] %v15927_v5  ;;  %236 = vst [vmem:[#allocation2 + $0x118] sm:$0xff] %v15927_v5  ;;  %v16101_v28 = vmax.f32 %v175_v22, 0.0  ;;  %v16105_v30 = vmax.f32 %v176_v29, 0.0  ;;  %v177_v31 = vld [vmem:[%s16071_s26 + $0x40] sm:$0xff]  ;;  %v178_v32 = vld [vmem:[%s16071_s26 + $0x48] sm:$0xff] }
  0x20   : > { %237 = vst [vmem:[#allocation2 + $0x120] sm:$0xff] %v15927_v5  ;;  %240 = vst [vmem:[#allocation2 + $0x138] sm:$0xff] %v15927_v5  ;;  %v179_v33 = vld [vmem:[%s16071_s26 + $0x50] sm:$0xff]  ;;  %v16113_v34 = vmax.f32 %v177_v31, 0.0  ;;  %v16115_v35 = vmax.f32 %v178_v32, 0.0  ;;  %v180_v37 = vld [vmem:[%s16071_s26 + $0x58] sm:$0xff]  ;;  %p15866_p13 = pneg %p15865_p12 }
  0x21   : > { %241 = vst [vmem:[#allocation2 + $0x140] sm:$0xff] %v15927_v5  ;;  %244 = vst [vmem:[#allocation2 + $0x158] sm:$0xff] %v15927_v5  ;;  %v16117_v36 = vmax.f32 %v179_v33, 0.0  ;;  %14123 = vmatpush3.bf16.msra.mxu0 %v14120_v9  ;;  %v16121_v38 = vmax.f32 %v180_v37, 0.0  ;;  %v181_v39 = vld [vmem:[%s16071_s26 + $0x60] sm:$0xff]  ;;  %v182_v40 = vld [vmem:[%s16071_s26 + $0x68] sm:$0xff] }
  0x22   : > { %245 = vst [vmem:[#allocation2 + $0x160] sm:$0xff] %v15927_v5  ;;  %248 = vst [vmem:[#allocation2 + $0x178] sm:$0xff] %v15927_v5  ;;  %v183_v41 = vld [vmem:[%s16071_s26 + $0x70] sm:$0xff]  ;;  %14125 = vmatprep.subr.bf16.mxu0 %v14124_v23  ;;  %v16135_v45 = vmax.f32 %v181_v39, 0.0  ;;  %v16137_v46 = vmax.f32 %v182_v40, 0.0  ;;  %v184_v48 = vld [vmem:[%s16071_s26 + $0x78] sm:$0xff] }
  0x23   : > { %249 = vst [vmem:[#allocation2 + $0x180] sm:$0xff] %v15927_v5  ;;  %252 = vst [vmem:[#allocation2 + $0x198] sm:$0xff] %v15927_v5  ;;  %v16139_v47 = vmax.f32 %v183_v41, 0.0  ;;  %v16143_v49 = vmax.f32 %v184_v48, 0.0  ;;  %v185_v50 = vld [vmem:[%s16071_s26 + $0x80] sm:$0xff]  ;;  %v186_v51 = vld [vmem:[%s16071_s26 + $0x88] sm:$0xff] }
  0x24   : > { %253 = vst [vmem:[#allocation2 + $0x1a0] sm:$0xff] %v15927_v5  ;;  %256 = vst [vmem:[#allocation2 + $0x1b8] sm:$0xff] %v15927_v5  ;;  %v187_v52 = vld [vmem:[%s16071_s26 + $0x90] sm:$0xff]  ;;  %v16151_v53 = vmax.f32 %v185_v50, 0.0  ;;  %v16153_v54 = vmax.f32 %v186_v51, 0.0  ;;  %v188_v56 = vld [vmem:[%s16071_s26 + $0x98] sm:$0xff] }
  0x25   : > { %257 = vst [vmem:[#allocation2 + $0x1c0] sm:$0xff] %v15927_v5  ;;  %260 = vst [vmem:[#allocation2 + $0x1d8] sm:$0xff] %v15927_v5  ;;  %v16155_v55 = vmax.f32 %v187_v52, 0.0  ;;  %14127 = vmatpush3.bf16.msra.mxu0 %v14124_v23  ;;  %v16159_v57 = vmax.f32 %v188_v56, 0.0  ;;  %v189_v58 = vld [vmem:[%s16071_s26 + $0xa0] sm:$0xff]  ;;  %v190_v59 = vld [vmem:[%s16071_s26 + $0xa8] sm:$0xff] }
  0x26   : > { %261 = vst [vmem:[#allocation2 + $0x1e0] sm:$0xff] %v15927_v5  ;;  %264 = vst [vmem:[#allocation2 + $0x1f8] sm:$0xff] %v15927_v5  ;;  %v191_v60 = vld [vmem:[%s16071_s26 + $0xb0] sm:$0xff]  ;;  %14129 = vmatprep.subr.bf16.mxu0 %v14128_v42  ;;  %v9866_v63 = vld [vmem:[%s19382_s1 + $0xe8] sm:$0xff]  ;;  %v16173_v0 = vmax.f32 %v189_v58, 0.0  ;;  %v16175_v1 = vmax.f32 %v190_v59, 0.0 }
  0x27   : > { %265 = vst [vmem:[#allocation2 + $0x200] sm:$0xff] %v15927_v5  ;;  %268 = vst [vmem:[#allocation2 + $0x218] sm:$0xff] %v15927_v5  ;;  %v16177_v2 = vmax.f32 %v191_v60, 0.0  ;;  %v192_v3 = vld [vmem:[%s16071_s26 + $0xb8] sm:$0xff]  ;;  %v193_v6 = vld [vmem:[%s16071_s26 + $0xc0] sm:$0xff]  ;;  %v14136_v20 = vpack.c.bf16 %v9866_v63, %v9865_v62  ;;  %s15928_s5 = smov [#allocation3]  }
  0x28   : > { %269 = vst [vmem:[#allocation2 + $0x220] sm:$0xff] %v15927_v5  ;;  %270 = vst [vmem:[#allocation2 + $0x228] sm:$0xff] %v15927_v5  ;;  %v16181_v4 = vmax.f32 %v192_v3, 0.0  ;;  %v194_v7 = vld [vmem:[%s16071_s26 + $0xc8] sm:$0xff]  ;;  %v195_v8 = vld [vmem:[%s16071_s26 + $0xd0] sm:$0xff]  ;;  %v16189_v9 = vmax.f32 %v193_v6, 0.0 }
  0x29   : > { %271 = vst [vmem:[#allocation2 + $0x230] sm:$0xff] %v15927_v5  ;;  %272 = vst [vmem:[#allocation2 + $0x238] sm:$0xff] %v15927_v5  ;;  %v16191_v10 = vmax.f32 %v194_v7, 0.0  ;;  %v16193_v11 = vmax.f32 %v195_v8, 0.0  ;;  %v196_v12 = vld [vmem:[%s16071_s26 + $0xd8] sm:$0xff]  ;;  %14131 = vmatpush3.bf16.msra.mxu0 %v14128_v42  ;;  %v197_v14 = vld [vmem:[%s16071_s26 + $0xe0] sm:$0xff] }
  0x2a   : > { %306 = vst [vmem:[#allocation2 + $0x28] sm:$0xff] %v16076_v15  ;;  %307 = vst [vmem:[#allocation2 + $0x30] sm:$0xff] %v16078_v16  ;;  %v16197_v13 = vmax.f32 %v196_v12, 0.0  ;;  %v198_v18 = vld [vmem:[%s16071_s26 + $0xe8] sm:$0xff]  ;;  %14133 = vmatprep.subr.bf16.mxu0 %v14132_v61  ;;  %v16204_v21 = vmax.f32 %v197_v14, 0.0  ;;  %v9867_v23 = vld [vmem:[%s19382_s1 + $0xf0] sm:$0xff] }
  0x2b   : > { %308 = vst [vmem:[#allocation2 + $0x48] sm:$0xff] %v16080_v17  ;;  %309 = vst [vmem:[#allocation2 + $0x50] sm:$0xff] %v16083_v19  ;;  %v16206_v22 = vmax.f32 %v198_v18, 0.0  ;;  %v9868_v24 = vld [vmem:[%s19382_s1 + $0xf8] sm:$0xff]  ;;  %v370_v29 = vld [vmem:[%s19382_s1] sm:$0xff]  ;;  %s15867_s6 = sshll.u32 %s15928_s5, 4  ;;  %s15868_s6 = int_to_ptr.vmem [resolvable:$false] %s15867_s6 }
  0x2c   : > { %310 = vst [vmem:[#allocation2 + $0x68] sm:$0xff] %v16097_v26  ;;  %311 = vst [vmem:[#allocation2 + $0x70] sm:$0xff] %v16099_v27  ;;  %v14140_v25 = vpack.c.bf16 %v9868_v24, %v9867_v23  ;;  %v371_v31 = vld [vmem:[%s19382_s1 + $0x8] sm:$0xff]  ;;  %v372_v33 = vld [vmem:[%s19382_s1 + $0x10] sm:$0xff]  ;;  %s15869_s7 = scalar_lea.vmem %s15868_s6, 8192  ;;  %p15870_p0 = scmp.lt.s32.totalorder %s19334_s27, %s15868_s6 }
  0x2d   : > { %312 = vst [vmem:[#allocation2 + $0x88] sm:$0xff] %v16101_v28  ;;  %313 = vst [vmem:[#allocation2 + $0x90] sm:$0xff] %v16105_v30  ;;  %14135 = vmatpush3.bf16.msra.mxu0 %v14132_v61  ;;  %v14144_v32 = vpack.c.bf16 %v371_v31, %v370_v29  ;;  %v373_v37 = vld [vmem:[%s19382_s1 + $0x18] sm:$0xff]  ;;  %v374_v40 = vld [vmem:[%s19382_s1 + $0x20] sm:$0xff]  ;;  %p15871_p1 = scmp.lt.s32.totalorder %s15869_s7, %s15863_s4 }
  0x2e   : > { %314 = vst [vmem:[#allocation2 + $0xa8] sm:$0xff] %v16113_v34  ;;  %315 = vst [vmem:[#allocation2 + $0xb0] sm:$0xff] %v16115_v35  ;;  %14137 = vmatprep.subr.bf16.mxu0 %v14136_v20  ;;  %v14148_v39 = vpack.c.bf16 %v373_v37, %v372_v33  ;;  %v375_v41 = vld [vmem:[%s19382_s1 + $0x28] sm:$0xff]  ;;  %v376_v43 = vld [vmem:[%s19382_s1 + $0x30] sm:$0xff] }
  0x2f   : > { %316 = vst [vmem:[#allocation2 + $0xc8] sm:$0xff] %v16117_v36  ;;  %317 = vst [vmem:[#allocation2 + $0xd0] sm:$0xff] %v16121_v38  ;;  %v14152_v42 = vpack.c.bf16 %v375_v41, %v374_v40  ;;  %v377_v44 = vld [vmem:[%s19382_s1 + $0x38] sm:$0xff]  ;;  %v378_v48 = vld [vmem:[%s19382_s1 + $0x40] sm:$0xff]  ;;  %p15872_p2 = por %p15871_p1, %p15870_p0 }
  0x30   : > { %318 = vst [vmem:[#allocation2 + $0xe8] sm:$0xff] %v16135_v45  ;;  %319 = vst [vmem:[#allocation2 + $0xf0] sm:$0xff] %v16137_v46  ;;  %v379_v50 = vld [vmem:[%s19382_s1 + $0x48] sm:$0xff]  ;;  %v380_v52 = vld [vmem:[%s19382_s1 + $0x50] sm:$0xff] }
  0x31   : > { %320 = vst [vmem:[#allocation2 + $0x108] sm:$0xff] %v16139_v47  ;;  %321 = vst [vmem:[#allocation2 + $0x110] sm:$0xff] %v16143_v49  ;;  %14139 = vmatpush3.bf16.msra.mxu0 %v14136_v20  ;;  %v14160_v51 = vpack.c.bf16 %v379_v50, %v378_v48  ;;  %v381_v56 = vld [vmem:[%s19382_s1 + $0x58] sm:$0xff]  ;;  %v382_v59 = vld [vmem:[%s19382_s1 + $0x60] sm:$0xff]  ;;  %p15873_p3 = pnand %p15872_p2, %p15866_p13 }
  0x32   : > { %322 = vst [vmem:[#allocation2 + $0x128] sm:$0xff] %v16151_v53  ;;  %323 = vst [vmem:[#allocation2 + $0x130] sm:$0xff] %v16153_v54  ;;  %14141 = vmatprep.subr.bf16.mxu0 %v14140_v25  ;;  %v14164_v58 = vpack.c.bf16 %v381_v56, %v380_v52  ;;  %v383_v60 = vld [vmem:[%s19382_s1 + $0x68] sm:$0xff]  ;;  %v384_v62 = vld [vmem:[%s19382_s1 + $0x70] sm:$0xff] }
  0x33   : > { %324 = vst [vmem:[#allocation2 + $0x148] sm:$0xff] %v16155_v55  ;;  %325 = vst [vmem:[#allocation2 + $0x150] sm:$0xff] %v16159_v57  ;;  %v14168_v61 = vpack.c.bf16 %v383_v60, %v382_v59  ;;  %v385_v63 = vld [vmem:[%s19382_s1 + $0x78] sm:$0xff]  ;;  %v9869_v6 = vld [vmem:[%s19382_s1 + $0x100] sm:$0xff] }
  0x34   : > { %19525 = vst [vmem:[#allocation6_spill] sm:$0xff] %v16181_v4  ;;  %326 = vst [vmem:[#allocation2 + $0x168] sm:$0xff] %v16173_v0  ;;  %v14172_v3 = vpack.c.bf16 %v385_v63, %v384_v62  ;;  %v9870_v7 = vld [vmem:[%s19382_s1 + $0x108] sm:$0xff]  ;;  %v9871_v14 = vld [vmem:[%s19382_s1 + $0x110] sm:$0xff] }
  0x35   : > { %327 = vst [vmem:[#allocation2 + $0x170] sm:$0xff] %v16175_v1  ;;  %328 = vst [vmem:[#allocation2 + $0x188] sm:$0xff] %v16177_v2  ;;  %14143 = vmatpush3.bf16.msra.mxu0 %v14140_v25  ;;  %v14176_v8 = vpack.c.bf16 %v9870_v7, %v9869_v6  ;;  %v338_v12 = vld [vmem:[#allocation2 + $0x7] sm:$0xff]  ;;  %v9872_v18 = vld [vmem:[%s19382_s1 + $0x118] sm:$0xff] }
  0x36   : > { %19526 = vst [vmem:[#allocation7_spill] sm:$0xff] %v16189_v9  ;;  %19527 = vst [vmem:[#allocation8_spill] sm:$0xff] %v16191_v10  ;;  %14145 = vmatprep.subr.bf16.mxu0 %v14144_v32  ;;  %v339_v20 = vld [vmem:[#allocation2 + $0xf] sm:$0xff]  ;;  %v16308_v23 = vld [vmem:[#allocation2 + $0x27] sm:$0xff]  ;;  %v14180_v24 = vpack.c.bf16 %v9872_v18, %v9871_v14 }
  0x37   : > { %19528 = vst [vmem:[#allocation9_spill] sm:$0xff] %v16193_v11  ;;  %329 = vst [vmem:[#allocation2 + $0x190] sm:$0xff] %v16181_v4  ;;  %v9873_v25 = vld [vmem:[%s19382_s1 + $0x120] sm:$0xff]  ;;  %v9874_v29 = vld [vmem:[%s19382_s1 + $0x128] sm:$0xff] }
  0x38   : > { %19529 = vst [vmem:[#allocation10_spill] sm:$0xff] %v16197_v13  ;;  %330 = vst [vmem:[#allocation2 + $0x1a8] sm:$0xff] %v16189_v9  ;;  %11817 = vmatmul.mubr.f32.vlgmr.msra.gmra.mrb[0].mxu0 %v15927_v5  ;;  %v14156_v5 = vpack.c.bf16 %v377_v44, %v376_v43  ;;  %v16317_v31 = vld [vmem:[#allocation2 + $0x2f] sm:$0xff]  ;;  %v14184_v33 = vpack.c.bf16 %v9874_v29, %v9873_v25  ;;  %v16331_v41 = vld [vmem:[#allocation2 + $0x67] sm:$0xff] }
  0x39   : > { %331 = vst [vmem:[#allocation2 + $0x1b0] sm:$0xff] %v16191_v10  ;;  %332 = vst [vmem:[#allocation2 + $0x1c8] sm:$0xff] %v16193_v11  ;;  %14147 = vmatpush3.bf16.msra.mxu0 %v14144_v32  ;;  %11819 = vmatprep.mubr.f32.mxu0 %v16076_v15  ;;  %v16319_v32 = vld [vmem:[#allocation2 + $0x47] sm:$0xff]  ;;  %v9875_v37 = vld [vmem:[%s19382_s1 + $0x130] sm:$0xff] }
  0x3a   : > { %19530 = vst [vmem:[#allocation11_spill] sm:$0xff] %v16204_v21  ;;  %19531 = vst [vmem:[#allocation12_spill] sm:$0xff] %v16206_v22  ;;  %14149 = vmatprep.subr.bf16.mxu0 %v14148_v39  ;;  %v16329_v40 = vld [vmem:[#allocation2 + $0x4f] sm:$0xff]  ;;  %v9877_v43 = vld [vmem:[%s19382_s1 + $0x140] sm:$0xff] }
  0x3b   : > { %333 = vst [vmem:[#allocation2 + $0x1d0] sm:$0xff] %v16197_v13  ;;  %334 = vst [vmem:[#allocation2 + $0x1e8] sm:$0xff] %v16204_v21  ;;  %v9878_v44 = vld [vmem:[%s19382_s1 + $0x148] sm:$0xff]  ;;  %v9880_v52 = vld [vmem:[%s19382_s1 + $0x158] sm:$0xff] }
  0x3c   : > { %335 = vst [vmem:[#allocation2 + $0x1f0] sm:$0xff] %v16206_v22  ;;  %11820 = vmatmul.mubr.f32.gmra.mrb[2].mxu0 %v16078_v16  ;;  %v16343_v48 = vld [vmem:[#allocation2 + $0x87] sm:$0xff]  ;;  %v14192_v50 = vpack.c.bf16 %v9878_v44, %v9877_v43  ;;  %v16353_v56 = vld [vmem:[#allocation2 + $0x8f] sm:$0xff]  ;;  %v9884_v7 = vld [vmem:[%s19382_s1 + $0x178] sm:$0xff] }
  0x3d   : > { %11822 = vmatprep.mubr.f32.mxu0 %v16080_v17  ;;  %14151 = vmatpush3.bf16.msra.mxu0 %v14148_v39  ;;  %v9876_v39 = vld [vmem:[%s19382_s1 + $0x138] sm:$0xff]  ;;  %v9881_v60 = vld [vmem:[%s19382_s1 + $0x160] sm:$0xff]  ;;  %v16365_v62 = vld [vmem:[#allocation2 + $0xaf] sm:$0xff] }
  0x3e   : > { %14153 = vmatprep.subr.bf16.mxu0 %v14152_v42  ;;  %v16367_v63 = vld [vmem:[#allocation2 + $0xc7] sm:$0xff]  ;;  %v9883_v6 = vld [vmem:[%s19382_s1 + $0x170] sm:$0xff] }
  0x3f   : > { %v14204_v14 = vpack.c.bf16 %v9884_v7, %v9883_v6  ;;  %v9885_v18 = vld [vmem:[%s19382_s1 + $0x180] sm:$0xff]  ;;  %v16407_v43 = vld [vmem:[#allocation2 + $0x14f] sm:$0xff]  ;;  %v16432_v6 = vld [vmem:[%s16071_s26 + $0xf8] sm:$0xff] }
  0x40   : > { %11823 = vmatmul.mubr.f32.gmra.mrb[4].mxu0 %v16083_v19  ;;  %v16391_v25 = vld [vmem:[#allocation2 + $0x107] sm:$0xff]  ;;  %19533 = vst [vmem:[#allocation14_spill] sm:$0xff] %v16432_v6 }
  0x41   : > { %11825 = vmatprep.mubr.f32.mxu0 %v16097_v26  ;;  %14155 = vmatpush3.bf16.msra.mxu0 %v14152_v42  ;;  %v14188_v42 = vpack.c.bf16 %v9876_v39, %v9875_v37  ;;  %v16397_v37 = vld [vmem:[#allocation2 + $0x127] sm:$0xff]  ;;  %v16401_v39 = vld [vmem:[#allocation2 + $0x12f] sm:$0xff] }
  0x42   : > { %14157 = vmatprep.subr.bf16.mxu0 %v14156_v5  ;;  %v16409_v44 = vld [vmem:[#allocation2 + $0x167] sm:$0xff] }
  0x43   : > { %v16434_v7 = vld [vmem:[#allocation2 + $0x1c7] sm:$0xff] }
  0x44   : > { %11826 = vmatmul.mubr.f32.gmra.mrb[6].mxu0 %v16099_v27 }
  0x45   : > { %11828 = vmatprep.mubr.f32.mxu0 %v16101_v28  ;;  %14159 = vmatpush3.bf16.msra.mxu0 %v14156_v5  ;;  %v16341_v5 = vld [vmem:[#allocation2 + $0x6f] sm:$0xff] }
  0x46   : > { %14161 = vmatprep.subr.bf16.mxu0 %v14160_v51 }
  0x48   : > { %11829 = vmatmul.mubr.f32.gmra.mrb[8].mxu0 %v16105_v30 }
  0x49   : > { %11831 = vmatprep.mubr.f32.mxu0 %v16113_v34  ;;  %14163 = vmatpush3.bf16.msra.mxu0 %v14160_v51  ;;  %v9879_v51 = vld [vmem:[%s19382_s1 + $0x150] sm:$0xff] }
  0x4a   : > { %14165 = vmatprep.subr.bf16.mxu0 %v14164_v58  ;;  %v14196_v59 = vpack.c.bf16 %v9880_v52, %v9879_v51  ;;  %v16415_v51 = vld [vmem:[#allocation2 + $0x187] sm:$0xff]  ;;  %v16419_v52 = vld [vmem:[#allocation2 + $0x18f] sm:$0xff] }
  0x4c   : > { %11832 = vmatmul.mubr.f32.gmra.mrb[10].mxu0 %v16115_v35 }
  0x4d   : > { %11834 = vmatprep.mubr.f32.mxu0 %v16117_v36  ;;  %14167 = vmatpush3.bf16.msra.mxu0 %v14164_v58  ;;  %v16355_v58 = vld [vmem:[#allocation2 + $0xa7] sm:$0xff] }
  0x4e   : > { %14169 = vmatprep.subr.bf16.mxu0 %v14168_v61 }
  0x50   : > { %11835 = vmatmul.mubr.f32.gmra.mrb[12].mxu0 %v16121_v38 }
  0x51   : > { %11837 = vmatprep.mubr.f32.mxu0 %v16135_v45  ;;  %14171 = vmatpush3.bf16.msra.mxu0 %v14168_v61  ;;  %v9882_v61 = vld [vmem:[%s19382_s1 + $0x168] sm:$0xff] }
  0x52   : > { %14173 = vmatprep.subr.bf16.mxu0 %v14172_v3 }
  0x54   : > { %11838 = vmatmul.mubr.f32.gmra.mrb[14].mxu0 %v16137_v46 }
  0x55   : > { %11840 = vmatprep.mubr.f32.mxu0 %v16139_v47  ;;  %14175 = vmatpush3.bf16.msra.mxu0 %v14172_v3  ;;  %v14200_v3 = vpack.c.bf16 %v9882_v61, %v9881_v60  ;;  %v16425_v60 = vld [vmem:[%s16071_s26 + $0xf0] sm:$0xff] }
  0x56   : > { %14177 = vmatprep.subr.bf16.mxu0 %v14176_v8  ;;  %19532 = vst [vmem:[#allocation13_spill] sm:$0xff] %v16425_v60  ;;  %v16428_v61 = vld [vmem:[#allocation2 + $0x1af] sm:$0xff] }
  0x58   : > { %11841 = vmatmul.mubr.f32.gmra.mrb[16].mxu0 %v16143_v49 }
  0x59   : > { %11843 = vmatprep.mubr.f32.mxu0 %v16151_v53 }
  0x5c   : > { %11844 = vmatmul.mubr.f32.gmra.mrb[18].mxu0 %v16153_v54 }
  0x5d   : > { %11846 = vmatprep.mubr.f32.mxu0 %v16155_v55 }
  0x60   : > { %11847 = vmatmul.mubr.f32.gmra.mrb[20].mxu0 %v16159_v57 }
  0x61   : > { %11849 = vmatprep.mubr.f32.mxu0 %v16173_v0 }
  0x64   : > { %11850 = vmatmul.mubr.f32.gmra.mrb[22].mxu0 %v16175_v1 }
  0x65   : > { %11852 = vmatprep.mubr.f32.mxu0 %v16177_v2 }
  0x68   : > { %11853 = vmatmul.mubr.f32.gmra.mrb[24].mxu0 %v16181_v4  ;;  %v16469_v4 = vld [vmem:[#allocation2 + $0x49] sm:$0xff] }
  0x69   : > { %11855 = vmatprep.mubr.f32.mxu0 %v16189_v9  ;;  %v16467_v9 = vld [vmem:[#allocation2 + $0x31] sm:$0xff]  ;;  %19536 = vst [vmem:[#allocation17_spill] sm:$0xff] %v16469_v4 }
  0x6a   : > { %19535 = vst [vmem:[#allocation16_spill] sm:$0xff] %v16467_v9 }
  0x6c   : > { %11856 = vmatmul.mubr.f32.gmra.mrb[26].mxu0 %v16191_v10  ;;  %v9890_v10 = vld [vmem:[%s19382_s1 + $0x1a8] sm:$0xff] }
  0x6d   : > { %11858 = vmatprep.mubr.f32.mxu0 %v16193_v11  ;;  %v9889_v11 = vld [vmem:[%s19382_s1 + $0x1a0] sm:$0xff] }
  0x70   : > { %11859 = vmatmul.mubr.f32.gmra.mrb[28].mxu0 %v16197_v13 }
  0x71   : > { %11861 = vmatprep.mubr.f32.mxu0 %v16204_v21  ;;  %v885_v21 = vld [vmem:[#allocation2 + $0x9] sm:$0xff] }
  0x74   : > { %11862 = vmatmul.mubr.f32.gmra.mrb[30].mxu0 %v16206_v22  ;;  %v16449_v22 = vld [vmem:[#allocation2 + $0x1ef] sm:$0xff] }
  0x75   : > { %11896 = vmatprep.mubr.f32.mxu0 %v338_v12  ;;  %v16379_v12 = vld [vmem:[#allocation2 + $0xe7] sm:$0xff] }
  0x78   : > { %11897 = vmatmul.mubr.f32.vlgmr.msra.gmra.mrb[0].mxu0 %v339_v20  ;;  %v9886_v20 = vld [vmem:[%s19382_s1 + $0x188] sm:$0xff] }
  0x79   : > { %14179 = vmatpush3.bf16.msra.mxu0 %v14176_v8  ;;  %11899 = vmatprep.mubr.f32.mxu0 %v16308_v23  ;;  %v16377_v8 = vld [vmem:[#allocation2 + $0xcf] sm:$0xff]  ;;  %v14208_v29 = vpack.c.bf16 %v9886_v20, %v9885_v18  ;;  %v16445_v20 = vld [vmem:[#allocation2 + $0x1e7] sm:$0xff] }
  0x7a   : > { %14181 = vmatprep.subr.bf16.mxu0 %v14180_v24  ;;  %v16443_v18 = vld [vmem:[#allocation2 + $0x1cf] sm:$0xff] }
  0x7c   : > { %11900 = vmatmul.mubr.f32.gmra.mrb[2].mxu0 %v16317_v31 }
  0x7d   : > { %11902 = vmatprep.mubr.f32.mxu0 %v16319_v32  ;;  %14183 = vmatpush3.bf16.msra.mxu0 %v14180_v24  ;;  %v16389_v24 = vld [vmem:[#allocation2 + $0xef] sm:$0xff] }
  0x7e   : > { %14185 = vmatprep.subr.bf16.mxu0 %v14184_v33 }
  0x80   : > { %11903 = vmatmul.mubr.f32.gmra.mrb[4].mxu0 %v16329_v40 }
  0x81   : > { %11905 = vmatprep.mubr.f32.mxu0 %v16331_v41  ;;  %14187 = vmatpush3.bf16.msra.mxu0 %v14184_v33  ;;  %v16395_v33 = vld [vmem:[#allocation2 + $0x10f] sm:$0xff] }
  0x82   : > { %14189 = vmatprep.subr.bf16.mxu0 %v14188_v42 }
  0x84   : > { %11906 = vmatmul.mubr.f32.gmra.mrb[6].mxu0 %v16341_v5 }
  0x85   : > { %11908 = vmatprep.mubr.f32.mxu0 %v16343_v48  ;;  %14191 = vmatpush3.bf16.msra.mxu0 %v14188_v42  ;;  %v16403_v42 = vld [vmem:[#allocation2 + $0x147] sm:$0xff] }
  0x86   : > { %14193 = vmatprep.subr.bf16.mxu0 %v14192_v50 }
  0x88   : > { %11909 = vmatmul.mubr.f32.gmra.mrb[8].mxu0 %v16353_v56 }
  0x89   : > { %11911 = vmatprep.mubr.f32.mxu0 %v16355_v58  ;;  %14195 = vmatpush3.bf16.msra.mxu0 %v14192_v50  ;;  %v16413_v50 = vld [vmem:[#allocation2 + $0x16f] sm:$0xff] }
  0x8a   : > { %14197 = vmatprep.subr.bf16.mxu0 %v14196_v59 }
  0x8c   : > { %11912 = vmatmul.mubr.f32.gmra.mrb[10].mxu0 %v16365_v62 }
  0x8d   : > { %11914 = vmatprep.mubr.f32.mxu0 %v16367_v63  ;;  %14199 = vmatpush3.bf16.msra.mxu0 %v14196_v59  ;;  %v16421_v59 = vld [vmem:[#allocation2 + $0x1a7] sm:$0xff] }
  0x8e   : > { %14201 = vmatprep.subr.bf16.mxu0 %v14200_v3 }
  0x90   : > { %11915 = vmatmul.mubr.f32.gmra.mrb[12].mxu0 %v16377_v8 }
  0x91   : > { %11917 = vmatprep.mubr.f32.mxu0 %v16379_v12  ;;  %14203 = vmatpush3.bf16.msra.mxu0 %v14200_v3  ;;  %v19387_v3 = vmax.f32 %v16425_v60, 0.0  ;;  %v16458_v60 = vld [vmem:[#allocation2 + $0x29] sm:$0xff] }
  0x92   : > { %14205 = vmatprep.subr.bf16.mxu0 %v14204_v14  ;;  %19534 = vst [vmem:[#allocation15_spill] sm:$0xff] %v16458_v60 }
  0x93   : > { %336 = vst [vmem:[#allocation2 + $0x208] sm:$0xff] %v19387_v3  ;;  %v9887_v3 = vld [vmem:[%s19382_s1 + $0x190] sm:$0xff] }
  0x94   : > { %11918 = vmatmul.mubr.f32.gmra.mrb[14].mxu0 %v16389_v24 }
  0x95   : > { %11920 = vmatprep.mubr.f32.mxu0 %v16391_v25  ;;  %14207 = vmatpush3.bf16.msra.mxu0 %v14204_v14  ;;  %v19388_v14 = vmax.f32 %v16432_v6, 0.0  ;;  %v886_v6 = vld [vmem:[#allocation2 + $0x11] sm:$0xff] }
  0x96   : > { %14209 = vmatprep.subr.bf16.mxu0 %v14208_v29 }
  0x97   : > { %337 = vst [vmem:[#allocation2 + $0x210] sm:$0xff] %v19388_v14  ;;  %v9888_v14 = vld [vmem:[%s19382_s1 + $0x198] sm:$0xff] }
  0x98   : > { %11921 = vmatmul.mubr.f32.gmra.mrb[16].mxu0 %v16395_v33  ;;  %v14212_v13 = vpack.c.bf16 %v9888_v14, %v9887_v3  ;;  %v9891_v3 = vld [vmem:[%s19382_s1 + $0x1b0] sm:$0xff]  ;;  %v9892_v14 = vld [vmem:[%s19382_s1 + $0x1b8] sm:$0xff] }
  0x99   : > { %11923 = vmatprep.mubr.f32.mxu0 %v16397_v37 }
  0x9c   : > { %11924 = vmatmul.mubr.f32.gmra.mrb[18].mxu0 %v16401_v39 }
  0x9d   : > { %11926 = vmatprep.mubr.f32.mxu0 %v16403_v42 }
  0xa0   : > { %11927 = vmatmul.mubr.f32.gmra.mrb[20].mxu0 %v16407_v43 }
  0xa1   : > { %11929 = vmatprep.mubr.f32.mxu0 %v16409_v44 }
  0xa4   : > { %11930 = vmatmul.mubr.f32.gmra.mrb[22].mxu0 %v16413_v50 }
  0xa5   : > { %11932 = vmatprep.mubr.f32.mxu0 %v16415_v51 }
  0xa8   : > { %11933 = vmatmul.mubr.f32.gmra.mrb[24].mxu0 %v16419_v52 }
  0xa9   : > { %11935 = vmatprep.mubr.f32.mxu0 %v16421_v59 }
  0xac   : > { %11936 = vmatmul.mubr.f32.gmra.mrb[26].mxu0 %v16428_v61 }
  0xad   : > { %11938 = vmatprep.mubr.f32.mxu0 %v16434_v7 }
  0xb0   : > { %11939 = vmatmul.mubr.f32.gmra.mrb[28].mxu0 %v16443_v18 }
  0xb1   : > { %11941 = vmatprep.mubr.f32.mxu0 %v16445_v20 }
  0xb4   : > { %11942 = vmatmul.mubr.f32.gmra.mrb[30].mxu0 %v16449_v22 }
  0xb5   : > { %11976 = vmatprep.mubr.f32.mxu0 %v885_v21  ;;  %v14216_v21 = vpack.c.bf16 %v9890_v10, %v9889_v11  ;;  %v9893_v10 = vld [vmem:[%s19382_s1 + $0x1c0] sm:$0xff]  ;;  %v9894_v11 = vld [vmem:[%s19382_s1 + $0x1c8] sm:$0xff] }
  0xb8   : > { %11977 = vmatmul.mubr.f32.vlgmr.msra.gmra.mrb[0].mxu0 %v886_v6  ;;  %v16481_v6 = vld [vmem:[#allocation2 + $0x69] sm:$0xff] }
  0xb9   : > { %14211 = vmatpush3.bf16.msra.mxu0 %v14208_v29  ;;  %11979 = vmatprep.mubr.f32.mxu0 %v16458_v60  ;;  %v16479_v29 = vld [vmem:[#allocation2 + $0x51] sm:$0xff]  ;;  %19538 = vst [vmem:[#allocation19_spill] sm:$0xff] %v16481_v6  ;;  %v14220_v60 = vpack.c.bf16 %v9892_v14, %v9891_v3 }
  0xba   : > { %14213 = vmatprep.subr.bf16.mxu0 %v14212_v13  ;;  %19537 = vst [vmem:[#allocation18_spill] sm:$0xff] %v16479_v29  ;;  %v9895_v3 = vld [vmem:[%s19382_s1 + $0x1d0] sm:$0xff]  ;;  %v9896_v14 = vld [vmem:[%s19382_s1 + $0x1d8] sm:$0xff] }
  0xbc   : > { %11980 = vmatmul.mubr.f32.gmra.mrb[2].mxu0 %v16467_v9  ;;  %v14224_v9 = vpack.c.bf16 %v9894_v11, %v9893_v10  ;;  %v9897_v10 = vld [vmem:[%s19382_s1 + $0x1e0] sm:$0xff]  ;;  %v9898_v11 = vld [vmem:[%s19382_s1 + $0x1e8] sm:$0xff] }
  0xbd   : > { %11982 = vmatprep.mubr.f32.mxu0 %v16469_v4  ;;  %14215 = vmatpush3.bf16.msra.mxu0 %v14212_v13  ;;  %v16491_v4 = vld [vmem:[#allocation2 + $0x71] sm:$0xff]  ;;  %v16493_v13 = vld [vmem:[#allocation2 + $0x89] sm:$0xff] }
  0xbe   : > { %14217 = vmatprep.subr.bf16.mxu0 %v14216_v21  ;;  %19539 = vst [vmem:[#allocation20_spill] sm:$0xff] %v16491_v4  ;;  %19540 = vst [vmem:[#allocation21_spill] sm:$0xff] %v16493_v13 }
  0xc0   : > { %11983 = vmatmul.mubr.f32.gmra.mrb[4].mxu0 %v16479_v29  ;;  %v14228_v29 = vpack.c.bf16 %v9896_v14, %v9895_v3  ;;  %v9899_v3 = vld [vmem:[%s19382_s1 + $0x1f0] sm:$0xff]  ;;  %v9900_v14 = vld [vmem:[%s19382_s1 + $0x1f8] sm:$0xff] }
  0xc1   : > { %11985 = vmatprep.mubr.f32.mxu0 %v16481_v6  ;;  %14219 = vmatpush3.bf16.msra.mxu0 %v14216_v21  ;;  %v16503_v6 = vld [vmem:[#allocation2 + $0x91] sm:$0xff]  ;;  %v16505_v21 = vld [vmem:[#allocation2 + $0xa9] sm:$0xff] }
  0xc2   : > { %14221 = vmatprep.subr.bf16.mxu0 %v14220_v60  ;;  %19541 = vst [vmem:[#allocation22_spill] sm:$0xff] %v16503_v6  ;;  %19542 = vst [vmem:[#allocation23_spill] sm:$0xff] %v16505_v21 }
  0xc4   : > { %11986 = vmatmul.mubr.f32.gmra.mrb[6].mxu0 %v16491_v4  ;;  %v14232_v4 = vpack.c.bf16 %v9898_v11, %v9897_v10  ;;  %v9901_v10 = vld [vmem:[%s19382_s1 + $0x200] sm:$0xff]  ;;  %v9902_v11 = vld [vmem:[%s19382_s1 + $0x208] sm:$0xff] }
  0xc5   : > { %11988 = vmatprep.mubr.f32.mxu0 %v16493_v13  ;;  %14223 = vmatpush3.bf16.msra.mxu0 %v14220_v60  ;;  %v16515_v13 = vld [vmem:[#allocation2 + $0xb1] sm:$0xff]  ;;  %v16517_v60 = vld [vmem:[#allocation2 + $0xc9] sm:$0xff] }
  0xc6   : > { %14225 = vmatprep.subr.bf16.mxu0 %v14224_v9  ;;  %19543 = vst [vmem:[#allocation24_spill] sm:$0xff] %v16515_v13  ;;  %19544 = vst [vmem:[#allocation25_spill] sm:$0xff] %v16517_v60 }
  0xc8   : > { %11989 = vmatmul.mubr.f32.gmra.mrb[8].mxu0 %v16503_v6  ;;  %v14236_v6 = vpack.c.bf16 %v9900_v14, %v9899_v3  ;;  %v16545_v3 = vld [vmem:[#allocation2 + $0x111] sm:$0xff]  ;;  %v16547_v14 = vld [vmem:[#allocation2 + $0x129] sm:$0xff] }
  0xc9   : > { %11991 = vmatprep.mubr.f32.mxu0 %v16505_v21  ;;  %14227 = vmatpush3.bf16.msra.mxu0 %v14224_v9  ;;  %v16527_v21 = vld [vmem:[#allocation2 + $0xd1] sm:$0xff]  ;;  %v16529_v9 = vld [vmem:[#allocation2 + $0xe9] sm:$0xff]  ;;  %19546 = vst [vmem:[#allocation27_spill] sm:$0xff] %v16545_v3  ;;  %19547 = vst [vmem:[#allocation28_spill] sm:$0xff] %v16547_v14 }
  0xca   : > { %14229 = vmatprep.subr.bf16.mxu0 %v14228_v29  ;;  %19545 = vst [vmem:[#allocation26_spill] sm:$0xff] %v16529_v9 }
  0xcc   : > { %11992 = vmatmul.mubr.f32.gmra.mrb[10].mxu0 %v16515_v13  ;;  %v14240_v13 = vpack.c.bf16 %v9902_v11, %v9901_v10  ;;  %v16557_v10 = vld [vmem:[#allocation2 + $0x151] sm:$0xff]  ;;  %v16559_v11 = vld [vmem:[#allocation2 + $0x169] sm:$0xff] }
  0xcd   : > { %11994 = vmatprep.mubr.f32.mxu0 %v16517_v60  ;;  %14231 = vmatpush3.bf16.msra.mxu0 %v14228_v29  ;;  %v16539_v60 = vld [vmem:[#allocation2 + $0xf1] sm:$0xff]  ;;  %v16541_v29 = vld [vmem:[#allocation2 + $0x109] sm:$0xff]  ;;  %19550 = vst [vmem:[#allocation31_spill] sm:$0xff] %v16557_v10  ;;  %19551 = vst [vmem:[#allocation32_spill] sm:$0xff] %v16559_v11 }
  0xce   : > { %14233 = vmatprep.subr.bf16.mxu0 %v14232_v4 }
  0xd0   : > { %11995 = vmatmul.mubr.f32.gmra.mrb[12].mxu0 %v16527_v21 }
  0xd1   : > { %11997 = vmatprep.mubr.f32.mxu0 %v16529_v9  ;;  %14235 = vmatpush3.bf16.msra.mxu0 %v14232_v4  ;;  %v16551_v9 = vld [vmem:[#allocation2 + $0x131] sm:$0xff]  ;;  %v16553_v4 = vld [vmem:[#allocation2 + $0x149] sm:$0xff] }
  0xd2   : > { %14237 = vmatprep.subr.bf16.mxu0 %v14236_v6  ;;  %19548 = vst [vmem:[#allocation29_spill] sm:$0xff] %v16551_v9  ;;  %19549 = vst [vmem:[#allocation30_spill] sm:$0xff] %v16553_v4 }
  0xd4   : > { %11998 = vmatmul.mubr.f32.gmra.mrb[14].mxu0 %v16539_v60 }
  0xd5   : > { %12000 = vmatprep.mubr.f32.mxu0 %v16541_v29  ;;  %14239 = vmatpush3.bf16.msra.mxu0 %v14236_v6  ;;  %v16563_v6 = vld [vmem:[#allocation2 + $0x171] sm:$0xff] }
  0xd6   : > { %14241 = vmatprep.subr.bf16.mxu0 %v14240_v13  ;;  %19552 = vst [vmem:[#allocation33_spill] sm:$0xff] %v16563_v6 }
  0xd8   : > { %12001 = vmatmul.mubr.f32.gmra.mrb[16].mxu0 %v16545_v3  ;;  %v16565_v3 = vld [vmem:[#allocation2 + $0x189] sm:$0xff] }
  0xd9   : > { %12003 = vmatprep.mubr.f32.mxu0 %v16547_v14  ;;  %19553 = vst [vmem:[#allocation34_spill] sm:$0xff] %v16565_v3  ;;  %v16569_v14 = vld [vmem:[#allocation2 + $0x191] sm:$0xff] }
  0xda   : > { %19554 = vst [vmem:[#allocation35_spill] sm:$0xff] %v16569_v14 }
  0xdc   : > { %12004 = vmatmul.mubr.f32.gmra.mrb[18].mxu0 %v16551_v9  ;;  %v16571_v9 = vld [vmem:[#allocation2 + $0x1a9] sm:$0xff] }
  0xdd   : > { %12006 = vmatprep.mubr.f32.mxu0 %v16553_v4  ;;  %19555 = vst [vmem:[#allocation36_spill] sm:$0xff] %v16571_v9  ;;  %v16575_v4 = vld [vmem:[#allocation2 + $0x1b1] sm:$0xff] }
  0xde   : > { %19556 = vst [vmem:[#allocation37_spill] sm:$0xff] %v16575_v4 }
  0xe0   : > { %12007 = vmatmul.mubr.f32.gmra.mrb[20].mxu0 %v16557_v10  ;;  %v16577_v10 = vld [vmem:[#allocation2 + $0x1c9] sm:$0xff] }
  0xe1   : > { %12009 = vmatprep.mubr.f32.mxu0 %v16559_v11  ;;  %19557 = vst [vmem:[#allocation38_spill] sm:$0xff] %v16577_v10  ;;  %v16581_v11 = vld [vmem:[#allocation2 + $0x1d1] sm:$0xff] }
  0xe2   : > { %19558 = vst [vmem:[#allocation39_spill] sm:$0xff] %v16581_v11 }
  0xe4   : > { %12010 = vmatmul.mubr.f32.gmra.mrb[22].mxu0 %v16563_v6  ;;  %v16583_v6 = vld [vmem:[#allocation2 + $0x1e9] sm:$0xff] }
  0xe5   : > { %12012 = vmatprep.mubr.f32.mxu0 %v16565_v3  ;;  %19559 = vst [vmem:[#allocation40_spill] sm:$0xff] %v16583_v6  ;;  %v16587_v3 = vld [vmem:[#allocation2 + $0x1f1] sm:$0xff] }
  0xe8   : > { %12013 = vmatmul.mubr.f32.gmra.mrb[24].mxu0 %v16569_v14 }
  0xe9   : > { %12015 = vmatprep.mubr.f32.mxu0 %v16571_v9  ;;  %v9903_v9 = vld [vmem:[%s19382_s1 + $0x210] sm:$0xff] }
  0xec   : > { %12016 = vmatmul.mubr.f32.gmra.mrb[26].mxu0 %v16575_v4  ;;  %v9904_v4 = vld [vmem:[%s19382_s1 + $0x218] sm:$0xff] }
  0xed   : > { %12018 = vmatprep.mubr.f32.mxu0 %v16577_v10  ;;  %v14244_v10 = vpack.c.bf16 %v9904_v4, %v9903_v9  ;;  %v9908_v9 = vld [vmem:[%s19382_s1 + $0x238] sm:$0xff] }
  0xee   : > { %v9912_v4 = vld [vmem:[%s19382_s1 + $0x258] sm:$0xff] }
  0xf0   : > { %12019 = vmatmul.mubr.f32.gmra.mrb[28].mxu0 %v16581_v11  ;;  %v9905_v11 = vld [vmem:[%s19382_s1 + $0x220] sm:$0xff] }
  0xf1   : > { %12021 = vmatprep.mubr.f32.mxu0 %v16583_v6  ;;  %v9906_v6 = vld [vmem:[%s19382_s1 + $0x228] sm:$0xff] }
  0xf2   : > { %v14248_v14 = vpack.c.bf16 %v9906_v6, %v9905_v11  ;;  %v9918_v11 = vld [vmem:[%s19382_s1 + $0x288] sm:$0xff]  ;;  %v9937_v6 = vld [vmem:[%s19382_s1 + $0x320] sm:$0xff] }
  0xf4   : > { %12022 = vmatmul.mubr.f32.gmra.mrb[30].mxu0 %v16587_v3 }
  0xf5   : > { %12056 = vmatprep.mubr.f32.mxu0 %v16308_v23  ;;  %v9907_v23 = vld [vmem:[%s19382_s1 + $0x230] sm:$0xff] }
  0xf8   : > { %12057 = vmatmul.mubr.f32.vlgmr.msra.gmra.mrb[0].mxu0 %v16317_v31  ;;  %v14252_v31 = vpack.c.bf16 %v9908_v9, %v9907_v23  ;;  %v9938_v23 = vld [vmem:[%s19382_s1 + $0x328] sm:$0xff]  ;;  %v19572_v9 = vld [vmem:[#allocation16_spill] sm:$0xff] }
  0xf9   : > { %14243 = vmatpush3.bf16.msra.mxu0 %v14240_v13  ;;  %12059 = vmatprep.mubr.f32.mxu0 %v16319_v32  ;;  %v9909_v32 = vld [vmem:[%s19382_s1 + $0x240] sm:$0xff]  ;;  %v9910_v13 = vld [vmem:[%s19382_s1 + $0x248] sm:$0xff] }
  0xfa   : > { %14245 = vmatprep.subr.bf16.mxu0 %v14244_v10 }
  0xfc   : > { %12060 = vmatmul.mubr.f32.gmra.mrb[2].mxu0 %v16329_v40  ;;  %v14256_v40 = vpack.c.bf16 %v9910_v13, %v9909_v32  ;;  %v14312_v32 = vpack.c.bf16 %v9938_v23, %v9937_v6  ;;  %v9939_v13 = vld [vmem:[%s19382_s1 + $0x330] sm:$0xff]  ;;  %v2116_v6 = vld [vmem:[#allocation2 + $0xa7] sm:$0xff] }
  0xfd   : > { %12062 = vmatprep.mubr.f32.mxu0 %v16331_v41  ;;  %14247 = vmatpush3.bf16.msra.mxu0 %v14244_v10  ;;  %v9911_v41 = vld [vmem:[%s19382_s1 + $0x250] sm:$0xff]  ;;  %v9916_v10 = vld [vmem:[%s19382_s1 + $0x278] sm:$0xff] }
  0xfe   : > { %14249 = vmatprep.subr.bf16.mxu0 %v14248_v14 }
 0x100   : > { %12063 = vmatmul.mubr.f32.gmra.mrb[4].mxu0 %v16341_v5  ;;  %v14260_v5 = vpack.c.bf16 %v9912_v4, %v9911_v41  ;;  %v19574_v41 = vld [vmem:[#allocation18_spill] sm:$0xff]  ;;  %v19575_v4 = vld [vmem:[#allocation19_spill] sm:$0xff] }
 0x101   : > { %12065 = vmatprep.mubr.f32.mxu0 %v16343_v48  ;;  %14251 = vmatpush3.bf16.msra.mxu0 %v14248_v14  ;;  %v9913_v48 = vld [vmem:[%s19382_s1 + $0x260] sm:$0xff]  ;;  %v9914_v14 = vld [vmem:[%s19382_s1 + $0x268] sm:$0xff] }
 0x102   : > { %14253 = vmatprep.subr.bf16.mxu0 %v14252_v31 }
 0x104   : > { %12066 = vmatmul.mubr.f32.gmra.mrb[6].mxu0 %v16353_v56  ;;  %v14264_v56 = vpack.c.bf16 %v9914_v14, %v9913_v48  ;;  %v9941_v48 = vld [vmem:[%s19382_s1 + $0x340] sm:$0xff]  ;;  %v9942_v14 = vld [vmem:[%s19382_s1 + $0x348] sm:$0xff] }
 0x105   : > { %12068 = vmatprep.mubr.f32.mxu0 %v16355_v58  ;;  %14255 = vmatpush3.bf16.msra.mxu0 %v14252_v31  ;;  %v9915_v58 = vld [vmem:[%s19382_s1 + $0x270] sm:$0xff]  ;;  %v19573_v31 = vld [vmem:[#allocation17_spill] sm:$0xff] }
 0x106   : > { %14257 = vmatprep.subr.bf16.mxu0 %v14256_v40 }
 0x108   : > { %12069 = vmatmul.mubr.f32.gmra.mrb[8].mxu0 %v16365_v62  ;;  %v14268_v62 = vpack.c.bf16 %v9916_v10, %v9915_v58  ;;  %v19577_v58 = vld [vmem:[#allocation21_spill] sm:$0xff]  ;;  %v14320_v10 = vpack.c.bf16 %v9942_v14, %v9941_v48  ;;  %v2120_v48 = vld [vmem:[#allocation2 + $0xe7] sm:$0xff] }
 0x109   : > { %12071 = vmatprep.mubr.f32.mxu0 %v16367_v63  ;;  %14259 = vmatpush3.bf16.msra.mxu0 %v14256_v40  ;;  %v9917_v63 = vld [vmem:[%s19382_s1 + $0x280] sm:$0xff]  ;;  %v9940_v40 = vld [vmem:[%s19382_s1 + $0x338] sm:$0xff] }
 0x10a   : > { %14261 = vmatprep.subr.bf16.mxu0 %v14260_v5 }
 0x10c   : > { %12072 = vmatmul.mubr.f32.gmra.mrb[10].mxu0 %v16377_v8  ;;  %v14272_v8 = vpack.c.bf16 %v9918_v11, %v9917_v63  ;;  %v9944_v63 = vld [vmem:[%s19382_s1 + $0x358] sm:$0xff]  ;;  %v19578_v11 = vld [vmem:[#allocation22_spill] sm:$0xff] }
 0x10d   : > { %12074 = vmatprep.mubr.f32.mxu0 %v16379_v12  ;;  %14263 = vmatpush3.bf16.msra.mxu0 %v14260_v5  ;;  %v16667_v12 = vld [vmem:[#allocation2 + $0x207] sm:$0xff]  ;;  %v14316_v5 = vpack.c.bf16 %v9940_v40, %v9939_v13 }
 0x10e   : > { %14265 = vmatprep.subr.bf16.mxu0 %v14264_v56  ;;  %v2118_v13 = vld [vmem:[#allocation2 + $0xc7] sm:$0xff] }
 0x110   : > { %12075 = vmatmul.mubr.f32.gmra.mrb[12].mxu0 %v16389_v24  ;;  %v16671_v24 = vld [vmem:[#allocation2 + $0x20f] sm:$0xff] }
 0x111   : > { %12077 = vmatprep.mubr.f32.mxu0 %v16391_v25  ;;  %14267 = vmatpush3.bf16.msra.mxu0 %v14264_v56  ;;  %v9919_v25 = vld [vmem:[%s19382_s1 + $0x290] sm:$0xff] }
 0x112   : > { %14269 = vmatprep.subr.bf16.mxu0 %v14268_v62  ;;  %v19576_v56 = vld [vmem:[#allocation20_spill] sm:$0xff] }
 0x114   : > { %12078 = vmatmul.mubr.f32.gmra.mrb[14].mxu0 %v16395_v33  ;;  %v9920_v33 = vld [vmem:[%s19382_s1 + $0x298] sm:$0xff] }
 0x115   : > { %12080 = vmatprep.mubr.f32.mxu0 %v16397_v37  ;;  %14271 = vmatpush3.bf16.msra.mxu0 %v14268_v62  ;;  %v14276_v37 = vpack.c.bf16 %v9920_v33, %v9919_v25  ;;  %v9943_v62 = vld [vmem:[%s19382_s1 + $0x350] sm:$0xff]  ;;  %v9945_v33 = vld [vmem:[%s19382_s1 + $0x360] sm:$0xff] }
 0x116   : > { %14273 = vmatprep.subr.bf16.mxu0 %v14272_v8  ;;  %v14324_v25 = vpack.c.bf16 %v9944_v63, %v9943_v62  ;;  %v2122_v62 = vld [vmem:[#allocation2 + $0x107] sm:$0xff] }
 0x118   : > { %12081 = vmatmul.mubr.f32.gmra.mrb[16].mxu0 %v16401_v39  ;;  %v9922_v39 = vld [vmem:[%s19382_s1 + $0x2a8] sm:$0xff] }
 0x119   : > { %12083 = vmatprep.mubr.f32.mxu0 %v16403_v42 }
 0x11c   : > { %12084 = vmatmul.mubr.f32.gmra.mrb[18].mxu0 %v16407_v43  ;;  %v9924_v43 = vld [vmem:[%s19382_s1 + $0x2b8] sm:$0xff] }
 0x11d   : > { %12086 = vmatprep.mubr.f32.mxu0 %v16409_v44  ;;  %v9926_v44 = vld [vmem:[%s19382_s1 + $0x2c8] sm:$0xff] }
 0x120   : > { %12087 = vmatmul.mubr.f32.gmra.mrb[20].mxu0 %v16413_v50  ;;  %v9928_v50 = vld [vmem:[%s19382_s1 + $0x2d8] sm:$0xff] }
 0x121   : > { %12089 = vmatprep.mubr.f32.mxu0 %v16415_v51  ;;  %v9930_v51 = vld [vmem:[%s19382_s1 + $0x2e8] sm:$0xff] }
 0x124   : > { %12090 = vmatmul.mubr.f32.gmra.mrb[22].mxu0 %v16419_v52  ;;  %v9932_v52 = vld [vmem:[%s19382_s1 + $0x2f8] sm:$0xff] }
 0x125   : > { %12092 = vmatprep.mubr.f32.mxu0 %v16421_v59  ;;  %v9934_v59 = vld [vmem:[%s19382_s1 + $0x308] sm:$0xff] }
 0x128   : > { %12093 = vmatmul.mubr.f32.gmra.mrb[24].mxu0 %v16428_v61  ;;  %v19569_v61 = vld [vmem:[#allocation14_spill] sm:$0xff] }
 0x129   : > { %12095 = vmatprep.mubr.f32.mxu0 %v16434_v7  ;;  %v19570_v7 = vmax.f32 %v19569_v61, 0.0 }
 0x12c   : > { %12096 = vmatmul.mubr.f32.gmra.mrb[26].mxu0 %v16443_v18  ;;  %v19571_v18 = vld [vmem:[#allocation15_spill] sm:$0xff] }
 0x12d   : > { %12098 = vmatprep.mubr.f32.mxu0 %v16445_v20 }
 0x130   : > { %12099 = vmatmul.mubr.f32.gmra.mrb[28].mxu0 %v16449_v22  ;;  %v9921_v22 = vld [vmem:[%s19382_s1 + $0x2a0] sm:$0xff] }
 0x131   : > { %12101 = vmatprep.mubr.f32.mxu0 %v16667_v12  ;;  %v14280_v42 = vpack.c.bf16 %v9922_v39, %v9921_v22  ;;  %v19580_v22 = vld [vmem:[#allocation24_spill] sm:$0xff]  ;;  %v19581_v39 = vld [vmem:[#allocation25_spill] sm:$0xff] }
 0x134   : > { %12102 = vmatmul.mubr.f32.gmra.mrb[30].mxu0 %v16671_v24 }
 0x135   : > { %12136 = vmatprep.mubr.f32.mxu0 %v16076_v15  ;;  %v9923_v15 = vld [vmem:[%s19382_s1 + $0x2b0] sm:$0xff] }
 0x138   : > { %12137 = vmatmul.mubr.f32.vlgmr.msra.gmra.mrb[0].mxu0 %v16078_v16  ;;  %v14284_v16 = vpack.c.bf16 %v9924_v43, %v9923_v15  ;;  %v9947_v15 = vld [vmem:[%s19382_s1 + $0x370] sm:$0xff]  ;;  %v9948_v43 = vld [vmem:[%s19382_s1 + $0x378] sm:$0xff] }
 0x139   : > { %14275 = vmatpush3.bf16.msra.mxu0 %v14272_v8  ;;  %12139 = vmatprep.mubr.f32.mxu0 %v16080_v17  ;;  %v9925_v17 = vld [vmem:[%s19382_s1 + $0x2c0] sm:$0xff]  ;;  %v19579_v8 = vld [vmem:[#allocation23_spill] sm:$0xff] }
 0x13a   : > { %14277 = vmatprep.subr.bf16.mxu0 %v14276_v37 }
 0x13c   : > { %12140 = vmatmul.mubr.f32.gmra.mrb[2].mxu0 %v16083_v19  ;;  %v14288_v19 = vpack.c.bf16 %v9926_v44, %v9925_v17  ;;  %v14332_v17 = vpack.c.bf16 %v9948_v43, %v9947_v15  ;;  %v9949_v44 = vld [vmem:[%s19382_s1 + $0x380] sm:$0xff] }
 0x13d   : > { %12142 = vmatprep.mubr.f32.mxu0 %v16097_v26  ;;  %14279 = vmatpush3.bf16.msra.mxu0 %v14276_v37  ;;  %v9927_v26 = vld [vmem:[%s19382_s1 + $0x2d0] sm:$0xff]  ;;  %v9946_v37 = vld [vmem:[%s19382_s1 + $0x368] sm:$0xff] }
 0x13e   : > { %14281 = vmatprep.subr.bf16.mxu0 %v14280_v42  ;;  %v2126_v15 = vld [vmem:[#allocation2 + $0x147] sm:$0xff] }
 0x140   : > { %12143 = vmatmul.mubr.f32.gmra.mrb[4].mxu0 %v16099_v27  ;;  %v14292_v27 = vpack.c.bf16 %v9928_v50, %v9927_v26  ;;  %v19583_v26 = vld [vmem:[#allocation27_spill] sm:$0xff]  ;;  %v19584_v50 = vld [vmem:[#allocation28_spill] sm:$0xff] }
 0x141   : > { %12145 = vmatprep.mubr.f32.mxu0 %v16101_v28  ;;  %14283 = vmatpush3.bf16.msra.mxu0 %v14280_v42  ;;  %v9929_v28 = vld [vmem:[%s19382_s1 + $0x2e0] sm:$0xff]  ;;  %v14328_v42 = vpack.c.bf16 %v9946_v37, %v9945_v33 }
 0x142   : > { %14285 = vmatprep.subr.bf16.mxu0 %v14284_v16  ;;  %v2124_v33 = vld [vmem:[#allocation2 + $0x127] sm:$0xff] }
 0x144   : > { %12146 = vmatmul.mubr.f32.gmra.mrb[6].mxu0 %v16105_v30  ;;  %v14296_v30 = vpack.c.bf16 %v9930_v51, %v9929_v28  ;;  %v19586_v28 = vld [vmem:[#allocation30_spill] sm:$0xff]  ;;  %v19587_v51 = vld [vmem:[#allocation31_spill] sm:$0xff] }
 0x145   : > { %12148 = vmatprep.mubr.f32.mxu0 %v16113_v34  ;;  %14287 = vmatpush3.bf16.msra.mxu0 %v14284_v16  ;;  %v9931_v34 = vld [vmem:[%s19382_s1 + $0x2f0] sm:$0xff]  ;;  %v19582_v16 = vld [vmem:[#allocation26_spill] sm:$0xff] }
 0x146   : > { %14289 = vmatprep.subr.bf16.mxu0 %v14288_v19 }
 0x148   : > { %12149 = vmatmul.mubr.f32.gmra.mrb[8].mxu0 %v16115_v35  ;;  %v14300_v35 = vpack.c.bf16 %v9932_v52, %v9931_v34  ;;  %v19591_v34 = vld [vmem:[#allocation35_spill] sm:$0xff]  ;;  %v19592_v52 = vld [vmem:[#allocation36_spill] sm:$0xff] }
 0x149   : > { %12151 = vmatprep.mubr.f32.mxu0 %v16117_v36  ;;  %14291 = vmatpush3.bf16.msra.mxu0 %v14288_v19  ;;  %v9933_v36 = vld [vmem:[%s19382_s1 + $0x300] sm:$0xff]  ;;  %v9950_v19 = vld [vmem:[%s19382_s1 + $0x388] sm:$0xff] }
 0x14a   : > { %14293 = vmatprep.subr.bf16.mxu0 %v14292_v27 }
 0x14c   : > { %12152 = vmatmul.mubr.f32.gmra.mrb[10].mxu0 %v16121_v38  ;;  %v14304_v38 = vpack.c.bf16 %v9934_v59, %v9933_v36  ;;  %v19594_v36 = vld [vmem:[#allocation38_spill] sm:$0xff]  ;;  %v19595_v59 = vld [vmem:[#allocation39_spill] sm:$0xff] }
 0x14d   : > { %12154 = vmatprep.mubr.f32.mxu0 %v16135_v45  ;;  %14295 = vmatpush3.bf16.msra.mxu0 %v14292_v27  ;;  %v19560_v45 = vld [vmem:[#allocation6_spill] sm:$0xff]  ;;  %v19585_v27 = vld [vmem:[#allocation29_spill] sm:$0xff] }
 0x14e   : > { %14297 = vmatprep.subr.bf16.mxu0 %v14296_v30 }
 0x150   : > { %12155 = vmatmul.mubr.f32.gmra.mrb[12].mxu0 %v16137_v46  ;;  %v19561_v46 = vld [vmem:[#allocation7_spill] sm:$0xff] }
 0x151   : > { %12157 = vmatprep.mubr.f32.mxu0 %v16139_v47  ;;  %14299 = vmatpush3.bf16.msra.mxu0 %v14296_v30  ;;  %v19562_v47 = vld [vmem:[#allocation8_spill] sm:$0xff] }
 0x152   : > { %14301 = vmatprep.subr.bf16.mxu0 %v14300_v35  ;;  %v19588_v30 = vld [vmem:[#allocation32_spill] sm:$0xff] }
 0x154   : > { %12158 = vmatmul.mubr.f32.gmra.mrb[14].mxu0 %v16143_v49  ;;  %v19563_v49 = vld [vmem:[#allocation9_spill] sm:$0xff] }
 0x155   : > { %12160 = vmatprep.mubr.f32.mxu0 %v16151_v53  ;;  %14303 = vmatpush3.bf16.msra.mxu0 %v14300_v35  ;;  %v19564_v53 = vld [vmem:[#allocation10_spill] sm:$0xff]  ;;  %v19593_v35 = vld [vmem:[#allocation37_spill] sm:$0xff] }
 0x156   : > { %14305 = vmatprep.subr.bf16.mxu0 %v14304_v38 }
 0x158   : > { %12161 = vmatmul.mubr.f32.gmra.mrb[16].mxu0 %v16153_v54  ;;  %v19565_v54 = vld [vmem:[#allocation11_spill] sm:$0xff] }
 0x159   : > { %12163 = vmatprep.mubr.f32.mxu0 %v16155_v55  ;;  %v19566_v55 = vld [vmem:[#allocation12_spill] sm:$0xff] }
 0x15c   : > { %12164 = vmatmul.mubr.f32.gmra.mrb[18].mxu0 %v16159_v57  ;;  %v19567_v57 = vld [vmem:[#allocation13_spill] sm:$0xff] }
 0x15d   : > { %12166 = vmatprep.mubr.f32.mxu0 %v16173_v0  ;;  %v19568_v0 = vmax.f32 %v19567_v57, 0.0 }
 0x160   : > { %12167 = vmatmul.mubr.f32.gmra.mrb[20].mxu0 %v16175_v1  ;;  %v9935_v1 = vld [vmem:[%s19382_s1 + $0x310] sm:$0xff] }
 0x161   : > { %12169 = vmatprep.mubr.f32.mxu0 %v16177_v2  ;;  %v9936_v2 = vld [vmem:[%s19382_s1 + $0x318] sm:$0xff] }
 0x162   : > { %v14308_v20 = vpack.c.bf16 %v9936_v2, %v9935_v1  ;;  %v2113_v1 = vld [vmem:[#allocation2 + $0x6f] sm:$0xff]  ;;  %v2114_v2 = vld [vmem:[#allocation2 + $0x87] sm:$0xff] }
 0x164   : > { %12170 = vmatmul.mubr.f32.gmra.mrb[22].mxu0 %v19560_v45  ;;  %v16833_v45 = vld [vmem:[#allocation2 + $0x209] sm:$0xff] }
 0x165   : > { %12172 = vmatprep.mubr.f32.mxu0 %v19561_v46  ;;  %v16837_v46 = vld [vmem:[#allocation2 + $0x211] sm:$0xff] }
 0x168   : > { %12173 = vmatmul.mubr.f32.gmra.mrb[24].mxu0 %v19562_v47  ;;  %v2110_v47 = vld [vmem:[#allocation2 + $0x47] sm:$0xff] }
 0x169   : > { %12175 = vmatprep.mubr.f32.mxu0 %v19563_v49  ;;  %v9951_v49 = vld [vmem:[%s19382_s1 + $0x390] sm:$0xff] }
 0x16c   : > { %12176 = vmatmul.mubr.f32.gmra.mrb[26].mxu0 %v19564_v53  ;;  %v9952_v53 = vld [vmem:[%s19382_s1 + $0x398] sm:$0xff] }
 0x16d   : > { %12178 = vmatprep.mubr.f32.mxu0 %v19565_v54  ;;  %v2111_v54 = vld [vmem:[#allocation2 + $0x4f] sm:$0xff]  ;;  %v14340_v57 = vpack.c.bf16 %v9952_v53, %v9951_v49  ;;  %v9969_v49 = vld [vmem:[%s19382_s1 + $0x420] sm:$0xff] }
 0x16e   : > { %v9970_v53 = vld [vmem:[%s19382_s1 + $0x428] sm:$0xff] }
 0x170   : > { %12179 = vmatmul.mubr.f32.gmra.mrb[28].mxu0 %v19566_v55  ;;  %v2112_v55 = vld [vmem:[#allocation2 + $0x67] sm:$0xff] }
 0x171   : > { %12181 = vmatprep.mubr.f32.mxu0 %v19568_v0  ;;  %v9954_v0 = vld [vmem:[%s19382_s1 + $0x3a8] sm:$0xff] }
 0x174   : > { %12182 = vmatmul.mubr.f32.gmra.mrb[30].mxu0 %v19570_v7  ;;  %v9955_v7 = vld [vmem:[%s19382_s1 + $0x3b0] sm:$0xff] }
 0x175   : > { %12216 = vmatprep.mubr.f32.mxu0 %v19571_v18  ;;  %v9956_v18 = vld [vmem:[%s19382_s1 + $0x3b8] sm:$0xff] }
 0x176   : > { %v14348_v23 = vpack.c.bf16 %v9956_v18, %v9955_v7  ;;  %v9973_v7 = vld [vmem:[%s19382_s1 + $0x440] sm:$0xff]  ;;  %v9974_v18 = vld [vmem:[%s19382_s1 + $0x448] sm:$0xff] }
 0x178   : > { %12217 = vmatmul.mubr.f32.vlgmr.msra.gmra.mrb[0].mxu0 %v19572_v9  ;;  %v9957_v9 = vld [vmem:[%s19382_s1 + $0x3c0] sm:$0xff] }
 0x179   : > { %14307 = vmatpush3.bf16.msra.mxu0 %v14304_v38  ;;  %12219 = vmatprep.mubr.f32.mxu0 %v19573_v31  ;;  %v19596_v38 = vld [vmem:[#allocation40_spill] sm:$0xff]  ;;  %v9958_v31 = vld [vmem:[%s19382_s1 + $0x3c8] sm:$0xff] }
 0x17a   : > { %14309 = vmatprep.subr.bf16.mxu0 %v14308_v20  ;;  %v14352_v40 = vpack.c.bf16 %v9958_v31, %v9957_v9  ;;  %v9975_v9 = vld [vmem:[%s19382_s1 + $0x450] sm:$0xff]  ;;  %v9976_v31 = vld [vmem:[%s19382_s1 + $0x458] sm:$0xff] }
 0x17c   : > { %12220 = vmatmul.mubr.f32.gmra.mrb[2].mxu0 %v19574_v41  ;;  %v9959_v41 = vld [vmem:[%s19382_s1 + $0x3d0] sm:$0xff] }
 0x17d   : > { %12222 = vmatprep.mubr.f32.mxu0 %v19575_v4  ;;  %14311 = vmatpush3.bf16.msra.mxu0 %v14308_v20  ;;  %v2115_v20 = vld [vmem:[#allocation2 + $0x8f] sm:$0xff]  ;;  %v9960_v4 = vld [vmem:[%s19382_s1 + $0x3d8] sm:$0xff] }
 0x17e   : > { %14313 = vmatprep.subr.bf16.mxu0 %v14312_v32  ;;  %v14356_v14 = vpack.c.bf16 %v9960_v4, %v9959_v41  ;;  %v9977_v41 = vld [vmem:[%s19382_s1 + $0x460] sm:$0xff]  ;;  %v9978_v4 = vld [vmem:[%s19382_s1 + $0x468] sm:$0xff] }
 0x180   : > { %12223 = vmatmul.mubr.f32.gmra.mrb[4].mxu0 %v19576_v56  ;;  %v9961_v56 = vld [vmem:[%s19382_s1 + $0x3e0] sm:$0xff] }
 0x181   : > { %12225 = vmatprep.mubr.f32.mxu0 %v19577_v58  ;;  %14315 = vmatpush3.bf16.msra.mxu0 %v14312_v32  ;;  %v2117_v32 = vld [vmem:[#allocation2 + $0xaf] sm:$0xff] }
 0x182   : > { %14317 = vmatprep.subr.bf16.mxu0 %v14316_v5  ;;  %v9962_v58 = vld [vmem:[%s19382_s1 + $0x3e8] sm:$0xff] }
 0x183   : > { %v14360_v63 = vpack.c.bf16 %v9962_v58, %v9961_v56  ;;  %v9979_v56 = vld [vmem:[%s19382_s1 + $0x470] sm:$0xff]  ;;  %v9980_v58 = vld [vmem:[%s19382_s1 + $0x478] sm:$0xff] }
 0x184   : > { %12226 = vmatmul.mubr.f32.gmra.mrb[6].mxu0 %v19578_v11  ;;  %v9963_v11 = vld [vmem:[%s19382_s1 + $0x3f0] sm:$0xff] }
 0x185   : > { %12228 = vmatprep.mubr.f32.mxu0 %v19579_v8  ;;  %14319 = vmatpush3.bf16.msra.mxu0 %v14316_v5  ;;  %v2119_v5 = vld [vmem:[#allocation2 + $0xcf] sm:$0xff]  ;;  %v9964_v8 = vld [vmem:[%s19382_s1 + $0x3f8] sm:$0xff] }
 0x186   : > { %14321 = vmatprep.subr.bf16.mxu0 %v14320_v10  ;;  %v14364_v37 = vpack.c.bf16 %v9964_v8, %v9963_v11  ;;  %v2431_v11 = vld [vmem:[#allocation2 + $0x130] sm:$0xff]  ;;  %v2432_v8 = vld [vmem:[#allocation2 + $0x148] sm:$0xff] }
 0x188   : > { %12229 = vmatmul.mubr.f32.gmra.mrb[8].mxu0 %v19580_v22  ;;  %v9965_v22 = vld [vmem:[%s19382_s1 + $0x400] sm:$0xff] }
 0x189   : > { %12231 = vmatprep.mubr.f32.mxu0 %v19581_v39  ;;  %14323 = vmatpush3.bf16.msra.mxu0 %v14320_v10  ;;  %v2121_v10 = vld [vmem:[#allocation2 + $0xef] sm:$0xff] }
 0x18a   : > { %14325 = vmatprep.subr.bf16.mxu0 %v14324_v25  ;;  %v9966_v39 = vld [vmem:[%s19382_s1 + $0x408] sm:$0xff] }
 0x18b   : > { %v14368_v43 = vpack.c.bf16 %v9966_v39, %v9965_v22  ;;  %v2436_v22 = vld [vmem:[#allocation2 + $0x188] sm:$0xff]  ;;  %v2437_v39 = vld [vmem:[#allocation2 + $0x190] sm:$0xff] }
 0x18c   : > { %12232 = vmatmul.mubr.f32.gmra.mrb[10].mxu0 %v16527_v21  ;;  %v14336_v21 = vpack.c.bf16 %v9950_v19, %v9949_v44  ;;  %v2129_v44 = vld [vmem:[#allocation2 + $0x16f] sm:$0xff]  ;;  %v2130_v19 = vld [vmem:[#allocation2 + $0x187] sm:$0xff] }
 0x18d   : > { %12234 = vmatprep.mubr.f32.mxu0 %v19582_v16  ;;  %14327 = vmatpush3.bf16.msra.mxu0 %v14324_v25  ;;  %v2123_v25 = vld [vmem:[#allocation2 + $0x10f] sm:$0xff] }
 0x18e   : > { %14329 = vmatprep.subr.bf16.mxu0 %v14328_v42  ;;  %v2127_v16 = vld [vmem:[#allocation2 + $0x14f] sm:$0xff] }
 0x190   : > { %12235 = vmatmul.mubr.f32.gmra.mrb[12].mxu0 %v16539_v60  ;;  %v19589_v60 = vld [vmem:[#allocation33_spill] sm:$0xff] }
 0x191   : > { %12237 = vmatprep.mubr.f32.mxu0 %v16541_v29  ;;  %14331 = vmatpush3.bf16.msra.mxu0 %v14328_v42  ;;  %v19590_v29 = vld [vmem:[#allocation34_spill] sm:$0xff]  ;;  %v2125_v42 = vld [vmem:[#allocation2 + $0x12f] sm:$0xff] }
 0x192   : > { %14333 = vmatprep.subr.bf16.mxu0 %v14332_v17 }
 0x194   : > { %12238 = vmatmul.mubr.f32.gmra.mrb[14].mxu0 %v19583_v26  ;;  %v2132_v26 = vld [vmem:[#allocation2 + $0x1a7] sm:$0xff] }
 0x195   : > { %12240 = vmatprep.mubr.f32.mxu0 %v19584_v50  ;;  %14335 = vmatpush3.bf16.msra.mxu0 %v14332_v17  ;;  %v2128_v17 = vld [vmem:[#allocation2 + $0x167] sm:$0xff]  ;;  %v2133_v50 = vld [vmem:[#allocation2 + $0x1af] sm:$0xff] }
 0x196   : > { %14337 = vmatprep.subr.bf16.mxu0 %v14336_v21 }
 0x198   : > { %12241 = vmatmul.mubr.f32.gmra.mrb[16].mxu0 %v19585_v27  ;;  %v2134_v27 = vld [vmem:[#allocation2 + $0x1c7] sm:$0xff] }
 0x199   : > { %12243 = vmatprep.mubr.f32.mxu0 %v19586_v28  ;;  %v2135_v28 = vld [vmem:[#allocation2 + $0x1cf] sm:$0xff] }
 0x19c   : > { %12244 = vmatmul.mubr.f32.gmra.mrb[18].mxu0 %v19587_v51  ;;  %v2136_v51 = vld [vmem:[#allocation2 + $0x1e7] sm:$0xff] }
 0x19d   : > { %12246 = vmatprep.mubr.f32.mxu0 %v19588_v30  ;;  %v2137_v30 = vld [vmem:[#allocation2 + $0x1ef] sm:$0xff] }
 0x1a0   : > { %12247 = vmatmul.mubr.f32.gmra.mrb[20].mxu0 %v19589_v60  ;;  %v2140_v60 = vld [vmem:[#allocation2 + $0x227] sm:$0xff] }
 0x1a1   : > { %12249 = vmatprep.mubr.f32.mxu0 %v19590_v29  ;;  %v2141_v29 = vld [vmem:[#allocation2 + $0x22f] sm:$0xff] }
 0x1a4   : > { %12250 = vmatmul.mubr.f32.gmra.mrb[22].mxu0 %v19591_v34  ;;  %v2416_v34 = vld [vmem:[#allocation2 + $0x48] sm:$0xff] }
 0x1a5   : > { %12252 = vmatprep.mubr.f32.mxu0 %v19592_v52  ;;  %v9967_v52 = vld [vmem:[%s19382_s1 + $0x410] sm:$0xff] }
 0x1a8   : > { %12253 = vmatmul.mubr.f32.gmra.mrb[24].mxu0 %v19593_v35  ;;  %v9968_v35 = vld [vmem:[%s19382_s1 + $0x418] sm:$0xff] }
 0x1a9   : > { %12255 = vmatprep.mubr.f32.mxu0 %v19594_v36  ;;  %v3060_v36 = vld [vmem:[%s19383_s2] sm:$0xff] }
 0x1ac   : > { %12256 = vmatmul.mubr.f32.gmra.mrb[26].mxu0 %v19595_v59 }
 0x1ad   : > { %12258 = vmatprep.mubr.f32.mxu0 %v19596_v38  ;;  %v2418_v38 = vld [vmem:[#allocation2 + $0x68] sm:$0xff] }
 0x1b0   : > { %12259 = vmatmul.mubr.f32.gmra.mrb[28].mxu0 %v16587_v3  ;;  %v9953_v3 = vld [vmem:[%s19382_s1 + $0x3a0] sm:$0xff] }
 0x1b1   : > { %12261 = vmatprep.mubr.f32.mxu0 %v16833_v45  ;;  %v14344_v61 = vpack.c.bf16 %v9954_v0, %v9953_v3  ;;  %v9971_v3 = vld [vmem:[%s19382_s1 + $0x430] sm:$0xff]  ;;  %v9972_v0 = vld [vmem:[%s19382_s1 + $0x438] sm:$0xff] }
 0x1b4   : > { %12262 = vmatmul.mubr.f32.gmra.mrb[30].mxu0 %v16837_v46 }
 0x1b5   : > { %12296 = vmatprep.mubr.f32.mxu0 %v2110_v47  ;;  %v14372_v47 = vpack.c.bf16 %v9968_v35, %v9967_v52  ;;  %v2730_v52 = vld [vmem:[#allocation2 + $0xc9] sm:$0xff]  ;;  %v2731_v35 = vld [vmem:[#allocation2 + $0xd1] sm:$0xff] }
 0x1b8   : > { %12297 = vmatmul.mubr.f32.vlgmr.msra.gmra.mrb[0].mxu0 %v2111_v54  ;;  %v2419_v54 = vld [vmem:[#allocation2 + $0x70] sm:$0xff] }
 0x1b9   : > { %14339 = vmatpush3.bf16.msra.mxu0 %v14336_v21  ;;  %12299 = vmatprep.mubr.f32.mxu0 %v2112_v55  ;;  %v2131_v21 = vld [vmem:[#allocation2 + $0x18f] sm:$0xff] }
 0x1ba   : > { %14341 = vmatprep.subr.bf16.mxu0 %v14340_v57  ;;  %v2420_v55 = vld [vmem:[#allocation2 + $0x88] sm:$0xff] }
 0x1bc   : > { %12300 = vmatmul.mubr.f32.gmra.mrb[2].mxu0 %v2113_v1  ;;  %v2421_v1 = vld [vmem:[#allocation2 + $0x90] sm:$0xff] }
 0x1bd   : > { %12302 = vmatprep.mubr.f32.mxu0 %v2114_v2  ;;  %14343 = vmatpush3.bf16.msra.mxu0 %v14340_v57  ;;  %v14376_v57 = vpack.c.bf16 %v9970_v53, %v9969_v49  ;;  %v2422_v2 = vld [vmem:[#allocation2 + $0xa8] sm:$0xff]  ;;  %v2739_v53 = vld [vmem:[#allocation2 + $0x151] sm:$0xff] }
 0x1be   : > { %14345 = vmatprep.subr.bf16.mxu0 %v14344_v61  ;;  %v2738_v49 = vld [vmem:[#allocation2 + $0x149] sm:$0xff] }
 0x1c0   : > { %12303 = vmatmul.mubr.f32.gmra.mrb[4].mxu0 %v2115_v20  ;;  %v2423_v20 = vld [vmem:[#allocation2 + $0xb0] sm:$0xff] }
 0x1c1   : > { %12305 = vmatprep.mubr.f32.mxu0 %v2116_v6  ;;  %14347 = vmatpush3.bf16.msra.mxu0 %v14344_v61  ;;  %v14380_v61 = vpack.c.bf16 %v9972_v0, %v9971_v3  ;;  %v2424_v6 = vld [vmem:[#allocation2 + $0xc8] sm:$0xff]  ;;  %v2743_v3 = vld [vmem:[#allocation2 + $0x191] sm:$0xff] }
 0x1c2   : > { %14349 = vmatprep.subr.bf16.mxu0 %v14348_v23  ;;  %v2744_v0 = vld [vmem:[#allocation2 + $0x1a9] sm:$0xff] }
 0x1c4   : > { %12306 = vmatmul.mubr.f32.gmra.mrb[6].mxu0 %v2117_v32  ;;  %v2425_v32 = vld [vmem:[#allocation2 + $0xd0] sm:$0xff] }
 0x1c5   : > { %12308 = vmatprep.mubr.f32.mxu0 %v2118_v13  ;;  %14351 = vmatpush3.bf16.msra.mxu0 %v14348_v23  ;;  %v14384_v23 = vpack.c.bf16 %v9974_v18, %v9973_v7  ;;  %v2426_v13 = vld [vmem:[#allocation2 + $0xe8] sm:$0xff]  ;;  %v2749_v18 = vld [vmem:[#allocation2 + $0x1f1] sm:$0xff] }
 0x1c6   : > { %14353 = vmatprep.subr.bf16.mxu0 %v14352_v40  ;;  %v2748_v7 = vld [vmem:[#allocation2 + $0x1e9] sm:$0xff] }
 0x1c8   : > { %12309 = vmatmul.mubr.f32.gmra.mrb[8].mxu0 %v2119_v5  ;;  %v2427_v5 = vld [vmem:[#allocation2 + $0xf0] sm:$0xff] }
 0x1c9   : > { %12311 = vmatprep.mubr.f32.mxu0 %v2120_v48  ;;  %14355 = vmatpush3.bf16.msra.mxu0 %v14352_v40  ;;  %v14388_v40 = vpack.c.bf16 %v9976_v31, %v9975_v9  ;;  %v2428_v48 = vld [vmem:[#allocation2 + $0x108] sm:$0xff]  ;;  %v3063_v9 = vld [vmem:[%s19383_s2 + $0x18] sm:$0xff] }
 0x1ca   : > { %14357 = vmatprep.subr.bf16.mxu0 %v14356_v14 }
 0x1cc   : > { %12312 = vmatmul.mubr.f32.gmra.mrb[10].mxu0 %v2121_v10  ;;  %v2429_v10 = vld [vmem:[#allocation2 + $0x110] sm:$0xff] }
 0x1cd   : > { %12314 = vmatprep.mubr.f32.mxu0 %v2122_v62  ;;  %14359 = vmatpush3.bf16.msra.mxu0 %v14356_v14  ;;  %v14392_v14 = vpack.c.bf16 %v9978_v4, %v9977_v41  ;;  %v2430_v62 = vld [vmem:[#allocation2 + $0x128] sm:$0xff]  ;;  %v10031_v41 = vld [vmem:[%s19382_s1 + $0x510] sm:$0xff]  ;;  %v10032_v4 = vld [vmem:[%s19382_s1 + $0x518] sm:$0xff] }
 0x1ce   : > { %14361 = vmatprep.subr.bf16.mxu0 %v14360_v63 }
 0x1d0   : > { %12315 = vmatmul.mubr.f32.gmra.mrb[12].mxu0 %v2123_v25  ;;  %v2433_v25 = vld [vmem:[#allocation2 + $0x150] sm:$0xff] }
 0x1d1   : > { %12317 = vmatprep.mubr.f32.mxu0 %v2124_v33  ;;  %14363 = vmatpush3.bf16.msra.mxu0 %v14360_v63  ;;  %v14396_v63 = vpack.c.bf16 %v9980_v58, %v9979_v56  ;;  %v2434_v33 = vld [vmem:[#allocation2 + $0x168] sm:$0xff] }
 0x1d2   : > { %14365 = vmatprep.subr.bf16.mxu0 %v14364_v37  ;;  %v10034_v56 = vld [vmem:[%s19382_s1 + $0x528] sm:$0xff] }
 0x1d4   : > { %12318 = vmatmul.mubr.f32.gmra.mrb[14].mxu0 %v2125_v42  ;;  %v2438_v42 = vld [vmem:[#allocation2 + $0x1a8] sm:$0xff] }
 0x1d5   : > { %12320 = vmatprep.mubr.f32.mxu0 %v2126_v15  ;;  %14367 = vmatpush3.bf16.msra.mxu0 %v14364_v37  ;;  %v2435_v37 = vld [vmem:[#allocation2 + $0x170] sm:$0xff] }
 0x1d6   : > { %14369 = vmatprep.subr.bf16.mxu0 %v14368_v43  ;;  %v2439_v15 = vld [vmem:[#allocation2 + $0x1b0] sm:$0xff] }
 0x1d8   : > { %12321 = vmatmul.mubr.f32.gmra.mrb[16].mxu0 %v2127_v16  ;;  %v2441_v16 = vld [vmem:[#allocation2 + $0x1d0] sm:$0xff] }
 0x1d9   : > { %12323 = vmatprep.mubr.f32.mxu0 %v2128_v17  ;;  %v2442_v17 = vld [vmem:[#allocation2 + $0x1e8] sm:$0xff] }
 0x1dc   : > { %12324 = vmatmul.mubr.f32.gmra.mrb[18].mxu0 %v2129_v44  ;;  %v2443_v44 = vld [vmem:[#allocation2 + $0x1f0] sm:$0xff] }
 0x1dd   : > { %12326 = vmatprep.mubr.f32.mxu0 %v2130_v19  ;;  %v15826_v19 = vld [vmem:[#allocation2 + $0x208] sm:$0xff] }
 0x1e0   : > { %12327 = vmatmul.mubr.f32.gmra.mrb[20].mxu0 %v2131_v21  ;;  %v15827_v21 = vld [vmem:[#allocation2 + $0x210] sm:$0xff] }
 0x1e1   : > { %12329 = vmatprep.mubr.f32.mxu0 %v2132_v26  ;;  %v16938_v26 = vld [vmem:[#allocation2 + $0x8] sm:$0xff] }
 0x1e4   : > { %12330 = vmatmul.mubr.f32.gmra.mrb[22].mxu0 %v2133_v50  ;;  %v2722_v50 = vld [vmem:[#allocation2 + $0x49] sm:$0xff] }
 0x1e5   : > { %12332 = vmatprep.mubr.f32.mxu0 %v2134_v27  ;;  %v2723_v27 = vld [vmem:[#allocation2 + $0x51] sm:$0xff] }
 0x1e8   : > { %12333 = vmatmul.mubr.f32.gmra.mrb[24].mxu0 %v2135_v28  ;;  %v2724_v28 = vld [vmem:[#allocation2 + $0x69] sm:$0xff] }
 0x1e9   : > { %12335 = vmatprep.mubr.f32.mxu0 %v2136_v51  ;;  %v2725_v51 = vld [vmem:[#allocation2 + $0x71] sm:$0xff] }
 0x1ec   : > { %12336 = vmatmul.mubr.f32.gmra.mrb[26].mxu0 %v2137_v30  ;;  %v2726_v30 = vld [vmem:[#allocation2 + $0x89] sm:$0xff] }
 0x1ed   : > { %12338 = vmatprep.mubr.f32.mxu0 %v16667_v12  ;;  %v3061_v12 = vld [vmem:[%s19383_s2 + $0x8] sm:$0xff] }
 0x1ee   : > { %v14400_v59 = vpack.c.bf16 %v3061_v12, %v3060_v36  ;;  %v2732_v36 = vld [vmem:[#allocation2 + $0xe9] sm:$0xff]  ;;  %v2733_v12 = vld [vmem:[#allocation2 + $0xf1] sm:$0xff] }
 0x1f0   : > { %12339 = vmatmul.mubr.f32.gmra.mrb[28].mxu0 %v16671_v24  ;;  %v2417_v24 = vld [vmem:[#allocation2 + $0x50] sm:$0xff]  ;;  %14401 = vmatprep.subr.bf16.mxu1 %v14400_v59 }
 0x1f1   : > { %12341 = vmatprep.mubr.f32.mxu0 %v2140_v60  ;;  %14403 = vmatpush3.bf16.msra.mxu1 %v14400_v59  ;;  %v2727_v60 = vld [vmem:[#allocation2 + $0x91] sm:$0xff] }
 0x1f2   : > { %v2735_v59 = vld [vmem:[#allocation2 + $0x111] sm:$0xff] }
 0x1f4   : > { %12342 = vmatmul.mubr.f32.gmra.mrb[30].mxu0 %v2141_v29  ;;  %v2728_v29 = vld [vmem:[#allocation2 + $0xa9] sm:$0xff] }
 0x1f5   : > { %12376 = vmatprep.mubr.f32.mxu0 %v2416_v34  ;;  %v2729_v34 = vld [vmem:[#allocation2 + $0xb1] sm:$0xff] }
 0x1f8   : > { %12377 = vmatmul.mubr.f32.vlgmr.msra.gmra.mrb[0].mxu0 %v2417_v24  ;;  %v2734_v24 = vld [vmem:[#allocation2 + $0x109] sm:$0xff] }
 0x1f9   : > { %14371 = vmatpush3.bf16.msra.mxu0 %v14368_v43  ;;  %12379 = vmatprep.mubr.f32.mxu0 %v2418_v38  ;;  %v2440_v43 = vld [vmem:[#allocation2 + $0x1c8] sm:$0xff] }
 0x1fa   : > { %14373 = vmatprep.subr.bf16.mxu0 %v14372_v47  ;;  %v2736_v38 = vld [vmem:[#allocation2 + $0x129] sm:$0xff] }
 0x1fc   : > { %12380 = vmatmul.mubr.f32.gmra.mrb[2].mxu0 %v2419_v54  ;;  %v2740_v54 = vld [vmem:[#allocation2 + $0x169] sm:$0xff] }
 0x1fd   : > { %12382 = vmatprep.mubr.f32.mxu0 %v2420_v55  ;;  %14375 = vmatpush3.bf16.msra.mxu0 %v14372_v47  ;;  %v2737_v47 = vld [vmem:[#allocation2 + $0x131] sm:$0xff] }
 0x1fe   : > { %14377 = vmatprep.subr.bf16.mxu0 %v14376_v57  ;;  %v2741_v55 = vld [vmem:[#allocation2 + $0x171] sm:$0xff] }
 0x200   : > { %12383 = vmatmul.mubr.f32.gmra.mrb[4].mxu0 %v2421_v1  ;;  %v2745_v1 = vld [vmem:[#allocation2 + $0x1b1] sm:$0xff] }
 0x201   : > { %12385 = vmatprep.mubr.f32.mxu0 %v2422_v2  ;;  %14379 = vmatpush3.bf16.msra.mxu0 %v14376_v57  ;;  %v2742_v57 = vld [vmem:[#allocation2 + $0x189] sm:$0xff] }
 0x202   : > { %14381 = vmatprep.subr.bf16.mxu0 %v14380_v61  ;;  %v2746_v2 = vld [vmem:[#allocation2 + $0x1c9] sm:$0xff] }
 0x204   : > { %12386 = vmatmul.mubr.f32.gmra.mrb[6].mxu0 %v2423_v20  ;;  %v2752_v20 = vld [vmem:[#allocation2 + $0x229] sm:$0xff] }
 0x205   : > { %12388 = vmatprep.mubr.f32.mxu0 %v2424_v6  ;;  %14383 = vmatpush3.bf16.msra.mxu0 %v14380_v61  ;;  %v2747_v61 = vld [vmem:[#allocation2 + $0x1d1] sm:$0xff] }
 0x206   : > { %14385 = vmatprep.subr.bf16.mxu0 %v14384_v23  ;;  %v2753_v6 = vld [vmem:[#allocation2 + $0x231] sm:$0xff] }
 0x208   : > { %12389 = vmatmul.mubr.f32.gmra.mrb[8].mxu0 %v2425_v32 }
 0x209   : > { %12391 = vmatprep.mubr.f32.mxu0 %v2426_v13  ;;  %14387 = vmatpush3.bf16.msra.mxu0 %v14384_v23  ;;  %v3062_v23 = vld [vmem:[%s19383_s2 + $0x10] sm:$0xff]  ;;  %v10029_v13 = vld [vmem:[%s19382_s1 + $0x500] sm:$0xff] }
 0x20a   : > { %14389 = vmatprep.subr.bf16.mxu0 %v14388_v40  ;;  %v14404_v31 = vpack.c.bf16 %v3063_v9, %v3062_v23 }
 0x20c   : > { %12392 = vmatmul.mubr.f32.gmra.mrb[10].mxu0 %v2427_v5  ;;  %14405 = vmatprep.subr.bf16.mxu1 %v14404_v31 }
 0x20d   : > { %12394 = vmatprep.mubr.f32.mxu0 %v2428_v48  ;;  %14391 = vmatpush3.bf16.msra.mxu0 %v14388_v40  ;;  %v10030_v40 = vld [vmem:[%s19382_s1 + $0x508] sm:$0xff]  ;;  %v14412_v48 = vpack.c.bf16 %v10032_v4, %v10031_v41 }
 0x20e   : > { %14393 = vmatprep.subr.bf16.mxu0 %v14392_v14  ;;  %14407 = vmatpush3.bf16.msra.mxu1 %v14404_v31  ;;  %v14408_v5 = vpack.c.bf16 %v10030_v40, %v10029_v13 }
 0x210   : > { %12395 = vmatmul.mubr.f32.gmra.mrb[12].mxu0 %v2429_v10  ;;  %v10035_v10 = vld [vmem:[%s19382_s1 + $0x530] sm:$0xff] }
 0x211   : > { %12397 = vmatprep.mubr.f32.mxu0 %v2430_v62  ;;  %14395 = vmatpush3.bf16.msra.mxu0 %v14392_v14  ;;  %v10033_v14 = vld [vmem:[%s19382_s1 + $0x520] sm:$0xff]  ;;  %v10036_v62 = vld [vmem:[%s19382_s1 + $0x538] sm:$0xff] }
 0x212   : > { %14397 = vmatprep.subr.bf16.mxu0 %v14396_v63  ;;  %v14416_v58 = vpack.c.bf16 %v10034_v56, %v10033_v14 }
 0x214   : > { %12398 = vmatmul.mubr.f32.gmra.mrb[14].mxu0 %v2431_v11  ;;  %v10037_v11 = vld [vmem:[%s19382_s1 + $0x540] sm:$0xff] }
 0x215   : > { %12400 = vmatprep.mubr.f32.mxu0 %v2432_v8  ;;  %14399 = vmatpush3.bf16.msra.mxu0 %v14396_v63  ;;  %v14420_v63 = vpack.c.bf16 %v10036_v62, %v10035_v10  ;;  %v10038_v8 = vld [vmem:[%s19382_s1 + $0x548] sm:$0xff] }
 0x216   : > { %14409 = vmatprep.subr.bf16.mxu0 %v14408_v5 }
 0x218   : > { %12401 = vmatmul.mubr.f32.gmra.mrb[16].mxu0 %v2433_v25  ;;  %v14424_v25 = vpack.c.bf16 %v10038_v8, %v10037_v11 }
 0x219   : > { %12403 = vmatprep.mubr.f32.mxu0 %v2434_v33  ;;  %v10039_v33 = vld [vmem:[%s19382_s1 + $0x550] sm:$0xff] }
 0x21c   : > { %12404 = vmatmul.mubr.f32.gmra.mrb[18].mxu0 %v2435_v37  ;;  %v10040_v37 = vld [vmem:[%s19382_s1 + $0x558] sm:$0xff] }
 0x21d   : > { %12406 = vmatprep.mubr.f32.mxu0 %v2436_v22  ;;  %v14428_v22 = vpack.c.bf16 %v10040_v37, %v10039_v33 }
 0x220   : > { %12407 = vmatmul.mubr.f32.gmra.mrb[20].mxu0 %v2437_v39 }
 0x221   : > { %12409 = vmatprep.mubr.f32.mxu0 %v2438_v42  ;;  %v10063_v42 = vld [vmem:[%s19382_s1 + $0x610] sm:$0xff] }
 0x224   : > { %12410 = vmatmul.mubr.f32.gmra.mrb[22].mxu0 %v2439_v15  ;;  %v10064_v15 = vld [vmem:[%s19382_s1 + $0x618] sm:$0xff] }
 0x225   : > { %12412 = vmatprep.mubr.f32.mxu0 %v2440_v43 }
 0x228   : > { %12413 = vmatmul.mubr.f32.gmra.mrb[24].mxu0 %v2441_v16 }
 0x229   : > { %12415 = vmatprep.mubr.f32.mxu0 %v2442_v17 }
 0x22c   : > { %12416 = vmatmul.mubr.f32.gmra.mrb[26].mxu0 %v2443_v44  ;;  %v14508_v44 = vpack.c.bf16 %v10064_v15, %v10063_v42 }
 0x22d   : > { %12418 = vmatprep.mubr.f32.mxu0 %v15826_v19 }
 0x230   : > { %12419 = vmatmul.mubr.f32.gmra.mrb[28].mxu0 %v15827_v21  ;;  %v10065_v21 = vld [vmem:[%s19382_s1 + $0x620] sm:$0xff] }
 0x231   : > { %12421 = vmatprep.mubr.f32.mxu0 %v16938_v26 }
 0x234   : > { %12422 = vmatmul.mubr.f32.gmra.mrb[30].mxu0 %v16938_v26 }
 0x235   : > { %12456 = vmatprep.mubr.f32.mxu0 %v2722_v50  ;;  %v10066_v50 = vld [vmem:[%s19382_s1 + $0x628] sm:$0xff] }
 0x238   : > { %12457 = vmatmul.mubr.f32.vlgmr.msra.gmra.mrb[0].mxu0 %v2723_v27 }
 0x239   : > { %12459 = vmatprep.mubr.f32.mxu0 %v2724_v28  ;;  %14411 = vmatpush3.bf16.msra.mxu0 %v14408_v5 }
 0x23a   : > { %14413 = vmatprep.subr.bf16.mxu0 %v14412_v48 }
 0x23c   : > { %12460 = vmatmul.mubr.f32.gmra.mrb[2].mxu0 %v2725_v51 }
 0x23d   : > { %12462 = vmatprep.mubr.f32.mxu0 %v2726_v30  ;;  %14415 = vmatpush3.bf16.msra.mxu0 %v14412_v48  ;;  %v14512_v30 = vpack.c.bf16 %v10066_v50, %v10065_v21 }
 0x23e   : > { %14417 = vmatprep.subr.bf16.mxu0 %v14416_v58 }
 0x240   : > { %12463 = vmatmul.mubr.f32.gmra.mrb[4].mxu0 %v2727_v60 }
 0x241   : > { %12465 = vmatprep.mubr.f32.mxu0 %v2728_v29  ;;  %14419 = vmatpush3.bf16.msra.mxu0 %v14416_v58  ;;  %v10067_v29 = vld [vmem:[%s19382_s1 + $0x630] sm:$0xff] }
 0x242   : > { %14421 = vmatprep.subr.bf16.mxu0 %v14420_v63 }
 0x244   : > { %12466 = vmatmul.mubr.f32.gmra.mrb[6].mxu0 %v2729_v34  ;;  %v10068_v34 = vld [vmem:[%s19382_s1 + $0x638] sm:$0xff] }
 0x245   : > { %12468 = vmatprep.mubr.f32.mxu0 %v2730_v52  ;;  %14423 = vmatpush3.bf16.msra.mxu0 %v14420_v63 }
 0x246   : > { %14425 = vmatprep.subr.bf16.mxu0 %v14424_v25 }
 0x248   : > { %12469 = vmatmul.mubr.f32.gmra.mrb[8].mxu0 %v2731_v35 }
 0x249   : > { %12471 = vmatprep.mubr.f32.mxu0 %v2732_v36  ;;  %14427 = vmatpush3.bf16.msra.mxu0 %v14424_v25 }
 0x24a   : > { %14429 = vmatprep.subr.bf16.mxu0 %v14428_v22 }
 0x24c   : > { %12472 = vmatmul.mubr.f32.gmra.mrb[10].mxu0 %v2733_v12  ;;  %v14516_v12 = vpack.c.bf16 %v10068_v34, %v10067_v29 }
 0x24d   : > { %12474 = vmatprep.mubr.f32.mxu0 %v2734_v24  ;;  %14431 = vmatpush3.bf16.msra.mxu0 %v14428_v22 }
 0x250   : > { %12475 = vmatmul.mubr.f32.gmra.mrb[12].mxu0 %v2735_v59  ;;  %v10069_v59 = vld [vmem:[%s19382_s1 + $0x640] sm:$0xff] }
 0x251   : > { %12477 = vmatprep.mubr.f32.mxu0 %v2736_v38  ;;  %v10070_v38 = vld [vmem:[%s19382_s1 + $0x648] sm:$0xff] }
 0x254   : > { %12478 = vmatmul.mubr.f32.gmra.mrb[14].mxu0 %v2737_v47 }
 0x255   : > { %12480 = vmatprep.mubr.f32.mxu0 %v2738_v49 }
 0x258   : > { %12481 = vmatmul.mubr.f32.gmra.mrb[16].mxu0 %v2739_v53 }
 0x259   : > { %12483 = vmatprep.mubr.f32.mxu0 %v2740_v54  ;;  %v14520_v54 = vpack.c.bf16 %v10070_v38, %v10069_v59  ;;  %v10043_v59 = vld [vmem:[%s19382_s1 + $0x570] sm:$0xff]  ;;  %v10044_v38 = vld [vmem:[%s19382_s1 + $0x578] sm:$0xff] }
 0x25c   : > { %12484 = vmatmul.mubr.f32.gmra.mrb[18].mxu0 %v2741_v55 }
 0x25d   : > { %12486 = vmatprep.mubr.f32.mxu0 %v2742_v57  ;;  %v10071_v57 = vld [vmem:[%s19382_s1 + $0x650] sm:$0xff] }
 0x260   : > { %12487 = vmatmul.mubr.f32.gmra.mrb[20].mxu0 %v2743_v3  ;;  %v10072_v3 = vld [vmem:[%s19382_s1 + $0x658] sm:$0xff] }
 0x261   : > { %12489 = vmatprep.mubr.f32.mxu0 %v2744_v0 }
 0x264   : > { %12490 = vmatmul.mubr.f32.gmra.mrb[22].mxu0 %v2745_v1 }
 0x265   : > { %12492 = vmatprep.mubr.f32.mxu0 %v2746_v2 }
 0x268   : > { %12493 = vmatmul.mubr.f32.gmra.mrb[24].mxu0 %v2747_v61  ;;  %v14524_v61 = vpack.c.bf16 %v10072_v3, %v10071_v57  ;;  %v10078_v57 = vld [vmem:[%s19382_s1 + $0x688] sm:$0xff]  ;;  %v10013_v3 = vld [vmem:[%s19382_s1 + $0x480] sm:$0xff] }
 0x269   : > { %12495 = vmatprep.mubr.f32.mxu0 %v2748_v7 }
 0x26c   : > { %12496 = vmatmul.mubr.f32.gmra.mrb[26].mxu0 %v2749_v18  ;;  %v10073_v18 = vld [vmem:[%s19382_s1 + $0x660] sm:$0xff] }
 0x26d   : > { %12498 = vmatprep.mubr.f32.mxu0 %v16833_v45  ;;  %v10061_v45 = vld [vmem:[%s19382_s1 + $0x600] sm:$0xff] }
 0x270   : > { %12499 = vmatmul.mubr.f32.gmra.mrb[28].mxu0 %v16837_v46  ;;  %v10062_v46 = vld [vmem:[%s19382_s1 + $0x608] sm:$0xff] }
 0x271   : > { %12501 = vmatprep.mubr.f32.mxu0 %v2752_v20  ;;  %v14504_v32 = vpack.c.bf16 %v10062_v46, %v10061_v45  ;;  %v10074_v20 = vld [vmem:[%s19382_s1 + $0x668] sm:$0xff] }
 0x272   : > { %v14528_v31 = vpack.c.bf16 %v10074_v20, %v10073_v18  ;;  %v10017_v18 = vld [vmem:[%s19382_s1 + $0x4a0] sm:$0xff]  ;;  %v10018_v20 = vld [vmem:[%s19382_s1 + $0x4a8] sm:$0xff] }
 0x273   : > { %14505 = vmatprep.subr.bf16.mxu1 %v14504_v32 }
 0x274   : > { %12502 = vmatmul.mubr.f32.gmra.mrb[30].mxu0 %v2753_v6 }
 0x275   : > { %12592 = vmatprep.mubr.f32.mxu0 %v16938_v26 }
 0x30b   : > { %v12458_v39 = vpop.f32.mrb[0].mxu0 }
 0x30c   : > { %v2837_v43 = vpop.f32.mrb[1].mxu0  ;;  %v3029_v17 = vmax.f32 %v12458_v39, 0.0 }
 0x30d   : > { %v3028_v16 = vmax.f32 %v2837_v43, 0.0 }
 0x30f   : > { %v12461_v19 = vpop.f32.mrb[2].mxu0  ;;  %12512 = vmatprep.mubr.msk.f32.mxu1 %vm3064_vm0, %v3028_v16 }
 0x310   : > { %v2847_v27 = vpop.f32.mrb[3].mxu0  ;;  %12513 = vmatmul.mubr.msk.f32.vlgmr.msra.gmra.mrb[0].mxu1 %vm3064_vm0, %v3029_v17  ;;  %v3031_v51 = vmax.f32 %v12461_v19, 0.0 }
 0x311   : > { %v3030_v28 = vmax.f32 %v2847_v27, 0.0  ;;  %14507 = vmatpush3.bf16.msra.mxu1 %v14504_v32 }
 0x312   : > { %14509 = vmatprep.subr.bf16.mxu1 %v14508_v44 }
 0x313   : > { %v12464_v60 = vpop.f32.mrb[4].mxu0  ;;  %12515 = vmatprep.mubr.msk.f32.mxu1 %vm3064_vm0, %v3030_v28 }
 0x314   : > { %v2857_v52 = vpop.f32.mrb[5].mxu0  ;;  %12516 = vmatmul.mubr.msk.f32.gmra.mrb[2].mxu1 %vm3064_vm0, %v3031_v51  ;;  %v3033_v36 = vmax.f32 %v12464_v60, 0.0 }
 0x315   : > { %v3032_v35 = vmax.f32 %v2857_v52, 0.0  ;;  %14511 = vmatpush3.bf16.msra.mxu1 %v14508_v44 }
 0x316   : > { %14513 = vmatprep.subr.bf16.mxu1 %v14512_v30 }
 0x317   : > { %v12467_v24 = vpop.f32.mrb[6].mxu0  ;;  %12518 = vmatprep.mubr.msk.f32.mxu1 %vm3064_vm0, %v3032_v35 }
 0x318   : > { %v2867_v47 = vpop.f32.mrb[7].mxu0  ;;  %12519 = vmatmul.mubr.msk.f32.gmra.mrb[4].mxu1 %vm3064_vm0, %v3033_v36  ;;  %v3035_v53 = vmax.f32 %v12467_v24, 0.0  ;;  %v10041_v36 = vld [vmem:[%s19382_s1 + $0x560] sm:$0xff] }
 0x319   : > { %v3034_v49 = vmax.f32 %v2867_v47, 0.0  ;;  %14515 = vmatpush3.bf16.msra.mxu1 %v14512_v30  ;;  %v14436_v47 = vpack.c.bf16 %v10044_v38, %v10043_v59 }
 0x31a   : > { %14517 = vmatprep.subr.bf16.mxu1 %v14516_v12 }
 0x31b   : > { %v12470_v55 = vpop.f32.mrb[8].mxu0  ;;  %12521 = vmatprep.mubr.msk.f32.mxu1 %vm3064_vm0, %v3034_v49  ;;  %v10075_v49 = vld [vmem:[%s19382_s1 + $0x670] sm:$0xff] }
 0x31c   : > { %v2877_v0 = vpop.f32.mrb[9].mxu0  ;;  %12522 = vmatmul.mubr.msk.f32.gmra.mrb[6].mxu1 %vm3064_vm0, %v3035_v53  ;;  %v3037_v2 = vmax.f32 %v12470_v55, 0.0  ;;  %v10076_v53 = vld [vmem:[%s19382_s1 + $0x678] sm:$0xff]  ;;  %v10077_v55 = vld [vmem:[%s19382_s1 + $0x680] sm:$0xff] }
 0x31d   : > { %v3036_v1 = vmax.f32 %v2877_v0, 0.0  ;;  %14519 = vmatpush3.bf16.msra.mxu1 %v14516_v12  ;;  %v10042_v12 = vld [vmem:[%s19382_s1 + $0x568] sm:$0xff] }
 0x31e   : > { %14521 = vmatprep.subr.bf16.mxu1 %v14520_v54  ;;  %v14432_v24 = vpack.c.bf16 %v10042_v12, %v10041_v36  ;;  %v10014_v0 = vld [vmem:[%s19382_s1 + $0x488] sm:$0xff] }
 0x31f   : > { %v12473_v7 = vpop.f32.mrb[10].mxu0  ;;  %12524 = vmatprep.mubr.msk.f32.mxu1 %vm3064_vm0, %v3036_v1  ;;  %v14440_v1 = vpack.c.bf16 %v10014_v0, %v10013_v3  ;;  %v10082_v3 = vld [vmem:[%s19382_s1 + $0x6a8] sm:$0xff] }
 0x320   : > { %v2887_v6 = vpop.f32.mrb[11].mxu0  ;;  %12525 = vmatmul.mubr.msk.f32.gmra.mrb[8].mxu1 %vm3064_vm0, %v3037_v2  ;;  %v3039_v9 = vmax.f32 %v12473_v7, 0.0  ;;  %14433 = vmatprep.subr.bf16.mxu0 %v14432_v24  ;;  %v10015_v2 = vld [vmem:[%s19382_s1 + $0x490] sm:$0xff] }
 0x321   : > { %v3038_v23 = vmax.f32 %v2887_v6, 0.0  ;;  %14523 = vmatpush3.bf16.msra.mxu1 %v14520_v54  ;;  %14435 = vmatpush3.bf16.msra.mxu0 %v14432_v24  ;;  %v14532_v54 = vpack.c.bf16 %v10076_v53, %v10075_v49  ;;  %v14448_v6 = vpack.c.bf16 %v10018_v20, %v10017_v18  ;;  %v15835_v24 = vld [vmem:[%s16071_s26 + $0x38] sm:$0xff] }
 0x322   : > { %14525 = vmatprep.subr.bf16.mxu1 %v14524_v61  ;;  %14437 = vmatprep.subr.bf16.mxu0 %v14436_v47 }
 0x323   : > { %v12476_v45 = vpop.f32.mrb[12].mxu0  ;;  %12527 = vmatprep.mubr.msk.f32.mxu1 %vm3064_vm0, %v3038_v23  ;;  %v10019_v23 = vld [vmem:[%s19382_s1 + $0x4b0] sm:$0xff] }
 0x324   : > { %v2897_v46 = vpop.f32.mrb[13].mxu0  ;;  %12528 = vmatmul.mubr.msk.f32.gmra.mrb[10].mxu1 %vm3064_vm0, %v3039_v9  ;;  %v3041_v13 = vmax.f32 %v12476_v45, 0.0  ;;  %v10020_v9 = vld [vmem:[%s19382_s1 + $0x4b8] sm:$0xff]  ;;  %v10021_v45 = vld [vmem:[%s19382_s1 + $0x4c0] sm:$0xff] }
 0x325   : > { %v3040_v32 = vmax.f32 %v2897_v46, 0.0  ;;  %14527 = vmatpush3.bf16.msra.mxu1 %v14524_v61  ;;  %14439 = vmatpush3.bf16.msra.mxu0 %v14436_v47  ;;  %v10016_v61 = vld [vmem:[%s19382_s1 + $0x498] sm:$0xff]  ;;  %v10022_v46 = vld [vmem:[%s19382_s1 + $0x4c8] sm:$0xff] }
 0x326   : > { %14529 = vmatprep.subr.bf16.mxu1 %v14528_v31  ;;  %14441 = vmatprep.subr.bf16.mxu0 %v14440_v1  ;;  %v14444_v7 = vpack.c.bf16 %v10016_v61, %v10015_v2  ;;  %v15837_v61 = vld [vmem:[%s16071_s26 + $0x48] sm:$0xff] }
 0x327   : > { %v12479_v40 = vpop.f32.mrb[14].mxu0  ;;  %12530 = vmatprep.mubr.msk.f32.mxu1 %vm3064_vm0, %v3040_v32  ;;  %v14456_v32 = vpack.c.bf16 %v10022_v46, %v10021_v45  ;;  %v10084_v45 = vld [vmem:[%s19382_s1 + $0x6b8] sm:$0xff] }
 0x328   : > { %v2907_v41 = vpop.f32.mrb[15].mxu0  ;;  %12531 = vmatmul.mubr.msk.f32.gmra.mrb[12].mxu1 %vm3064_vm0, %v3041_v13  ;;  %v3043_v5 = vmax.f32 %v12479_v40, 0.0  ;;  %12593 = vmatmul.mubr.f32.vlgmr.msra.gmra.mrb[32].mxu0 %v16938_v26  ;;  %v17086_v26 = vpack.c.bf16 %v10078_v57, %v10077_v55  ;;  %v10023_v13 = vld [vmem:[%s19382_s1 + $0x4d0] sm:$0xff]  ;;  %v10024_v40 = vld [vmem:[%s19382_s1 + $0x4d8] sm:$0xff]  ;;  %v10081_v57 = vld [vmem:[%s19382_s1 + $0x6a0] sm:$0xff] }
 0x329   : > { %v3042_v4 = vmax.f32 %v2907_v41, 0.0  ;;  %14531 = vmatpush3.bf16.msra.mxu1 %v14528_v31  ;;  %14443 = vmatpush3.bf16.msra.mxu0 %v14440_v1  ;;  %v14452_v31 = vpack.c.bf16 %v10020_v9, %v10019_v23  ;;  %v14460_v41 = vpack.c.bf16 %v10024_v40, %v10023_v13  ;;  %v14544_v23 = vpack.c.bf16 %v10082_v3, %v10081_v57  ;;  %v15838_v9 = vld [vmem:[%s16071_s26 + $0x40] sm:$0xff]  ;;  %v15839_v40 = vld [vmem:[%s16071_s26 + $0x58] sm:$0xff] }
 0x32a   : > { %14533 = vmatprep.subr.bf16.mxu1 %v14532_v54  ;;  %14445 = vmatprep.subr.bf16.mxu0 %v14444_v7 }
 0x32b   : > { %v12482_v48 = vpop.f32.mrb[16].mxu0  ;;  %12533 = vmatprep.mubr.msk.f32.mxu1 %vm3064_vm0, %v3042_v4  ;;  %v10025_v4 = vld [vmem:[%s19382_s1 + $0x4e0] sm:$0xff] }
 0x32c   : > { %v2917_v14 = vpop.f32.mrb[17].mxu0  ;;  %12534 = vmatmul.mubr.msk.f32.gmra.mrb[14].mxu1 %vm3064_vm0, %v3043_v5  ;;  %v3045_v58 = vmax.f32 %v12482_v48, 0.0  ;;  %v10026_v5 = vld [vmem:[%s19382_s1 + $0x4e8] sm:$0xff] }
 0x32d   : > { %v3044_v56 = vmax.f32 %v2917_v14, 0.0  ;;  %14535 = vmatpush3.bf16.msra.mxu1 %v14532_v54  ;;  %14447 = vmatpush3.bf16.msra.mxu0 %v14444_v7  ;;  %v14464_v48 = vpack.c.bf16 %v10026_v5, %v10025_v4  ;;  %v10027_v14 = vld [vmem:[%s19382_s1 + $0x4f0] sm:$0xff] }
 0x32e   : > { %14537 = vmatprep.subr.bf16.mxu1 %v17086_v26  ;;  %14449 = vmatprep.subr.bf16.mxu0 %v14448_v6  ;;  %v15836_v54 = vld [vmem:[%s16071_s26 + $0x30] sm:$0xff] }
 0x32f   : > { %v12485_v10 = vpop.f32.mrb[18].mxu0  ;;  %12536 = vmatprep.mubr.msk.f32.mxu1 %vm3064_vm0, %v3044_v56  ;;  %v10028_v56 = vld [vmem:[%s19382_s1 + $0x4f8] sm:$0xff] }
 0x330   : > { %v2927_v62 = vpop.f32.mrb[19].mxu0  ;;  %12537 = vmatmul.mubr.msk.f32.gmra.mrb[16].mxu1 %vm3064_vm0, %v3045_v58  ;;  %v3047_v11 = vmax.f32 %v12485_v10, 0.0  ;;  %v14468_v58 = vpack.c.bf16 %v10028_v56, %v10027_v14  ;;  %v10045_v10 = vld [vmem:[%s19382_s1 + $0x580] sm:$0xff]  ;;  %v15840_v56 = vld [vmem:[%s16071_s26 + $0x50] sm:$0xff] }
 0x331   : > { %v3046_v63 = vmax.f32 %v2927_v62, 0.0  ;;  %14451 = vmatpush3.bf16.msra.mxu0 %v14448_v6  ;;  %v10046_v62 = vld [vmem:[%s19382_s1 + $0x588] sm:$0xff] }
 0x332   : > { %14453 = vmatprep.subr.bf16.mxu0 %v14452_v31 }
 0x333   : > { %v12488_v8 = vpop.f32.mrb[20].mxu0  ;;  %12539 = vmatprep.mubr.msk.f32.mxu1 %vm3064_vm0, %v3046_v63  ;;  %v17143_v63 = vpack.c.bf16 %v10046_v62, %v10045_v10  ;;  %v10085_v10 = vld [vmem:[%s19382_s1 + $0x6c0] sm:$0xff]  ;;  %v10086_v62 = vld [vmem:[%s19382_s1 + $0x6c8] sm:$0xff] }
 0x334   : > { %v2937_v25 = vpop.f32.mrb[21].mxu0  ;;  %12540 = vmatmul.mubr.msk.f32.gmra.mrb[18].mxu1 %vm3064_vm0, %v3047_v11  ;;  %v3049_v37 = vmax.f32 %v12488_v8, 0.0  ;;  %v15829_v8 = vld [vmem:[%s16071_s26 + $0x8] sm:$0xff] }
 0x335   : > { %v3048_v33 = vmax.f32 %v2937_v25, 0.0  ;;  %14455 = vmatpush3.bf16.msra.mxu0 %v14452_v31 }
 0x336   : > { %14457 = vmatprep.subr.bf16.mxu0 %v14456_v32 }
 0x337   : > { %v12491_v22 = vpop.f32.mrb[22].mxu0  ;;  %12542 = vmatprep.mubr.msk.f32.mxu1 %vm3064_vm0, %v3048_v33 }
 0x338   : > { %v2947_v39 = vpop.f32.mrb[23].mxu0  ;;  %12543 = vmatmul.mubr.msk.f32.gmra.mrb[20].mxu1 %vm3064_vm0, %v3049_v37  ;;  %v3051_v15 = vmax.f32 %v12491_v22, 0.0  ;;  %v15830_v37 = vld [vmem:[%s16071_s26] sm:$0xff] }
 0x339   : > { %v3050_v42 = vmax.f32 %v2947_v39, 0.0  ;;  %14459 = vmatpush3.bf16.msra.mxu0 %v14456_v32 }
 0x33a   : > { %14461 = vmatprep.subr.bf16.mxu0 %v14460_v41 }
 0x33b   : > { %v12494_v43 = vpop.f32.mrb[24].mxu0  ;;  %12545 = vmatprep.mubr.msk.f32.mxu1 %vm3064_vm0, %v3050_v42 }
 0x33c   : > { %v2957_v16 = vpop.f32.mrb[25].mxu0  ;;  %12546 = vmatmul.mubr.msk.f32.gmra.mrb[22].mxu1 %vm3064_vm0, %v3051_v15  ;;  %v3053_v44 = vmax.f32 %v12494_v43, 0.0  ;;  %v15831_v43 = vld [vmem:[%s16071_s26 + $0x18] sm:$0xff] }
 0x33d   : > { %v3052_v17 = vmax.f32 %v2957_v16, 0.0  ;;  %14463 = vmatpush3.bf16.msra.mxu0 %v14460_v41 }
 0x33e   : > { %14465 = vmatprep.subr.bf16.mxu0 %v14464_v48 }
 0x33f   : > { %v12497_v19 = vpop.f32.mrb[26].mxu0  ;;  %12548 = vmatprep.mubr.msk.f32.mxu1 %vm3064_vm0, %v3052_v17 }
 0x340   : > { %v2967_v21 = vpop.f32.mrb[27].mxu0  ;;  %12549 = vmatmul.mubr.msk.f32.gmra.mrb[24].mxu1 %vm3064_vm0, %v3053_v44  ;;  %v3055_v27 = vmax.f32 %v12497_v19, 0.0  ;;  %v15832_v44 = vld [vmem:[%s16071_s26 + $0x10] sm:$0xff] }
 0x341   : > { %v3054_v50 = vmax.f32 %v2967_v21, 0.0  ;;  %14467 = vmatpush3.bf16.msra.mxu0 %v14464_v48 }
 0x342   : > { %14469 = vmatprep.subr.bf16.mxu0 %v14468_v58 }
 0x343   : > { %v12500_v28 = vpop.f32.mrb[28].mxu0  ;;  %12551 = vmatprep.mubr.msk.f32.mxu1 %vm3064_vm0, %v3054_v50 }
 0x344   : > { %v2977_v51 = vpop.f32.mrb[29].mxu0  ;;  %12552 = vmatmul.mubr.msk.f32.gmra.mrb[26].mxu1 %vm3064_vm0, %v3055_v27  ;;  %v3057_v60 = vmax.f32 %v12500_v28, 0.0  ;;  %v15833_v28 = vld [vmem:[%s16071_s26 + $0x28] sm:$0xff] }
 0x345   : > { %v3056_v30 = vmax.f32 %v2977_v51, 0.0  ;;  %14471 = vmatpush3.bf16.msra.mxu0 %v14468_v58 }
 0x346   : > { %14473 = vmatprep.subr.bf16.mxu0 %v17143_v63 }
 0x347   : > { %v12503_v29 = vpop.f32.mrb[30].mxu0  ;;  %12554 = vmatprep.mubr.msk.f32.mxu1 %vm3064_vm0, %v3056_v30 }
 0x348   : > { %v2987_v34 = vpop.f32.mrb[31].mxu0  ;;  %12555 = vmatmul.mubr.msk.f32.gmra.mrb[28].mxu1 %vm3064_vm0, %v3057_v60  ;;  %v3059_v35 = vmax.f32 %v12503_v29, 0.0  ;;  %v15834_v60 = vld [vmem:[%s16071_s26 + $0x20] sm:$0xff] }
 0x349   : > { %v3058_v52 = vmax.f32 %v2987_v34, 0.0  ;;  %v10079_v34 = vld [vmem:[%s19382_s1 + $0x690] sm:$0xff] }
 0x34b   : > { %12557 = vmatprep.mubr.msk.f32.mxu1 %vm3064_vm0, %v3058_v52  ;;  %v10080_v52 = vld [vmem:[%s19382_s1 + $0x698] sm:$0xff] }
 0x34c   : > { %12558 = vmatmul.mubr.msk.f32.gmra.mrb[30].mxu1 %vm3064_vm0, %v3059_v35  ;;  %v14540_v53 = vpack.c.bf16 %v10080_v52, %v10079_v34  ;;  %v10088_v34 = vld [vmem:[%s19382_s1 + $0x6d8] sm:$0xff] }
 0x3e3   : > { %v12514_v11 = vpop.f32.mrb[0].mxu1 }
 0x3e4   : > { %v17147_v25 = vadd.f32 %v15829_v8, %v12514_v11  ;;  %v3227_v33 = vpop.f32.mrb[1].mxu1 }
 0x3e5   : > { %v17150_v22 = vadd.f32 %v15830_v37, %v3227_v33  ;;  %v15841_v37 = vld [vmem:[%s16071_s26 + $0x68] sm:$0xff] }
 0x3e6   : > { %19597 = vst [vmem:[#allocation6_spill] sm:$0xff] %v17147_v25  ;;  %v17153_v39 = vmax.f32 %v17147_v25, 0.0 }
 0x3e7   : > { %19598 = vst [vmem:[#allocation7_spill] sm:$0xff] %v17150_v22  ;;  %v17156_v42 = vmax.f32 %v17150_v22, 0.0  ;;  %v12517_v15 = vpop.f32.mrb[2].mxu1 }
 0x3e8   : > { %3451 = vst [vmem:[#allocation2 + $0x30] sm:$0xff] %v17153_v39  ;;  %v17160_v16 = vadd.f32 %v15831_v43, %v12517_v15  ;;  %v3237_v17 = vpop.f32.mrb[3].mxu1 }
 0x3e9   : > { %3450 = vst [vmem:[#allocation2 + $0x28] sm:$0xff] %v17156_v42  ;;  %v17164_v19 = vadd.f32 %v15832_v44, %v3237_v17  ;;  %12595 = vmatprep.mubr.f32.mxu0 %v17156_v42 }
 0x3ea   : > { %19599 = vst [vmem:[#allocation8_spill] sm:$0xff] %v17160_v16  ;;  %v17168_v21 = vmax.f32 %v17160_v16, 0.0  ;;  %12596 = vmatmul.mubr.f32.gmra.mrb[34].mxu0 %v17153_v39 }
 0x3eb   : > { %19600 = vst [vmem:[#allocation9_spill] sm:$0xff] %v17164_v19  ;;  %v17172_v50 = vmax.f32 %v17164_v19, 0.0  ;;  %v12520_v27 = vpop.f32.mrb[4].mxu1 }
 0x3ec   : > { %3453 = vst [vmem:[#allocation2 + $0x50] sm:$0xff] %v17168_v21  ;;  %v17176_v51 = vadd.f32 %v15833_v28, %v12520_v27  ;;  %v3247_v30 = vpop.f32.mrb[5].mxu1  ;;  %v14552_v27 = vpack.c.bf16 %v10086_v62, %v10085_v10  ;;  %v15842_v28 = vld [vmem:[%s16071_s26 + $0x60] sm:$0xff] }
 0x3ed   : > { %3452 = vst [vmem:[#allocation2 + $0x48] sm:$0xff] %v17172_v50  ;;  %v17180_v29 = vadd.f32 %v15834_v60, %v3247_v30  ;;  %12598 = vmatprep.mubr.f32.mxu0 %v17172_v50  ;;  %v10087_v60 = vld [vmem:[%s19382_s1 + $0x6d0] sm:$0xff] }
 0x3ee   : > { %19601 = vst [vmem:[#allocation10_spill] sm:$0xff] %v17176_v51  ;;  %v17190_v35 = vmax.f32 %v17176_v51, 0.0  ;;  %12599 = vmatmul.mubr.f32.gmra.mrb[36].mxu0 %v17168_v21 }
 0x3ef   : > { %19602 = vst [vmem:[#allocation11_spill] sm:$0xff] %v17180_v29  ;;  %v17194_v36 = vmax.f32 %v17180_v29, 0.0  ;;  %v12523_v12 = vpop.f32.mrb[6].mxu1 }
 0x3f0   : > { %3455 = vst [vmem:[#allocation2 + $0x70] sm:$0xff] %v17190_v35  ;;  %v17198_v59 = vadd.f32 %v15835_v24, %v12523_v12  ;;  %v3257_v38 = vpop.f32.mrb[7].mxu1  ;;  %v17200_v47 = vld [vmem:[#allocation2 + $0x27] sm:$0xff]  ;;  %v17202_v49 = vld [vmem:[#allocation2 + $0x2f] sm:$0xff] }
 0x3f1   : > { %3454 = vst [vmem:[#allocation2 + $0x68] sm:$0xff] %v17194_v36  ;;  %v17206_v55 = vadd.f32 %v15836_v54, %v3257_v38  ;;  %12832 = vmatprep.mubr.f32.mxu1 %v17200_v47  ;;  %12601 = vmatprep.mubr.f32.mxu0 %v17194_v36  ;;  %v15843_v38 = vld [vmem:[%s16071_s26 + $0x78] sm:$0xff] }
 0x3f2   : > { %19603 = vst [vmem:[#allocation12_spill] sm:$0xff] %v17198_v59  ;;  %v17217_v0 = vmax.f32 %v17198_v59, 0.0  ;;  %12833 = vmatmul.mubr.f32.vlgmr.msra.gmra.mrb[32].mxu1 %v17202_v49  ;;  %12602 = vmatmul.mubr.f32.gmra.mrb[38].mxu0 %v17190_v35  ;;  %v15857_v59 = vld [vmem:[%s16071_s26 + $0xe8] sm:$0xff] }
 0x3f3   : > { %19604 = vst [vmem:[#allocation13_spill] sm:$0xff] %v17206_v55  ;;  %v17222_v1 = vmax.f32 %v17206_v55, 0.0  ;;  %v12526_v2 = vpop.f32.mrb[8].mxu1  ;;  %14539 = vmatpush3.bf16.msra.mxu1 %v17086_v26  ;;  %v10083_v26 = vld [vmem:[%s19382_s1 + $0x6b0] sm:$0xff] }
 0x3f4   : > { %3457 = vst [vmem:[#allocation2 + $0x90] sm:$0xff] %v17217_v0  ;;  %v17227_v7 = vadd.f32 %v15837_v61, %v12526_v2  ;;  %v3267_v18 = vpop.f32.mrb[9].mxu1  ;;  %v17229_v20 = vld [vmem:[#allocation2 + $0x47] sm:$0xff]  ;;  %v17231_v6 = vld [vmem:[#allocation2 + $0x4f] sm:$0xff]  ;;  %14541 = vmatprep.subr.bf16.mxu1 %v14540_v53  ;;  %v14548_v14 = vpack.c.bf16 %v10084_v45, %v10083_v26  ;;  %v14556_v2 = vpack.c.bf16 %v10088_v34, %v10087_v60 }
 0x3f5   : > { %3456 = vst [vmem:[#allocation2 + $0x88] sm:$0xff] %v17222_v1  ;;  %v17235_v31 = vadd.f32 %v15838_v9, %v3267_v18  ;;  %12835 = vmatprep.mubr.f32.mxu1 %v17229_v20  ;;  %12604 = vmatprep.mubr.f32.mxu0 %v17222_v1  ;;  %v15844_v61 = vld [vmem:[%s16071_s26 + $0x70] sm:$0xff]  ;;  %v10090_v9 = vld [vmem:[%s19382_s1 + $0x6e8] sm:$0xff] }
 0x3f6   : > { %19605 = vst [vmem:[#allocation14_spill] sm:$0xff] %v17227_v7  ;;  %v17246_v46 = vmax.f32 %v17227_v7, 0.0  ;;  %12836 = vmatmul.mubr.f32.gmra.mrb[34].mxu1 %v17231_v6  ;;  %12605 = vmatmul.mubr.f32.gmra.mrb[40].mxu0 %v17217_v0 }
 0x3f7   : > { %19606 = vst [vmem:[#allocation15_spill] sm:$0xff] %v17235_v31  ;;  %v17251_v32 = vmax.f32 %v17235_v31, 0.0  ;;  %v12529_v13 = vpop.f32.mrb[10].mxu1  ;;  %14543 = vmatpush3.bf16.msra.mxu1 %v14540_v53 }
 0x3f8   : > { %3459 = vst [vmem:[#allocation2 + $0xb0] sm:$0xff] %v17246_v46  ;;  %v17255_v41 = vadd.f32 %v15839_v40, %v12529_v13  ;;  %v3277_v4 = vpop.f32.mrb[11].mxu1  ;;  %v17257_v5 = vld [vmem:[#allocation2 + $0x67] sm:$0xff]  ;;  %v17259_v48 = vld [vmem:[#allocation2 + $0x6f] sm:$0xff]  ;;  %14545 = vmatprep.subr.bf16.mxu1 %v14544_v23 }
 0x3f9   : > { %3458 = vst [vmem:[#allocation2 + $0xa8] sm:$0xff] %v17251_v32  ;;  %v17263_v58 = vadd.f32 %v15840_v56, %v3277_v4  ;;  %12838 = vmatprep.mubr.f32.mxu1 %v17257_v5  ;;  %12607 = vmatprep.mubr.f32.mxu0 %v17251_v32  ;;  %v15845_v40 = vld [vmem:[%s16071_s26 + $0x88] sm:$0xff] }
 0x3fa   : > { %19607 = vst [vmem:[#allocation16_spill] sm:$0xff] %v17255_v41  ;;  %v17274_v11 = vmax.f32 %v17255_v41, 0.0  ;;  %12839 = vmatmul.mubr.f32.gmra.mrb[36].mxu1 %v17259_v48  ;;  %12608 = vmatmul.mubr.f32.gmra.mrb[42].mxu0 %v17246_v46  ;;  %v15855_v41 = vld [vmem:[%s16071_s26 + $0xd8] sm:$0xff] }
 0x3fb   : > { %19608 = vst [vmem:[#allocation17_spill] sm:$0xff] %v17263_v58  ;;  %v17279_v8 = vmax.f32 %v17263_v58, 0.0  ;;  %v12532_v33 = vpop.f32.mrb[12].mxu1  ;;  %14547 = vmatpush3.bf16.msra.mxu1 %v14544_v23  ;;  %v10089_v23 = vld [vmem:[%s19382_s1 + $0x6e0] sm:$0xff] }
 0x3fc   : > { %3461 = vst [vmem:[#allocation2 + $0xd0] sm:$0xff] %v17274_v11  ;;  %v17283_v15 = vadd.f32 %v15841_v37, %v12532_v33  ;;  %v3287_v43 = vpop.f32.mrb[13].mxu1  ;;  %v17285_v17 = vld [vmem:[#allocation2 + $0x87] sm:$0xff]  ;;  %v17287_v44 = vld [vmem:[#allocation2 + $0x8f] sm:$0xff]  ;;  %14549 = vmatprep.subr.bf16.mxu1 %v14548_v14  ;;  %v14560_v62 = vpack.c.bf16 %v10090_v9, %v10089_v23 }
 0x3fd   : > { %3460 = vst [vmem:[#allocation2 + $0xc8] sm:$0xff] %v17279_v8  ;;  %v17291_v30 = vadd.f32 %v15842_v28, %v3287_v43  ;;  %12841 = vmatprep.mubr.f32.mxu1 %v17285_v17  ;;  %12610 = vmatprep.mubr.f32.mxu0 %v17279_v8  ;;  %v15846_v33 = vld [vmem:[%s16071_s26 + $0x80] sm:$0xff]  ;;  %v10091_v43 = vld [vmem:[%s19382_s1 + $0x6f0] sm:$0xff] }
 0x3fe   : > { %19609 = vst [vmem:[#allocation18_spill] sm:$0xff] %v17283_v15  ;;  %v17302_v52 = vmax.f32 %v17283_v15, 0.0  ;;  %12842 = vmatmul.mubr.f32.gmra.mrb[38].mxu1 %v17287_v44  ;;  %12611 = vmatmul.mubr.f32.gmra.mrb[44].mxu0 %v17274_v11 }
 0x3ff   : > { %19610 = vst [vmem:[#allocation19_spill] sm:$0xff] %v17291_v30  ;;  %v17307_v12 = vmax.f32 %v17291_v30, 0.0  ;;  %v12535_v24 = vpop.f32.mrb[14].mxu1  ;;  %14551 = vmatpush3.bf16.msra.mxu1 %v14548_v14 }
 0x400   : > { %3463 = vst [vmem:[#allocation2 + $0xf0] sm:$0xff] %v17302_v52  ;;  %v17311_v53 = vadd.f32 %v15843_v38, %v12535_v24  ;;  %v3297_v54 = vpop.f32.mrb[15].mxu1  ;;  %v17313_v57 = vld [vmem:[#allocation2 + $0xa7] sm:$0xff]  ;;  %v17315_v3 = vld [vmem:[#allocation2 + $0xaf] sm:$0xff]  ;;  %14553 = vmatprep.subr.bf16.mxu1 %v14552_v27  ;;  %v15847_v24 = vld [vmem:[%s16071_s26 + $0x98] sm:$0xff] }
 0x401   : > { %3462 = vst [vmem:[#allocation2 + $0xe8] sm:$0xff] %v17307_v12  ;;  %v17319_v18 = vadd.f32 %v15844_v61, %v3297_v54  ;;  %12844 = vmatprep.mubr.f32.mxu1 %v17313_v57  ;;  %12613 = vmatprep.mubr.f32.mxu0 %v17307_v12 }
 0x402   : > { %19611 = vst [vmem:[#allocation20_spill] sm:$0xff] %v17311_v53  ;;  %v17330_v26 = vmax.f32 %v17311_v53, 0.0  ;;  %12845 = vmatmul.mubr.f32.gmra.mrb[40].mxu1 %v17315_v3  ;;  %12614 = vmatmul.mubr.f32.gmra.mrb[46].mxu0 %v17302_v52  ;;  %v15853_v53 = vld [vmem:[%s16071_s26 + $0xc8] sm:$0xff] }
 0x403   : > { %19612 = vst [vmem:[#allocation21_spill] sm:$0xff] %v17319_v18  ;;  %v17335_v45 = vmax.f32 %v17319_v18, 0.0  ;;  %v12538_v13 = vpop.f32.mrb[16].mxu1  ;;  %14555 = vmatpush3.bf16.msra.mxu1 %v14552_v27  ;;  %v10092_v27 = vld [vmem:[%s19382_s1 + $0x6f8] sm:$0xff]  ;;  %v15852_v18 = vld [vmem:[%s16071_s26 + $0xb0] sm:$0xff] }
 0x404   : > { %3465 = vst [vmem:[#allocation2 + $0x110] sm:$0xff] %v17330_v26  ;;  %v17339_v4 = vadd.f32 %v15845_v40, %v12538_v13  ;;  %v3307_v14 = vpop.f32.mrb[17].mxu1  ;;  %v17341_v56 = vld [vmem:[#allocation2 + $0xc7] sm:$0xff]  ;;  %v17343_v10 = vld [vmem:[#allocation2 + $0xcf] sm:$0xff]  ;;  %14557 = vmatprep.subr.bf16.mxu1 %v14556_v2  ;;  %v14564_v9 = vpack.c.bf16 %v10092_v27, %v10091_v43 }
 0x405   : > { %3464 = vst [vmem:[#allocation2 + $0x108] sm:$0xff] %v17335_v45  ;;  %v17347_v37 = vadd.f32 %v15846_v33, %v3307_v14  ;;  %12847 = vmatprep.mubr.f32.mxu1 %v17341_v56  ;;  %12616 = vmatprep.mubr.f32.mxu0 %v17335_v45  ;;  %v15848_v13 = vld [vmem:[%s16071_s26 + $0x90] sm:$0xff]  ;;  %v10094_v14 = vld [vmem:[%s19382_s1 + $0x708] sm:$0xff] }
 0x406   : > { %19613 = vst [vmem:[#allocation22_spill] sm:$0xff] %v17339_v4  ;;  %v17358_v28 = vmax.f32 %v17339_v4, 0.0  ;;  %12848 = vmatmul.mubr.f32.gmra.mrb[42].mxu1 %v17343_v10  ;;  %12617 = vmatmul.mubr.f32.gmra.mrb[48].mxu0 %v17330_v26 }
 0x407   : > { %19614 = vst [vmem:[#allocation23_spill] sm:$0xff] %v17347_v37  ;;  %v17363_v60 = vmax.f32 %v17347_v37, 0.0  ;;  %v12541_v34 = vpop.f32.mrb[18].mxu1  ;;  %14559 = vmatpush3.bf16.msra.mxu1 %v14556_v2  ;;  %v10093_v2 = vld [vmem:[%s19382_s1 + $0x700] sm:$0xff] }
 0x408   : > { %3467 = vst [vmem:[#allocation2 + $0x130] sm:$0xff] %v17358_v28  ;;  %v17367_v38 = vadd.f32 %v15847_v24, %v12541_v34  ;;  %v3317_v54 = vpop.f32.mrb[19].mxu1  ;;  %v17369_v61 = vld [vmem:[#allocation2 + $0xe7] sm:$0xff]  ;;  %v17371_v23 = vld [vmem:[#allocation2 + $0xef] sm:$0xff]  ;;  %14561 = vmatprep.subr.bf16.mxu1 %v14560_v62  ;;  %v17401_v37 = vpack.c.bf16 %v10094_v14, %v10093_v2 }
 0x409   : > { %3466 = vst [vmem:[#allocation2 + $0x128] sm:$0xff] %v17363_v60  ;;  %v17375_v40 = vadd.f32 %v15848_v13, %v3317_v54  ;;  %12850 = vmatprep.mubr.f32.mxu1 %v17369_v61  ;;  %12619 = vmatprep.mubr.f32.mxu0 %v17363_v60  ;;  %v15849_v34 = vld [vmem:[%s16071_s26 + $0xa8] sm:$0xff] }
 0x40a   : > { %19615 = vst [vmem:[#allocation24_spill] sm:$0xff] %v17367_v38  ;;  %v17386_v33 = vmax.f32 %v17367_v38, 0.0  ;;  %12851 = vmatmul.mubr.f32.gmra.mrb[44].mxu1 %v17371_v23  ;;  %12620 = vmatmul.mubr.f32.gmra.mrb[50].mxu0 %v17358_v28 }
 0x40b   : > { %19616 = vst [vmem:[#allocation25_spill] sm:$0xff] %v17375_v40  ;;  %v17391_v43 = vmax.f32 %v17375_v40, 0.0  ;;  %v12544_v27 = vpop.f32.mrb[20].mxu1  ;;  %14563 = vmatpush3.bf16.msra.mxu1 %v14560_v62  ;;  %v15850_v40 = vld [vmem:[%s16071_s26 + $0xa0] sm:$0xff] }
 0x40c   : > { %3469 = vst [vmem:[#allocation2 + $0x150] sm:$0xff] %v17386_v33  ;;  %v17395_v24 = vadd.f32 %v15849_v34, %v12544_v27  ;;  %v3327_v54 = vpop.f32.mrb[21].mxu1  ;;  %v17397_v13 = vld [vmem:[#allocation2 + $0x107] sm:$0xff]  ;;  %v17399_v38 = vld [vmem:[#allocation2 + $0x10f] sm:$0xff]  ;;  %14565 = vmatprep.subr.bf16.mxu1 %v14564_v9 }
 0x40d   : > { %3468 = vst [vmem:[#allocation2 + $0x148] sm:$0xff] %v17391_v43  ;;  %v17405_v4 = vadd.f32 %v15850_v40, %v3327_v54  ;;  %12853 = vmatprep.mubr.f32.mxu1 %v17397_v13  ;;  %12622 = vmatprep.mubr.f32.mxu0 %v17391_v43  ;;  %v15851_v40 = vld [vmem:[%s16071_s26 + $0xb8] sm:$0xff] }
 0x40e   : > { %19617 = vst [vmem:[#allocation26_spill] sm:$0xff] %v17395_v24  ;;  %v17410_v62 = vmax.f32 %v17395_v24, 0.0  ;;  %12854 = vmatmul.mubr.f32.gmra.mrb[46].mxu1 %v17399_v38  ;;  %12623 = vmatmul.mubr.f32.gmra.mrb[52].mxu0 %v17386_v33 }
 0x40f   : > { %19618 = vst [vmem:[#allocation27_spill] sm:$0xff] %v17405_v4  ;;  %v17415_v2 = vmax.f32 %v17405_v4, 0.0  ;;  %v12547_v14 = vpop.f32.mrb[22].mxu1  ;;  %14567 = vmatpush3.bf16.msra.mxu1 %v14564_v9 }
 0x410   : > { %3471 = vst [vmem:[#allocation2 + $0x170] sm:$0xff] %v17410_v62  ;;  %v17419_v27 = vadd.f32 %v15851_v40, %v12547_v14  ;;  %v3337_v34 = vpop.f32.mrb[23].mxu1  ;;  %v17421_v54 = vld [vmem:[#allocation2 + $0x127] sm:$0xff]  ;;  %v17423_v24 = vld [vmem:[#allocation2 + $0x12f] sm:$0xff]  ;;  %14569 = vmatprep.subr.bf16.mxu1 %v17401_v37 }
 0x411   : > { %3470 = vst [vmem:[#allocation2 + $0x168] sm:$0xff] %v17415_v2  ;;  %v17428_v4 = vadd.f32 %v15852_v18, %v3337_v34  ;;  %12856 = vmatprep.mubr.f32.mxu1 %v17421_v54  ;;  %12625 = vmatprep.mubr.f32.mxu0 %v17415_v2 }
 0x412   : > { %19619 = vst [vmem:[#allocation28_spill] sm:$0xff] %v17419_v27  ;;  %v17433_v9 = vmax.f32 %v17419_v27, 0.0  ;;  %12857 = vmatmul.mubr.f32.gmra.mrb[48].mxu1 %v17423_v24  ;;  %12626 = vmatmul.mubr.f32.gmra.mrb[54].mxu0 %v17410_v62  ;;  %v15854_v27 = vld [vmem:[%s16071_s26 + $0xc0] sm:$0xff] }
 0x413   : > { %19620 = vst [vmem:[#allocation29_spill] sm:$0xff] %v17428_v4  ;;  %v17438_v14 = vmax.f32 %v17428_v4, 0.0  ;;  %v12550_v40 = vpop.f32.mrb[24].mxu1 }
 0x414   : > { %3473 = vst [vmem:[#allocation2 + $0x190] sm:$0xff] %v17433_v9  ;;  %v17442_v18 = vadd.f32 %v15853_v53, %v12550_v40  ;;  %v3347_v34 = vpop.f32.mrb[25].mxu1  ;;  %v17444_v30 = vld [vmem:[#allocation2 + $0x147] sm:$0xff]  ;;  %v17446_v15 = vld [vmem:[#allocation2 + $0x14f] sm:$0xff] }
 0x415   : > { %3472 = vst [vmem:[#allocation2 + $0x188] sm:$0xff] %v17438_v14  ;;  %v17450_v58 = vadd.f32 %v15854_v27, %v3347_v34  ;;  %12859 = vmatprep.mubr.f32.mxu1 %v17444_v30  ;;  %12628 = vmatprep.mubr.f32.mxu0 %v17438_v14 }
 0x416   : > { %19621 = vst [vmem:[#allocation30_spill] sm:$0xff] %v17442_v18  ;;  %v17455_v4 = vmax.f32 %v17442_v18, 0.0  ;;  %12860 = vmatmul.mubr.f32.gmra.mrb[50].mxu1 %v17446_v15  ;;  %12629 = vmatmul.mubr.f32.gmra.mrb[56].mxu0 %v17433_v9  ;;  %v15856_v18 = vld [vmem:[%s16071_s26 + $0xd0] sm:$0xff] }
 0x417   : > { %19622 = vst [vmem:[#allocation31_spill] sm:$0xff] %v17450_v58  ;;  %v17460_v53 = vmax.f32 %v17450_v58, 0.0  ;;  %v12553_v40 = vpop.f32.mrb[26].mxu1 }
 0x418   : > { %19623 = vst [vmem:[#allocation32_spill] sm:$0xff] %v17455_v4  ;;  %3475 = vst [vmem:[#allocation2 + $0x1b0] sm:$0xff] %v17455_v4  ;;  %v17464_v27 = vadd.f32 %v15855_v41, %v12553_v40  ;;  %v3357_v34 = vpop.f32.mrb[27].mxu1  ;;  %v17466_v31 = vld [vmem:[#allocation2 + $0x167] sm:$0xff]  ;;  %v17468_v7 = vld [vmem:[#allocation2 + $0x16f] sm:$0xff] }
 0x419   : > { %19624 = vst [vmem:[#allocation33_spill] sm:$0xff] %v17460_v53  ;;  %3474 = vst [vmem:[#allocation2 + $0x1a8] sm:$0xff] %v17460_v53  ;;  %v17472_v55 = vadd.f32 %v15856_v18, %v3357_v34  ;;  %12862 = vmatprep.mubr.f32.mxu1 %v17466_v31  ;;  %12631 = vmatprep.mubr.f32.mxu0 %v17460_v53 }
 0x41a   : > { %19625 = vst [vmem:[#allocation34_spill] sm:$0xff] %v17464_v27  ;;  %v17477_v58 = vmax.f32 %v17464_v27, 0.0  ;;  %12863 = vmatmul.mubr.f32.gmra.mrb[52].mxu1 %v17468_v7  ;;  %12632 = vmatmul.mubr.f32.gmra.mrb[58].mxu0 %v17455_v4  ;;  %v15858_v27 = vld [vmem:[%s16071_s26 + $0xe0] sm:$0xff] }
 0x41b   : > { %19626 = vst [vmem:[#allocation35_spill] sm:$0xff] %v17472_v55  ;;  %v17482_v41 = vmax.f32 %v17472_v55, 0.0  ;;  %v12556_v40 = vpop.f32.mrb[28].mxu1 }
 0x41c   : > { %19627 = vst [vmem:[#allocation36_spill] sm:$0xff] %v17477_v58  ;;  %3477 = vst [vmem:[#allocation2 + $0x1d0] sm:$0xff] %v17477_v58  ;;  %v17486_v18 = vadd.f32 %v15857_v59, %v12556_v40  ;;  %v3367_v34 = vpop.f32.mrb[29].mxu1  ;;  %v17488_v29 = vld [vmem:[#allocation2 + $0x187] sm:$0xff]  ;;  %v17490_v51 = vld [vmem:[#allocation2 + $0x18f] sm:$0xff] }
 0x41d   : > { %19628 = vst [vmem:[#allocation37_spill] sm:$0xff] %v17482_v41  ;;  %3476 = vst [vmem:[#allocation2 + $0x1c8] sm:$0xff] %v17482_v41  ;;  %v17494_v19 = vadd.f32 %v15858_v27, %v3367_v34  ;;  %12865 = vmatprep.mubr.f32.mxu1 %v17488_v29  ;;  %12634 = vmatprep.mubr.f32.mxu0 %v17482_v41  ;;  %v15859_v27 = vld [vmem:[%s16071_s26 + $0xf8] sm:$0xff]  ;;  %v15860_v41 = vld [vmem:[%s16071_s26 + $0xf0] sm:$0xff] }
 0x41e   : > { %19629 = vst [vmem:[#allocation38_spill] sm:$0xff] %v17486_v18  ;;  %v17499_v55 = vmax.f32 %v17486_v18, 0.0  ;;  %12866 = vmatmul.mubr.f32.gmra.mrb[54].mxu1 %v17490_v51  ;;  %12635 = vmatmul.mubr.f32.gmra.mrb[60].mxu0 %v17477_v58  ;;  %v3482_v18 = vld [vmem:[#allocation2 + $0x7] sm:$0xff] }
 0x41f   : > { %19630 = vst [vmem:[#allocation39_spill] sm:$0xff] %v17494_v19  ;;  %v17504_v59 = vmax.f32 %v17494_v19, 0.0  ;;  %v12559_v40 = vpop.f32.mrb[30].mxu1 }
 0x420   : > { %19631 = vst [vmem:[#allocation40_spill] sm:$0xff] %v17499_v55  ;;  %3479 = vst [vmem:[#allocation2 + $0x1f0] sm:$0xff] %v17499_v55  ;;  %v17508_v34 = vadd.f32 %v15859_v27, %v12559_v40  ;;  %v3377_v16 = vpop.f32.mrb[31].mxu1  ;;  %v17510_v22 = vld [vmem:[#allocation2 + $0x1a7] sm:$0xff]  ;;  %v17512_v25 = vld [vmem:[#allocation2 + $0x1af] sm:$0xff] }
 0x421   : > { %19632 = vst [vmem:[#allocation41_spill] sm:$0xff] %v17504_v59  ;;  %3478 = vst [vmem:[#allocation2 + $0x1e8] sm:$0xff] %v17504_v59  ;;  %v17516_v4 = vadd.f32 %v15860_v41, %v3377_v16  ;;  %12868 = vmatprep.mubr.f32.mxu1 %v17510_v22  ;;  %12637 = vmatprep.mubr.f32.mxu0 %v17504_v59  ;;  %v10047_v40 = vld [vmem:[%s19382_s1 + $0x590] sm:$0xff]  ;;  %v10048_v27 = vld [vmem:[%s19382_s1 + $0x598] sm:$0xff] }
 0x422   : > { %v19458_v19 = vmax.f32 %v17508_v34, 0.0  ;;  %12869 = vmatmul.mubr.f32.gmra.mrb[56].mxu1 %v17512_v25  ;;  %12638 = vmatmul.mubr.f32.gmra.mrb[62].mxu0 %v17499_v55  ;;  %v3483_v41 = vld [vmem:[#allocation2 + $0xf] sm:$0xff]  ;;  %v14476_v53 = vpack.c.bf16 %v10048_v27, %v10047_v40  ;;  %v10049_v55 = vld [vmem:[%s19382_s1 + $0x5a0] sm:$0xff] }
 0x423   : > { %v19459_v16 = vmax.f32 %v17516_v4, 0.0  ;;  %12672 = vmatprep.mubr.f32.mxu0 %v3482_v18  ;;  %v10050_v18 = vld [vmem:[%s19382_s1 + $0x5a8] sm:$0xff] }
 0x424   : > { %3481 = vst [vmem:[#allocation2 + $0x210] sm:$0xff] %v19458_v19  ;;  %v17532_v59 = vld [vmem:[#allocation2 + $0x1c7] sm:$0xff]  ;;  %v17534_v58 = vld [vmem:[#allocation2 + $0x1cf] sm:$0xff]  ;;  %v14480_v19 = vpack.c.bf16 %v10050_v18, %v10049_v55  ;;  %v10096_v18 = vld [vmem:[%s19382_s1 + $0x718] sm:$0xff] }
 0x425   : > { %3480 = vst [vmem:[#allocation2 + $0x208] sm:$0xff] %v19459_v16  ;;  %12871 = vmatprep.mubr.f32.mxu1 %v17532_v59 }
 0x426   : > { %12872 = vmatmul.mubr.f32.gmra.mrb[58].mxu1 %v17534_v58  ;;  %12673 = vmatmul.mubr.f32.vlgmr.msra.gmra.mrb[32].mxu0 %v3483_v41  ;;  %v10051_v41 = vld [vmem:[%s19382_s1 + $0x5b0] sm:$0xff] }
 0x427   : > { %12675 = vmatprep.mubr.f32.mxu0 %v17200_v47  ;;  %14475 = vmatpush3.bf16.msra.mxu0 %v17143_v63  ;;  %v10052_v63 = vld [vmem:[%s19382_s1 + $0x5b8] sm:$0xff] }
 0x428   : > { %v17548_v40 = vld [vmem:[#allocation2 + $0x1e7] sm:$0xff]  ;;  %v17550_v27 = vld [vmem:[#allocation2 + $0x1ef] sm:$0xff]  ;;  %14477 = vmatprep.subr.bf16.mxu0 %v14476_v53  ;;  %v14484_v16 = vpack.c.bf16 %v10052_v63, %v10051_v41  ;;  %v10060_v63 = vld [vmem:[%s19382_s1 + $0x5f8] sm:$0xff] }
 0x429   : > { %12874 = vmatprep.mubr.f32.mxu1 %v17548_v40 }
 0x42a   : > { %12875 = vmatmul.mubr.f32.gmra.mrb[60].mxu1 %v17550_v27  ;;  %12676 = vmatmul.mubr.f32.gmra.mrb[34].mxu0 %v17202_v49  ;;  %v10095_v49 = vld [vmem:[%s19382_s1 + $0x710] sm:$0xff] }
 0x42b   : > { %12678 = vmatprep.mubr.f32.mxu0 %v17229_v20  ;;  %14479 = vmatpush3.bf16.msra.mxu0 %v14476_v53  ;;  %v14572_v20 = vpack.c.bf16 %v10096_v18, %v10095_v49  ;;  %v10097_v53 = vld [vmem:[%s19382_s1 + $0x720] sm:$0xff]  ;;  %v10114_v18 = vld [vmem:[%s19382_s1 + $0x7a8] sm:$0xff] }
 0x42c   : > { %v17562_v47 = vld [vmem:[#allocation2 + $0x207] sm:$0xff]  ;;  %v17564_v55 = vld [vmem:[#allocation2 + $0x20f] sm:$0xff]  ;;  %14481 = vmatprep.subr.bf16.mxu0 %v14480_v19 }
 0x42d   : > { %19633 = vst [vmem:[#allocation42_spill] sm:$0xff] %v17562_v47  ;;  %12877 = vmatprep.mubr.f32.mxu1 %v17562_v47  ;;  %v10098_v47 = vld [vmem:[%s19382_s1 + $0x728] sm:$0xff]  ;;  %v10113_v49 = vld [vmem:[%s19382_s1 + $0x7a0] sm:$0xff] }
 0x42e   : > { %12878 = vmatmul.mubr.f32.gmra.mrb[62].mxu1 %v17564_v55  ;;  %12679 = vmatmul.mubr.f32.gmra.mrb[36].mxu0 %v17231_v6  ;;  %v14576_v6 = vpack.c.bf16 %v10098_v47, %v10097_v53  ;;  %v10105_v47 = vld [vmem:[%s19382_s1 + $0x760] sm:$0xff]  ;;  %v14608_v53 = vpack.c.bf16 %v10114_v18, %v10113_v49  ;;  %v5255_v18 = vld [vmem:[#allocation2 + $0x4f] sm:$0xff] }
 0x42f   : > { %12912 = vmatprep.mubr.f32.mxu1 %v17156_v42  ;;  %12681 = vmatprep.mubr.f32.mxu0 %v17257_v5  ;;  %v10053_v42 = vld [vmem:[%s19382_s1 + $0x5c0] sm:$0xff] }
 0x430   : > { %14483 = vmatpush3.bf16.msra.mxu0 %v14480_v19  ;;  %v10054_v19 = vld [vmem:[%s19382_s1 + $0x5c8] sm:$0xff] }
 0x431   : > { %14485 = vmatprep.subr.bf16.mxu0 %v14484_v16  ;;  %v14488_v5 = vpack.c.bf16 %v10054_v19, %v10053_v42  ;;  %v17730_v42 = vld [vmem:[#allocation2 + $0x91] sm:$0xff] }
 0x432   : > { %12913 = vmatmul.mubr.f32.vlgmr.msra.gmra.mrb[32].mxu1 %v17153_v39  ;;  %12682 = vmatmul.mubr.f32.gmra.mrb[38].mxu0 %v17259_v48  ;;  %v10099_v39 = vld [vmem:[%s19382_s1 + $0x730] sm:$0xff] }
 0x433   : > { %12915 = vmatprep.mubr.f32.mxu1 %v17172_v50  ;;  %14571 = vmatpush3.bf16.msra.mxu1 %v17401_v37  ;;  %v10100_v50 = vld [vmem:[%s19382_s1 + $0x738] sm:$0xff]  ;;  %v10055_v48 = vld [vmem:[%s19382_s1 + $0x5d0] sm:$0xff] }
 0x434   : > { %14573 = vmatprep.subr.bf16.mxu1 %v14572_v20  ;;  %12684 = vmatprep.mubr.f32.mxu0 %v17285_v17  ;;  %v10056_v17 = vld [vmem:[%s19382_s1 + $0x5d8] sm:$0xff]  ;;  %v10115_v19 = vld [vmem:[%s19382_s1 + $0x7b0] sm:$0xff] }
 0x435   : > { %14487 = vmatpush3.bf16.msra.mxu0 %v14484_v16  ;;  %v14492_v37 = vpack.c.bf16 %v10056_v17, %v10055_v48  ;;  %v10102_v16 = vld [vmem:[%s19382_s1 + $0x748] sm:$0xff]  ;;  %v10117_v17 = vld [vmem:[%s19382_s1 + $0x7c0] sm:$0xff] }
 0x436   : > { %12916 = vmatmul.mubr.f32.gmra.mrb[34].mxu1 %v17168_v21  ;;  %12685 = vmatmul.mubr.f32.gmra.mrb[40].mxu0 %v17287_v44  ;;  %v14580_v21 = vpack.c.bf16 %v10100_v50, %v10099_v39  ;;  %v10101_v44 = vld [vmem:[%s19382_s1 + $0x740] sm:$0xff]  ;;  %v17741_v39 = vld [vmem:[#allocation2 + $0xa9] sm:$0xff] }
 0x437   : > { %12918 = vmatprep.mubr.f32.mxu1 %v17194_v36  ;;  %14575 = vmatpush3.bf16.msra.mxu1 %v14572_v20  ;;  %v10057_v36 = vld [vmem:[%s19382_s1 + $0x5e0] sm:$0xff]  ;;  %v17727_v20 = vld [vmem:[#allocation2 + $0x89] sm:$0xff] }
 0x438   : > { %12687 = vmatprep.mubr.f32.mxu0 %v17313_v57  ;;  %14577 = vmatprep.subr.bf16.mxu1 %v14576_v6  ;;  %v10058_v57 = vld [vmem:[%s19382_s1 + $0x5e8] sm:$0xff] }
 0x439   : > { %14489 = vmatprep.subr.bf16.mxu0 %v14488_v5  ;;  %v14496_v41 = vpack.c.bf16 %v10058_v57, %v10057_v36  ;;  %v17748_v48 = vld [vmem:[#allocation2 + $0xc9] sm:$0xff]  ;;  %v10120_v57 = vld [vmem:[%s19382_s1 + $0x7d8] sm:$0xff] }
 0x43a   : > { %12919 = vmatmul.mubr.f32.gmra.mrb[36].mxu1 %v17190_v35  ;;  %12688 = vmatmul.mubr.f32.gmra.mrb[42].mxu0 %v17315_v3  ;;  %v14584_v35 = vpack.c.bf16 %v10102_v16, %v10101_v44  ;;  %v10103_v3 = vld [vmem:[%s19382_s1 + $0x750] sm:$0xff] }
 0x43b   : > { %12921 = vmatprep.mubr.f32.mxu1 %v17222_v1  ;;  %12690 = vmatprep.mubr.f32.mxu0 %v17341_v56  ;;  %v10104_v1 = vld [vmem:[%s19382_s1 + $0x758] sm:$0xff]  ;;  %v10059_v56 = vld [vmem:[%s19382_s1 + $0x5f0] sm:$0xff] }
 0x43c   : > { %14579 = vmatpush3.bf16.msra.mxu1 %v14576_v6  ;;  %14491 = vmatpush3.bf16.msra.mxu0 %v14488_v5  ;;  %v10116_v6 = vld [vmem:[%s19382_s1 + $0x7b8] sm:$0xff]  ;;  %v17762_v16 = vld [vmem:[#allocation2 + $0xe9] sm:$0xff] }
 0x43d   : > { %14581 = vmatprep.subr.bf16.mxu1 %v14580_v21  ;;  %14493 = vmatprep.subr.bf16.mxu0 %v14492_v37  ;;  %v17744_v5 = vld [vmem:[#allocation2 + $0xb1] sm:$0xff]  ;;  %v14612_v50 = vpack.c.bf16 %v10116_v6, %v10115_v19  ;;  %v10130_v19 = vld [vmem:[%s19382_s1 + $0x828] sm:$0xff] }
 0x43e   : > { %12922 = vmatmul.mubr.f32.gmra.mrb[38].mxu1 %v17217_v0  ;;  %12691 = vmatmul.mubr.f32.gmra.mrb[44].mxu0 %v17343_v10  ;;  %v14588_v0 = vpack.c.bf16 %v10104_v1, %v10103_v3  ;;  %v14500_v10 = vpack.c.bf16 %v10060_v63, %v10059_v56  ;;  %v17758_v44 = vld [vmem:[#allocation2 + $0xd1] sm:$0xff]  ;;  %v10121_v1 = vld [vmem:[%s19382_s1 + $0x7e0] sm:$0xff]  ;;  %v10122_v56 = vld [vmem:[%s19382_s1 + $0x7e8] sm:$0xff] }
 0x43f   : > { %12924 = vmatprep.mubr.f32.mxu1 %v17251_v32  ;;  %12693 = vmatprep.mubr.f32.mxu0 %v17369_v61  ;;  %v10106_v32 = vld [vmem:[%s19382_s1 + $0x768] sm:$0xff]  ;;  %v10119_v36 = vld [vmem:[%s19382_s1 + $0x7d0] sm:$0xff] }
 0x440   : > { %14583 = vmatpush3.bf16.msra.mxu1 %v14580_v21  ;;  %14495 = vmatpush3.bf16.msra.mxu0 %v14492_v37  ;;  %v14592_v61 = vpack.c.bf16 %v10106_v32, %v10105_v47  ;;  %v10118_v21 = vld [vmem:[%s19382_s1 + $0x7c8] sm:$0xff]  ;;  %v14620_v3 = vpack.c.bf16 %v10120_v57, %v10119_v36  ;;  %v17786_v63 = vld [vmem:[#allocation2 + $0x111] sm:$0xff] }
 0x441   : > { %14585 = vmatprep.subr.bf16.mxu1 %v14584_v35  ;;  %14497 = vmatprep.subr.bf16.mxu0 %v14496_v41  ;;  %v14616_v37 = vpack.c.bf16 %v10118_v21, %v10117_v17  ;;  %v10123_v47 = vld [vmem:[%s19382_s1 + $0x7f0] sm:$0xff]  ;;  %v10124_v32 = vld [vmem:[%s19382_s1 + $0x7f8] sm:$0xff]  ;;  %v5256_v6 = vld [vmem:[#allocation2 + $0x67] sm:$0xff] }
 0x442   : > { %12925 = vmatmul.mubr.f32.gmra.mrb[40].mxu1 %v17246_v46  ;;  %12694 = vmatmul.mubr.f32.gmra.mrb[46].mxu0 %v17371_v23  ;;  %v10107_v46 = vld [vmem:[%s19382_s1 + $0x770] sm:$0xff]  ;;  %v10108_v23 = vld [vmem:[%s19382_s1 + $0x778] sm:$0xff]  ;;  %v5258_v36 = vld [vmem:[#allocation2 + $0x87] sm:$0xff] }
 0x443   : > { %12927 = vmatprep.mubr.f32.mxu1 %v17279_v8  ;;  %12696 = vmatprep.mubr.f32.mxu0 %v17397_v13  ;;  %v14596_v8 = vpack.c.bf16 %v10108_v23, %v10107_v46  ;;  %v10111_v13 = vld [vmem:[%s19382_s1 + $0x790] sm:$0xff]  ;;  %v14628_v46 = vpack.c.bf16 %v10124_v32, %v10123_v47 }
 0x444   : > { %14587 = vmatpush3.bf16.msra.mxu1 %v14584_v35  ;;  %14499 = vmatpush3.bf16.msra.mxu0 %v14496_v41  ;;  %v17772_v35 = vld [vmem:[#allocation2 + $0xf1] sm:$0xff]  ;;  %v17776_v41 = vld [vmem:[#allocation2 + $0x109] sm:$0xff] }
 0x445   : > { %14589 = vmatprep.subr.bf16.mxu1 %v14588_v0  ;;  %14501 = vmatprep.subr.bf16.mxu0 %v14500_v10  ;;  %v17804_v23 = vld [vmem:[#allocation2 + $0x149] sm:$0xff] }
 0x446   : > { %12928 = vmatmul.mubr.f32.gmra.mrb[42].mxu1 %v17274_v11  ;;  %12697 = vmatmul.mubr.f32.gmra.mrb[48].mxu0 %v17399_v38  ;;  %v10109_v11 = vld [vmem:[%s19382_s1 + $0x780] sm:$0xff]  ;;  %v10110_v38 = vld [vmem:[%s19382_s1 + $0x788] sm:$0xff]  ;;  %v10131_v21 = vld [vmem:[%s19382_s1 + $0x830] sm:$0xff] }
 0x447   : > { %12930 = vmatprep.mubr.f32.mxu1 %v17307_v12  ;;  %12699 = vmatprep.mubr.f32.mxu0 %v17421_v54  ;;  %v14600_v12 = vpack.c.bf16 %v10110_v38, %v10109_v11  ;;  %v17714_v54 = vld [vmem:[#allocation2 + $0x69] sm:$0xff]  ;;  %v17814_v38 = vld [vmem:[#allocation2 + $0x151] sm:$0xff] }
 0x448   : > { %14591 = vmatpush3.bf16.msra.mxu1 %v14588_v0  ;;  %14503 = vmatpush3.bf16.msra.mxu0 %v14500_v10  ;;  %v14624_v0 = vpack.c.bf16 %v10122_v56, %v10121_v1  ;;  %v17790_v10 = vld [vmem:[#allocation2 + $0x129] sm:$0xff]  ;;  %v10133_v1 = vld [vmem:[%s19382_s1 + $0x840] sm:$0xff] }
 0x449   : > { %14593 = vmatprep.subr.bf16.mxu1 %v14592_v61  ;;  %v10126_v11 = vld [vmem:[%s19382_s1 + $0x808] sm:$0xff] }
 0x44a   : > { %12931 = vmatmul.mubr.f32.gmra.mrb[44].mxu1 %v17302_v52  ;;  %12700 = vmatmul.mubr.f32.gmra.mrb[50].mxu0 %v17423_v24  ;;  %v19637_v52 = vld [vmem:[#allocation36_spill] sm:$0xff]  ;;  %v10134_v56 = vld [vmem:[%s19382_s1 + $0x848] sm:$0xff] }
 0x44b   : > { %12933 = vmatprep.mubr.f32.mxu1 %v17335_v45  ;;  %12702 = vmatprep.mubr.f32.mxu0 %v17444_v30  ;;  %v4031_v30 = vld [vmem:[#allocation2 + $0x11] sm:$0xff]  ;;  %v14648_v47 = vpack.c.bf16 %v10134_v56, %v10133_v1  ;;  %v5270_v56 = vld [vmem:[#allocation2 + $0x147] sm:$0xff] }
 0x44c   : > { %14595 = vmatpush3.bf16.msra.mxu1 %v14592_v61  ;;  %v19638_v45 = vld [vmem:[#allocation41_spill] sm:$0xff]  ;;  %v5257_v17 = vld [vmem:[#allocation2 + $0x6f] sm:$0xff] }
 0x44d   : > { %14597 = vmatprep.subr.bf16.mxu1 %v14596_v8  ;;  %v17703_v24 = vld [vmem:[#allocation2 + $0x51] sm:$0xff] }
 0x44e   : > { %12934 = vmatmul.mubr.f32.gmra.mrb[46].mxu1 %v17330_v26  ;;  %12703 = vmatmul.mubr.f32.gmra.mrb[52].mxu0 %v17446_v15  ;;  %v19636_v15 = vld [vmem:[#allocation37_spill] sm:$0xff]  ;;  %v4032_v26 = vld [vmem:[#allocation2 + $0x29] sm:$0xff] }
 0x44f   : > { %12936 = vmatprep.mubr.f32.mxu1 %v17363_v60  ;;  %12705 = vmatprep.mubr.f32.mxu0 %v17466_v31  ;;  %v19635_v31 = vld [vmem:[#allocation32_spill] sm:$0xff] }
 0x450   : > { %14599 = vmatpush3.bf16.msra.mxu1 %v14596_v8  ;;  %v19639_v60 = vld [vmem:[#allocation40_spill] sm:$0xff]  ;;  %v10125_v8 = vld [vmem:[%s19382_s1 + $0x800] sm:$0xff] }
 0x451   : > { %14601 = vmatprep.subr.bf16.mxu1 %v14600_v12  ;;  %v17800_v61 = vld [vmem:[#allocation2 + $0x131] sm:$0xff] }
 0x452   : > { %12937 = vmatmul.mubr.f32.gmra.mrb[48].mxu1 %v17358_v28  ;;  %12706 = vmatmul.mubr.f32.gmra.mrb[54].mxu0 %v17468_v7  ;;  %v4030_v7 = vld [vmem:[#allocation2 + $0x9] sm:$0xff]  ;;  %v4033_v28 = vld [vmem:[#allocation2 + $0x31] sm:$0xff] }
 0x453   : > { %12939 = vmatprep.mubr.f32.mxu1 %v17391_v43  ;;  %12708 = vmatprep.mubr.f32.mxu0 %v17488_v29  ;;  %v19634_v29 = vld [vmem:[#allocation33_spill] sm:$0xff]  ;;  %v19640_v43 = vmax.f32 %v17516_v4, 0.0  ;;  %v5261_v32 = vld [vmem:[#allocation2 + $0xaf] sm:$0xff] }
 0x454   : > { %v5269_v1 = vld [vmem:[#allocation2 + $0x12f] sm:$0xff] }
 0x456   : > { %12940 = vmatmul.mubr.f32.gmra.mrb[50].mxu1 %v17386_v33  ;;  %12709 = vmatmul.mubr.f32.gmra.mrb[56].mxu0 %v17490_v51  ;;  %v17698_v33 = vld [vmem:[#allocation2 + $0x49] sm:$0xff] }
 0x457   : > { %12942 = vmatprep.mubr.f32.mxu1 %v17415_v2  ;;  %12711 = vmatprep.mubr.f32.mxu0 %v17510_v22  ;;  %v19641_v2 = vmax.f32 %v17508_v34, 0.0 }
 0x45a   : > { %12943 = vmatmul.mubr.f32.gmra.mrb[52].mxu1 %v17410_v62  ;;  %12712 = vmatmul.mubr.f32.gmra.mrb[58].mxu0 %v17512_v25  ;;  %v10112_v62 = vld [vmem:[%s19382_s1 + $0x798] sm:$0xff] }
 0x45b   : > { %12945 = vmatprep.mubr.f32.mxu1 %v17438_v14  ;;  %12714 = vmatprep.mubr.f32.mxu0 %v17532_v59  ;;  %v17717_v14 = vld [vmem:[#allocation2 + $0x71] sm:$0xff] }
 0x45e   : > { %12946 = vmatmul.mubr.f32.gmra.mrb[54].mxu1 %v17433_v9  ;;  %12715 = vmatmul.mubr.f32.gmra.mrb[60].mxu0 %v17534_v58  ;;  %v14604_v9 = vpack.c.bf16 %v10112_v62, %v10111_v13  ;;  %v17865_v13 = vld [vmem:[#allocation2 + $0x211] sm:$0xff] }
 0x45f   : > { %12948 = vmatprep.mubr.f32.mxu1 %v19634_v29  ;;  %12717 = vmatprep.mubr.f32.mxu0 %v17548_v40  ;;  %v17818_v29 = vld [vmem:[#allocation2 + $0x169] sm:$0xff] }
 0x460   : > { %v10127_v62 = vld [vmem:[%s19382_s1 + $0x810] sm:$0xff] }
 0x462   : > { %12949 = vmatmul.mubr.f32.gmra.mrb[56].mxu1 %v19635_v31  ;;  %12718 = vmatmul.mubr.f32.gmra.mrb[62].mxu0 %v17550_v27  ;;  %v17826_v31 = vld [vmem:[#allocation2 + $0x189] sm:$0xff] }
 0x463   : > { %12951 = vmatprep.mubr.f32.mxu1 %v19636_v15  ;;  %12752 = vmatprep.mubr.f32.mxu0 %v4030_v7  ;;  %v17822_v7 = vld [vmem:[#allocation2 + $0x171] sm:$0xff] }
 0x464   : > { %v17830_v15 = vld [vmem:[#allocation2 + $0x191] sm:$0xff] }
 0x466   : > { %12952 = vmatmul.mubr.f32.gmra.mrb[58].mxu1 %v19637_v52  ;;  %12753 = vmatmul.mubr.f32.vlgmr.msra.gmra.mrb[32].mxu0 %v4031_v30  ;;  %v17834_v30 = vld [vmem:[#allocation2 + $0x1a9] sm:$0xff]  ;;  %v17838_v52 = vld [vmem:[#allocation2 + $0x1b1] sm:$0xff] }
 0x467   : > { %12954 = vmatprep.mubr.f32.mxu1 %v19638_v45  ;;  %12755 = vmatprep.mubr.f32.mxu0 %v4032_v26  ;;  %v17846_v45 = vld [vmem:[#allocation2 + $0x1d1] sm:$0xff] }
 0x46a   : > { %12955 = vmatmul.mubr.f32.gmra.mrb[60].mxu1 %v19639_v60  ;;  %12756 = vmatmul.mubr.f32.gmra.mrb[34].mxu0 %v4033_v28  ;;  %v17854_v60 = vld [vmem:[#allocation2 + $0x1f1] sm:$0xff] }
 0x46b   : > { %12957 = vmatprep.mubr.f32.mxu1 %v19640_v43  ;;  %12758 = vmatprep.mubr.f32.mxu0 %v17698_v33  ;;  %v17862_v43 = vld [vmem:[#allocation2 + $0x209] sm:$0xff] }
 0x46e   : > { %12958 = vmatmul.mubr.f32.gmra.mrb[62].mxu1 %v19641_v2  ;;  %12759 = vmatmul.mubr.f32.gmra.mrb[36].mxu0 %v17703_v24  ;;  %v10128_v2 = vld [vmem:[%s19382_s1 + $0x818] sm:$0xff] }
 0x46f   : > { %12992 = vmatprep.mubr.f32.mxu1 %v4032_v26  ;;  %12761 = vmatprep.mubr.f32.mxu0 %v17714_v54  ;;  %v17842_v26 = vld [vmem:[#allocation2 + $0x1c9] sm:$0xff]  ;;  %v14636_v49 = vpack.c.bf16 %v10128_v2, %v10127_v62  ;;  %v10137_v2 = vld [vmem:[%s19382_s1 + $0x860] sm:$0xff] }
 0x470   : > { %v5263_v62 = vld [vmem:[#allocation2 + $0xcf] sm:$0xff] }
 0x472   : > { %12993 = vmatmul.mubr.f32.vlgmr.msra.gmra.mrb[32].mxu1 %v4033_v28  ;;  %12762 = vmatmul.mubr.f32.gmra.mrb[38].mxu0 %v17717_v14  ;;  %v17850_v28 = vld [vmem:[#allocation2 + $0x1e9] sm:$0xff] }
 0x473   : > { %12995 = vmatprep.mubr.f32.mxu1 %v17698_v33  ;;  %14603 = vmatpush3.bf16.msra.mxu1 %v14600_v12  ;;  %v14632_v12 = vpack.c.bf16 %v10126_v11, %v10125_v8  ;;  %v10136_v8 = vld [vmem:[%s19382_s1 + $0x858] sm:$0xff]  ;;  %v5262_v11 = vld [vmem:[#allocation2 + $0xc7] sm:$0xff] }
 0x474   : > { %14605 = vmatprep.subr.bf16.mxu1 %v14604_v9  ;;  %12764 = vmatprep.mubr.f32.mxu0 %v17727_v20 }
 0x476   : > { %12996 = vmatmul.mubr.f32.gmra.mrb[34].mxu1 %v17703_v24  ;;  %12765 = vmatmul.mubr.f32.gmra.mrb[40].mxu0 %v17730_v42 }
 0x477   : > { %12998 = vmatprep.mubr.f32.mxu1 %v17714_v54  ;;  %14607 = vmatpush3.bf16.msra.mxu1 %v14604_v9  ;;  %v5254_v9 = vld [vmem:[#allocation2 + $0x47] sm:$0xff] }
 0x478   : > { %12767 = vmatprep.mubr.f32.mxu0 %v17741_v39  ;;  %14609 = vmatprep.subr.bf16.mxu1 %v14608_v53 }
 0x47a   : > { %12999 = vmatmul.mubr.f32.gmra.mrb[36].mxu1 %v17717_v14  ;;  %12768 = vmatmul.mubr.f32.gmra.mrb[42].mxu0 %v17744_v5 }
 0x47b   : > { %13001 = vmatprep.mubr.f32.mxu1 %v17727_v20  ;;  %12770 = vmatprep.mubr.f32.mxu0 %v17748_v48 }
 0x47c   : > { %14611 = vmatpush3.bf16.msra.mxu1 %v14608_v53  ;;  %v10129_v53 = vld [vmem:[%s19382_s1 + $0x820] sm:$0xff] }
 0x47d   : > { %14613 = vmatprep.subr.bf16.mxu1 %v14612_v50 }
 0x47e   : > { %13002 = vmatmul.mubr.f32.gmra.mrb[38].mxu1 %v17730_v42  ;;  %12771 = vmatmul.mubr.f32.gmra.mrb[44].mxu0 %v17758_v44 }
 0x47f   : > { %13004 = vmatprep.mubr.f32.mxu1 %v17741_v39  ;;  %12773 = vmatprep.mubr.f32.mxu0 %v17762_v16 }
 0x480   : > { %14615 = vmatpush3.bf16.msra.mxu1 %v14612_v50  ;;  %v14640_v50 = vpack.c.bf16 %v10130_v19, %v10129_v53  ;;  %v5265_v53 = vld [vmem:[#allocation2 + $0xef] sm:$0xff] }
 0x481   : > { %14617 = vmatprep.subr.bf16.mxu1 %v14616_v37  ;;  %v10139_v19 = vld [vmem:[%s19382_s1 + $0x870] sm:$0xff] }
 0x482   : > { %13005 = vmatmul.mubr.f32.gmra.mrb[40].mxu1 %v17744_v5  ;;  %12774 = vmatmul.mubr.f32.gmra.mrb[46].mxu0 %v17772_v35 }
 0x483   : > { %13007 = vmatprep.mubr.f32.mxu1 %v17748_v48  ;;  %12776 = vmatprep.mubr.f32.mxu0 %v17776_v41 }
 0x484   : > { %14619 = vmatpush3.bf16.msra.mxu1 %v14616_v37  ;;  %v10132_v37 = vld [vmem:[%s19382_s1 + $0x838] sm:$0xff] }
 0x485   : > { %14621 = vmatprep.subr.bf16.mxu1 %v14620_v3  ;;  %v14644_v57 = vpack.c.bf16 %v10132_v37, %v10131_v21  ;;  %v5267_v21 = vld [vmem:[#allocation2 + $0x10f] sm:$0xff]  ;;  %v10141_v37 = vld [vmem:[%s19382_s1 + $0x880] sm:$0xff] }
 0x486   : > { %13008 = vmatmul.mubr.f32.gmra.mrb[42].mxu1 %v17758_v44  ;;  %12777 = vmatmul.mubr.f32.gmra.mrb[48].mxu0 %v17786_v63 }
 0x487   : > { %13010 = vmatprep.mubr.f32.mxu1 %v17762_v16  ;;  %12779 = vmatprep.mubr.f32.mxu0 %v17790_v10 }
 0x488   : > { %14623 = vmatpush3.bf16.msra.mxu1 %v14620_v3  ;;  %v5259_v3 = vld [vmem:[#allocation2 + $0x8f] sm:$0xff] }
 0x489   : > { %14625 = vmatprep.subr.bf16.mxu1 %v14624_v0 }
 0x48a   : > { %13011 = vmatmul.mubr.f32.gmra.mrb[44].mxu1 %v17772_v35  ;;  %12780 = vmatmul.mubr.f32.gmra.mrb[50].mxu0 %v17800_v61 }
 0x48b   : > { %13013 = vmatprep.mubr.f32.mxu1 %v17776_v41  ;;  %12782 = vmatprep.mubr.f32.mxu0 %v17804_v23 }
 0x48c   : > { %14627 = vmatpush3.bf16.msra.mxu1 %v14624_v0  ;;  %v5260_v0 = vld [vmem:[#allocation2 + $0xa7] sm:$0xff] }
 0x48d   : > { %14629 = vmatprep.subr.bf16.mxu1 %v14628_v46 }
 0x48e   : > { %13014 = vmatmul.mubr.f32.gmra.mrb[46].mxu1 %v17786_v63  ;;  %12783 = vmatmul.mubr.f32.gmra.mrb[52].mxu0 %v17814_v38 }
 0x48f   : > { %13016 = vmatprep.mubr.f32.mxu1 %v17790_v10  ;;  %12785 = vmatprep.mubr.f32.mxu0 %v17818_v29 }
 0x490   : > { %14631 = vmatpush3.bf16.msra.mxu1 %v14628_v46  ;;  %v10135_v46 = vld [vmem:[%s19382_s1 + $0x850] sm:$0xff] }
 0x491   : > { %14633 = vmatprep.subr.bf16.mxu1 %v14632_v12 }
 0x492   : > { %13017 = vmatmul.mubr.f32.gmra.mrb[48].mxu1 %v17800_v61  ;;  %12786 = vmatmul.mubr.f32.gmra.mrb[54].mxu0 %v17822_v7 }
 0x493   : > { %13019 = vmatprep.mubr.f32.mxu1 %v17804_v23  ;;  %12788 = vmatprep.mubr.f32.mxu0 %v17826_v31 }
 0x496   : > { %13020 = vmatmul.mubr.f32.gmra.mrb[50].mxu1 %v17814_v38  ;;  %12789 = vmatmul.mubr.f32.gmra.mrb[56].mxu0 %v17830_v15 }
 0x497   : > { %13022 = vmatprep.mubr.f32.mxu1 %v17818_v29  ;;  %12791 = vmatprep.mubr.f32.mxu0 %v17834_v30 }
 0x49a   : > { %13023 = vmatmul.mubr.f32.gmra.mrb[52].mxu1 %v17822_v7  ;;  %12792 = vmatmul.mubr.f32.gmra.mrb[58].mxu0 %v17838_v52 }
 0x49b   : > { %13025 = vmatprep.mubr.f32.mxu1 %v17826_v31  ;;  %12794 = vmatprep.mubr.f32.mxu0 %v17842_v26 }
 0x49e   : > { %13026 = vmatmul.mubr.f32.gmra.mrb[54].mxu1 %v17830_v15  ;;  %12795 = vmatmul.mubr.f32.gmra.mrb[60].mxu0 %v17846_v45 }
 0x49f   : > { %13028 = vmatprep.mubr.f32.mxu1 %v17834_v30  ;;  %12797 = vmatprep.mubr.f32.mxu0 %v17850_v28 }
 0x4a2   : > { %13029 = vmatmul.mubr.f32.gmra.mrb[56].mxu1 %v17838_v52  ;;  %12798 = vmatmul.mubr.f32.gmra.mrb[62].mxu0 %v17854_v60 }
 0x4a3   : > { %13031 = vmatprep.mubr.f32.mxu1 %v17842_v26 }
 0x4a6   : > { %13032 = vmatmul.mubr.f32.gmra.mrb[58].mxu1 %v17846_v45 }
 0x4a7   : > { %13034 = vmatprep.mubr.f32.mxu1 %v17850_v28 }
 0x4aa   : > { %13035 = vmatmul.mubr.f32.gmra.mrb[60].mxu1 %v17854_v60 }
 0x4ab   : > { %13037 = vmatprep.mubr.f32.mxu1 %v17862_v43 }
 0x4ae   : > { %13038 = vmatmul.mubr.f32.gmra.mrb[62].mxu1 %v17865_v13 }
 0x4af   : > { %13072 = vmatprep.mubr.f32.mxu1 %v5254_v9  ;;  %v10138_v9 = vld [vmem:[%s19382_s1 + $0x868] sm:$0xff] }
 0x4b2   : > { %13073 = vmatmul.mubr.f32.vlgmr.msra.gmra.mrb[32].mxu1 %v5255_v18  ;;  %v14656_v18 = vpack.c.bf16 %v10138_v9, %v10137_v2  ;;  %v5564_v9 = vld [vmem:[#allocation2 + $0x88] sm:$0xff] }
 0x4b3   : > { %13075 = vmatprep.mubr.f32.mxu1 %v5256_v6  ;;  %14635 = vmatpush3.bf16.msra.mxu1 %v14632_v12  ;;  %v14652_v12 = vpack.c.bf16 %v10136_v8, %v10135_v46  ;;  %v10140_v6 = vld [vmem:[%s19382_s1 + $0x878] sm:$0xff]  ;;  %v5274_v46 = vld [vmem:[#allocation2 + $0x187] sm:$0xff] }
 0x4b4   : > { %14637 = vmatprep.subr.bf16.mxu1 %v14636_v49  ;;  %v19642_v8 = vld [vmem:[#allocation42_spill] sm:$0xff] }
 0x4b6   : > { %13076 = vmatmul.mubr.f32.gmra.mrb[34].mxu1 %v5257_v17  ;;  %v14660_v17 = vpack.c.bf16 %v10140_v6, %v10139_v19  ;;  %v10158_v19 = vld [vmem:[%s19383_s2 + $0x28] sm:$0xff]  ;;  %v10159_v6 = vld [vmem:[%s19383_s2 + $0x30] sm:$0xff] }
 0x4b7   : > { %13078 = vmatprep.mubr.f32.mxu1 %v5258_v36  ;;  %14639 = vmatpush3.bf16.msra.mxu1 %v14636_v49  ;;  %v5264_v49 = vld [vmem:[#allocation2 + $0xe7] sm:$0xff] }
 0x4b8   : > { %14641 = vmatprep.subr.bf16.mxu1 %v14640_v50  ;;  %v10142_v36 = vld [vmem:[%s19382_s1 + $0x888] sm:$0xff] }
 0x4ba   : > { %13079 = vmatmul.mubr.f32.gmra.mrb[36].mxu1 %v5259_v3  ;;  %v14664_v3 = vpack.c.bf16 %v10142_v36, %v10141_v37  ;;  %v5565_v36 = vld [vmem:[#allocation2 + $0x90] sm:$0xff] }
 0x4bb   : > { %13081 = vmatprep.mubr.f32.mxu1 %v5260_v0  ;;  %14643 = vmatpush3.bf16.msra.mxu1 %v14640_v50  ;;  %v5266_v50 = vld [vmem:[#allocation2 + $0x107] sm:$0xff]  ;;  %v5271_v0 = vld [vmem:[#allocation2 + $0x14f] sm:$0xff] }
 0x4bc   : > { %14645 = vmatprep.subr.bf16.mxu1 %v14644_v57 }
 0x4be   : > { %13082 = vmatmul.mubr.f32.gmra.mrb[38].mxu1 %v5261_v32  ;;  %v5273_v32 = vld [vmem:[#allocation2 + $0x16f] sm:$0xff] }
 0x4bf   : > { %13084 = vmatprep.mubr.f32.mxu1 %v5262_v11  ;;  %14647 = vmatpush3.bf16.msra.mxu1 %v14644_v57  ;;  %v5268_v57 = vld [vmem:[#allocation2 + $0x127] sm:$0xff] }
 0x4c0   : > { %14649 = vmatprep.subr.bf16.mxu1 %v14648_v47  ;;  %v5284_v11 = vld [vmem:[#allocation2 + $0x227] sm:$0xff] }
 0x4c2   : > { %13085 = vmatmul.mubr.f32.gmra.mrb[40].mxu1 %v5263_v62  ;;  %v5563_v62 = vld [vmem:[#allocation2 + $0x70] sm:$0xff] }
 0x4c3   : > { %13087 = vmatprep.mubr.f32.mxu1 %v5264_v49  ;;  %14651 = vmatpush3.bf16.msra.mxu1 %v14648_v47  ;;  %v5272_v47 = vld [vmem:[#allocation2 + $0x167] sm:$0xff]  ;;  %v10147_v49 = vld [vmem:[%s19382_s1 + $0x8b0] sm:$0xff] }
 0x4c4   : > { %14653 = vmatprep.subr.bf16.mxu1 %v14652_v12 }
 0x4c6   : > { %13088 = vmatmul.mubr.f32.gmra.mrb[42].mxu1 %v5265_v53  ;;  %v10157_v53 = vld [vmem:[%s19383_s2 + $0x20] sm:$0xff] }
 0x4c7   : > { %13090 = vmatprep.mubr.f32.mxu1 %v5266_v50  ;;  %14655 = vmatpush3.bf16.msra.mxu1 %v14652_v12  ;;  %v5285_v12 = vld [vmem:[#allocation2 + $0x22f] sm:$0xff]  ;;  %v14696_v50 = vpack.c.bf16 %v10158_v19, %v10157_v53 }
 0x4c8   : > { %14657 = vmatprep.subr.bf16.mxu1 %v14656_v18  ;;  %v5578_v53 = vld [vmem:[#allocation2 + $0x168] sm:$0xff]  ;;  %v5579_v19 = vld [vmem:[#allocation2 + $0x170] sm:$0xff] }
 0x4c9   : > { %14697 = vmatprep.subr.bf16.mxu0 %v14696_v50 }
 0x4ca   : > { %13091 = vmatmul.mubr.f32.gmra.mrb[44].mxu1 %v5267_v21  ;;  %14699 = vmatpush3.bf16.msra.mxu0 %v14696_v50  ;;  %v5581_v50 = vld [vmem:[#allocation2 + $0x190] sm:$0xff] }
 0x4cb   : > { %13093 = vmatprep.mubr.f32.mxu1 %v5268_v57  ;;  %14659 = vmatpush3.bf16.msra.mxu1 %v14656_v18  ;;  %v10148_v18 = vld [vmem:[%s19382_s1 + $0x8b8] sm:$0xff]  ;;  %v10149_v57 = vld [vmem:[%s19382_s1 + $0x8c0] sm:$0xff] }
 0x4cc   : > { %14661 = vmatprep.subr.bf16.mxu1 %v14660_v17  ;;  %v14676_v21 = vpack.c.bf16 %v10148_v18, %v10147_v49  ;;  %v5576_v49 = vld [vmem:[#allocation2 + $0x148] sm:$0xff]  ;;  %v5577_v18 = vld [vmem:[#allocation2 + $0x150] sm:$0xff] }
 0x4ce   : > { %13094 = vmatmul.mubr.f32.gmra.mrb[46].mxu1 %v5269_v1  ;;  %v5566_v1 = vld [vmem:[#allocation2 + $0xa8] sm:$0xff] }
 0x4cf   : > { %13096 = vmatprep.mubr.f32.mxu1 %v5270_v56  ;;  %14663 = vmatpush3.bf16.msra.mxu1 %v14660_v17  ;;  %v10160_v17 = vld [vmem:[%s19383_s2 + $0x38] sm:$0xff] }
 0x4d0   : > { %14665 = vmatprep.subr.bf16.mxu1 %v14664_v3  ;;  %v14700_v37 = vpack.c.bf16 %v10160_v17, %v10159_v6  ;;  %v5580_v6 = vld [vmem:[#allocation2 + $0x188] sm:$0xff] }
 0x4d1   : > { %v5582_v17 = vld [vmem:[#allocation2 + $0x1a8] sm:$0xff] }
 0x4d2   : > { %13097 = vmatmul.mubr.f32.gmra.mrb[48].mxu1 %v5271_v0  ;;  %14701 = vmatprep.subr.bf16.mxu0 %v14700_v37  ;;  %v5567_v0 = vld [vmem:[#allocation2 + $0xb0] sm:$0xff] }
 0x4d3   : > { %13099 = vmatprep.mubr.f32.mxu1 %v5272_v47  ;;  %v10151_v47 = vld [vmem:[%s19382_s1 + $0x8d0] sm:$0xff]  ;;  %14703 = vmatpush3.bf16.msra.mxu0 %v14700_v37  ;;  %v5584_v37 = vld [vmem:[#allocation2 + $0x1c8] sm:$0xff] }
 0x4d6   : > { %13100 = vmatmul.mubr.f32.gmra.mrb[50].mxu1 %v5273_v32  ;;  %v10152_v32 = vld [vmem:[%s19382_s1 + $0x8d8] sm:$0xff] }
 0x4d7   : > { %13102 = vmatprep.mubr.f32.mxu1 %v5274_v46  ;;  %v5568_v46 = vld [vmem:[#allocation2 + $0xc8] sm:$0xff] }
 0x4da   : > { %13103 = vmatmul.mubr.f32.gmra.mrb[52].mxu1 %v17490_v51  ;;  %v5560_v51 = vld [vmem:[#allocation2 + $0x48] sm:$0xff] }
 0x4db   : > { %13105 = vmatprep.mubr.f32.mxu1 %v17510_v22  ;;  %v10143_v22 = vld [vmem:[%s19382_s1 + $0x890] sm:$0xff] }
 0x4de   : > { %13106 = vmatmul.mubr.f32.gmra.mrb[54].mxu1 %v17512_v25  ;;  %v10144_v25 = vld [vmem:[%s19382_s1 + $0x898] sm:$0xff] }
 0x4df   : > { %13108 = vmatprep.mubr.f32.mxu1 %v17532_v59  ;;  %v5561_v59 = vld [vmem:[#allocation2 + $0x50] sm:$0xff] }
 0x4e2   : > { %13109 = vmatmul.mubr.f32.gmra.mrb[56].mxu1 %v17534_v58  ;;  %v14668_v58 = vpack.c.bf16 %v10144_v25, %v10143_v22  ;;  %v10154_v22 = vld [vmem:[%s19382_s1 + $0x8e8] sm:$0xff] }
 0x4e3   : > { %13111 = vmatprep.mubr.f32.mxu1 %v17548_v40  ;;  %v10145_v40 = vld [vmem:[%s19382_s1 + $0x8a0] sm:$0xff]  ;;  %v5570_v25 = vld [vmem:[#allocation2 + $0xe8] sm:$0xff] }
 0x4e6   : > { %13112 = vmatmul.mubr.f32.gmra.mrb[58].mxu1 %v17550_v27  ;;  %v10146_v27 = vld [vmem:[%s19382_s1 + $0x8a8] sm:$0xff] }
 0x4e7   : > { %13114 = vmatprep.mubr.f32.mxu1 %v19642_v8  ;;  %v14672_v2 = vpack.c.bf16 %v10146_v27, %v10145_v40  ;;  %v14684_v8 = vpack.c.bf16 %v10152_v32, %v10151_v47  ;;  %v10156_v40 = vld [vmem:[%s19382_s1 + $0x8f8] sm:$0xff]  ;;  %v5572_v27 = vld [vmem:[#allocation2 + $0x108] sm:$0xff] }
 0x4ea   : > { %13115 = vmatmul.mubr.f32.gmra.mrb[60].mxu1 %v17564_v55  ;;  %v5562_v55 = vld [vmem:[#allocation2 + $0x68] sm:$0xff] }
 0x4eb   : > { %13117 = vmatprep.mubr.f32.mxu1 %v5284_v11  ;;  %v5569_v11 = vld [vmem:[#allocation2 + $0xd0] sm:$0xff] }
 0x4ee   : > { %13118 = vmatmul.mubr.f32.gmra.mrb[62].mxu1 %v5285_v12  ;;  %v10153_v12 = vld [vmem:[%s19382_s1 + $0x8e0] sm:$0xff] }
 0x4ef   : > { %13152 = vmatprep.mubr.f32.mxu1 %v5560_v51  ;;  %v14688_v51 = vpack.c.bf16 %v10154_v22, %v10153_v12  ;;  %v10210_v12 = vld [vmem:[%s19382_s1 + $0x988] sm:$0xff]  ;;  %v10211_v22 = vld [vmem:[%s19382_s1 + $0x990] sm:$0xff] }
 0x4f2   : > { %13153 = vmatmul.mubr.f32.vlgmr.msra.gmra.mrb[32].mxu1 %v5561_v59  ;;  %v10155_v59 = vld [vmem:[%s19382_s1 + $0x8f0] sm:$0xff] }
 0x4f3   : > { %13155 = vmatprep.mubr.f32.mxu1 %v5562_v55  ;;  %14667 = vmatpush3.bf16.msra.mxu1 %v14664_v3  ;;  %v10150_v3 = vld [vmem:[%s19382_s1 + $0x8c8] sm:$0xff]  ;;  %v14692_v55 = vpack.c.bf16 %v10156_v40, %v10155_v59  ;;  %v10213_v59 = vld [vmem:[%s19382_s1 + $0x9a0] sm:$0xff] }
 0x4f4   : > { %14669 = vmatprep.subr.bf16.mxu1 %v14668_v58  ;;  %v14680_v56 = vpack.c.bf16 %v10150_v3, %v10149_v57  ;;  %v5586_v57 = vld [vmem:[#allocation2 + $0x1e8] sm:$0xff]  ;;  %v5587_v3 = vld [vmem:[#allocation2 + $0x1f0] sm:$0xff] }
 0x4f5   : > { %v10214_v40 = vld [vmem:[%s19382_s1 + $0x9a8] sm:$0xff] }
 0x4f6   : > { %13156 = vmatmul.mubr.f32.gmra.mrb[34].mxu1 %v5563_v62  ;;  %v5573_v62 = vld [vmem:[#allocation2 + $0x110] sm:$0xff] }
 0x4f7   : > { %13158 = vmatprep.mubr.f32.mxu1 %v5564_v9  ;;  %14671 = vmatpush3.bf16.msra.mxu1 %v14668_v58  ;;  %v5571_v58 = vld [vmem:[#allocation2 + $0xf0] sm:$0xff] }
 0x4f8   : > { %14673 = vmatprep.subr.bf16.mxu1 %v14672_v2  ;;  %v5575_v9 = vld [vmem:[#allocation2 + $0x130] sm:$0xff] }
 0x4fa   : > { %13159 = vmatmul.mubr.f32.gmra.mrb[36].mxu1 %v5565_v36  ;;  %v5585_v36 = vld [vmem:[#allocation2 + $0x1d0] sm:$0xff] }
 0x4fb   : > { %13161 = vmatprep.mubr.f32.mxu1 %v5566_v1  ;;  %14675 = vmatpush3.bf16.msra.mxu1 %v14672_v2  ;;  %v5574_v2 = vld [vmem:[#allocation2 + $0x128] sm:$0xff] }
 0x4fc   : > { %14677 = vmatprep.subr.bf16.mxu1 %v14676_v21  ;;  %v5588_v1 = vld [vmem:[#allocation2 + $0x208] sm:$0xff] }
 0x4fe   : > { %13162 = vmatmul.mubr.f32.gmra.mrb[38].mxu1 %v5567_v0  ;;  %v17979_v0 = vld [vmem:[#allocation2 + $0x8] sm:$0xff] }
 0x4ff   : > { %13164 = vmatprep.mubr.f32.mxu1 %v5568_v46  ;;  %14679 = vmatpush3.bf16.msra.mxu1 %v14676_v21  ;;  %v5583_v21 = vld [vmem:[#allocation2 + $0x1b0] sm:$0xff] }
 0x500   : > { %14681 = vmatprep.subr.bf16.mxu1 %v14680_v56 }
 0x502   : > { %13165 = vmatmul.mubr.f32.gmra.mrb[40].mxu1 %v5569_v11 }
 0x503   : > { %13167 = vmatprep.mubr.f32.mxu1 %v5570_v25  ;;  %14683 = vmatpush3.bf16.msra.mxu1 %v14680_v56  ;;  %v5589_v56 = vld [vmem:[#allocation2 + $0x210] sm:$0xff] }
 0x504   : > { %14685 = vmatprep.subr.bf16.mxu1 %v14684_v8 }
 0x506   : > { %13168 = vmatmul.mubr.f32.gmra.mrb[42].mxu1 %v5571_v58 }
 0x507   : > { %13170 = vmatprep.mubr.f32.mxu1 %v5572_v27  ;;  %14687 = vmatpush3.bf16.msra.mxu1 %v14684_v8  ;;  %v10321_v27 = vld [vmem:[%s19382_s1 + $0xd00] sm:$0xff] }
 0x508   : > { %14689 = vmatprep.subr.bf16.mxu1 %v14688_v51 }
 0x50a   : > { %13171 = vmatmul.mubr.f32.gmra.mrb[44].mxu1 %v5573_v62  ;;  %v14712_v62 = vpack.c.bf16 %v10214_v40, %v10213_v59  ;;  %v10326_v40 = vld [vmem:[%s19382_s1 + $0xd28] sm:$0xff] }
 0x50b   : > { %13173 = vmatprep.mubr.f32.mxu1 %v5574_v2  ;;  %14691 = vmatpush3.bf16.msra.mxu1 %v14688_v51  ;;  %v10212_v51 = vld [vmem:[%s19382_s1 + $0x998] sm:$0xff] }
 0x50c   : > { %14693 = vmatprep.subr.bf16.mxu1 %v14692_v55  ;;  %v14708_v58 = vpack.c.bf16 %v10212_v51, %v10211_v22 }
 0x50e   : > { %13174 = vmatmul.mubr.f32.gmra.mrb[46].mxu1 %v5575_v9  ;;  %v10215_v9 = vld [vmem:[%s19382_s1 + $0x9b0] sm:$0xff] }
 0x50f   : > { %13176 = vmatprep.mubr.f32.mxu1 %v5576_v49  ;;  %14695 = vmatpush3.bf16.msra.mxu1 %v14692_v55  ;;  %v10322_v55 = vld [vmem:[%s19382_s1 + $0xd08] sm:$0xff]  ;;  %v10216_v49 = vld [vmem:[%s19382_s1 + $0x9b8] sm:$0xff] }
 0x510   : > { %v18102_v2 = vpack.c.bf16 %v10322_v55, %v10321_v27 }
 0x512   : > { %13177 = vmatmul.mubr.f32.gmra.mrb[48].mxu1 %v5577_v18  ;;  %19643 = vst [vmem:[#allocation33_spill] sm:$0xff] %v18102_v2  ;;  %14961 = vmatprep.subr.bf16.mxu0 %v18102_v2  ;;  %v14716_v18 = vpack.c.bf16 %v10216_v49, %v10215_v9 }
 0x513   : > { %13179 = vmatprep.mubr.f32.mxu1 %v5578_v53  ;;  %v10217_v53 = vld [vmem:[%s19382_s1 + $0x9c0] sm:$0xff] }
 0x516   : > { %13180 = vmatmul.mubr.f32.gmra.mrb[50].mxu1 %v5579_v19  ;;  %v10218_v19 = vld [vmem:[%s19382_s1 + $0x9c8] sm:$0xff] }
 0x517   : > { %13182 = vmatprep.mubr.f32.mxu1 %v5580_v6  ;;  %v14720_v6 = vpack.c.bf16 %v10218_v19, %v10217_v53  ;;  %v10328_v53 = vld [vmem:[%s19382_s1 + $0xd38] sm:$0xff] }
 0x51a   : > { %13183 = vmatmul.mubr.f32.gmra.mrb[52].mxu1 %v5581_v50  ;;  %v10219_v50 = vld [vmem:[%s19382_s1 + $0x9d0] sm:$0xff] }
 0x51b   : > { %13185 = vmatprep.mubr.f32.mxu1 %v5582_v17  ;;  %v10220_v17 = vld [vmem:[%s19382_s1 + $0x9d8] sm:$0xff] }
 0x51e   : > { %13186 = vmatmul.mubr.f32.gmra.mrb[54].mxu1 %v5583_v21  ;;  %v14724_v21 = vpack.c.bf16 %v10220_v17, %v10219_v50 }
 0x51f   : > { %13188 = vmatprep.mubr.f32.mxu1 %v5584_v37  ;;  %v10221_v37 = vld [vmem:[%s19382_s1 + $0x9e0] sm:$0xff] }
 0x522   : > { %13189 = vmatmul.mubr.f32.gmra.mrb[56].mxu1 %v5585_v36  ;;  %v10222_v36 = vld [vmem:[%s19382_s1 + $0x9e8] sm:$0xff] }
 0x523   : > { %13191 = vmatprep.mubr.f32.mxu1 %v5586_v57  ;;  %v14728_v57 = vpack.c.bf16 %v10222_v36, %v10221_v37 }
 0x526   : > { %13192 = vmatmul.mubr.f32.gmra.mrb[58].mxu1 %v5587_v3 }
 0x527   : > { %13194 = vmatprep.mubr.f32.mxu1 %v5588_v1 }
 0x52a   : > { %13195 = vmatmul.mubr.f32.gmra.mrb[60].mxu1 %v5589_v56 }
 0x52b   : > { %13197 = vmatprep.mubr.f32.mxu1 %v17979_v0 }
 0x52e   : > { %13198 = vmatmul.mubr.f32.gmra.mrb[62].mxu1 %v17979_v0 }
 0x52f   : > { %13232 = vmatprep.mubr.f32.mxu1 %v17698_v33 }
 0x532   : > { %13233 = vmatmul.mubr.f32.vlgmr.msra.gmra.mrb[32].mxu1 %v17703_v24 }
 0x533   : > { %13235 = vmatprep.mubr.f32.mxu1 %v17714_v54 }
 0x536   : > { %13236 = vmatmul.mubr.f32.gmra.mrb[34].mxu1 %v17717_v14 }
 0x537   : > { %13238 = vmatprep.mubr.f32.mxu1 %v17727_v20 }
 0x539   : > { %v17988_v47 = vpop.f32.mrb[32].mxu0 }
 0x53a   : > { %13239 = vmatmul.mubr.f32.gmra.mrb[36].mxu1 %v17730_v42  ;;  %v17991_v32 = vpop.f32.mrb[33].mxu0 }
 0x53b   : > { %13241 = vmatprep.mubr.f32.mxu1 %v17741_v39 }
 0x53d   : > { %v17994_v46 = vpop.f32.mrb[34].mxu0 }
 0x53e   : > { %13242 = vmatmul.mubr.f32.gmra.mrb[38].mxu1 %v17744_v5  ;;  %v17997_v33 = vpop.f32.mrb[35].mxu0 }
 0x53f   : > { %13244 = vmatprep.mubr.f32.mxu1 %v17748_v48 }
 0x541   : > { %v18000_v24 = vpop.f32.mrb[36].mxu0 }
 0x542   : > { %13245 = vmatmul.mubr.f32.gmra.mrb[40].mxu1 %v17758_v44  ;;  %v18003_v54 = vpop.f32.mrb[37].mxu0 }
 0x543   : > { %13247 = vmatprep.mubr.f32.mxu1 %v17762_v16 }
 0x545   : > { %v18006_v14 = vpop.f32.mrb[38].mxu0 }
 0x546   : > { %13248 = vmatmul.mubr.f32.gmra.mrb[42].mxu1 %v17772_v35  ;;  %v18009_v20 = vpop.f32.mrb[39].mxu0 }
 0x547   : > { %13250 = vmatprep.mubr.f32.mxu1 %v17776_v41 }
 0x549   : > { %v18012_v42 = vpop.f32.mrb[40].mxu0 }
 0x54a   : > { %13251 = vmatmul.mubr.f32.gmra.mrb[44].mxu1 %v17786_v63  ;;  %v18015_v39 = vpop.f32.mrb[41].mxu0 }
 0x54b   : > { %13253 = vmatprep.mubr.f32.mxu1 %v17790_v10 }
 0x54d   : > { %v18018_v5 = vpop.f32.mrb[42].mxu0 }
 0x54e   : > { %13254 = vmatmul.mubr.f32.gmra.mrb[46].mxu1 %v17800_v61  ;;  %v18021_v48 = vpop.f32.mrb[43].mxu0 }
 0x54f   : > { %13256 = vmatprep.mubr.f32.mxu1 %v17804_v23 }
 0x551   : > { %v18024_v44 = vpop.f32.mrb[44].mxu0 }
 0x552   : > { %13257 = vmatmul.mubr.f32.gmra.mrb[48].mxu1 %v17814_v38  ;;  %v18027_v16 = vpop.f32.mrb[45].mxu0 }
 0x553   : > { %13259 = vmatprep.mubr.f32.mxu1 %v17818_v29 }
 0x555   : > { %v18030_v35 = vpop.f32.mrb[46].mxu0 }
 0x556   : > { %13260 = vmatmul.mubr.f32.gmra.mrb[50].mxu1 %v17822_v7  ;;  %v18033_v41 = vpop.f32.mrb[47].mxu0 }
 0x557   : > { %13262 = vmatprep.mubr.f32.mxu1 %v17826_v31 }
 0x559   : > { %v18036_v63 = vpop.f32.mrb[48].mxu0 }
 0x55a   : > { %13263 = vmatmul.mubr.f32.gmra.mrb[52].mxu1 %v17830_v15  ;;  %v18039_v10 = vpop.f32.mrb[49].mxu0  ;;  %v5896_v15 = vld [vmem:[#allocation2 + $0x229] sm:$0xff] }
 0x55b   : > { %13265 = vmatprep.mubr.f32.mxu1 %v17834_v30 }
 0x55d   : > { %v18042_v61 = vpop.f32.mrb[50].mxu0 }
 0x55e   : > { %13266 = vmatmul.mubr.f32.gmra.mrb[54].mxu1 %v17838_v52  ;;  %v18045_v23 = vpop.f32.mrb[51].mxu0 }
 0x55f   : > { %13268 = vmatprep.mubr.f32.mxu1 %v17842_v26  ;;  %v5897_v26 = vld [vmem:[#allocation2 + $0x231] sm:$0xff] }
 0x561   : > { %v18048_v38 = vpop.f32.mrb[52].mxu0 }
 0x562   : > { %13269 = vmatmul.mubr.f32.gmra.mrb[56].mxu1 %v17846_v45  ;;  %v18051_v29 = vpop.f32.mrb[53].mxu0 }
 0x563   : > { %13271 = vmatprep.mubr.f32.mxu1 %v17850_v28 }
 0x565   : > { %v18054_v7 = vpop.f32.mrb[54].mxu0 }
 0x566   : > { %13272 = vmatmul.mubr.f32.gmra.mrb[58].mxu1 %v17854_v60  ;;  %v18057_v31 = vpop.f32.mrb[55].mxu0 }
 0x567   : > { %13274 = vmatprep.mubr.f32.mxu1 %v17862_v43 }
 0x569   : > { %v18060_v30 = vpop.f32.mrb[56].mxu0 }
 0x56a   : > { %13275 = vmatmul.mubr.f32.gmra.mrb[60].mxu1 %v17865_v13  ;;  %v18063_v52 = vpop.f32.mrb[57].mxu0  ;;  %v10209_v13 = vld [vmem:[%s19382_s1 + $0x980] sm:$0xff] }
 0x56b   : > { %13277 = vmatprep.mubr.f32.mxu1 %v5896_v15  ;;  %v14704_v25 = vpack.c.bf16 %v10210_v12, %v10209_v13  ;;  %v10324_v13 = vld [vmem:[%s19382_s1 + $0xd18] sm:$0xff] }
 0x56d   : > { %v18065_v45 = vpop.f32.mrb[58].mxu0  ;;  %14705 = vmatprep.subr.bf16.mxu1 %v14704_v25 }
 0x56e   : > { %13278 = vmatmul.mubr.f32.gmra.mrb[62].mxu1 %v5897_v26  ;;  %v18067_v28 = vpop.f32.mrb[59].mxu0  ;;  %v10323_v26 = vld [vmem:[%s19382_s1 + $0xd10] sm:$0xff] }
 0x56f   : > { %13368 = vmatprep.mubr.f32.mxu1 %v17979_v0  ;;  %14707 = vmatpush3.bf16.msra.mxu1 %v14704_v25  ;;  %v18138_v59 = vpack.c.bf16 %v10324_v13, %v10323_v26 }
 0x570   : > { %14709 = vmatprep.subr.bf16.mxu1 %v14708_v58 }
 0x571   : > { %v18070_v60 = vpop.f32.mrb[60].mxu0  ;;  %19644 = vst [vmem:[#allocation32_spill] sm:$0xff] %v18138_v59 }
 0x572   : > { %v18072_v8 = vpop.f32.mrb[61].mxu0 }
 0x573   : > { %14711 = vmatpush3.bf16.msra.mxu1 %v14708_v58 }
 0x574   : > { %14713 = vmatprep.subr.bf16.mxu1 %v14712_v62 }
 0x575   : > { %v18074_v43 = vpop.f32.mrb[62].mxu0 }
 0x576   : > { %v18076_v11 = vpop.f32.mrb[63].mxu0 }
 0x577   : > { %14715 = vmatpush3.bf16.msra.mxu1 %v14712_v62 }
 0x578   : > { %14717 = vmatprep.subr.bf16.mxu1 %v14716_v18 }
 0x57b   : > { %14719 = vmatpush3.bf16.msra.mxu1 %v14716_v18  ;;  %v10327_v18 = vld [vmem:[%s19382_s1 + $0xd30] sm:$0xff] }
 0x57c   : > { %14721 = vmatprep.subr.bf16.mxu1 %v14720_v6  ;;  %v18166_v17 = vpack.c.bf16 %v10328_v53, %v10327_v18 }
 0x57e   : > { %19646 = vst [vmem:[#allocation36_spill] sm:$0xff] %v18166_v17 }
 0x57f   : > { %14723 = vmatpush3.bf16.msra.mxu1 %v14720_v6 }
 0x580   : > { %14725 = vmatprep.subr.bf16.mxu1 %v14724_v21 }
 0x583   : > { %14727 = vmatpush3.bf16.msra.mxu1 %v14724_v21 }
 0x584   : > { %14729 = vmatprep.subr.bf16.mxu1 %v14728_v57 }
 0x587   : > { %14731 = vmatpush3.bf16.msra.mxu1 %v14728_v57 }
 0x605   : > { %v13234_v3 = vpop.f32.mrb[32].mxu1 }
 0x606   : > { %v15016_v1 = vadd.f32 %v13234_v3, %v17988_v47  ;;  %v5981_v56 = vpop.f32.mrb[33].mxu1 }
 0x607   : > { %v15017_v15 = vadd.f32 %v5981_v56, %v17991_v32  ;;  %v10325_v32 = vld [vmem:[%s19382_s1 + $0xd20] sm:$0xff] }
 0x608   : > { %v6173_v25 = vmax.f32 %v15016_v1, 0.0  ;;  %v18152_v9 = vpack.c.bf16 %v10326_v40, %v10325_v32 }
 0x609   : > { %v6172_v12 = vmax.f32 %v15017_v15, 0.0  ;;  %v13237_v22 = vpop.f32.mrb[34].mxu1 }
 0x60a   : > { %v15018_v51 = vadd.f32 %v13237_v22, %v17994_v46  ;;  %v5991_v58 = vpop.f32.mrb[35].mxu1  ;;  %19645 = vst [vmem:[#allocation37_spill] sm:$0xff] %v18152_v9 }
 0x60b   : > { %v15019_v47 = vadd.f32 %v5991_v58, %v17997_v33  ;;  %13288 = vmatprep.mubr.msk.f32.mxu0 %vm3064_vm0, %v6172_v12 }
 0x60c   : > { %13289 = vmatmul.mubr.msk.f32.vlgmr.msra.gmra.mrb[64].mxu0 %vm3064_vm0, %v6173_v25  ;;  %v6175_v46 = vmax.f32 %v15018_v51, 0.0 }
 0x60d   : > { %v6174_v27 = vmax.f32 %v15019_v47, 0.0  ;;  %v13240_v55 = vpop.f32.mrb[36].mxu1  ;;  %14963 = vmatpush3.bf16.msra.mxu0 %v18102_v2 }
 0x60e   : > { %v15020_v62 = vadd.f32 %v13240_v55, %v18000_v24  ;;  %v6001_v33 = vpop.f32.mrb[37].mxu1  ;;  %14965 = vmatprep.subr.bf16.mxu0 %v18138_v59 }
 0x60f   : > { %v15021_v49 = vadd.f32 %v6001_v33, %v18003_v54  ;;  %13291 = vmatprep.mubr.msk.f32.mxu0 %vm3064_vm0, %v6174_v27 }
 0x610   : > { %13292 = vmatmul.mubr.msk.f32.gmra.mrb[66].mxu0 %vm3064_vm0, %v6175_v46  ;;  %v6177_v6 = vmax.f32 %v15020_v62, 0.0 }
 0x611   : > { %v6176_v24 = vmax.f32 %v15021_v49, 0.0  ;;  %v13243_v19 = vpop.f32.mrb[38].mxu1  ;;  %14967 = vmatpush3.bf16.msra.mxu0 %v18138_v59 }
 0x612   : > { %v15022_v50 = vadd.f32 %v13243_v19, %v18006_v14  ;;  %v6011_v54 = vpop.f32.mrb[39].mxu1  ;;  %14969 = vmatprep.subr.bf16.mxu0 %v18152_v9 }
 0x613   : > { %v15023_v21 = vadd.f32 %v6011_v54, %v18009_v20  ;;  %13294 = vmatprep.mubr.msk.f32.mxu0 %vm3064_vm0, %v6176_v24 }
 0x614   : > { %13295 = vmatmul.mubr.msk.f32.gmra.mrb[68].mxu0 %vm3064_vm0, %v6177_v6  ;;  %v6179_v57 = vmax.f32 %v15022_v50, 0.0 }
 0x615   : > { %v6178_v37 = vmax.f32 %v15023_v21, 0.0  ;;  %v13246_v36 = vpop.f32.mrb[40].mxu1  ;;  %14971 = vmatpush3.bf16.msra.mxu0 %v18152_v9 }
 0x616   : > { %v15024_v3 = vadd.f32 %v13246_v36, %v18012_v42  ;;  %v6021_v1 = vpop.f32.mrb[41].mxu1  ;;  %14973 = vmatprep.subr.bf16.mxu0 %v18166_v17 }
 0x617   : > { %v15025_v14 = vadd.f32 %v6021_v1, %v18015_v39  ;;  %13297 = vmatprep.mubr.msk.f32.mxu0 %vm3064_vm0, %v6178_v37 }
 0x618   : > { %13298 = vmatmul.mubr.msk.f32.gmra.mrb[70].mxu0 %vm3064_vm0, %v6179_v57  ;;  %v6181_v15 = vmax.f32 %v15024_v3, 0.0 }
 0x619   : > { %v6180_v20 = vmax.f32 %v15025_v14, 0.0  ;;  %v13249_v56 = vpop.f32.mrb[42].mxu1  ;;  %14975 = vmatpush3.bf16.msra.mxu0 %v18166_v17 }
 0x61a   : > { %v15026_v26 = vadd.f32 %v13249_v56, %v18018_v5  ;;  %v6031_v13 = vpop.f32.mrb[43].mxu1 }
 0x61b   : > { %v15027_v12 = vadd.f32 %v6031_v13, %v18021_v48  ;;  %13300 = vmatprep.mubr.msk.f32.mxu0 %vm3064_vm0, %v6180_v20 }
 0x61c   : > { %13301 = vmatmul.mubr.msk.f32.gmra.mrb[72].mxu0 %vm3064_vm0, %v6181_v15  ;;  %v6183_v22 = vmax.f32 %v15026_v26, 0.0 }
 0x61d   : > { %v6182_v42 = vmax.f32 %v15027_v12, 0.0  ;;  %v13252_v39 = vpop.f32.mrb[44].mxu1 }
 0x61e   : > { %v15028_v25 = vadd.f32 %v13252_v39, %v18024_v44  ;;  %v6041_v51 = vpop.f32.mrb[45].mxu1 }
 0x61f   : > { %v15029_v58 = vadd.f32 %v6041_v51, %v18027_v16  ;;  %13303 = vmatprep.mubr.msk.f32.mxu0 %vm3064_vm0, %v6182_v42 }
 0x620   : > { %13304 = vmatmul.mubr.msk.f32.gmra.mrb[74].mxu0 %vm3064_vm0, %v6183_v22  ;;  %v6185_v32 = vmax.f32 %v15028_v25, 0.0 }
 0x621   : > { %v6184_v5 = vmax.f32 %v15029_v58, 0.0  ;;  %v13255_v47 = vpop.f32.mrb[46].mxu1 }
 0x622   : > { %v15030_v48 = vadd.f32 %v13255_v47, %v18030_v35  ;;  %v6051_v40 = vpop.f32.mrb[47].mxu1 }
 0x623   : > { %v15031_v27 = vadd.f32 %v6051_v40, %v18033_v41  ;;  %13306 = vmatprep.mubr.msk.f32.mxu0 %vm3064_vm0, %v6184_v5 }
 0x624   : > { %13307 = vmatmul.mubr.msk.f32.gmra.mrb[76].mxu0 %vm3064_vm0, %v6185_v32  ;;  %v6187_v46 = vmax.f32 %v15030_v48, 0.0  ;;  %v10330_v48 = vld [vmem:[%s19382_s1 + $0xd48] sm:$0xff] }
 0x625   : > { %v6186_v44 = vmax.f32 %v15031_v27, 0.0  ;;  %v13258_v55 = vpop.f32.mrb[48].mxu1  ;;  %v10331_v27 = vld [vmem:[%s19382_s1 + $0xd50] sm:$0xff] }
 0x626   : > { %v15032_v16 = vadd.f32 %v13258_v55, %v18036_v63  ;;  %v6061_v62 = vpop.f32.mrb[49].mxu1 }
 0x627   : > { %v15033_v33 = vadd.f32 %v6061_v62, %v18039_v10  ;;  %13309 = vmatprep.mubr.msk.f32.mxu0 %vm3064_vm0, %v6186_v44  ;;  %v10332_v44 = vld [vmem:[%s19382_s1 + $0xd58] sm:$0xff]  ;;  %v10335_v62 = vld [vmem:[%s19382_s1 + $0xd70] sm:$0xff] }
 0x628   : > { %13310 = vmatmul.mubr.msk.f32.gmra.mrb[78].mxu0 %vm3064_vm0, %v6187_v46  ;;  %v6189_v18 = vmax.f32 %v15032_v16, 0.0  ;;  %v18247_v55 = vpack.c.bf16 %v10332_v44, %v10331_v27  ;;  %v10334_v46 = vld [vmem:[%s19382_s1 + $0xd68] sm:$0xff] }
 0x629   : > { %v6188_v35 = vmax.f32 %v15033_v33, 0.0  ;;  %v13261_v49 = vpop.f32.mrb[50].mxu1  ;;  %v10336_v33 = vld [vmem:[%s19382_s1 + $0xd78] sm:$0xff] }
 0x62a   : > { %v15034_v41 = vadd.f32 %v13261_v49, %v18042_v61  ;;  %v6071_v53 = vpop.f32.mrb[51].mxu1  ;;  %19648 = vst [vmem:[#allocation40_spill] sm:$0xff] %v18247_v55  ;;  %v10194_v49 = vld [vmem:[%s19382_s1 + $0x908] sm:$0xff] }
 0x62b   : > { %v15035_v24 = vadd.f32 %v6071_v53, %v18045_v23  ;;  %13312 = vmatprep.mubr.msk.f32.mxu0 %vm3064_vm0, %v6188_v35  ;;  %v10193_v35 = vld [vmem:[%s19382_s1 + $0x900] sm:$0xff]  ;;  %v10195_v53 = vld [vmem:[%s19382_s1 + $0x910] sm:$0xff] }
 0x62c   : > { %13313 = vmatmul.mubr.msk.f32.gmra.mrb[80].mxu0 %vm3064_vm0, %v6189_v18  ;;  %v6191_v6 = vmax.f32 %v15034_v41, 0.0  ;;  %v18273_v18 = vpack.c.bf16 %v10336_v33, %v10335_v62  ;;  %v14736_v41 = vpack.c.bf16 %v10194_v49, %v10193_v35  ;;  %v19663_v62 = vld [vmem:[#allocation12_spill] sm:$0xff]  ;;  %v19665_v49 = vld [vmem:[#allocation13_spill] sm:$0xff] }
 0x62d   : > { %v6190_v63 = vmax.f32 %v15035_v24, 0.0  ;;  %v13264_v19 = vpop.f32.mrb[52].mxu1  ;;  %v10196_v24 = vld [vmem:[%s19382_s1 + $0x918] sm:$0xff] }
 0x62e   : > { %v15036_v10 = vadd.f32 %v13264_v19, %v18048_v38  ;;  %v6081_v50 = vpop.f32.mrb[53].mxu1  ;;  %19650 = vst [vmem:[#allocation43_spill] sm:$0xff] %v18273_v18  ;;  %v10197_v19 = vld [vmem:[%s19382_s1 + $0x920] sm:$0xff] }
 0x62f   : > { %v15037_v54 = vadd.f32 %v6081_v50, %v18051_v29  ;;  %13315 = vmatprep.mubr.msk.f32.mxu0 %vm3064_vm0, %v6190_v63  ;;  %v14740_v63 = vpack.c.bf16 %v10196_v24, %v10195_v53  ;;  %v10199_v50 = vld [vmem:[%s19382_s1 + $0x930] sm:$0xff] }
 0x630   : > { %13316 = vmatmul.mubr.msk.f32.gmra.mrb[82].mxu0 %vm3064_vm0, %v6191_v6  ;;  %v6193_v37 = vmax.f32 %v15036_v10, 0.0  ;;  %v10198_v6 = vld [vmem:[%s19382_s1 + $0x928] sm:$0xff] }
 0x631   : > { %v6192_v61 = vmax.f32 %v15037_v54, 0.0  ;;  %v13267_v21 = vpop.f32.mrb[54].mxu1  ;;  %v14744_v10 = vpack.c.bf16 %v10198_v6, %v10197_v19  ;;  %v10200_v54 = vld [vmem:[%s19382_s1 + $0x938] sm:$0xff]  ;;  %v19667_v19 = vld [vmem:[#allocation14_spill] sm:$0xff] }
 0x632   : > { %v15038_v23 = vadd.f32 %v13267_v21, %v18054_v7  ;;  %v6091_v36 = vpop.f32.mrb[55].mxu1  ;;  %v10201_v21 = vld [vmem:[%s19382_s1 + $0x940] sm:$0xff] }
 0x633   : > { %v15039_v57 = vadd.f32 %v6091_v36, %v18057_v31  ;;  %13318 = vmatprep.mubr.msk.f32.mxu0 %vm3064_vm0, %v6192_v61  ;;  %v14748_v61 = vpack.c.bf16 %v10200_v54, %v10199_v50  ;;  %v10203_v36 = vld [vmem:[%s19382_s1 + $0x950] sm:$0xff]  ;;  %v19669_v54 = vld [vmem:[#allocation15_spill] sm:$0xff] }
 0x634   : > { %13319 = vmatmul.mubr.msk.f32.gmra.mrb[84].mxu0 %vm3064_vm0, %v6193_v37  ;;  %v6195_v1 = vmax.f32 %v15038_v23, 0.0  ;;  %v10202_v37 = vld [vmem:[%s19382_s1 + $0x948] sm:$0xff] }
 0x635   : > { %v6194_v38 = vmax.f32 %v15039_v57, 0.0  ;;  %v13270_v3 = vpop.f32.mrb[56].mxu1  ;;  %v14752_v23 = vpack.c.bf16 %v10202_v37, %v10201_v21  ;;  %v10204_v57 = vld [vmem:[%s19382_s1 + $0x958] sm:$0xff] }
 0x636   : > { %v15040_v29 = vadd.f32 %v13270_v3, %v18060_v30  ;;  %v6101_v14 = vpop.f32.mrb[57].mxu1  ;;  %v10205_v3 = vld [vmem:[%s19382_s1 + $0x960] sm:$0xff] }
 0x637   : > { %v15041_v20 = vadd.f32 %v6101_v14, %v18063_v52  ;;  %13321 = vmatprep.mubr.msk.f32.mxu0 %vm3064_vm0, %v6194_v38  ;;  %v14756_v38 = vpack.c.bf16 %v10204_v57, %v10203_v36  ;;  %v10207_v14 = vld [vmem:[%s19382_s1 + $0x970] sm:$0xff] }
 0x638   : > { %13322 = vmatmul.mubr.msk.f32.gmra.mrb[86].mxu0 %vm3064_vm0, %v6195_v1  ;;  %v6197_v15 = vmax.f32 %v15040_v29, 0.0  ;;  %v10206_v1 = vld [vmem:[%s19382_s1 + $0x968] sm:$0xff]  ;;  %v19671_v57 = vld [vmem:[#allocation16_spill] sm:$0xff] }
 0x639   : > { %v6196_v7 = vmax.f32 %v15041_v20, 0.0  ;;  %v13273_v56 = vpop.f32.mrb[58].mxu1  ;;  %v14760_v29 = vpack.c.bf16 %v10206_v1, %v10205_v3  ;;  %v10208_v20 = vld [vmem:[%s19382_s1 + $0x978] sm:$0xff] }
 0x63a   : > { %v15042_v31 = vadd.f32 %v13273_v56, %v18065_v45  ;;  %v6111_v26 = vpop.f32.mrb[59].mxu1  ;;  %v10225_v56 = vld [vmem:[%s19382_s1 + $0xa00] sm:$0xff] }
 0x63b   : > { %v15043_v13 = vadd.f32 %v6111_v26, %v18067_v28  ;;  %13324 = vmatprep.mubr.msk.f32.mxu0 %vm3064_vm0, %v6196_v7  ;;  %v14764_v7 = vpack.c.bf16 %v10208_v20, %v10207_v14 }
 0x63c   : > { %13325 = vmatmul.mubr.msk.f32.gmra.mrb[88].mxu0 %vm3064_vm0, %v6197_v15  ;;  %v6199_v42 = vmax.f32 %v15042_v31, 0.0  ;;  %v10226_v15 = vld [vmem:[%s19382_s1 + $0xa08] sm:$0xff] }
 0x63d   : > { %v6198_v30 = vmax.f32 %v15043_v13, 0.0  ;;  %v13276_v12 = vpop.f32.mrb[60].mxu1  ;;  %v18325_v31 = vpack.c.bf16 %v10226_v15, %v10225_v56  ;;  %v19651_v13 = vld [vmem:[#allocation6_spill] sm:$0xff] }
 0x63e   : > { %v15044_v52 = vadd.f32 %v13276_v12, %v18070_v60  ;;  %v6121_v39 = vpop.f32.mrb[61].mxu1 }
 0x63f   : > { %v15045_v22 = vadd.f32 %v6121_v39, %v18072_v8  ;;  %13327 = vmatprep.mubr.msk.f32.mxu0 %vm3064_vm0, %v6198_v30  ;;  %v10223_v8 = vld [vmem:[%s19382_s1 + $0x9f0] sm:$0xff] }
 0x640   : > { %13328 = vmatmul.mubr.msk.f32.gmra.mrb[90].mxu0 %vm3064_vm0, %v6199_v42  ;;  %v6201_v51 = vmax.f32 %v15044_v52, 0.0  ;;  %v19653_v42 = vld [vmem:[#allocation7_spill] sm:$0xff] }
 0x641   : > { %v6200_v45 = vmax.f32 %v15045_v22, 0.0  ;;  %v13279_v25 = vpop.f32.mrb[62].mxu1 }
 0x642   : > { %v15046_v28 = vadd.f32 %v13279_v25, %v18074_v43  ;;  %v6131_v58 = vpop.f32.mrb[63].mxu1  ;;  %v10224_v43 = vld [vmem:[%s19382_s1 + $0x9f8] sm:$0xff]  ;;  %v19655_v25 = vld [vmem:[#allocation8_spill] sm:$0xff] }
 0x643   : > { %v15047_v5 = vadd.f32 %v6131_v58, %v18076_v11  ;;  %13330 = vmatprep.mubr.msk.f32.mxu0 %vm3064_vm0, %v6200_v45  ;;  %v14732_v32 = vpack.c.bf16 %v10224_v43, %v10223_v8  ;;  %v10329_v11 = vld [vmem:[%s19382_s1 + $0xd40] sm:$0xff]  ;;  %v19657_v58 = vld [vmem:[#allocation9_spill] sm:$0xff] }
 0x644   : > { %13331 = vmatmul.mubr.msk.f32.gmra.mrb[92].mxu0 %vm3064_vm0, %v6201_v51  ;;  %v6203_v47 = vmax.f32 %v15046_v28, 0.0  ;;  %v18236_v40 = vpack.c.bf16 %v10330_v48, %v10329_v11  ;;  %v19659_v43 = vld [vmem:[#allocation10_spill] sm:$0xff]  ;;  %v19661_v48 = vld [vmem:[#allocation11_spill] sm:$0xff] }
 0x645   : > { %v6202_v60 = vmax.f32 %v15047_v5, 0.0  ;;  %14733 = vmatprep.subr.bf16.mxu1 %v14732_v32 }
 0x646   : > { %14735 = vmatpush3.bf16.msra.mxu1 %v14732_v32  ;;  %19647 = vst [vmem:[#allocation41_spill] sm:$0xff] %v18236_v40  ;;  %14977 = vmatprep.subr.bf16.mxu0 %v18236_v40 }
 0x647   : > { %13333 = vmatprep.mubr.msk.f32.mxu0 %vm3064_vm0, %v6202_v60  ;;  %14979 = vmatpush3.bf16.msra.mxu0 %v18236_v40 }
 0x648   : > { %13334 = vmatmul.mubr.msk.f32.gmra.mrb[94].mxu0 %vm3064_vm0, %v6203_v47  ;;  %14981 = vmatprep.subr.bf16.mxu0 %v18247_v55 }
 0x649   : > { %13369 = vmatmul.mubr.f32.vlgmr.msra.gmra.mrb[64].mxu1 %v17979_v0  ;;  %v10333_v0 = vld [vmem:[%s19382_s1 + $0xd60] sm:$0xff]  ;;  %14737 = vmatprep.subr.bf16.mxu1 %v14736_v41 }
 0x64a   : > { %v18257_v16 = vpack.c.bf16 %v10334_v46, %v10333_v0  ;;  %14739 = vmatpush3.bf16.msra.mxu1 %v14736_v41 }
 0x64b   : > { %14983 = vmatpush3.bf16.msra.mxu0 %v18247_v55  ;;  %14741 = vmatprep.subr.bf16.mxu1 %v14740_v63 }
 0x64c   : > { %19649 = vst [vmem:[#allocation42_spill] sm:$0xff] %v18257_v16  ;;  %14985 = vmatprep.subr.bf16.mxu0 %v18257_v16 }
 0x64e   : > { %14743 = vmatpush3.bf16.msra.mxu1 %v14740_v63 }
 0x64f   : > { %14987 = vmatpush3.bf16.msra.mxu0 %v18257_v16  ;;  %14745 = vmatprep.subr.bf16.mxu1 %v14744_v10 }
 0x650   : > { %14989 = vmatprep.subr.bf16.mxu0 %v18273_v18 }
 0x652   : > { %14747 = vmatpush3.bf16.msra.mxu1 %v14744_v10 }
 0x653   : > { %14991 = vmatpush3.bf16.msra.mxu0 %v18273_v18  ;;  %14749 = vmatprep.subr.bf16.mxu1 %v14748_v61 }
 0x656   : > { %14751 = vmatpush3.bf16.msra.mxu1 %v14748_v61 }
 0x657   : > { %14753 = vmatprep.subr.bf16.mxu1 %v14752_v23 }
 0x65a   : > { %14755 = vmatpush3.bf16.msra.mxu1 %v14752_v23 }
 0x65b   : > { %14757 = vmatprep.subr.bf16.mxu1 %v14756_v38 }
 0x65e   : > { %14759 = vmatpush3.bf16.msra.mxu1 %v14756_v38 }
 0x65f   : > { %14761 = vmatprep.subr.bf16.mxu1 %v14760_v29 }
 0x662   : > { %14763 = vmatpush3.bf16.msra.mxu1 %v14760_v29  ;;  %v19673_v29 = vld [vmem:[#allocation17_spill] sm:$0xff] }
 0x663   : > { %14765 = vmatprep.subr.bf16.mxu1 %v14764_v7 }
 0x666   : > { %14767 = vmatpush3.bf16.msra.mxu1 %v14764_v7 }
 0x667   : > { %14769 = vmatprep.subr.bf16.mxu1 %v18325_v31 }
 0x6df   : > { %v13290_v26 = vpop.f32.mrb[64].mxu0 }
 0x6e0   : > { %v18329_v30 = vadd.f32 %v13290_v26, %v19651_v13  ;;  %v6371_v12 = vpop.f32.mrb[65].mxu0  ;;  %v19675_v26 = vld [vmem:[#allocation18_spill] sm:$0xff] }
 0x6e1   : > { %v18332_v52 = vadd.f32 %v6371_v12, %v19653_v42 }
 0x6e2   : > { %19652 = vst [vmem:[#allocation6_spill] sm:$0xff] %v18329_v30  ;;  %v6563_v39 = vmax.f32 %v18329_v30, 0.0 }
 0x6e3   : > { %19654 = vst [vmem:[#allocation7_spill] sm:$0xff] %v18332_v52  ;;  %v6562_v22 = vmax.f32 %v18332_v52, 0.0  ;;  %v13293_v45 = vpop.f32.mrb[66].mxu0 }
 0x6e4   : > { %6595 = vst [vmem:[#allocation2 + $0x30] sm:$0xff] %v6563_v39  ;;  %v18337_v51 = vadd.f32 %v13293_v45, %v19655_v25  ;;  %v6381_v28 = vpop.f32.mrb[67].mxu0 }
 0x6e5   : > { %6594 = vst [vmem:[#allocation2 + $0x28] sm:$0xff] %v6562_v22  ;;  %v18340_v5 = vadd.f32 %v6381_v28, %v19657_v58  ;;  %13371 = vmatprep.mubr.f32.mxu1 %v6562_v22 }
 0x6e6   : > { %19656 = vst [vmem:[#allocation8_spill] sm:$0xff] %v18337_v51  ;;  %v6565_v60 = vmax.f32 %v18337_v51, 0.0  ;;  %13372 = vmatmul.mubr.f32.gmra.mrb[66].mxu1 %v6563_v39  ;;  %v19677_v39 = vld [vmem:[#allocation19_spill] sm:$0xff] }
 0x6e7   : > { %19658 = vst [vmem:[#allocation9_spill] sm:$0xff] %v18340_v5  ;;  %v6564_v47 = vmax.f32 %v18340_v5, 0.0  ;;  %v13296_v8 = vpop.f32.mrb[68].mxu0  ;;  %v10242_v51 = vld [vmem:[%s19382_s1 + $0xa88] sm:$0xff] }
 0x6e8   : > { %6597 = vst [vmem:[#allocation2 + $0x50] sm:$0xff] %v6565_v60  ;;  %v18345_v32 = vadd.f32 %v13296_v8, %v19659_v43  ;;  %v6391_v11 = vpop.f32.mrb[69].mxu0 }
 0x6e9   : > { %6596 = vst [vmem:[#allocation2 + $0x48] sm:$0xff] %v6564_v47  ;;  %v18348_v27 = vadd.f32 %v6391_v11, %v19661_v48  ;;  %13374 = vmatprep.mubr.f32.mxu1 %v6564_v47  ;;  %v19681_v11 = vld [vmem:[#allocation21_spill] sm:$0xff] }
 0x6ea   : > { %19660 = vst [vmem:[#allocation10_spill] sm:$0xff] %v18345_v32  ;;  %v6567_v44 = vmax.f32 %v18345_v32, 0.0  ;;  %13375 = vmatmul.mubr.f32.gmra.mrb[68].mxu1 %v6565_v60  ;;  %v19679_v60 = vld [vmem:[#allocation20_spill] sm:$0xff]  ;;  %v10240_v32 = vld [vmem:[%s19382_s1 + $0xa78] sm:$0xff] }
 0x6eb   : > { %19662 = vst [vmem:[#allocation11_spill] sm:$0xff] %v18348_v27  ;;  %v6566_v0 = vmax.f32 %v18348_v27, 0.0  ;;  %v13299_v46 = vpop.f32.mrb[70].mxu0 }
 0x6ec   : > { %6599 = vst [vmem:[#allocation2 + $0x70] sm:$0xff] %v6567_v44  ;;  %v18353_v33 = vadd.f32 %v13299_v46, %v19663_v62  ;;  %v6401_v35 = vpop.f32.mrb[71].mxu0 }
 0x6ed   : > { %6598 = vst [vmem:[#allocation2 + $0x68] sm:$0xff] %v6566_v0  ;;  %v18356_v41 = vadd.f32 %v6401_v35, %v19665_v49  ;;  %13377 = vmatprep.mubr.f32.mxu1 %v6566_v0  ;;  %v19683_v35 = vld [vmem:[#allocation22_spill] sm:$0xff] }
 0x6ee   : > { %19664 = vst [vmem:[#allocation12_spill] sm:$0xff] %v18353_v33  ;;  %v6569_v53 = vmax.f32 %v18353_v33, 0.0  ;;  %13378 = vmatmul.mubr.f32.gmra.mrb[70].mxu1 %v6567_v44  ;;  %v10238_v33 = vld [vmem:[%s19382_s1 + $0xa68] sm:$0xff] }
 0x6ef   : > { %19666 = vst [vmem:[#allocation13_spill] sm:$0xff] %v18356_v41  ;;  %v6568_v24 = vmax.f32 %v18356_v41, 0.0  ;;  %v13302_v63 = vpop.f32.mrb[72].mxu0  ;;  %v18369_v21 = vld [vmem:[#allocation2 + $0x51] sm:$0xff] }
 0x6f0   : > { %6601 = vst [vmem:[#allocation2 + $0x90] sm:$0xff] %v6569_v53  ;;  %v18361_v6 = vadd.f32 %v13302_v63, %v19667_v19  ;;  %v6411_v10 = vpop.f32.mrb[73].mxu0  ;;  %v18363_v50 = vld [vmem:[#allocation2 + $0x49] sm:$0xff] }
 0x6f1   : > { %6600 = vst [vmem:[#allocation2 + $0x88] sm:$0xff] %v6568_v24  ;;  %v18366_v61 = vadd.f32 %v6411_v10, %v19669_v54  ;;  %14008 = vmatprep.mubr.f32.mxu0 %v18363_v50  ;;  %13380 = vmatprep.mubr.f32.mxu1 %v6568_v24  ;;  %v19685_v63 = vld [vmem:[#allocation23_spill] sm:$0xff] }
 0x6f2   : > { %19668 = vst [vmem:[#allocation14_spill] sm:$0xff] %v18361_v6  ;;  %v6571_v37 = vmax.f32 %v18361_v6, 0.0  ;;  %14009 = vmatmul.mubr.f32.vlgmr.msra.gmra.mrb[96].mxu0 %v18369_v21  ;;  %13381 = vmatmul.mubr.f32.gmra.mrb[72].mxu1 %v6569_v53  ;;  %v10236_v6 = vld [vmem:[%s19382_s1 + $0xa58] sm:$0xff] }
 0x6f3   : > { %19670 = vst [vmem:[#allocation15_spill] sm:$0xff] %v18366_v61  ;;  %v6570_v23 = vmax.f32 %v18366_v61, 0.0  ;;  %v13305_v36 = vpop.f32.mrb[74].mxu0  ;;  %v18383_v20 = vld [vmem:[#allocation2 + $0x71] sm:$0xff] }
 0x6f4   : > { %6603 = vst [vmem:[#allocation2 + $0xb0] sm:$0xff] %v6571_v37  ;;  %v18375_v38 = vadd.f32 %v13305_v36, %v19671_v57  ;;  %v6421_v3 = vpop.f32.mrb[75].mxu0  ;;  %v18377_v1 = vld [vmem:[#allocation2 + $0x69] sm:$0xff] }
 0x6f5   : > { %6602 = vst [vmem:[#allocation2 + $0xa8] sm:$0xff] %v6570_v23  ;;  %v18380_v14 = vadd.f32 %v6421_v3, %v19673_v29  ;;  %14011 = vmatprep.mubr.f32.mxu0 %v18377_v1  ;;  %13383 = vmatprep.mubr.f32.mxu1 %v6570_v23  ;;  %v19687_v36 = vld [vmem:[#allocation24_spill] sm:$0xff]  ;;  %v18603_v61 = vld [vmem:[#allocation2 + $0x67] sm:$0xff] }
 0x6f6   : > { %19672 = vst [vmem:[#allocation16_spill] sm:$0xff] %v18375_v38  ;;  %v6573_v7 = vmax.f32 %v18375_v38, 0.0  ;;  %14012 = vmatmul.mubr.f32.gmra.mrb[98].mxu0 %v18383_v20  ;;  %13384 = vmatmul.mubr.f32.gmra.mrb[74].mxu1 %v6571_v37  ;;  %v10234_v38 = vld [vmem:[%s19382_s1 + $0xa48] sm:$0xff] }
 0x6f7   : > { %19674 = vst [vmem:[#allocation17_spill] sm:$0xff] %v18380_v14  ;;  %v6572_v56 = vmax.f32 %v18380_v14, 0.0  ;;  %v13308_v15 = vpop.f32.mrb[76].mxu0  ;;  %v18397_v45 = vld [vmem:[#allocation2 + $0x91] sm:$0xff] }
 0x6f8   : > { %6605 = vst [vmem:[#allocation2 + $0xd0] sm:$0xff] %v6573_v7  ;;  %v18389_v13 = vadd.f32 %v13308_v15, %v19675_v26  ;;  %v6431_v12 = vpop.f32.mrb[77].mxu0  ;;  %v18391_v42 = vld [vmem:[#allocation2 + $0x89] sm:$0xff]  ;;  %v10232_v14 = vld [vmem:[%s19382_s1 + $0xa38] sm:$0xff] }
 0x6f9   : > { %6604 = vst [vmem:[#allocation2 + $0xc8] sm:$0xff] %v6572_v56  ;;  %v18394_v22 = vadd.f32 %v6431_v12, %v19677_v39  ;;  %14014 = vmatprep.mubr.f32.mxu0 %v18391_v42  ;;  %13386 = vmatprep.mubr.f32.mxu1 %v6572_v56  ;;  %v18615_v41 = vld [vmem:[#allocation2 + $0x87] sm:$0xff] }
 0x6fa   : > { %19676 = vst [vmem:[#allocation18_spill] sm:$0xff] %v18389_v13  ;;  %v6575_v25 = vmax.f32 %v18389_v13, 0.0  ;;  %14015 = vmatmul.mubr.f32.gmra.mrb[100].mxu0 %v18397_v45  ;;  %13387 = vmatmul.mubr.f32.gmra.mrb[76].mxu1 %v6573_v7  ;;  %v19689_v7 = vld [vmem:[#allocation25_spill] sm:$0xff]  ;;  %v10229_v13 = vld [vmem:[%s19382_s1 + $0xa20] sm:$0xff] }
 0x6fb   : > { %19678 = vst [vmem:[#allocation19_spill] sm:$0xff] %v18394_v22  ;;  %v6574_v28 = vmax.f32 %v18394_v22, 0.0  ;;  %v13311_v58 = vpop.f32.mrb[78].mxu0  ;;  %v18411_v44 = vld [vmem:[#allocation2 + $0xb1] sm:$0xff] }
 0x6fc   : > { %6607 = vst [vmem:[#allocation2 + $0xf0] sm:$0xff] %v6575_v25  ;;  %v18403_v47 = vadd.f32 %v13311_v58, %v19679_v60  ;;  %v6441_v8 = vpop.f32.mrb[79].mxu0  ;;  %v18405_v43 = vld [vmem:[#allocation2 + $0xa9] sm:$0xff] }
 0x6fd   : > { %6606 = vst [vmem:[#allocation2 + $0xe8] sm:$0xff] %v6574_v28  ;;  %v18408_v48 = vadd.f32 %v6441_v8, %v19681_v11  ;;  %14017 = vmatprep.mubr.f32.mxu0 %v18405_v43  ;;  %13389 = vmatprep.mubr.f32.mxu1 %v6574_v28  ;;  %v19693_v8 = vld [vmem:[#allocation27_spill] sm:$0xff] }
 0x6fe   : > { %19680 = vst [vmem:[#allocation20_spill] sm:$0xff] %v18403_v47  ;;  %v6577_v0 = vmax.f32 %v18403_v47, 0.0  ;;  %14018 = vmatmul.mubr.f32.gmra.mrb[102].mxu0 %v18411_v44  ;;  %13390 = vmatmul.mubr.f32.gmra.mrb[78].mxu1 %v6575_v25  ;;  %v19691_v25 = vld [vmem:[#allocation26_spill] sm:$0xff] }
 0x6ff   : > { %19682 = vst [vmem:[#allocation21_spill] sm:$0xff] %v18408_v48  ;;  %v6576_v46 = vmax.f32 %v18408_v48, 0.0  ;;  %v13314_v62 = vpop.f32.mrb[80].mxu0  ;;  %v18425_v10 = vld [vmem:[#allocation2 + $0xd1] sm:$0xff]  ;;  %v18627_v27 = vld [vmem:[#allocation2 + $0xa7] sm:$0xff] }
 0x700   : > { %6609 = vst [vmem:[#allocation2 + $0x110] sm:$0xff] %v6577_v0  ;;  %v18417_v49 = vadd.f32 %v13314_v62, %v19683_v35  ;;  %v6451_v53 = vpop.f32.mrb[81].mxu0  ;;  %v18419_v24 = vld [vmem:[#allocation2 + $0xc9] sm:$0xff] }
 0x701   : > { %6608 = vst [vmem:[#allocation2 + $0x108] sm:$0xff] %v6576_v46  ;;  %v18422_v19 = vadd.f32 %v6451_v53, %v19685_v63  ;;  %14020 = vmatprep.mubr.f32.mxu0 %v18419_v24  ;;  %13392 = vmatprep.mubr.f32.mxu1 %v6576_v46  ;;  %v19695_v53 = vld [vmem:[#allocation28_spill] sm:$0xff]  ;;  %v18639_v5 = vld [vmem:[#allocation2 + $0xc7] sm:$0xff] }
 0x702   : > { %19684 = vst [vmem:[#allocation22_spill] sm:$0xff] %v18417_v49  ;;  %v6579_v54 = vmax.f32 %v18417_v49, 0.0  ;;  %14021 = vmatmul.mubr.f32.gmra.mrb[104].mxu0 %v18425_v10  ;;  %13393 = vmatmul.mubr.f32.gmra.mrb[80].mxu1 %v6577_v0 }
 0x703   : > { %19686 = vst [vmem:[#allocation23_spill] sm:$0xff] %v18422_v19  ;;  %v6578_v37 = vmax.f32 %v18422_v19, 0.0  ;;  %v13317_v23 = vpop.f32.mrb[82].mxu0  ;;  %v18439_v15 = vld [vmem:[#allocation2 + $0xf1] sm:$0xff]  ;;  %v6626_v19 = vld [vmem:[#allocation2 + $0x7] sm:$0xff] }
 0x704   : > { %6611 = vst [vmem:[#allocation2 + $0x130] sm:$0xff] %v6579_v54  ;;  %v18431_v57 = vadd.f32 %v13317_v23, %v19687_v36  ;;  %v6461_v3 = vpop.f32.mrb[83].mxu0  ;;  %v18433_v29 = vld [vmem:[#allocation2 + $0xe9] sm:$0xff]  ;;  %v19697_v23 = vld [vmem:[#allocation29_spill] sm:$0xff] }
 0x705   : > { %6610 = vst [vmem:[#allocation2 + $0x128] sm:$0xff] %v6578_v37  ;;  %v18436_v56 = vadd.f32 %v6461_v3, %v19689_v7  ;;  %14023 = vmatprep.mubr.f32.mxu0 %v18433_v29  ;;  %13395 = vmatprep.mubr.f32.mxu1 %v6578_v37  ;;  %v18651_v52 = vld [vmem:[#allocation2 + $0xe7] sm:$0xff] }
 0x706   : > { %19688 = vst [vmem:[#allocation24_spill] sm:$0xff] %v18431_v57  ;;  %v6581_v26 = vmax.f32 %v18431_v57, 0.0  ;;  %14024 = vmatmul.mubr.f32.gmra.mrb[106].mxu0 %v18439_v15  ;;  %13396 = vmatmul.mubr.f32.gmra.mrb[82].mxu1 %v6579_v54 }
 0x707   : > { %19690 = vst [vmem:[#allocation25_spill] sm:$0xff] %v18436_v56  ;;  %v6580_v12 = vmax.f32 %v18436_v56, 0.0  ;;  %v13320_v39 = vpop.f32.mrb[84].mxu0  ;;  %v18453_v0 = vld [vmem:[#allocation2 + $0x111] sm:$0xff] }
 0x708   : > { %6613 = vst [vmem:[#allocation2 + $0x150] sm:$0xff] %v6581_v26  ;;  %v18445_v28 = vadd.f32 %v13320_v39, %v19691_v25  ;;  %v6471_v58 = vpop.f32.mrb[85].mxu0  ;;  %v18447_v60 = vld [vmem:[#allocation2 + $0x109] sm:$0xff]  ;;  %v19700_v39 = vld [vmem:[#allocation30_spill] sm:$0xff] }
 0x709   : > { %6612 = vst [vmem:[#allocation2 + $0x148] sm:$0xff] %v6580_v12  ;;  %v18450_v11 = vadd.f32 %v6471_v58, %v19693_v8  ;;  %14026 = vmatprep.mubr.f32.mxu0 %v18447_v60  ;;  %13398 = vmatprep.mubr.f32.mxu1 %v6580_v12  ;;  %v18660_v30 = vld [vmem:[#allocation2 + $0x10f] sm:$0xff] }
 0x70a   : > { %19692 = vst [vmem:[#allocation26_spill] sm:$0xff] %v18445_v28  ;;  %v6583_v46 = vmax.f32 %v18445_v28, 0.0  ;;  %14027 = vmatmul.mubr.f32.gmra.mrb[108].mxu0 %v18453_v0  ;;  %13399 = vmatmul.mubr.f32.gmra.mrb[84].mxu1 %v6581_v26 }
 0x70b   : > { %19694 = vst [vmem:[#allocation27_spill] sm:$0xff] %v18450_v11  ;;  %v6582_v62 = vmax.f32 %v18450_v11, 0.0  ;;  %v13323_v35 = vpop.f32.mrb[86].mxu0  ;;  %v18467_v3 = vld [vmem:[#allocation2 + $0x131] sm:$0xff] }
 0x70c   : > { %6615 = vst [vmem:[#allocation2 + $0x170] sm:$0xff] %v6583_v46  ;;  %v18459_v63 = vadd.f32 %v13323_v35, %v19695_v53  ;;  %v6481_v54 = vpop.f32.mrb[87].mxu0  ;;  %v18461_v37 = vld [vmem:[#allocation2 + $0x129] sm:$0xff] }
 0x70d   : > { %6614 = vst [vmem:[#allocation2 + $0x168] sm:$0xff] %v6582_v62  ;;  %v18464_v36 = vadd.f32 %v6481_v54, %v19697_v23  ;;  %14029 = vmatprep.mubr.f32.mxu0 %v18461_v37  ;;  %13401 = vmatprep.mubr.f32.mxu1 %v6582_v62  ;;  %v19702_v35 = vld [vmem:[#allocation31_spill] sm:$0xff] }
 0x70e   : > { %19696 = vst [vmem:[#allocation28_spill] sm:$0xff] %v18459_v63  ;;  %v6585_v7 = vmax.f32 %v18459_v63, 0.0  ;;  %14030 = vmatmul.mubr.f32.gmra.mrb[110].mxu0 %v18467_v3  ;;  %13402 = vmatmul.mubr.f32.gmra.mrb[86].mxu1 %v6583_v46  ;;  %v18663_v18 = vld [vmem:[#allocation2 + $0x127] sm:$0xff] }
 0x70f   : > { %19698 = vst [vmem:[#allocation29_spill] sm:$0xff] %v18464_v36  ;;  %v18472_v26 = vmax.f32 %v18464_v36, 0.0  ;;  %v13326_v12 = vpop.f32.mrb[88].mxu0  ;;  %v18484_v53 = vld [vmem:[#allocation2 + $0x151] sm:$0xff]  ;;  %v19708_v36 = vld [vmem:[#allocation35_spill] sm:$0xff] }
 0x710   : > { %6617 = vst [vmem:[#allocation2 + $0x190] sm:$0xff] %v6585_v7  ;;  %v18475_v25 = vadd.f32 %v13326_v12, %v19700_v39  ;;  %v6491_v58 = vpop.f32.mrb[89].mxu0  ;;  %v18477_v8 = vld [vmem:[#allocation2 + $0x149] sm:$0xff]  ;;  %v19706_v12 = vld [vmem:[#allocation34_spill] sm:$0xff] }
 0x711   : > { %19699 = vst [vmem:[#allocation44_spill] sm:$0xff] %v18472_v26  ;;  %6616 = vst [vmem:[#allocation2 + $0x188] sm:$0xff] %v18472_v26  ;;  %v18481_v62 = vadd.f32 %v6491_v58, %v19702_v35  ;;  %14032 = vmatprep.mubr.f32.mxu0 %v18477_v8  ;;  %13404 = vmatprep.mubr.f32.mxu1 %v18472_v26  ;;  %v10246_v26 = vld [vmem:[%s19382_s1 + $0xaa8] sm:$0xff] }
 0x712   : > { %19701 = vst [vmem:[#allocation30_spill] sm:$0xff] %v18475_v25  ;;  %v18488_v46 = vmax.f32 %v18475_v25, 0.0  ;;  %14033 = vmatmul.mubr.f32.gmra.mrb[112].mxu0 %v18484_v53  ;;  %13405 = vmatmul.mubr.f32.gmra.mrb[88].mxu1 %v6585_v7 }
 0x713   : > { %19703 = vst [vmem:[#allocation31_spill] sm:$0xff] %v18481_v62  ;;  %v18492_v54 = vmax.f32 %v18481_v62, 0.0  ;;  %v13329_v23 = vpop.f32.mrb[90].mxu0  ;;  %v18505_v7 = vld [vmem:[#allocation2 + $0x171] sm:$0xff] }
 0x714   : > { %19704 = vst [vmem:[#allocation45_spill] sm:$0xff] %v18488_v46  ;;  %6619 = vst [vmem:[#allocation2 + $0x1b0] sm:$0xff] %v18488_v46  ;;  %v18496_v39 = vadd.f32 %v13329_v23, %v19706_v12  ;;  %v6501_v58 = vpop.f32.mrb[91].mxu0  ;;  %v18498_v35 = vld [vmem:[#allocation2 + $0x169] sm:$0xff] }
 0x715   : > { %19705 = vst [vmem:[#allocation46_spill] sm:$0xff] %v18492_v54  ;;  %6618 = vst [vmem:[#allocation2 + $0x1a8] sm:$0xff] %v18492_v54  ;;  %v18502_v25 = vadd.f32 %v6501_v58, %v19708_v36  ;;  %14035 = vmatprep.mubr.f32.mxu0 %v18498_v35  ;;  %13407 = vmatprep.mubr.f32.mxu1 %v18492_v54  ;;  %v19712_v36 = vld [vmem:[#allocation38_spill] sm:$0xff]  ;;  %v18678_v16 = vld [vmem:[#allocation2 + $0x16f] sm:$0xff] }
 0x716   : > { %19707 = vst [vmem:[#allocation34_spill] sm:$0xff] %v18496_v39  ;;  %v18509_v62 = vmax.f32 %v18496_v39, 0.0  ;;  %14036 = vmatmul.mubr.f32.gmra.mrb[114].mxu0 %v18505_v7  ;;  %13408 = vmatmul.mubr.f32.gmra.mrb[90].mxu1 %v18488_v46  ;;  %v19714_v39 = vld [vmem:[#allocation39_spill] sm:$0xff]  ;;  %v10245_v54 = vld [vmem:[%s19382_s1 + $0xaa0] sm:$0xff] }
 0x717   : > { %19709 = vst [vmem:[#allocation35_spill] sm:$0xff] %v18502_v25  ;;  %v18514_v23 = vmax.f32 %v18502_v25, 0.0  ;;  %v13332_v12 = vpop.f32.mrb[92].mxu0  ;;  %v18527_v56 = vld [vmem:[#allocation2 + $0x191] sm:$0xff] }
 0x718   : > { %19710 = vst [vmem:[#allocation47_spill] sm:$0xff] %v18509_v62  ;;  %6621 = vst [vmem:[#allocation2 + $0x1d0] sm:$0xff] %v18509_v62  ;;  %v18518_v58 = vadd.f32 %v13332_v12, %v19712_v36  ;;  %v6511_v63 = vpop.f32.mrb[93].mxu0  ;;  %v18520_v11 = vld [vmem:[#allocation2 + $0x189] sm:$0xff] }
 0x719   : > { %19711 = vst [vmem:[#allocation48_spill] sm:$0xff] %v18514_v23  ;;  %6620 = vst [vmem:[#allocation2 + $0x1c8] sm:$0xff] %v18514_v23  ;;  %v18524_v28 = vadd.f32 %v6511_v63, %v19714_v39  ;;  %14038 = vmatprep.mubr.f32.mxu0 %v18520_v11  ;;  %13410 = vmatprep.mubr.f32.mxu1 %v18514_v23  ;;  %v18681_v55 = vld [vmem:[#allocation2 + $0x187] sm:$0xff]  ;;  %v18684_v40 = vld [vmem:[#allocation2 + $0x18f] sm:$0xff] }
 0x71a   : > { %19713 = vst [vmem:[#allocation38_spill] sm:$0xff] %v18518_v58  ;;  %v18531_v25 = vmax.f32 %v18518_v58, 0.0  ;;  %14039 = vmatmul.mubr.f32.gmra.mrb[116].mxu0 %v18527_v56  ;;  %13411 = vmatmul.mubr.f32.gmra.mrb[92].mxu1 %v18509_v62  ;;  %v10244_v62 = vld [vmem:[%s19382_s1 + $0xa98] sm:$0xff] }
 0x71b   : > { %19715 = vst [vmem:[#allocation39_spill] sm:$0xff] %v18524_v28  ;;  %v18536_v12 = vmax.f32 %v18524_v28, 0.0  ;;  %v13335_v36 = vpop.f32.mrb[94].mxu0  ;;  %v18549_v49 = vld [vmem:[#allocation2 + $0x1b1] sm:$0xff] }
 0x71c   : > { %19716 = vst [vmem:[#allocation49_spill] sm:$0xff] %v18531_v25  ;;  %6623 = vst [vmem:[#allocation2 + $0x1f0] sm:$0xff] %v18531_v25  ;;  %v18540_v63 = vadd.f32 %v13335_v36, %v17508_v34  ;;  %v6521_v39 = vpop.f32.mrb[95].mxu0  ;;  %v18542_v57 = vld [vmem:[#allocation2 + $0x1a9] sm:$0xff]  ;;  %v10228_v36 = vld [vmem:[%s19382_s1 + $0xa18] sm:$0xff] }
 0x71d   : > { %19717 = vst [vmem:[#allocation50_spill] sm:$0xff] %v18536_v12  ;;  %6622 = vst [vmem:[#allocation2 + $0x1e8] sm:$0xff] %v18536_v12  ;;  %v18546_v58 = vadd.f32 %v6521_v39, %v17516_v4  ;;  %14041 = vmatprep.mubr.f32.mxu0 %v18542_v57  ;;  %13413 = vmatprep.mubr.f32.mxu1 %v18536_v12  ;;  %v10227_v34 = vld [vmem:[%s19382_s1 + $0xa10] sm:$0xff]  ;;  %v18687_v17 = vld [vmem:[#allocation2 + $0x1a7] sm:$0xff] }
 0x71e   : > { %19718 = vst [vmem:[#allocation51_spill] sm:$0xff] %v18540_v63  ;;  %v19479_v28 = vmax.f32 %v18540_v63, 0.0  ;;  %14042 = vmatmul.mubr.f32.gmra.mrb[118].mxu0 %v18549_v49  ;;  %13414 = vmatmul.mubr.f32.gmra.mrb[94].mxu1 %v18531_v25  ;;  %v6627_v39 = vld [vmem:[#allocation2 + $0xf] sm:$0xff]  ;;  %v14772_v47 = vpack.c.bf16 %v10228_v36, %v10227_v34 }
 0x71f   : > { %19719 = vst [vmem:[#allocation52_spill] sm:$0xff] %v18546_v58  ;;  %v19480_v4 = vmax.f32 %v18546_v58, 0.0  ;;  %13448 = vmatprep.mubr.f32.mxu1 %v6626_v19  ;;  %v18569_v22 = vld [vmem:[#allocation2 + $0x1d1] sm:$0xff]  ;;  %v10230_v19 = vld [vmem:[%s19382_s1 + $0xa28] sm:$0xff] }
 0x720   : > { %6625 = vst [vmem:[#allocation2 + $0x210] sm:$0xff] %v19479_v28  ;;  %v18564_v48 = vld [vmem:[#allocation2 + $0x1c9] sm:$0xff]  ;;  %v14776_v34 = vpack.c.bf16 %v10230_v19, %v10229_v13  ;;  %v10233_v19 = vld [vmem:[%s19382_s1 + $0xa40] sm:$0xff]  ;;  %v7175_v23 = vld [vmem:[#allocation2 + $0x11] sm:$0xff] }
 0x721   : > { %6624 = vst [vmem:[#allocation2 + $0x208] sm:$0xff] %v19480_v4  ;;  %14044 = vmatprep.mubr.f32.mxu0 %v18564_v48  ;;  %v18578_v28 = vld [vmem:[#allocation2 + $0x27] sm:$0xff]  ;;  %v18582_v36 = vld [vmem:[#allocation2 + $0x2f] sm:$0xff] }
 0x722   : > { %14045 = vmatmul.mubr.f32.gmra.mrb[120].mxu0 %v18569_v22  ;;  %13449 = vmatmul.mubr.f32.vlgmr.msra.gmra.mrb[64].mxu1 %v6627_v39  ;;  %v10231_v4 = vld [vmem:[%s19382_s1 + $0xa30] sm:$0xff]  ;;  %v18591_v39 = vld [vmem:[#allocation2 + $0x47] sm:$0xff] }
 0x723   : > { %13451 = vmatprep.mubr.f32.mxu1 %v18578_v28  ;;  %14771 = vmatpush3.bf16.msra.mxu1 %v18325_v31  ;;  %v14780_v31 = vpack.c.bf16 %v10232_v14, %v10231_v4  ;;  %v18594_v13 = vld [vmem:[#allocation2 + $0x4f] sm:$0xff]  ;;  %v18693_v59 = vld [vmem:[#allocation2 + $0x1c7] sm:$0xff] }
 0x724   : > { %14773 = vmatprep.subr.bf16.mxu1 %v14772_v47  ;;  %v18606_v14 = vld [vmem:[#allocation2 + $0x6f] sm:$0xff]  ;;  %v18699_v63 = vld [vmem:[#allocation2 + $0x1e7] sm:$0xff] }
 0x725   : > { %v10235_v4 = vld [vmem:[%s19382_s1 + $0xa50] sm:$0xff]  ;;  %19721 = vst [vmem:[#allocation54_spill] sm:$0xff] %v18699_v63 }
 0x726   : > { %13452 = vmatmul.mubr.f32.gmra.mrb[66].mxu1 %v18582_v36  ;;  %v18690_v9 = vld [vmem:[#allocation2 + $0x1af] sm:$0xff] }
 0x727   : > { %13454 = vmatprep.mubr.f32.mxu1 %v18591_v39  ;;  %14775 = vmatpush3.bf16.msra.mxu1 %v14772_v47  ;;  %v14784_v47 = vpack.c.bf16 %v10234_v38, %v10233_v19  ;;  %v18618_v38 = vld [vmem:[#allocation2 + $0x8f] sm:$0xff]  ;;  %v10237_v19 = vld [vmem:[%s19382_s1 + $0xa60] sm:$0xff] }
 0x728   : > { %14777 = vmatprep.subr.bf16.mxu1 %v14776_v34  ;;  %v18696_v2 = vld [vmem:[#allocation2 + $0x1cf] sm:$0xff] }
 0x729   : > { %19720 = vst [vmem:[#allocation53_spill] sm:$0xff] %v18696_v2  ;;  %v7174_v58 = vld [vmem:[#allocation2 + $0x9] sm:$0xff] }
 0x72a   : > { %13455 = vmatmul.mubr.f32.gmra.mrb[68].mxu1 %v18594_v13  ;;  %v18702_v25 = vld [vmem:[#allocation2 + $0x1ef] sm:$0xff] }
 0x72b   : > { %13457 = vmatprep.mubr.f32.mxu1 %v18603_v61  ;;  %14779 = vmatpush3.bf16.msra.mxu1 %v14776_v34  ;;  %v14788_v34 = vpack.c.bf16 %v10236_v6, %v10235_v4  ;;  %v18630_v6 = vld [vmem:[#allocation2 + $0xaf] sm:$0xff]  ;;  %19722 = vst [vmem:[#allocation55_spill] sm:$0xff] %v18702_v25 }
 0x72c   : > { %14781 = vmatprep.subr.bf16.mxu1 %v14780_v31  ;;  %v10239_v4 = vld [vmem:[%s19382_s1 + $0xa70] sm:$0xff] }
 0x72d   : > { %v10243_v12 = vld [vmem:[%s19382_s1 + $0xa90] sm:$0xff] }
 0x72e   : > { %13458 = vmatmul.mubr.f32.gmra.mrb[70].mxu1 %v18606_v14  ;;  %v14804_v46 = vpack.c.bf16 %v10244_v62, %v10243_v12  ;;  %v10247_v62 = vld [vmem:[%s19382_s1 + $0xab0] sm:$0xff] }
 0x72f   : > { %13460 = vmatprep.mubr.f32.mxu1 %v18615_v41  ;;  %14783 = vmatpush3.bf16.msra.mxu1 %v14780_v31  ;;  %v14792_v31 = vpack.c.bf16 %v10238_v33, %v10237_v19  ;;  %v18642_v33 = vld [vmem:[#allocation2 + $0xcf] sm:$0xff]  ;;  %v10241_v19 = vld [vmem:[%s19382_s1 + $0xa80] sm:$0xff] }
 0x730   : > { %14785 = vmatprep.subr.bf16.mxu1 %v14784_v47 }
 0x732   : > { %13461 = vmatmul.mubr.f32.gmra.mrb[72].mxu1 %v18618_v38 }
 0x733   : > { %13463 = vmatprep.mubr.f32.mxu1 %v18627_v27  ;;  %14787 = vmatpush3.bf16.msra.mxu1 %v14784_v47  ;;  %v14796_v47 = vpack.c.bf16 %v10240_v32, %v10239_v4  ;;  %v18654_v32 = vld [vmem:[#allocation2 + $0xef] sm:$0xff]  ;;  %v18657_v4 = vld [vmem:[#allocation2 + $0x107] sm:$0xff] }
 0x734   : > { %14789 = vmatprep.subr.bf16.mxu1 %v14788_v34 }
 0x736   : > { %13464 = vmatmul.mubr.f32.gmra.mrb[74].mxu1 %v18630_v6 }
 0x737   : > { %13466 = vmatprep.mubr.f32.mxu1 %v18639_v5  ;;  %14791 = vmatpush3.bf16.msra.mxu1 %v14788_v34  ;;  %v14800_v34 = vpack.c.bf16 %v10242_v51, %v10241_v19  ;;  %v18669_v51 = vld [vmem:[#allocation2 + $0x147] sm:$0xff]  ;;  %v18672_v19 = vld [vmem:[#allocation2 + $0x14f] sm:$0xff] }
 0x738   : > { %14793 = vmatprep.subr.bf16.mxu1 %v14792_v31 }
 0x73a   : > { %13467 = vmatmul.mubr.f32.gmra.mrb[76].mxu1 %v18642_v33 }
 0x73b   : > { %13469 = vmatprep.mubr.f32.mxu1 %v18651_v52  ;;  %14795 = vmatpush3.bf16.msra.mxu1 %v14792_v31  ;;  %v18666_v31 = vld [vmem:[#allocation2 + $0x12f] sm:$0xff] }
 0x73c   : > { %14797 = vmatprep.subr.bf16.mxu1 %v14796_v47 }
 0x73e   : > { %13470 = vmatmul.mubr.f32.gmra.mrb[78].mxu1 %v18654_v32 }
 0x73f   : > { %13472 = vmatprep.mubr.f32.mxu1 %v18657_v4  ;;  %14799 = vmatpush3.bf16.msra.mxu1 %v14796_v47  ;;  %v18675_v47 = vld [vmem:[#allocation2 + $0x167] sm:$0xff] }
 0x740   : > { %14801 = vmatprep.subr.bf16.mxu1 %v14800_v34 }
 0x742   : > { %13473 = vmatmul.mubr.f32.gmra.mrb[80].mxu1 %v18660_v30 }
 0x743   : > { %13475 = vmatprep.mubr.f32.mxu1 %v18663_v18 }
 0x746   : > { %13476 = vmatmul.mubr.f32.gmra.mrb[82].mxu1 %v18666_v31 }
 0x747   : > { %13478 = vmatprep.mubr.f32.mxu1 %v18669_v51 }
 0x74a   : > { %13479 = vmatmul.mubr.f32.gmra.mrb[84].mxu1 %v18672_v19 }
 0x74b   : > { %13481 = vmatprep.mubr.f32.mxu1 %v18675_v47 }
 0x74e   : > { %13482 = vmatmul.mubr.f32.gmra.mrb[86].mxu1 %v18678_v16 }
 0x74f   : > { %13484 = vmatprep.mubr.f32.mxu1 %v18681_v55 }
 0x752   : > { %13485 = vmatmul.mubr.f32.gmra.mrb[88].mxu1 %v18684_v40 }
 0x753   : > { %13487 = vmatprep.mubr.f32.mxu1 %v18687_v17 }
 0x756   : > { %13488 = vmatmul.mubr.f32.gmra.mrb[90].mxu1 %v18690_v9 }
 0x757   : > { %13490 = vmatprep.mubr.f32.mxu1 %v18693_v59 }
 0x75a   : > { %13491 = vmatmul.mubr.f32.gmra.mrb[92].mxu1 %v18696_v2  ;;  %v14808_v2 = vpack.c.bf16 %v10246_v26, %v10245_v54  ;;  %v10249_v26 = vld [vmem:[%s19382_s1 + $0xac0] sm:$0xff]  ;;  %v10250_v54 = vld [vmem:[%s19382_s1 + $0xac8] sm:$0xff] }
 0x75b   : > { %13493 = vmatprep.mubr.f32.mxu1 %v18699_v63  ;;  %v18717_v63 = vld [vmem:[#allocation2 + $0x29] sm:$0xff]  ;;  %v14816_v12 = vpack.c.bf16 %v10250_v54, %v10249_v26 }
 0x75c   : > { %v7786_v26 = vld [vmem:[#allocation2 + $0x28] sm:$0xff] }
 0x75e   : > { %13494 = vmatmul.mubr.f32.gmra.mrb[94].mxu1 %v18702_v25  ;;  %v18720_v25 = vld [vmem:[#allocation2 + $0x31] sm:$0xff] }
 0x75f   : > { %13528 = vmatprep.mubr.f32.mxu1 %v7174_v58  ;;  %v10248_v58 = vld [vmem:[%s19382_s1 + $0xab8] sm:$0xff] }
 0x762   : > { %13529 = vmatmul.mubr.f32.vlgmr.msra.gmra.mrb[64].mxu1 %v7175_v23  ;;  %v14812_v23 = vpack.c.bf16 %v10248_v58, %v10247_v62  ;;  %v10258_v62 = vld [vmem:[%s19382_s1 + $0xb08] sm:$0xff]  ;;  %v10276_v58 = vld [vmem:[%s19382_s1 + $0xb98] sm:$0xff] }
 0x763   : > { %13531 = vmatprep.mubr.f32.mxu1 %v18717_v63  ;;  %14803 = vmatpush3.bf16.msra.mxu1 %v14800_v34  ;;  %v10256_v34 = vld [vmem:[%s19382_s1 + $0xaf8] sm:$0xff] }
 0x764   : > { %14805 = vmatprep.subr.bf16.mxu1 %v14804_v46 }
 0x766   : > { %13532 = vmatmul.mubr.f32.gmra.mrb[66].mxu1 %v18720_v25 }
 0x767   : > { %13534 = vmatprep.mubr.f32.mxu1 %v18363_v50  ;;  %14807 = vmatpush3.bf16.msra.mxu1 %v14804_v46  ;;  %v10251_v50 = vld [vmem:[%s19382_s1 + $0xad0] sm:$0xff]  ;;  %v10252_v46 = vld [vmem:[%s19382_s1 + $0xad8] sm:$0xff] }
 0x768   : > { %14809 = vmatprep.subr.bf16.mxu1 %v14808_v2 }
 0x76a   : > { %13535 = vmatmul.mubr.f32.gmra.mrb[68].mxu1 %v18369_v21  ;;  %v14820_v21 = vpack.c.bf16 %v10252_v46, %v10251_v50  ;;  %v7787_v50 = vld [vmem:[#allocation2 + $0x30] sm:$0xff]  ;;  %v10277_v46 = vld [vmem:[%s19382_s1 + $0xba0] sm:$0xff] }
 0x76b   : > { %13537 = vmatprep.mubr.f32.mxu1 %v18377_v1  ;;  %14811 = vmatpush3.bf16.msra.mxu1 %v14808_v2  ;;  %v10253_v2 = vld [vmem:[%s19382_s1 + $0xae0] sm:$0xff]  ;;  %v10254_v1 = vld [vmem:[%s19382_s1 + $0xae8] sm:$0xff] }
 0x76c   : > { %14813 = vmatprep.subr.bf16.mxu1 %v14812_v23 }
 0x76e   : > { %13538 = vmatmul.mubr.f32.gmra.mrb[70].mxu1 %v18383_v20  ;;  %v14824_v20 = vpack.c.bf16 %v10254_v1, %v10253_v2  ;;  %v18919_v1 = vld [vmem:[#allocation2 + $0x48] sm:$0xff] }
 0x76f   : > { %13540 = vmatprep.mubr.f32.mxu1 %v18391_v42  ;;  %14815 = vmatpush3.bf16.msra.mxu1 %v14812_v23  ;;  %v10255_v42 = vld [vmem:[%s19382_s1 + $0xaf0] sm:$0xff] }
 0x770   : > { %14817 = vmatprep.subr.bf16.mxu1 %v14816_v12 }
 0x772   : > { %13541 = vmatmul.mubr.f32.gmra.mrb[72].mxu1 %v18397_v45  ;;  %v14828_v45 = vpack.c.bf16 %v10256_v34, %v10255_v42  ;;  %v18924_v34 = vld [vmem:[#allocation2 + $0x50] sm:$0xff] }
 0x773   : > { %13543 = vmatprep.mubr.f32.mxu1 %v18405_v43  ;;  %14819 = vmatpush3.bf16.msra.mxu1 %v14816_v12  ;;  %v10257_v43 = vld [vmem:[%s19382_s1 + $0xb00] sm:$0xff] }
 0x774   : > { %14821 = vmatprep.subr.bf16.mxu1 %v14820_v21 }
 0x776   : > { %13544 = vmatmul.mubr.f32.gmra.mrb[74].mxu1 %v18411_v44  ;;  %v14832_v44 = vpack.c.bf16 %v10258_v62, %v10257_v43  ;;  %v10280_v43 = vld [vmem:[%s19382_s1 + $0xbb8] sm:$0xff] }
 0x777   : > { %13546 = vmatprep.mubr.f32.mxu1 %v18419_v24  ;;  %14823 = vmatpush3.bf16.msra.mxu1 %v14820_v21  ;;  %v18785_v24 = vld [vmem:[#allocation2 + $0x1e9] sm:$0xff] }
 0x778   : > { %14825 = vmatprep.subr.bf16.mxu1 %v14824_v20  ;;  %v10278_v21 = vld [vmem:[%s19382_s1 + $0xba8] sm:$0xff] }
 0x77a   : > { %13547 = vmatmul.mubr.f32.gmra.mrb[76].mxu1 %v18425_v10  ;;  %v18788_v10 = vld [vmem:[#allocation2 + $0x1f1] sm:$0xff] }
 0x77b   : > { %13549 = vmatprep.mubr.f32.mxu1 %v18433_v29  ;;  %14827 = vmatpush3.bf16.msra.mxu1 %v14824_v20  ;;  %v10259_v29 = vld [vmem:[%s19382_s1 + $0xb10] sm:$0xff]  ;;  %v14872_v20 = vpack.c.bf16 %v10278_v21, %v10277_v46  ;;  %v19011_v46 = vld [vmem:[#allocation2 + $0x108] sm:$0xff] }
 0x77c   : > { %14829 = vmatprep.subr.bf16.mxu1 %v14828_v45 }
 0x77e   : > { %13550 = vmatmul.mubr.f32.gmra.mrb[78].mxu1 %v18439_v15  ;;  %v10263_v15 = vld [vmem:[%s19382_s1 + $0xb30] sm:$0xff] }
 0x77f   : > { %13552 = vmatprep.mubr.f32.mxu1 %v18447_v60  ;;  %14831 = vmatpush3.bf16.msra.mxu1 %v14828_v45  ;;  %v10279_v45 = vld [vmem:[%s19382_s1 + $0xbb0] sm:$0xff] }
 0x780   : > { %14833 = vmatprep.subr.bf16.mxu1 %v14832_v44 }
 0x782   : > { %13553 = vmatmul.mubr.f32.gmra.mrb[80].mxu1 %v18453_v0  ;;  %v10266_v0 = vld [vmem:[%s19382_s1 + $0xb48] sm:$0xff] }
 0x783   : > { %13555 = vmatprep.mubr.f32.mxu1 %v18461_v37 }
 0x786   : > { %13556 = vmatmul.mubr.f32.gmra.mrb[82].mxu1 %v18467_v3  ;;  %v10268_v3 = vld [vmem:[%s19382_s1 + $0xb58] sm:$0xff] }
 0x787   : > { %13558 = vmatprep.mubr.f32.mxu1 %v18477_v8 }
 0x78a   : > { %13559 = vmatmul.mubr.f32.gmra.mrb[84].mxu1 %v18484_v53  ;;  %v10270_v53 = vld [vmem:[%s19382_s1 + $0xb68] sm:$0xff] }
 0x78b   : > { %13561 = vmatprep.mubr.f32.mxu1 %v18498_v35 }
 0x78e   : > { %13562 = vmatmul.mubr.f32.gmra.mrb[86].mxu1 %v18505_v7  ;;  %v10272_v7 = vld [vmem:[%s19382_s1 + $0xb78] sm:$0xff] }
 0x78f   : > { %13564 = vmatprep.mubr.f32.mxu1 %v18520_v11  ;;  %v10265_v11 = vld [vmem:[%s19382_s1 + $0xb40] sm:$0xff] }
 0x790   : > { %v14848_v37 = vpack.c.bf16 %v10266_v0, %v10265_v11  ;;  %v18956_v11 = vld [vmem:[#allocation2 + $0x90] sm:$0xff] }
 0x791   : > { %v10283_v0 = vld [vmem:[%s19382_s1 + $0xbd0] sm:$0xff] }
 0x792   : > { %13565 = vmatmul.mubr.f32.gmra.mrb[88].mxu1 %v18527_v56 }
 0x793   : > { %13567 = vmatprep.mubr.f32.mxu1 %v18542_v57  ;;  %v10260_v57 = vld [vmem:[%s19382_s1 + $0xb18] sm:$0xff] }
 0x796   : > { %13568 = vmatmul.mubr.f32.gmra.mrb[90].mxu1 %v18549_v49  ;;  %v10262_v49 = vld [vmem:[%s19382_s1 + $0xb28] sm:$0xff] }
 0x797   : > { %13570 = vmatprep.mubr.f32.mxu1 %v18564_v48  ;;  %v14836_v48 = vpack.c.bf16 %v10260_v57, %v10259_v29  ;;  %v14876_v29 = vpack.c.bf16 %v10280_v43, %v10279_v45  ;;  %v19017_v45 = vld [vmem:[#allocation2 + $0x128] sm:$0xff]  ;;  %v19020_v43 = vld [vmem:[#allocation2 + $0x130] sm:$0xff] }
 0x79a   : > { %13571 = vmatmul.mubr.f32.gmra.mrb[92].mxu1 %v18569_v22  ;;  %v10261_v22 = vld [vmem:[%s19382_s1 + $0xb20] sm:$0xff] }
 0x79b   : > { %13573 = vmatprep.mubr.f32.mxu1 %v18785_v24  ;;  %v14840_v56 = vpack.c.bf16 %v10262_v49, %v10261_v22  ;;  %v10281_v22 = vld [vmem:[%s19382_s1 + $0xbc0] sm:$0xff]  ;;  %v10282_v49 = vld [vmem:[%s19382_s1 + $0xbc8] sm:$0xff] }
 0x79e   : > { %13574 = vmatmul.mubr.f32.gmra.mrb[94].mxu1 %v18788_v10 }
 0x79f   : > { %13608 = vmatprep.mubr.f32.mxu1 %v18578_v28  ;;  %v10264_v28 = vld [vmem:[%s19382_s1 + $0xb38] sm:$0xff] }
 0x7a0   : > { %v14844_v60 = vpack.c.bf16 %v10264_v28, %v10263_v15  ;;  %v18951_v15 = vld [vmem:[#allocation2 + $0x88] sm:$0xff]  ;;  %v14880_v28 = vpack.c.bf16 %v10282_v49, %v10281_v22  ;;  %v19026_v22 = vld [vmem:[#allocation2 + $0x150] sm:$0xff] }
 0x7a1   : > { %v19029_v49 = vld [vmem:[#allocation2 + $0x168] sm:$0xff] }
 0x7a2   : > { %13609 = vmatmul.mubr.f32.vlgmr.msra.gmra.mrb[64].mxu1 %v18582_v36 }
 0x7a3   : > { %13611 = vmatprep.mubr.f32.mxu1 %v18591_v39  ;;  %14835 = vmatpush3.bf16.msra.mxu1 %v14832_v44  ;;  %v10274_v39 = vld [vmem:[%s19382_s1 + $0xb88] sm:$0xff] }
 0x7a4   : > { %14837 = vmatprep.subr.bf16.mxu1 %v14836_v48  ;;  %v18935_v44 = vld [vmem:[#allocation2 + $0x68] sm:$0xff] }
 0x7a6   : > { %13612 = vmatmul.mubr.f32.gmra.mrb[66].mxu1 %v18594_v13 }
 0x7a7   : > { %13614 = vmatprep.mubr.f32.mxu1 %v18603_v61  ;;  %14839 = vmatpush3.bf16.msra.mxu1 %v14836_v48  ;;  %v10267_v61 = vld [vmem:[%s19382_s1 + $0xb50] sm:$0xff] }
 0x7a8   : > { %14841 = vmatprep.subr.bf16.mxu1 %v14840_v56  ;;  %v14852_v8 = vpack.c.bf16 %v10268_v3, %v10267_v61  ;;  %v18940_v48 = vld [vmem:[#allocation2 + $0x70] sm:$0xff]  ;;  %v18967_v3 = vld [vmem:[#allocation2 + $0xa8] sm:$0xff] }
 0x7aa   : > { %13615 = vmatmul.mubr.f32.gmra.mrb[68].mxu1 %v18606_v14 }
 0x7ab   : > { %13617 = vmatprep.mubr.f32.mxu1 %v18615_v41  ;;  %14843 = vmatpush3.bf16.msra.mxu1 %v14840_v56  ;;  %v10269_v41 = vld [vmem:[%s19382_s1 + $0xb60] sm:$0xff] }
 0x7ac   : > { %14845 = vmatprep.subr.bf16.mxu1 %v14844_v60  ;;  %v14856_v35 = vpack.c.bf16 %v10270_v53, %v10269_v41  ;;  %v18972_v53 = vld [vmem:[#allocation2 + $0xb0] sm:$0xff] }
 0x7ae   : > { %13618 = vmatmul.mubr.f32.gmra.mrb[70].mxu1 %v18618_v38 }
 0x7af   : > { %13620 = vmatprep.mubr.f32.mxu1 %v18627_v27  ;;  %14847 = vmatpush3.bf16.msra.mxu1 %v14844_v60  ;;  %v10271_v27 = vld [vmem:[%s19382_s1 + $0xb70] sm:$0xff] }
 0x7b0   : > { %14849 = vmatprep.subr.bf16.mxu1 %v14848_v37  ;;  %v14860_v36 = vpack.c.bf16 %v10272_v7, %v10271_v27  ;;  %v10286_v27 = vld [vmem:[%s19382_s1 + $0xbe8] sm:$0xff] }
 0x7b2   : > { %13621 = vmatmul.mubr.f32.gmra.mrb[72].mxu1 %v18630_v6 }
 0x7b3   : > { %13623 = vmatprep.mubr.f32.mxu1 %v18639_v5  ;;  %14851 = vmatpush3.bf16.msra.mxu1 %v14848_v37  ;;  %v10273_v5 = vld [vmem:[%s19382_s1 + $0xb80] sm:$0xff]  ;;  %v10284_v37 = vld [vmem:[%s19382_s1 + $0xbd8] sm:$0xff] }
 0x7b4   : > { %14853 = vmatprep.subr.bf16.mxu1 %v14852_v8  ;;  %v14864_v13 = vpack.c.bf16 %v10274_v39, %v10273_v5 }
 0x7b6   : > { %13624 = vmatmul.mubr.f32.gmra.mrb[74].mxu1 %v18642_v33 }
 0x7b7   : > { %13626 = vmatprep.mubr.f32.mxu1 %v18651_v52  ;;  %14855 = vmatpush3.bf16.msra.mxu1 %v14852_v8  ;;  %v14884_v8 = vpack.c.bf16 %v10284_v37, %v10283_v0  ;;  %v19728_v0 = vld [vmem:[#allocation44_spill] sm:$0xff] }
 0x7b8   : > { %14857 = vmatprep.subr.bf16.mxu1 %v14856_v35  ;;  %v19036_v37 = vld [vmem:[#allocation2 + $0x190] sm:$0xff] }
 0x7ba   : > { %13627 = vmatmul.mubr.f32.gmra.mrb[76].mxu1 %v18654_v32 }
 0x7bb   : > { %13629 = vmatprep.mubr.f32.mxu1 %v18657_v4  ;;  %14859 = vmatpush3.bf16.msra.mxu1 %v14856_v35  ;;  %v10285_v35 = vld [vmem:[%s19382_s1 + $0xbe0] sm:$0xff] }
 0x7bc   : > { %14861 = vmatprep.subr.bf16.mxu1 %v14860_v36  ;;  %v14888_v5 = vpack.c.bf16 %v10286_v27, %v10285_v35  ;;  %v19730_v35 = vld [vmem:[#allocation45_spill] sm:$0xff]  ;;  %v19731_v27 = vld [vmem:[#allocation48_spill] sm:$0xff] }
 0x7be   : > { %13630 = vmatmul.mubr.f32.gmra.mrb[78].mxu1 %v18660_v30 }
 0x7bf   : > { %13632 = vmatprep.mubr.f32.mxu1 %v18663_v18  ;;  %14863 = vmatpush3.bf16.msra.mxu1 %v14860_v36  ;;  %v18983_v36 = vld [vmem:[#allocation2 + $0xc8] sm:$0xff] }
 0x7c0   : > { %14865 = vmatprep.subr.bf16.mxu1 %v14864_v13 }
 0x7c2   : > { %13633 = vmatmul.mubr.f32.gmra.mrb[80].mxu1 %v18666_v31  ;;  %v19724_v31 = vld [vmem:[#allocation54_spill] sm:$0xff] }
 0x7c3   : > { %13635 = vmatprep.mubr.f32.mxu1 %v18669_v51 }
 0x7c5   : > { %v18858_v52 = vpop.f32.mrb[96].mxu0 }
 0x7c6   : > { %v18860_v14 = vpop.f32.mrb[97].mxu0  ;;  %13636 = vmatmul.mubr.f32.gmra.mrb[82].mxu1 %v18672_v19  ;;  %v18893_v19 = vld [vmem:[#allocation2 + $0x207] sm:$0xff] }
 0x7c7   : > { %13638 = vmatprep.mubr.f32.mxu1 %v18675_v47  ;;  %v10275_v47 = vld [vmem:[%s19382_s1 + $0xb90] sm:$0xff] }
 0x7c8   : > { %v14868_v54 = vpack.c.bf16 %v10276_v58, %v10275_v47  ;;  %v18999_v47 = vld [vmem:[#allocation2 + $0xe8] sm:$0xff] }
 0x7c9   : > { %v18864_v38 = vpop.f32.mrb[98].mxu0 }
 0x7ca   : > { %v18866_v6 = vpop.f32.mrb[99].mxu0  ;;  %13639 = vmatmul.mubr.f32.gmra.mrb[84].mxu1 %v18678_v16 }
 0x7cb   : > { %13641 = vmatprep.mubr.f32.mxu1 %v18681_v55  ;;  %v19723_v55 = vld [vmem:[#allocation53_spill] sm:$0xff] }
 0x7cd   : > { %v18870_v18 = vpop.f32.mrb[100].mxu0 }
 0x7ce   : > { %v18872_v30 = vpop.f32.mrb[101].mxu0  ;;  %13642 = vmatmul.mubr.f32.gmra.mrb[86].mxu1 %v18684_v40 }
 0x7cf   : > { %13644 = vmatprep.mubr.f32.mxu1 %v18687_v17  ;;  %v19725_v17 = vld [vmem:[#allocation55_spill] sm:$0xff] }
 0x7d1   : > { %v18876_v33 = vpop.f32.mrb[102].mxu0 }
 0x7d2   : > { %v18878_v32 = vpop.f32.mrb[103].mxu0  ;;  %13645 = vmatmul.mubr.f32.gmra.mrb[88].mxu1 %v18690_v9 }
 0x7d3   : > { %13647 = vmatprep.mubr.f32.mxu1 %v18693_v59  ;;  %v18898_v59 = vld [vmem:[#allocation2 + $0x20f] sm:$0xff] }
 0x7d5   : > { %v18882_v4 = vpop.f32.mrb[104].mxu0 }
 0x7d6   : > { %v18884_v16 = vpop.f32.mrb[105].mxu0  ;;  %13648 = vmatmul.mubr.f32.gmra.mrb[90].mxu1 %v19723_v55  ;;  %v10287_v55 = vld [vmem:[%s19382_s1 + $0xbf0] sm:$0xff] }
 0x7d7   : > { %13650 = vmatprep.mubr.f32.mxu1 %v19724_v31  ;;  %v10288_v31 = vld [vmem:[%s19382_s1 + $0xbf8] sm:$0xff] }
 0x7d8   : > { %v14892_v58 = vpack.c.bf16 %v10288_v31, %v10287_v55  ;;  %v19733_v55 = vld [vmem:[#allocation50_spill] sm:$0xff]  ;;  %v19734_v31 = vld [vmem:[#allocation49_spill] sm:$0xff] }
 0x7d9   : > { %v18888_v51 = vpop.f32.mrb[106].mxu0 }
 0x7da   : > { %v18890_v40 = vpop.f32.mrb[107].mxu0  ;;  %13651 = vmatmul.mubr.f32.gmra.mrb[92].mxu1 %v19725_v17 }
 0x7db   : > { %13653 = vmatprep.mubr.f32.mxu1 %v18893_v19 }
 0x7dd   : > { %v18896_v9 = vpop.f32.mrb[108].mxu0 }
 0x7de   : > { %v18906_v23 = vpop.f32.mrb[109].mxu0  ;;  %13654 = vmatmul.mubr.f32.gmra.mrb[94].mxu1 %v18898_v59 }
 0x7df   : > { %13688 = vmatprep.mubr.f32.mxu1 %v7786_v26  ;;  %v19002_v26 = vld [vmem:[#allocation2 + $0xf0] sm:$0xff] }
 0x7e1   : > { %v18909_v12 = vpop.f32.mrb[110].mxu0 }
 0x7e2   : > { %v18917_v2 = vpop.f32.mrb[111].mxu0  ;;  %13689 = vmatmul.mubr.f32.vlgmr.msra.gmra.mrb[64].mxu1 %v7787_v50  ;;  %v10290_v50 = vld [vmem:[%s19382_s1 + $0xc08] sm:$0xff] }
 0x7e3   : > { %13691 = vmatprep.mubr.f32.mxu1 %v18919_v1  ;;  %14867 = vmatpush3.bf16.msra.mxu1 %v14864_v13  ;;  %v18988_v13 = vld [vmem:[#allocation2 + $0xd0] sm:$0xff] }
 0x7e4   : > { %14869 = vmatprep.subr.bf16.mxu1 %v14868_v54 }
 0x7e5   : > { %v18922_v42 = vpop.f32.mrb[112].mxu0 }
 0x7e6   : > { %v18932_v62 = vpop.f32.mrb[113].mxu0  ;;  %13692 = vmatmul.mubr.f32.gmra.mrb[66].mxu1 %v18924_v34 }
 0x7e7   : > { %13694 = vmatprep.mubr.f32.mxu1 %v18935_v44  ;;  %14871 = vmatpush3.bf16.msra.mxu1 %v14868_v54  ;;  %v10289_v54 = vld [vmem:[%s19382_s1 + $0xc00] sm:$0xff] }
 0x7e8   : > { %14873 = vmatprep.subr.bf16.mxu1 %v14872_v20  ;;  %v14896_v21 = vpack.c.bf16 %v10290_v50, %v10289_v54  ;;  %v10291_v50 = vld [vmem:[%s19382_s1 + $0xc10] sm:$0xff] }
 0x7e9   : > { %v18938_v57 = vpop.f32.mrb[114].mxu0 }
 0x7ea   : > { %v18948_v56 = vpop.f32.mrb[115].mxu0  ;;  %13695 = vmatmul.mubr.f32.gmra.mrb[68].mxu1 %v18940_v48 }
 0x7eb   : > { %13697 = vmatprep.mubr.f32.mxu1 %v18951_v15  ;;  %14875 = vmatpush3.bf16.msra.mxu1 %v14872_v20  ;;  %v19014_v20 = vld [vmem:[#allocation2 + $0x110] sm:$0xff] }
 0x7ec   : > { %14877 = vmatprep.subr.bf16.mxu1 %v14876_v29 }
 0x7ed   : > { %v18954_v60 = vpop.f32.mrb[116].mxu0 }
 0x7ee   : > { %v18964_v61 = vpop.f32.mrb[117].mxu0  ;;  %13698 = vmatmul.mubr.f32.gmra.mrb[70].mxu1 %v18956_v11 }
 0x7ef   : > { %13700 = vmatprep.mubr.f32.mxu1 %v18967_v3  ;;  %14879 = vmatpush3.bf16.msra.mxu1 %v14876_v29  ;;  %v19023_v29 = vld [vmem:[#allocation2 + $0x148] sm:$0xff] }
 0x7f0   : > { %14881 = vmatprep.subr.bf16.mxu1 %v14880_v28 }
 0x7f1   : > { %v18970_v41 = vpop.f32.mrb[118].mxu0 }
 0x7f2   : > { %v18980_v7 = vpop.f32.mrb[119].mxu0  ;;  %13701 = vmatmul.mubr.f32.gmra.mrb[72].mxu1 %v18972_v53 }
 0x7f3   : > { %13703 = vmatprep.mubr.f32.mxu1 %v18983_v36  ;;  %14883 = vmatpush3.bf16.msra.mxu1 %v14880_v28  ;;  %v19032_v28 = vld [vmem:[#allocation2 + $0x170] sm:$0xff] }
 0x7f4   : > { %14885 = vmatprep.subr.bf16.mxu1 %v14884_v8 }
 0x7f5   : > { %v18986_v39 = vpop.f32.mrb[120].mxu0 }
 0x7f6   : > { %19726 = vst [vmem:[#allocation53_spill] sm:$0xff] %v18986_v39  ;;  %v18996_v17 = vpop.f32.mrb[121].mxu0  ;;  %13704 = vmatmul.mubr.f32.gmra.mrb[74].mxu1 %v18988_v13  ;;  %v10316_v39 = vld [vmem:[%s19382_s1 + $0xcd8] sm:$0xff] }
 0x7f7   : > { %19727 = vst [vmem:[#allocation54_spill] sm:$0xff] %v18996_v17  ;;  %13706 = vmatprep.mubr.f32.mxu1 %v18999_v47  ;;  %14887 = vmatpush3.bf16.msra.mxu1 %v14884_v8  ;;  %v19729_v8 = vld [vmem:[#allocation46_spill] sm:$0xff]  ;;  %v10315_v17 = vld [vmem:[%s19382_s1 + $0xcd0] sm:$0xff] }
 0x7f8   : > { %14889 = vmatprep.subr.bf16.mxu1 %v14888_v5 }
 0x7fa   : > { %13707 = vmatmul.mubr.f32.gmra.mrb[76].mxu1 %v19002_v26 }
 0x7fb   : > { %13709 = vmatprep.mubr.f32.mxu1 %v19011_v46  ;;  %14891 = vmatpush3.bf16.msra.mxu1 %v14888_v5  ;;  %v19732_v5 = vld [vmem:[#allocation47_spill] sm:$0xff] }
 0x7fc   : > { %14893 = vmatprep.subr.bf16.mxu1 %v14892_v58 }
 0x7fe   : > { %13710 = vmatmul.mubr.f32.gmra.mrb[78].mxu1 %v19014_v20 }
 0x7ff   : > { %13712 = vmatprep.mubr.f32.mxu1 %v19017_v45  ;;  %14895 = vmatpush3.bf16.msra.mxu1 %v14892_v58  ;;  %v19735_v58 = vld [vmem:[#allocation52_spill] sm:$0xff] }
 0x800   : > { %14897 = vmatprep.subr.bf16.mxu1 %v14896_v21  ;;  %v19736_v54 = vmax.f32 %v19735_v58, 0.0  ;;  %v8095_v58 = vld [vmem:[#allocation2 + $0x51] sm:$0xff] }
 0x802   : > { %13713 = vmatmul.mubr.f32.gmra.mrb[80].mxu1 %v19020_v43 }
 0x803   : > { %13715 = vmatprep.mubr.f32.mxu1 %v19023_v29 }
 0x806   : > { %13716 = vmatmul.mubr.f32.gmra.mrb[82].mxu1 %v19026_v22 }
 0x807   : > { %13718 = vmatprep.mubr.f32.mxu1 %v19029_v49 }
 0x80a   : > { %13719 = vmatmul.mubr.f32.gmra.mrb[84].mxu1 %v19032_v28 }
 0x80b   : > { %13721 = vmatprep.mubr.f32.mxu1 %v19728_v0  ;;  %v10292_v0 = vld [vmem:[%s19382_s1 + $0xc18] sm:$0xff] }
 0x80e   : > { %13722 = vmatmul.mubr.f32.gmra.mrb[86].mxu1 %v19036_v37 }
 0x80f   : > { %13724 = vmatprep.mubr.f32.mxu1 %v19729_v8  ;;  %v19737_v8 = vld [vmem:[#allocation51_spill] sm:$0xff] }
 0x812   : > { %13725 = vmatmul.mubr.f32.gmra.mrb[88].mxu1 %v19730_v35  ;;  %v19738_v35 = vmax.f32 %v19737_v8, 0.0  ;;  %v8112_v8 = vld [vmem:[#allocation2 + $0x169] sm:$0xff] }
 0x813   : > { %13727 = vmatprep.mubr.f32.mxu1 %v19731_v27  ;;  %v14900_v27 = vpack.c.bf16 %v10292_v0, %v10291_v50  ;;  %v10296_v50 = vld [vmem:[%s19382_s1 + $0xc38] sm:$0xff]  ;;  %v8096_v0 = vld [vmem:[#allocation2 + $0x69] sm:$0xff] }
 0x816   : > { %13728 = vmatmul.mubr.f32.gmra.mrb[90].mxu1 %v19732_v5  ;;  %v10293_v5 = vld [vmem:[%s19382_s1 + $0xc20] sm:$0xff] }
 0x817   : > { %13730 = vmatprep.mubr.f32.mxu1 %v19733_v55  ;;  %v10294_v55 = vld [vmem:[%s19382_s1 + $0xc28] sm:$0xff] }
 0x81a   : > { %13731 = vmatmul.mubr.f32.gmra.mrb[92].mxu1 %v19734_v31  ;;  %v8094_v31 = vld [vmem:[#allocation2 + $0x49] sm:$0xff] }
 0x81b   : > { %13733 = vmatprep.mubr.f32.mxu1 %v19736_v54  ;;  %v14904_v54 = vpack.c.bf16 %v10294_v55, %v10293_v5  ;;  %v10298_v5 = vld [vmem:[%s19382_s1 + $0xc48] sm:$0xff] }
 0x81c   : > { %v8098_v55 = vld [vmem:[#allocation2 + $0x89] sm:$0xff] }
 0x81e   : > { %13734 = vmatmul.mubr.f32.gmra.mrb[94].mxu1 %v19738_v35  ;;  %v8097_v35 = vld [vmem:[#allocation2 + $0x71] sm:$0xff] }
 0x81f   : > { %13768 = vmatprep.mubr.f32.mxu1 %v18717_v63  ;;  %v10295_v63 = vld [vmem:[%s19382_s1 + $0xc30] sm:$0xff] }
 0x822   : > { %13769 = vmatmul.mubr.f32.vlgmr.msra.gmra.mrb[64].mxu1 %v18720_v25  ;;  %v14908_v25 = vpack.c.bf16 %v10296_v50, %v10295_v63  ;;  %v10300_v63 = vld [vmem:[%s19382_s1 + $0xc58] sm:$0xff]  ;;  %v8100_v50 = vld [vmem:[#allocation2 + $0xa9] sm:$0xff] }
 0x823   : > { %13771 = vmatprep.mubr.f32.mxu1 %v8094_v31  ;;  %14899 = vmatpush3.bf16.msra.mxu1 %v14896_v21  ;;  %v10297_v21 = vld [vmem:[%s19382_s1 + $0xc40] sm:$0xff]  ;;  %v8099_v31 = vld [vmem:[#allocation2 + $0x91] sm:$0xff] }
 0x824   : > { %14901 = vmatprep.subr.bf16.mxu1 %v14900_v27 }
 0x826   : > { %13772 = vmatmul.mubr.f32.gmra.mrb[66].mxu1 %v8095_v58  ;;  %v14912_v58 = vpack.c.bf16 %v10298_v5, %v10297_v21  ;;  %v10302_v21 = vld [vmem:[%s19382_s1 + $0xc68] sm:$0xff] }
 0x827   : > { %13774 = vmatprep.mubr.f32.mxu1 %v8096_v0  ;;  %14903 = vmatpush3.bf16.msra.mxu1 %v14900_v27  ;;  %v10299_v27 = vld [vmem:[%s19382_s1 + $0xc50] sm:$0xff] }
 0x828   : > { %14905 = vmatprep.subr.bf16.mxu1 %v14904_v54  ;;  %v14916_v0 = vpack.c.bf16 %v10300_v63, %v10299_v27  ;;  %v8102_v5 = vld [vmem:[#allocation2 + $0xc9] sm:$0xff]  ;;  %v10304_v27 = vld [vmem:[%s19382_s1 + $0xc78] sm:$0xff] }
 0x829   : > { %v8104_v63 = vld [vmem:[#allocation2 + $0xe9] sm:$0xff] }
 0x82a   : > { %13775 = vmatmul.mubr.f32.gmra.mrb[68].mxu1 %v8097_v35  ;;  %v8101_v35 = vld [vmem:[#allocation2 + $0xb1] sm:$0xff] }
 0x82b   : > { %13777 = vmatprep.mubr.f32.mxu1 %v8098_v55  ;;  %14907 = vmatpush3.bf16.msra.mxu1 %v14904_v54  ;;  %v10301_v54 = vld [vmem:[%s19382_s1 + $0xc60] sm:$0xff] }
 0x82c   : > { %14909 = vmatprep.subr.bf16.mxu1 %v14908_v25  ;;  %v14920_v55 = vpack.c.bf16 %v10302_v21, %v10301_v54  ;;  %v10306_v54 = vld [vmem:[%s19382_s1 + $0xc88] sm:$0xff] }
 0x82d   : > { %v8106_v21 = vld [vmem:[#allocation2 + $0x109] sm:$0xff] }
 0x82e   : > { %13778 = vmatmul.mubr.f32.gmra.mrb[70].mxu1 %v8099_v31  ;;  %v8103_v31 = vld [vmem:[#allocation2 + $0xd1] sm:$0xff] }
 0x82f   : > { %13780 = vmatprep.mubr.f32.mxu1 %v8100_v50  ;;  %14911 = vmatpush3.bf16.msra.mxu1 %v14908_v25  ;;  %v10303_v25 = vld [vmem:[%s19382_s1 + $0xc70] sm:$0xff] }
 0x830   : > { %14913 = vmatprep.subr.bf16.mxu1 %v14912_v58  ;;  %v14924_v50 = vpack.c.bf16 %v10304_v27, %v10303_v25  ;;  %v8109_v25 = vld [vmem:[#allocation2 + $0x131] sm:$0xff]  ;;  %v8110_v27 = vld [vmem:[#allocation2 + $0x149] sm:$0xff] }
 0x832   : > { %13781 = vmatmul.mubr.f32.gmra.mrb[72].mxu1 %v8101_v35  ;;  %v8105_v35 = vld [vmem:[#allocation2 + $0xf1] sm:$0xff] }
 0x833   : > { %13783 = vmatprep.mubr.f32.mxu1 %v8102_v5  ;;  %14915 = vmatpush3.bf16.msra.mxu1 %v14912_v58  ;;  %v10305_v58 = vld [vmem:[%s19382_s1 + $0xc80] sm:$0xff] }
 0x834   : > { %14917 = vmatprep.subr.bf16.mxu1 %v14916_v0  ;;  %v14928_v5 = vpack.c.bf16 %v10306_v54, %v10305_v58  ;;  %v8116_v58 = vld [vmem:[#allocation2 + $0x1a9] sm:$0xff]  ;;  %v8117_v54 = vld [vmem:[#allocation2 + $0x1b1] sm:$0xff] }
 0x836   : > { %13784 = vmatmul.mubr.f32.gmra.mrb[74].mxu1 %v8103_v31  ;;  %v8107_v31 = vld [vmem:[#allocation2 + $0x111] sm:$0xff] }
 0x837   : > { %13786 = vmatprep.mubr.f32.mxu1 %v8104_v63  ;;  %14919 = vmatpush3.bf16.msra.mxu1 %v14916_v0  ;;  %v8108_v0 = vld [vmem:[#allocation2 + $0x129] sm:$0xff]  ;;  %v8111_v63 = vld [vmem:[#allocation2 + $0x151] sm:$0xff] }
 0x838   : > { %14921 = vmatprep.subr.bf16.mxu1 %v14920_v55 }
 0x83a   : > { %13787 = vmatmul.mubr.f32.gmra.mrb[76].mxu1 %v8105_v35  ;;  %v8113_v35 = vld [vmem:[#allocation2 + $0x171] sm:$0xff] }
 0x83b   : > { %13789 = vmatprep.mubr.f32.mxu1 %v8106_v21  ;;  %14923 = vmatpush3.bf16.msra.mxu1 %v14920_v55  ;;  %v8114_v21 = vld [vmem:[#allocation2 + $0x189] sm:$0xff]  ;;  %v8115_v55 = vld [vmem:[#allocation2 + $0x191] sm:$0xff] }
 0x83c   : > { %14925 = vmatprep.subr.bf16.mxu1 %v14924_v50 }
 0x83e   : > { %13790 = vmatmul.mubr.f32.gmra.mrb[78].mxu1 %v8107_v31  ;;  %v8119_v31 = vld [vmem:[#allocation2 + $0x1d1] sm:$0xff] }
 0x83f   : > { %13792 = vmatprep.mubr.f32.mxu1 %v8108_v0  ;;  %14927 = vmatpush3.bf16.msra.mxu1 %v14924_v50  ;;  %v8118_v50 = vld [vmem:[#allocation2 + $0x1c9] sm:$0xff] }
 0x840   : > { %14929 = vmatprep.subr.bf16.mxu1 %v14928_v5  ;;  %v19101_v0 = vld [vmem:[#allocation2 + $0x209] sm:$0xff] }
 0x842   : > { %13793 = vmatmul.mubr.f32.gmra.mrb[80].mxu1 %v8109_v25  ;;  %v10307_v25 = vld [vmem:[%s19382_s1 + $0xc90] sm:$0xff] }
 0x843   : > { %13795 = vmatprep.mubr.f32.mxu1 %v8110_v27  ;;  %v10308_v27 = vld [vmem:[%s19382_s1 + $0xc98] sm:$0xff] }
 0x846   : > { %13796 = vmatmul.mubr.f32.gmra.mrb[82].mxu1 %v8111_v63  ;;  %v8398_v63 = vld [vmem:[#allocation2 + $0x47] sm:$0xff] }
 0x847   : > { %13798 = vmatprep.mubr.f32.mxu1 %v8112_v8  ;;  %v19104_v8 = vld [vmem:[#allocation2 + $0x211] sm:$0xff] }
 0x84a   : > { %13799 = vmatmul.mubr.f32.gmra.mrb[84].mxu1 %v8113_v35  ;;  %v10309_v35 = vld [vmem:[%s19382_s1 + $0xca0] sm:$0xff] }
 0x84b   : > { %13801 = vmatprep.mubr.f32.mxu1 %v8114_v21  ;;  %v10310_v21 = vld [vmem:[%s19382_s1 + $0xca8] sm:$0xff] }
 0x84e   : > { %13802 = vmatmul.mubr.f32.gmra.mrb[86].mxu1 %v8115_v55  ;;  %v8400_v55 = vld [vmem:[#allocation2 + $0x67] sm:$0xff] }
 0x84f   : > { %13804 = vmatprep.mubr.f32.mxu1 %v8116_v58  ;;  %v14936_v58 = vpack.c.bf16 %v10310_v21, %v10309_v35  ;;  %v10314_v35 = vld [vmem:[%s19382_s1 + $0xcc8] sm:$0xff]  ;;  %v10337_v21 = vld [vmem:[%s19383_s2 + $0x40] sm:$0xff] }
 0x852   : > { %13805 = vmatmul.mubr.f32.gmra.mrb[88].mxu1 %v8117_v54  ;;  %v8401_v54 = vld [vmem:[#allocation2 + $0x6f] sm:$0xff] }
 0x853   : > { %13807 = vmatprep.mubr.f32.mxu1 %v8118_v50  ;;  %v10311_v50 = vld [vmem:[%s19382_s1 + $0xcb0] sm:$0xff] }
 0x856   : > { %13808 = vmatmul.mubr.f32.gmra.mrb[90].mxu1 %v8119_v31  ;;  %v10312_v31 = vld [vmem:[%s19382_s1 + $0xcb8] sm:$0xff] }
 0x857   : > { %13810 = vmatprep.mubr.f32.mxu1 %v18785_v24  ;;  %v14932_v24 = vpack.c.bf16 %v10308_v27, %v10307_v25  ;;  %v8402_v25 = vld [vmem:[#allocation2 + $0x87] sm:$0xff]  ;;  %v8403_v27 = vld [vmem:[#allocation2 + $0x8f] sm:$0xff] }
 0x85a   : > { %13811 = vmatmul.mubr.f32.gmra.mrb[92].mxu1 %v18788_v10  ;;  %v8399_v10 = vld [vmem:[#allocation2 + $0x4f] sm:$0xff] }
 0x85b   : > { %13813 = vmatprep.mubr.f32.mxu1 %v19101_v0 }
 0x85e   : > { %13814 = vmatmul.mubr.f32.gmra.mrb[94].mxu1 %v19104_v8 }
 0x85f   : > { %13848 = vmatprep.mubr.f32.mxu1 %v8398_v63  ;;  %v14940_v63 = vpack.c.bf16 %v10312_v31, %v10311_v50  ;;  %v10340_v50 = vld [vmem:[%s19383_s2 + $0x58] sm:$0xff] }
 0x862   : > { %13849 = vmatmul.mubr.f32.vlgmr.msra.gmra.mrb[64].mxu1 %v8399_v10  ;;  %v8404_v10 = vld [vmem:[#allocation2 + $0xa7] sm:$0xff] }
 0x863   : > { %13851 = vmatprep.mubr.f32.mxu1 %v8400_v55  ;;  %14931 = vmatpush3.bf16.msra.mxu1 %v14928_v5  ;;  %v10313_v5 = vld [vmem:[%s19382_s1 + $0xcc0] sm:$0xff]  ;;  %v10339_v55 = vld [vmem:[%s19383_s2 + $0x50] sm:$0xff] }
 0x864   : > { %14933 = vmatprep.subr.bf16.mxu1 %v14932_v24  ;;  %v14944_v31 = vpack.c.bf16 %v10314_v35, %v10313_v5  ;;  %v8407_v5 = vld [vmem:[#allocation2 + $0xcf] sm:$0xff]  ;;  %v10317_v35 = vld [vmem:[%s19382_s1 + $0xce0] sm:$0xff] }
 0x866   : > { %13852 = vmatmul.mubr.f32.gmra.mrb[66].mxu1 %v8401_v54 }
 0x867   : > { %13854 = vmatprep.mubr.f32.mxu1 %v8402_v25  ;;  %14935 = vmatpush3.bf16.msra.mxu1 %v14932_v24  ;;  %v10338_v24 = vld [vmem:[%s19383_s2 + $0x48] sm:$0xff]  ;;  %v14996_v25 = vpack.c.bf16 %v10340_v50, %v10339_v55 }
 0x868   : > { %14937 = vmatprep.subr.bf16.mxu1 %v14936_v58  ;;  %v14992_v54 = vpack.c.bf16 %v10338_v24, %v10337_v21  ;;  %v10318_v21 = vld [vmem:[%s19382_s1 + $0xce8] sm:$0xff] }
 0x869   : > { %v8408_v24 = vld [vmem:[#allocation2 + $0xe7] sm:$0xff]  ;;  %v14952_v55 = vpack.c.bf16 %v10318_v21, %v10317_v35  ;;  %v8415_v35 = vld [vmem:[#allocation2 + $0x14f] sm:$0xff] }
 0x86a   : > { %13855 = vmatmul.mubr.f32.gmra.mrb[68].mxu1 %v8403_v27  ;;  %v8405_v27 = vld [vmem:[#allocation2 + $0xaf] sm:$0xff]  ;;  %14993 = vmatprep.subr.bf16.mxu0 %v14992_v54  ;;  %v8416_v21 = vld [vmem:[#allocation2 + $0x167] sm:$0xff] }
 0x86b   : > { %13857 = vmatprep.mubr.f32.mxu1 %v8404_v10  ;;  %14939 = vmatpush3.bf16.msra.mxu1 %v14936_v58  ;;  %v8406_v58 = vld [vmem:[#allocation2 + $0xc7] sm:$0xff]  ;;  %v14948_v10 = vpack.c.bf16 %v10316_v39, %v10315_v17  ;;  %v10319_v39 = vld [vmem:[%s19382_s1 + $0xcf0] sm:$0xff]  ;;  %v10320_v17 = vld [vmem:[%s19382_s1 + $0xcf8] sm:$0xff] }
 0x86c   : > { %14941 = vmatprep.subr.bf16.mxu1 %v14940_v63  ;;  %14995 = vmatpush3.bf16.msra.mxu0 %v14992_v54  ;;  %v8410_v54 = vld [vmem:[#allocation2 + $0x107] sm:$0xff]  ;;  %v14956_v50 = vpack.c.bf16 %v10320_v17, %v10319_v39 }
 0x86d   : > { %14997 = vmatprep.subr.bf16.mxu0 %v14996_v25  ;;  %v8420_v39 = vld [vmem:[#allocation2 + $0x1a7] sm:$0xff] }
 0x86e   : > { %13858 = vmatmul.mubr.f32.gmra.mrb[70].mxu1 %v8405_v27  ;;  %v8413_v27 = vld [vmem:[#allocation2 + $0x12f] sm:$0xff]  ;;  %v8422_v17 = vld [vmem:[#allocation2 + $0x1c7] sm:$0xff] }
 0x86f   : > { %13860 = vmatprep.mubr.f32.mxu1 %v8406_v58  ;;  %14943 = vmatpush3.bf16.msra.mxu1 %v14940_v63  ;;  %v8409_v63 = vld [vmem:[#allocation2 + $0xef] sm:$0xff]  ;;  %v8414_v58 = vld [vmem:[#allocation2 + $0x147] sm:$0xff] }
 0x870   : > { %14945 = vmatprep.subr.bf16.mxu1 %v14944_v31  ;;  %14999 = vmatpush3.bf16.msra.mxu0 %v14996_v25  ;;  %v8411_v25 = vld [vmem:[#allocation2 + $0x10f] sm:$0xff] }
 0x872   : > { %13861 = vmatmul.mubr.f32.gmra.mrb[72].mxu1 %v8407_v5  ;;  %v19739_v5 = vld [vmem:[#allocation33_spill] sm:$0xff] }
 0x873   : > { %13863 = vmatprep.mubr.f32.mxu1 %v8408_v24  ;;  %14947 = vmatpush3.bf16.msra.mxu1 %v14944_v31  ;;  %v8412_v31 = vld [vmem:[#allocation2 + $0x127] sm:$0xff] }
 0x874   : > { %14949 = vmatprep.subr.bf16.mxu1 %v14948_v10  ;;  %v8418_v24 = vld [vmem:[#allocation2 + $0x187] sm:$0xff] }
 0x876   : > { %13864 = vmatmul.mubr.f32.gmra.mrb[74].mxu1 %v8409_v63  ;;  %v8419_v63 = vld [vmem:[#allocation2 + $0x18f] sm:$0xff] }
 0x877   : > { %13866 = vmatprep.mubr.f32.mxu1 %v8410_v54  ;;  %14951 = vmatpush3.bf16.msra.mxu1 %v14948_v10  ;;  %v8417_v10 = vld [vmem:[#allocation2 + $0x16f] sm:$0xff] }
 0x878   : > { %14953 = vmatprep.subr.bf16.mxu1 %v14952_v55  ;;  %v8423_v54 = vld [vmem:[#allocation2 + $0x1cf] sm:$0xff] }
 0x87a   : > { %13867 = vmatmul.mubr.f32.gmra.mrb[76].mxu1 %v8411_v25  ;;  %v8425_v25 = vld [vmem:[#allocation2 + $0x1ef] sm:$0xff] }
 0x87b   : > { %13869 = vmatprep.mubr.f32.mxu1 %v8412_v31  ;;  %14955 = vmatpush3.bf16.msra.mxu1 %v14952_v55  ;;  %v8421_v55 = vld [vmem:[#allocation2 + $0x1af] sm:$0xff]  ;;  %v8428_v31 = vld [vmem:[#allocation2 + $0x227] sm:$0xff] }
 0x87c   : > { %14957 = vmatprep.subr.bf16.mxu1 %v14956_v50 }
 0x87e   : > { %13870 = vmatmul.mubr.f32.gmra.mrb[78].mxu1 %v8413_v27  ;;  %v8429_v27 = vld [vmem:[#allocation2 + $0x22f] sm:$0xff] }
 0x87f   : > { %13872 = vmatprep.mubr.f32.mxu1 %v8414_v58  ;;  %14959 = vmatpush3.bf16.msra.mxu1 %v14956_v50  ;;  %v8424_v50 = vld [vmem:[#allocation2 + $0x1e7] sm:$0xff]  ;;  %v19740_v58 = vld [vmem:[#allocation32_spill] sm:$0xff] }
 0x880   : > { %15000 = vmatprep.subr.bf16.mxu1 %v19739_v5 }
 0x882   : > { %13873 = vmatmul.mubr.f32.gmra.mrb[80].mxu1 %v8415_v35 }
 0x883   : > { %13875 = vmatprep.mubr.f32.mxu1 %v8416_v21 }
 0x886   : > { %13876 = vmatmul.mubr.f32.gmra.mrb[82].mxu1 %v8417_v10 }
 0x887   : > { %13878 = vmatprep.mubr.f32.mxu1 %v8418_v24 }
 0x88a   : > { %13879 = vmatmul.mubr.f32.gmra.mrb[84].mxu1 %v8419_v63 }
 0x88b   : > { %13881 = vmatprep.mubr.f32.mxu1 %v8420_v39 }
 0x88e   : > { %13882 = vmatmul.mubr.f32.gmra.mrb[86].mxu1 %v8421_v55 }
 0x88f   : > { %13884 = vmatprep.mubr.f32.mxu1 %v8422_v17 }
 0x892   : > { %13885 = vmatmul.mubr.f32.gmra.mrb[88].mxu1 %v8423_v54 }
 0x893   : > { %13887 = vmatprep.mubr.f32.mxu1 %v8424_v50 }
 0x896   : > { %13888 = vmatmul.mubr.f32.gmra.mrb[90].mxu1 %v8425_v25 }
 0x897   : > { %13890 = vmatprep.mubr.f32.mxu1 %v18893_v19  ;;  %v19741_v19 = vld [vmem:[#allocation37_spill] sm:$0xff] }
 0x89a   : > { %13891 = vmatmul.mubr.f32.gmra.mrb[92].mxu1 %v18898_v59  ;;  %v19742_v59 = vld [vmem:[#allocation36_spill] sm:$0xff] }
 0x89b   : > { %13893 = vmatprep.mubr.f32.mxu1 %v8428_v31 }
 0x89e   : > { %13894 = vmatmul.mubr.f32.gmra.mrb[94].mxu1 %v8429_v27 }
 0x89f   : > { %13928 = vmatprep.mubr.f32.mxu1 %v18919_v1  ;;  %v19743_v1 = vld [vmem:[#allocation41_spill] sm:$0xff] }
 0x8a2   : > { %13929 = vmatmul.mubr.f32.vlgmr.msra.gmra.mrb[64].mxu1 %v18924_v34  ;;  %v19744_v34 = vld [vmem:[#allocation40_spill] sm:$0xff] }
 0x8a3   : > { %13931 = vmatprep.mubr.f32.mxu1 %v18935_v44  ;;  %15008 = vmatpush3.bf16.msra.mxu1 %v19739_v5  ;;  %v19745_v44 = vld [vmem:[#allocation42_spill] sm:$0xff] }
 0x8a4   : > { %15001 = vmatprep.subr.bf16.mxu1 %v19740_v58 }
 0x8a6   : > { %13932 = vmatmul.mubr.f32.gmra.mrb[66].mxu1 %v18940_v48  ;;  %v19746_v48 = vld [vmem:[#allocation43_spill] sm:$0xff] }
 0x8a7   : > { %13934 = vmatprep.mubr.f32.mxu1 %v18951_v15  ;;  %15009 = vmatpush3.bf16.msra.mxu1 %v19740_v58  ;;  %v8724_v15 = vld [vmem:[#allocation2 + $0x188] sm:$0xff] }
 0x8a8   : > { %15002 = vmatprep.subr.bf16.mxu1 %v19741_v19 }
 0x8aa   : > { %13935 = vmatmul.mubr.f32.gmra.mrb[68].mxu1 %v18956_v11  ;;  %v8726_v11 = vld [vmem:[#allocation2 + $0x1a8] sm:$0xff] }
 0x8ab   : > { %13937 = vmatprep.mubr.f32.mxu1 %v18967_v3  ;;  %15010 = vmatpush3.bf16.msra.mxu1 %v19741_v19  ;;  %v8727_v3 = vld [vmem:[#allocation2 + $0x1b0] sm:$0xff] }
 0x8ac   : > { %15003 = vmatprep.subr.bf16.mxu1 %v19742_v59 }
 0x8ae   : > { %13938 = vmatmul.mubr.f32.gmra.mrb[70].mxu1 %v18972_v53  ;;  %v8728_v53 = vld [vmem:[#allocation2 + $0x1c8] sm:$0xff] }
 0x8af   : > { %13940 = vmatprep.mubr.f32.mxu1 %v18983_v36  ;;  %15011 = vmatpush3.bf16.msra.mxu1 %v19742_v59  ;;  %v8729_v36 = vld [vmem:[#allocation2 + $0x1d0] sm:$0xff] }
 0x8b0   : > { %15004 = vmatprep.subr.bf16.mxu1 %v19743_v1 }
 0x8b2   : > { %13941 = vmatmul.mubr.f32.gmra.mrb[72].mxu1 %v18988_v13  ;;  %v8730_v13 = vld [vmem:[#allocation2 + $0x1e8] sm:$0xff] }
 0x8b3   : > { %13943 = vmatprep.mubr.f32.mxu1 %v18999_v47  ;;  %15012 = vmatpush3.bf16.msra.mxu1 %v19743_v1  ;;  %v8731_v47 = vld [vmem:[#allocation2 + $0x1f0] sm:$0xff] }
 0x8b4   : > { %15005 = vmatprep.subr.bf16.mxu1 %v19744_v34 }
 0x8b6   : > { %13944 = vmatmul.mubr.f32.gmra.mrb[74].mxu1 %v19002_v26  ;;  %v8732_v26 = vld [vmem:[#allocation2 + $0x208] sm:$0xff] }
 0x8b7   : > { %13946 = vmatprep.mubr.f32.mxu1 %v19011_v46  ;;  %15013 = vmatpush3.bf16.msra.mxu1 %v19744_v34  ;;  %v8733_v46 = vld [vmem:[#allocation2 + $0x210] sm:$0xff] }
 0x8b8   : > { %15006 = vmatprep.subr.bf16.mxu1 %v19745_v44 }
 0x8ba   : > { %13947 = vmatmul.mubr.f32.gmra.mrb[76].mxu1 %v19014_v20  ;;  %v15862_v20 = vld [vmem:[#allocation2 + $0x8] sm:$0xff] }
 0x8bb   : > { %13949 = vmatprep.mubr.f32.mxu1 %v19017_v45  ;;  %15014 = vmatpush3.bf16.msra.mxu1 %v19745_v44  ;;  %v9036_v45 = vld [vmem:[#allocation2 + $0x1e9] sm:$0xff] }
 0x8bc   : > { %15007 = vmatprep.subr.bf16.mxu1 %v19746_v48 }
 0x8be   : > { %13950 = vmatmul.mubr.f32.gmra.mrb[78].mxu1 %v19020_v43  ;;  %v9037_v43 = vld [vmem:[#allocation2 + $0x1f1] sm:$0xff] }
 0x8bf   : > { %13952 = vmatprep.mubr.f32.mxu1 %v19023_v29  ;;  %15015 = vmatpush3.bf16.msra.mxu1 %v19746_v48  ;;  %v9040_v29 = vld [vmem:[#allocation2 + $0x229] sm:$0xff] }
 0x8c2   : > { %13953 = vmatmul.mubr.f32.gmra.mrb[80].mxu1 %v19026_v22  ;;  %v9041_v22 = vld [vmem:[#allocation2 + $0x231] sm:$0xff] }
 0x8c3   : > { %13955 = vmatprep.mubr.f32.mxu1 %v19029_v49 }
 0x8c6   : > { %13956 = vmatmul.mubr.f32.gmra.mrb[82].mxu1 %v19032_v28 }
 0x8c7   : > { %13958 = vmatprep.mubr.f32.mxu1 %v8724_v15 }
 0x8ca   : > { %13959 = vmatmul.mubr.f32.gmra.mrb[84].mxu1 %v19036_v37 }
 0x8cb   : > { %13961 = vmatprep.mubr.f32.mxu1 %v8726_v11 }
 0x8ce   : > { %13962 = vmatmul.mubr.f32.gmra.mrb[86].mxu1 %v8727_v3 }
 0x8cf   : > { %13964 = vmatprep.mubr.f32.mxu1 %v8728_v53 }
 0x8d2   : > { %13965 = vmatmul.mubr.f32.gmra.mrb[88].mxu1 %v8729_v36 }
 0x8d3   : > { %13967 = vmatprep.mubr.f32.mxu1 %v8730_v13 }
 0x8d6   : > { %13968 = vmatmul.mubr.f32.gmra.mrb[90].mxu1 %v8731_v47 }
 0x8d7   : > { %13970 = vmatprep.mubr.f32.mxu1 %v8732_v26 }
 0x8da   : > { %13971 = vmatmul.mubr.f32.gmra.mrb[92].mxu1 %v8733_v46 }
 0x8db   : > { %13973 = vmatprep.mubr.f32.mxu1 %v15862_v20 }
 0x8de   : > { %13974 = vmatmul.mubr.f32.gmra.mrb[94].mxu1 %v15862_v20 }
 0x8df   : > { %14047 = vmatprep.mubr.f32.mxu1 %v9036_v45 }
 0x8e2   : > { %14048 = vmatmul.mubr.f32.vlgmr.msra.gmra.mrb[90].mxu1 %v9037_v43 }
 0x8e3   : > { %14050 = vmatprep.mubr.f32.mxu1 %v19101_v0 }
 0x8e6   : > { %14051 = vmatmul.mubr.f32.gmra.mrb[92].mxu1 %v19104_v8 }
 0x8e7   : > { %14053 = vmatprep.mubr.f32.mxu1 %v9040_v29 }
 0x8ea   : > { %14054 = vmatmul.mubr.f32.gmra.mrb[94].mxu1 %v9041_v22 }
 0x975   : > { %v13930_v49 = vpop.f32.mrb[64].mxu1 }
 0x976   : > { %v15048_v28 = vadd.f32 %v18858_v52, %v13930_v49  ;;  %v8819_v37 = vpop.f32.mrb[65].mxu1 }
 0x977   : > { %v15049_v5 = vadd.f32 %v18860_v14, %v8819_v37 }
 0x978   : > { %v9317_v10 = vmax.f32 %v15048_v28, 0.0 }
 0x979   : > { %v9316_v35 = vmax.f32 %v15049_v5, 0.0  ;;  %v13933_v21 = vpop.f32.mrb[66].mxu1 }
 0x97a   : > { %v15050_v24 = vadd.f32 %v18864_v38, %v13933_v21  ;;  %v8829_v63 = vpop.f32.mrb[67].mxu1 }
 0x97b   : > { %v15051_v0 = vadd.f32 %v18866_v6, %v8829_v63  ;;  %14064 = vmatprep.mubr.msk.f32.mxu0 %vm3064_vm0, %v9316_v35 }
 0x97c   : > { %14065 = vmatmul.mubr.msk.f32.vlgmr.msra.gmra.mrb[122].mxu0 %vm3064_vm0, %v9317_v10  ;;  %v9319_v55 = vmax.f32 %v15050_v24, 0.0 }
 0x97d   : > { %v9318_v8 = vmax.f32 %v15051_v0, 0.0  ;;  %v13936_v39 = vpop.f32.mrb[68].mxu1 }
 0x97e   : > { %v15052_v52 = vadd.f32 %v18870_v18, %v13936_v39  ;;  %v8839_v17 = vpop.f32.mrb[69].mxu1 }
 0x97f   : > { %v15053_v14 = vadd.f32 %v18872_v30, %v8839_v17  ;;  %14067 = vmatprep.mubr.msk.f32.mxu0 %vm3064_vm0, %v9318_v8  ;;  %v19748_v17 = vld [vmem:[#allocation54_spill] sm:$0xff] }
 0x980   : > { %14068 = vmatmul.mubr.msk.f32.gmra.mrb[124].mxu0 %vm3064_vm0, %v9319_v55  ;;  %v9321_v50 = vmax.f32 %v15052_v52, 0.0 }
 0x981   : > { %v9320_v38 = vmax.f32 %v15053_v14, 0.0  ;;  %v13939_v54 = vpop.f32.mrb[70].mxu1 }
 0x982   : > { %v15054_v6 = vadd.f32 %v18876_v33, %v13939_v54  ;;  %v8849_v25 = vpop.f32.mrb[71].mxu1 }
 0x983   : > { %v15055_v31 = vadd.f32 %v18878_v32, %v8849_v25  ;;  %14070 = vmatprep.mubr.msk.f32.mxu0 %vm3064_vm0, %v9320_v38 }
 0x984   : > { %14071 = vmatmul.mubr.msk.f32.gmra.mrb[126].mxu0 %vm3064_vm0, %v9321_v50  ;;  %v9323_v58 = vmax.f32 %v15054_v6, 0.0 }
 0x985   : > { %v9322_v18 = vmax.f32 %v15055_v31, 0.0  ;;  %v13942_v27 = vpop.f32.mrb[72].mxu1 }
 0x986   : > { %v15056_v30 = vadd.f32 %v18882_v4, %v13942_v27  ;;  %v8859_v19 = vpop.f32.mrb[73].mxu1 }
 0x987   : > { %v15057_v59 = vadd.f32 %v18884_v16, %v8859_v19  ;;  %14073 = vmatprep.mubr.msk.f32.mxu0 %vm3064_vm0, %v9322_v18 }
 0x988   : > { %14074 = vmatmul.mubr.msk.f32.gmra.mrb[128].mxu0 %vm3064_vm0, %v9323_v58  ;;  %v9325_v34 = vmax.f32 %v15056_v30, 0.0 }
 0x989   : > { %v9324_v33 = vmax.f32 %v15057_v59, 0.0  ;;  %v13945_v1 = vpop.f32.mrb[74].mxu1 }
 0x98a   : > { %v15058_v32 = vadd.f32 %v18888_v51, %v13945_v1  ;;  %v8869_v44 = vpop.f32.mrb[75].mxu1  ;;  %v19749_v1 = vld [vmem:[#allocation6_spill] sm:$0xff] }
 0x98b   : > { %v15059_v48 = vadd.f32 %v18890_v40, %v8869_v44  ;;  %14076 = vmatprep.mubr.msk.f32.mxu0 %vm3064_vm0, %v9324_v33  ;;  %v19750_v44 = vld [vmem:[#allocation7_spill] sm:$0xff] }
 0x98c   : > { %14077 = vmatmul.mubr.msk.f32.gmra.mrb[130].mxu0 %vm3064_vm0, %v9325_v34  ;;  %v9327_v11 = vmax.f32 %v15058_v32, 0.0 }
 0x98d   : > { %v9326_v4 = vmax.f32 %v15059_v48, 0.0  ;;  %v13948_v15 = vpop.f32.mrb[76].mxu1 }
 0x98e   : > { %v15060_v16 = vadd.f32 %v18896_v9, %v13948_v15  ;;  %v8879_v3 = vpop.f32.mrb[77].mxu1 }
 0x98f   : > { %v15061_v53 = vadd.f32 %v18906_v23, %v8879_v3  ;;  %14079 = vmatprep.mubr.msk.f32.mxu0 %vm3064_vm0, %v9326_v4 }
 0x990   : > { %14080 = vmatmul.mubr.msk.f32.gmra.mrb[132].mxu0 %vm3064_vm0, %v9327_v11  ;;  %v9329_v13 = vmax.f32 %v15060_v16, 0.0  ;;  %v19751_v16 = vld [vmem:[#allocation8_spill] sm:$0xff] }
 0x991   : > { %v9328_v51 = vmax.f32 %v15061_v53, 0.0  ;;  %v13951_v36 = vpop.f32.mrb[78].mxu1 }
 0x992   : > { %v15062_v40 = vadd.f32 %v18909_v12, %v13951_v36  ;;  %v8889_v47 = vpop.f32.mrb[79].mxu1 }
 0x993   : > { %v15063_v26 = vadd.f32 %v18917_v2, %v8889_v47  ;;  %14082 = vmatprep.mubr.msk.f32.mxu0 %vm3064_vm0, %v9328_v51  ;;  %v19752_v51 = vld [vmem:[#allocation9_spill] sm:$0xff] }
 0x994   : > { %14083 = vmatmul.mubr.msk.f32.gmra.mrb[134].mxu0 %vm3064_vm0, %v9329_v13  ;;  %v9331_v20 = vmax.f32 %v15062_v40, 0.0 }
 0x995   : > { %v9330_v9 = vmax.f32 %v15063_v26, 0.0  ;;  %v13954_v46 = vpop.f32.mrb[80].mxu1  ;;  %v19753_v26 = vld [vmem:[#allocation10_spill] sm:$0xff] }
 0x996   : > { %v15064_v23 = vadd.f32 %v18922_v42, %v13954_v46  ;;  %v8899_v45 = vpop.f32.mrb[81].mxu1 }
 0x997   : > { %v15065_v43 = vadd.f32 %v18932_v62, %v8899_v45  ;;  %14085 = vmatprep.mubr.msk.f32.mxu0 %vm3064_vm0, %v9330_v9 }
 0x998   : > { %14086 = vmatmul.mubr.msk.f32.gmra.mrb[136].mxu0 %vm3064_vm0, %v9331_v20  ;;  %v9333_v22 = vmax.f32 %v15064_v23, 0.0  ;;  %v19754_v20 = vld [vmem:[#allocation11_spill] sm:$0xff] }
 0x999   : > { %v9332_v12 = vmax.f32 %v15065_v43, 0.0  ;;  %v13957_v29 = vpop.f32.mrb[82].mxu1 }
 0x99a   : > { %v15066_v2 = vadd.f32 %v18938_v57, %v13957_v29  ;;  %v8909_v49 = vpop.f32.mrb[83].mxu1  ;;  %v19755_v29 = vld [vmem:[#allocation12_spill] sm:$0xff] }
 0x99b   : > { %v15067_v28 = vadd.f32 %v18948_v56, %v8909_v49  ;;  %14088 = vmatprep.mubr.msk.f32.mxu0 %vm3064_vm0, %v9332_v12  ;;  %v19756_v49 = vld [vmem:[#allocation13_spill] sm:$0xff] }
 0x99c   : > { %14089 = vmatmul.mubr.msk.f32.gmra.mrb[138].mxu0 %vm3064_vm0, %v9333_v22  ;;  %v9335_v5 = vmax.f32 %v15066_v2, 0.0 }
 0x99d   : > { %v9334_v42 = vmax.f32 %v15067_v28, 0.0  ;;  %v13960_v37 = vpop.f32.mrb[84].mxu1 }
 0x99e   : > { %v15068_v62 = vadd.f32 %v18954_v60, %v13960_v37  ;;  %v8919_v35 = vpop.f32.mrb[85].mxu1 }
 0x99f   : > { %v15069_v21 = vadd.f32 %v18964_v61, %v8919_v35  ;;  %14091 = vmatprep.mubr.msk.f32.mxu0 %vm3064_vm0, %v9334_v42  ;;  %v19747_v61 = vld [vmem:[#allocation53_spill] sm:$0xff] }
 0x9a0   : > { %14092 = vmatmul.mubr.msk.f32.gmra.mrb[140].mxu0 %vm3064_vm0, %v9335_v5  ;;  %v9337_v24 = vmax.f32 %v15068_v62, 0.0  ;;  %v19757_v62 = vld [vmem:[#allocation14_spill] sm:$0xff] }
 0x9a1   : > { %v9336_v57 = vmax.f32 %v15069_v21, 0.0  ;;  %v13963_v10 = vpop.f32.mrb[86].mxu1 }
 0x9a2   : > { %v15070_v56 = vadd.f32 %v18970_v41, %v13963_v10  ;;  %v8929_v63 = vpop.f32.mrb[87].mxu1 }
 0x9a3   : > { %v15071_v0 = vadd.f32 %v18980_v7, %v8929_v63  ;;  %14094 = vmatprep.mubr.msk.f32.mxu0 %vm3064_vm0, %v9336_v57  ;;  %v19758_v57 = vld [vmem:[#allocation15_spill] sm:$0xff] }
 0x9a4   : > { %14095 = vmatmul.mubr.msk.f32.gmra.mrb[142].mxu0 %vm3064_vm0, %v9337_v24  ;;  %v9339_v39 = vmax.f32 %v15070_v56, 0.0 }
 0x9a5   : > { %v9338_v60 = vmax.f32 %v15071_v0, 0.0  ;;  %v13966_v8 = vpop.f32.mrb[88].mxu1  ;;  %v19759_v0 = vld [vmem:[#allocation16_spill] sm:$0xff] }
 0x9a6   : > { %v15072_v55 = vadd.f32 %v19747_v61, %v13966_v8  ;;  %v8939_v52 = vpop.f32.mrb[89].mxu1 }
 0x9a7   : > { %v15073_v14 = vadd.f32 %v19748_v17, %v8939_v52  ;;  %14097 = vmatprep.mubr.msk.f32.mxu0 %vm3064_vm0, %v9338_v60 }
 0x9a8   : > { %14098 = vmatmul.mubr.msk.f32.gmra.mrb[144].mxu0 %vm3064_vm0, %v9339_v39  ;;  %v9341_v38 = vmax.f32 %v15072_v55, 0.0  ;;  %v19760_v39 = vld [vmem:[#allocation17_spill] sm:$0xff] }
 0x9a9   : > { %v9340_v41 = vmax.f32 %v15073_v14, 0.0  ;;  %v19761_v14 = vld [vmem:[#allocation18_spill] sm:$0xff] }
 0x9ab   : > { %14100 = vmatprep.mubr.msk.f32.mxu0 %vm3064_vm0, %v9340_v41 }
 0x9ac   : > { %14101 = vmatmul.mubr.msk.f32.gmra.mrb[146].mxu0 %vm3064_vm0, %v9341_v38 }
 0x9b5   : > { %v14049_v7 = vpop.f32.mrb[90].mxu1 }
 0x9b6   : > { %v9255_v54 = vpop.f32.mrb[91].mxu1  ;;  %v9343_v6 = vmax.f32 %v14049_v7, 0.0  ;;  %v19762_v7 = vld [vmem:[#allocation19_spill] sm:$0xff] }
 0x9b7   : > { %v9342_v50 = vmax.f32 %v9255_v54, 0.0 }
 0x9b9   : > { %v14052_v25 = vpop.f32.mrb[92].mxu1  ;;  %14103 = vmatprep.mubr.msk.f32.mxu0 %vm3064_vm0, %v9342_v50 }
 0x9ba   : > { %v9265_v31 = vpop.f32.mrb[93].mxu1  ;;  %14104 = vmatmul.mubr.msk.f32.gmra.mrb[148].mxu0 %vm3064_vm0, %v9343_v6  ;;  %v9345_v27 = vmax.f32 %v14052_v25, 0.0 }
 0x9bb   : > { %v9344_v18 = vmax.f32 %v9265_v31, 0.0  ;;  %v19763_v31 = vld [vmem:[#allocation20_spill] sm:$0xff] }
 0x9bd   : > { %v14055_v58 = vpop.f32.mrb[94].mxu1  ;;  %14106 = vmatprep.mubr.msk.f32.mxu0 %vm3064_vm0, %v9344_v18 }
 0x9be   : > { %v9275_v30 = vpop.f32.mrb[95].mxu1  ;;  %14107 = vmatmul.mubr.msk.f32.gmra.mrb[150].mxu0 %vm3064_vm0, %v9345_v27  ;;  %v9347_v59 = vmax.f32 %v14055_v58, 0.0  ;;  %v19764_v58 = vld [vmem:[#allocation21_spill] sm:$0xff] }
 0x9bf   : > { %v9346_v19 = vmax.f32 %v9275_v30, 0.0 }
 0x9c1   : > { %14109 = vmatprep.mubr.msk.f32.mxu0 %vm3064_vm0, %v9346_v19 }
 0x9c2   : > { %14110 = vmatmul.mubr.msk.f32.gmra.mrb[152].mxu0 %vm3064_vm0, %v9347_v59 }
 0xa4f   : > { %v14066_v33 = vpop.f32.mrb[122].mxu0 }
 0xa50   : > { %v9675_v34 = vadd.f32 %v14066_v33, %v19749_v1  ;;  %v9515_v32 = vpop.f32.mrb[123].mxu0  ;;  %v19765_v1 = vld [vmem:[#allocation22_spill] sm:$0xff] }
 0xa51   : > { %v9674_v48 = vadd.f32 %v9515_v32, %v19750_v44  ;;  %v19766_v44 = vld [vmem:[#allocation23_spill] sm:$0xff] }
 0xa52   : > { %v9707_v4 = vmax.f32 %v9675_v34, 0.0 }
 0xa53   : > { %v9706_v15 = vmax.f32 %v9674_v48, 0.0  ;;  %v14069_v11 = vpop.f32.mrb[124].mxu0 }
 0xa54   : > { %9739 = vst [vmem:[%s19265_s24 + $0x8] sm:$0xff] %v9707_v4  ;;  %v9677_v3 = vadd.f32 %v14069_v11, %v19751_v16  ;;  %v9525_v53 = vpop.f32.mrb[125].mxu0  ;;  %v19767_v16 = vld [vmem:[#allocation24_spill] sm:$0xff] }
 0xa55   : > { %9738 = vst [vmem:[%s19265_s24] sm:$0xff] %v9706_v15  ;;  %v9676_v36 = vadd.f32 %v9525_v53, %v19752_v51  ;;  %v19768_v51 = vld [vmem:[#allocation25_spill] sm:$0xff] }
 0xa56   : > { %v9709_v13 = vmax.f32 %v9677_v3, 0.0 }
 0xa57   : > { %v9708_v40 = vmax.f32 %v9676_v36, 0.0  ;;  %v14072_v47 = vpop.f32.mrb[126].mxu0 }
 0xa58   : > { %9741 = vst [vmem:[%s19265_s24 + $0x18] sm:$0xff] %v9709_v13  ;;  %v9679_v9 = vadd.f32 %v14072_v47, %v19753_v26  ;;  %v9535_v46 = vpop.f32.mrb[127].mxu0  ;;  %v19769_v26 = vld [vmem:[#allocation26_spill] sm:$0xff] }
 0xa59   : > { %9740 = vst [vmem:[%s19265_s24 + $0x10] sm:$0xff] %v9708_v40  ;;  %v9678_v23 = vadd.f32 %v9535_v46, %v19754_v20  ;;  %v19770_v20 = vld [vmem:[#allocation27_spill] sm:$0xff] }
 0xa5a   : > { %v9711_v45 = vmax.f32 %v9679_v9, 0.0 }
 0xa5b   : > { %v9710_v43 = vmax.f32 %v9678_v23, 0.0  ;;  %v14075_v12 = vpop.f32.mrb[128].mxu0 }
 0xa5c   : > { %9743 = vst [vmem:[%s19265_s24 + $0x28] sm:$0xff] %v9711_v45  ;;  %v9681_v22 = vadd.f32 %v14075_v12, %v19755_v29  ;;  %v9545_v2 = vpop.f32.mrb[129].mxu0  ;;  %v19771_v29 = vld [vmem:[#allocation28_spill] sm:$0xff] }
 0xa5d   : > { %9742 = vst [vmem:[%s19265_s24 + $0x20] sm:$0xff] %v9710_v43  ;;  %v9680_v28 = vadd.f32 %v9545_v2, %v19756_v49  ;;  %v19772_v49 = vld [vmem:[#allocation29_spill] sm:$0xff] }
 0xa5e   : > { %v9713_v42 = vmax.f32 %v9681_v22, 0.0 }
 0xa5f   : > { %v9712_v37 = vmax.f32 %v9680_v28, 0.0  ;;  %v14078_v5 = vpop.f32.mrb[130].mxu0 }
 0xa60   : > { %9745 = vst [vmem:[%s19265_s24 + $0x38] sm:$0xff] %v9713_v42  ;;  %v9683_v35 = vadd.f32 %v14078_v5, %v19757_v62  ;;  %v9555_v21 = vpop.f32.mrb[131].mxu0  ;;  %v19773_v62 = vld [vmem:[#allocation30_spill] sm:$0xff] }
 0xa61   : > { %9744 = vst [vmem:[%s19265_s24 + $0x30] sm:$0xff] %v9712_v37  ;;  %v9682_v10 = vadd.f32 %v9555_v21, %v19758_v57  ;;  %v19774_v57 = vld [vmem:[#allocation31_spill] sm:$0xff] }
 0xa62   : > { %v9715_v24 = vmax.f32 %v9683_v35, 0.0 }
 0xa63   : > { %v9714_v56 = vmax.f32 %v9682_v10, 0.0  ;;  %v14081_v63 = vpop.f32.mrb[132].mxu0 }
 0xa64   : > { %9747 = vst [vmem:[%s19265_s24 + $0x48] sm:$0xff] %v9715_v24  ;;  %v9685_v60 = vadd.f32 %v14081_v63, %v19759_v0  ;;  %v9565_v8 = vpop.f32.mrb[133].mxu0  ;;  %v19775_v0 = vld [vmem:[#allocation34_spill] sm:$0xff] }
 0xa65   : > { %9746 = vst [vmem:[%s19265_s24 + $0x40] sm:$0xff] %v9714_v56  ;;  %v9684_v61 = vadd.f32 %v9565_v8, %v19760_v39  ;;  %v19776_v39 = vld [vmem:[#allocation35_spill] sm:$0xff] }
 0xa66   : > { %v9717_v55 = vmax.f32 %v9685_v60, 0.0 }
 0xa67   : > { %v9716_v52 = vmax.f32 %v9684_v61, 0.0  ;;  %v14084_v17 = vpop.f32.mrb[134].mxu0 }
 0xa68   : > { %9749 = vst [vmem:[%s19265_s24 + $0x58] sm:$0xff] %v9717_v55  ;;  %v9687_v41 = vadd.f32 %v14084_v17, %v19761_v14  ;;  %v9575_v38 = vpop.f32.mrb[135].mxu0  ;;  %v19777_v14 = vld [vmem:[#allocation38_spill] sm:$0xff] }
 0xa69   : > { %9748 = vst [vmem:[%s19265_s24 + $0x50] sm:$0xff] %v9716_v52  ;;  %v9686_v54 = vadd.f32 %v9575_v38, %v19762_v7  ;;  %v19778_v7 = vld [vmem:[#allocation39_spill] sm:$0xff] }
 0xa6a   : > { %v9719_v50 = vmax.f32 %v9687_v41, 0.0 }
 0xa6b   : > { %v9718_v6 = vmax.f32 %v9686_v54, 0.0  ;;  %v14087_v25 = vpop.f32.mrb[136].mxu0 }
 0xa6c   : > { %9751 = vst [vmem:[%s19265_s24 + $0x68] sm:$0xff] %v9719_v50  ;;  %v9689_v18 = vadd.f32 %v14087_v25, %v19763_v31  ;;  %v9585_v27 = vpop.f32.mrb[137].mxu0  ;;  %v19779_v31 = vld [vmem:[#allocation51_spill] sm:$0xff] }
 0xa6d   : > { %9750 = vst [vmem:[%s19265_s24 + $0x60] sm:$0xff] %v9718_v6  ;;  %v9688_v30 = vadd.f32 %v9585_v27, %v19764_v58  ;;  %v19780_v58 = vld [vmem:[#allocation52_spill] sm:$0xff] }
 0xa6e   : > { %v9721_v19 = vmax.f32 %v9689_v18, 0.0 }
 0xa6f   : > { %v9720_v59 = vmax.f32 %v9688_v30, 0.0  ;;  %v14090_v33 = vpop.f32.mrb[138].mxu0 }
 0xa70   : > { %9753 = vst [vmem:[%s19265_s24 + $0x78] sm:$0xff] %v9721_v19  ;;  %v9691_v34 = vadd.f32 %v14090_v33, %v19765_v1  ;;  %v9595_v32 = vpop.f32.mrb[139].mxu0 }
 0xa71   : > { %9752 = vst [vmem:[%s19265_s24 + $0x70] sm:$0xff] %v9720_v59  ;;  %v9690_v48 = vadd.f32 %v9595_v32, %v19766_v44 }
 0xa72   : > { %v9723_v4 = vmax.f32 %v9691_v34, 0.0 }
 0xa73   : > { %v9722_v15 = vmax.f32 %v9690_v48, 0.0  ;;  %v14093_v11 = vpop.f32.mrb[140].mxu0 }
 0xa74   : > { %9755 = vst [vmem:[%s19265_s24 + $0x88] sm:$0xff] %v9723_v4  ;;  %v9693_v3 = vadd.f32 %v14093_v11, %v19767_v16  ;;  %v9605_v53 = vpop.f32.mrb[141].mxu0 }
 0xa75   : > { %9754 = vst [vmem:[%s19265_s24 + $0x80] sm:$0xff] %v9722_v15  ;;  %v9692_v36 = vadd.f32 %v9605_v53, %v19768_v51 }
 0xa76   : > { %v9725_v13 = vmax.f32 %v9693_v3, 0.0 }
 0xa77   : > { %v9724_v40 = vmax.f32 %v9692_v36, 0.0  ;;  %v14096_v47 = vpop.f32.mrb[142].mxu0 }
 0xa78   : > { %9757 = vst [vmem:[%s19265_s24 + $0x98] sm:$0xff] %v9725_v13  ;;  %v9695_v9 = vadd.f32 %v14096_v47, %v19769_v26  ;;  %v9615_v46 = vpop.f32.mrb[143].mxu0 }
 0xa79   : > { %9756 = vst [vmem:[%s19265_s24 + $0x90] sm:$0xff] %v9724_v40  ;;  %v9694_v23 = vadd.f32 %v9615_v46, %v19770_v20 }
 0xa7a   : > { %v9727_v45 = vmax.f32 %v9695_v9, 0.0 }
 0xa7b   : > { %v9726_v43 = vmax.f32 %v9694_v23, 0.0  ;;  %v14099_v12 = vpop.f32.mrb[144].mxu0 }
 0xa7c   : > { %9759 = vst [vmem:[%s19265_s24 + $0xa8] sm:$0xff] %v9727_v45  ;;  %v9697_v22 = vadd.f32 %v14099_v12, %v19771_v29  ;;  %v9625_v2 = vpop.f32.mrb[145].mxu0 }
 0xa7d   : > { %9758 = vst [vmem:[%s19265_s24 + $0xa0] sm:$0xff] %v9726_v43  ;;  %v9696_v28 = vadd.f32 %v9625_v2, %v19772_v49 }
 0xa7e   : > { %v9729_v42 = vmax.f32 %v9697_v22, 0.0 }
 0xa7f   : > { %v9728_v37 = vmax.f32 %v9696_v28, 0.0  ;;  %v14102_v5 = vpop.f32.mrb[146].mxu0 }
 0xa80   : > { %9761 = vst [vmem:[%s19265_s24 + $0xb8] sm:$0xff] %v9729_v42  ;;  %v9699_v35 = vadd.f32 %v14102_v5, %v19773_v62  ;;  %v9635_v21 = vpop.f32.mrb[147].mxu0 }
 0xa81   : > { %9760 = vst [vmem:[%s19265_s24 + $0xb0] sm:$0xff] %v9728_v37  ;;  %v9698_v10 = vadd.f32 %v9635_v21, %v19774_v57 }
 0xa82   : > { %v9731_v24 = vmax.f32 %v9699_v35, 0.0 }
 0xa83   : > { %v9730_v56 = vmax.f32 %v9698_v10, 0.0 }
 0xa84   : > { %9763 = vst [vmem:[%s19265_s24 + $0xc8] sm:$0xff] %v9731_v24 }
 0xa85   : > { %9762 = vst [vmem:[%s19265_s24 + $0xc0] sm:$0xff] %v9730_v56 }
 0xa8d   : > { %v14105_v63 = vpop.f32.mrb[148].mxu0 }
 0xa8e   : > { %v9701_v60 = vadd.f32 %v14105_v63, %v19775_v0  ;;  %v9645_v8 = vpop.f32.mrb[149].mxu0 }
 0xa8f   : > { %v9700_v61 = vadd.f32 %v9645_v8, %v19776_v39 }
 0xa90   : > { %v9733_v55 = vmax.f32 %v9701_v60, 0.0 }
 0xa91   : > { %v9732_v52 = vmax.f32 %v9700_v61, 0.0  ;;  %v14108_v17 = vpop.f32.mrb[150].mxu0 }
 0xa92   : > { %9765 = vst [vmem:[%s19265_s24 + $0xd8] sm:$0xff] %v9733_v55  ;;  %v9703_v41 = vadd.f32 %v14108_v17, %v19777_v14  ;;  %v9655_v38 = vpop.f32.mrb[151].mxu0 }
 0xa93   : > { %9764 = vst [vmem:[%s19265_s24 + $0xd0] sm:$0xff] %v9732_v52  ;;  %v9702_v54 = vadd.f32 %v9655_v38, %v19778_v7 }
 0xa94   : > { %v9735_v50 = vmax.f32 %v9703_v41, 0.0 }
 0xa95   : > { %v9734_v6 = vmax.f32 %v9702_v54, 0.0  ;;  %v14111_v25 = vpop.f32.mrb[152].mxu0 }
 0xa96   : > { %9767 = vst [vmem:[%s19265_s24 + $0xe8] sm:$0xff] %v9735_v50  ;;  %v9705_v18 = vadd.f32 %v14111_v25, %v19779_v31  ;;  %v9665_v27 = vpop.f32.mrb[153].mxu0 }
 0xa97   : > { %9766 = vst [vmem:[%s19265_s24 + $0xe0] sm:$0xff] %v9734_v6  ;;  %v9704_v30 = vadd.f32 %v9665_v27, %v19780_v58 }
 0xa98   : > { %v9737_v19 = vmax.f32 %v9705_v18, 0.0 }
 0xa99   : > { %v9736_v59 = vmax.f32 %v9704_v30, 0.0 }
 0xa9a   : > { %9769 = vst [vmem:[%s19265_s24 + $0xf8] sm:$0xff] %v9737_v19 }
 0xa9b   : > { %9768 = vst [vmem:[%s19265_s24 + $0xf0] sm:$0xff] %v9736_v59 }
 0xa9c   : > { %15876 = shalt.err (!%p15873_p3)
}
 0xa9d   : > { %s15877_s8 = scalar_lea.hbm %s19332_s30, 4096  ;;  %s15881_s11 = scalar_lea.hbm %s19384_s3, 8192 }
 0xa9e   : > { %p15878_p4 = scmp.ne.s32.totalorder %s19332_s30, %s15877_s8  ;;  %p15882_p9 = scmp.lt.u32.totalorder %s19332_s30, %s19384_s3 }
 0xa9f   : > { %p15883_p10 = scmp.lt.u32.totalorder %s15881_s11, %s15877_s8  ;;  %p15885_p12 = scmp.lt.u32.totalorder %s15877_s8, %s19332_s30 }
 0xaa0   : > { %p15879_p7 = pnand %p15878_p4, %p15989_p5 }
 0xaa1   : > { %p15884_p11 = por %p15883_p10, %p15882_p9 }
 0xaa2   : > { %p15880_p8 = pneg %p15879_p7 }
 0xaa3   : > { %p15886_p13 = por %p15885_p12, %p15884_p11 }
 0xaa5   : > { %p15887_p0 = pnand %p15886_p13, %p15880_p8 }
 0xaa7   : > { %15890 = shalt.err (!%p15887_p0)
}
 0xaa8   : > { %s15929_s19 = smov 128   ;;  %s15930_s20 = smov 8  }
 0xaa9   : > { %15784 = dma.vmem_to_hbm [thread:$0]  (%p15989_p5), %s19334_s27, 4096, %s19332_s30, %s19340_s16, %s15929_s19, %s15929_s19, %s15930_s20  }
 0xaaa PF: > { %p15790_p1 = scmp.ge.s32.totalorder %s15925_s15, 2  ;;  %s9799_s24 = sand.u32 1, %s15913_s12  }
 0xaab   : > { %s9800_s25 = scalar_lea.sflag [#allocation4], %s9799_s24 }
 0xaac   : > { %p15787_p2 = pnand %p15790_p1, %p15993_p6 }
 0xaae   : > { %15908 = dma.done.wait (!%p15787_p2), %s9800_s25, 4096  }
 0xaaf   : > { %15910 = vsyncadd (!%p15787_p2), %s9800_s25, 4294963200  ;;  %p13_p3 = scmp.ge.s32.totalorder %s15976_s18, 4   ;;  %s19781_s12 = smov %s15917_s13 }
 0xab0   : > { %s19782_s13 = smov %s15921_s14  ;;  %s19783_s14 = smov %s15987_s21 }
 0xab1   : > { %s19784_s15 = smov %s15976_s18  ;;  %15 = sbr.rel (!%p13_p3) target bundleno = 3 (0x3), region = 97 }
 0xab8   :  { %9805 = vsyncpa [#allocation4], 1 }
 0xab9   :  { %9807 = vsyncpa [#allocation4 + $0x1], 1 }

</bundles_post_ra>
